<compile_context>
chip_gen: v7x
topology: tpu7x:2x2x1
jax: 0.10.0
libtpu: 0.0.40
codegen_flags: <defaults>
</compile_context>

<pallas_src>
import functools

import jax
import jax.numpy as jnp
from jax.experimental import pallas as pl
from jax.experimental.pallas import tpu as pltpu


B_TILE = 8   # batch rows per grid step (one sublane group)


# ----------------------------------------------------------------------------
# Fused kernel: attention + pool (left & right) + demo_fc + classifier MLP
# ----------------------------------------------------------------------------
def _fused_head_kernel(xl_ref, xr_ref, demo_ref,
                       w_att_ref, b_att_ref,
                       wd_ref, bd_ref,
                       w1_ref, w1d_ref, b1_ref,
                       w2_ref, b2_ref,
                       w3_ref, b3_ref,
                       out_ref):
    f32 = jnp.float32
    bf16 = jnp.bfloat16

    w_att = w_att_ref[...]                # (1, C)  f32
    b_att = b_att_ref[...]                # (1, 1)  f32
    inv_hw = 1.0 / xl_ref.shape[1]

    def attention_pool(x_ref):
        # Features arrive as bf16 (halved DMA); upcast once so all VPU/XLU/EUP
        # work stays f32 (v5e VALU/EUP have no bf16).
        x = x_ref[...].astype(f32)                                  # (Bt, HW, C)
        # 1x1 conv == per-pixel dot with the (C,) weight: VPU mult + lane reduce.
        logits = jnp.sum(x * w_att, axis=-1, keepdims=True) + b_att  # (Bt, HW, 1)
        att = jax.nn.sigmoid(logits)
        # Attention-weighted global average pool over HW.
        return jnp.sum(x * att, axis=1) * inv_hw                    # (Bt, C) f32

    # concat(left, right) on the lane axis -> one merged 2048-wide matmul.
    pooled = jnp.concatenate(
        [attention_pool(xl_ref), attention_pool(xr_ref)], axis=-1)  # (Bt, 2C)

    # --- demo_fc: Linear(2, 32) + ReLU   (Dropout(0.6) = identity) ----------
    demo_feat = jnp.maximum(
        jnp.dot(demo_ref[...], wd_ref[...], preferred_element_type=f32)
        + bd_ref[...], 0.0)                                          # (Bt, 32)

    # --- classifier[0]: Linear(2080, 512) + ReLU -----------------------------
    h1 = jnp.maximum(
        jnp.dot(pooled.astype(bf16), w1_ref[...], preferred_element_type=f32)
        + jnp.dot(demo_feat.astype(bf16), w1d_ref[...], preferred_element_type=f32)
        + b1_ref[...], 0.0)                                          # (Bt, 512)

    # --- classifier[3]: Linear(512, 256) + ReLU ------------------------------
    h2 = jnp.maximum(
        jnp.dot(h1.astype(bf16), w2_ref[...], preferred_element_type=f32)
        + b2_ref[...], 0.0)                                          # (Bt, 256)

    # --- classifier[6]: Linear(256, num_classes), padded to 128 lanes -------
    out_ref[...] = (
        jnp.dot(h2.astype(bf16), w3_ref[...], preferred_element_type=f32)
        + b3_ref[...])                                               # (Bt, 128)


# ----------------------------------------------------------------------------
# Wrapper
# ----------------------------------------------------------------------------
@functools.partial(jax.jit, static_argnames=("num_classes",))
def densenet_model_forward(left_feat, right_feat, demo, params, *, num_classes=8):
    # left_feat / right_feat: (B, 1024, H, W) backbone outputs, demo: (B, 2)
    B, C, H, W = left_feat.shape
    HW = H * W
    B_pad = ((B + B_TILE - 1) // B_TILE) * B_TILE

    def prep(x):
        # NCHW -> (B, HW, C) with the bf16 cast fused into the transpose.
        x = jnp.transpose(x.reshape(B, C, HW), (0, 2, 1)).astype(jnp.bfloat16)
        if B_pad != B:
            x = jnp.pad(x, ((0, B_pad - B), (0, 0), (0, 0)))
        return x

    xl = prep(left_feat)
    xr = prep(right_feat)
    demo_p = jnp.pad(demo, ((0, B_pad - B), (0, 0))) if B_pad != B else demo

    n_pad = params["w3"].shape[-1]        # 128 (lane-dense padded output width)
    assert n_pad % 128 == 0 and num_classes <= n_pad

    grid = (B_pad // B_TILE,)

    def full(arr):
        # Whole-array VMEM-resident block (constant block index across the grid).
        return pl.BlockSpec(arr.shape, lambda i, _nd=arr.ndim: (0,) * _nd)

    weight_names = ("w_att", "b_att", "wd", "bd",
                    "w1", "w1d", "b1", "w2", "b2", "w3", "b3")
    weight_bytes = sum(params[n].size * params[n].dtype.itemsize
                       for n in weight_names)
    flops = B_pad * (8 * HW * C                      # two attention pools
                     + 2 * 2 * 32                    # demo_fc
                     + 2 * (2 * C) * 512 + 2 * 32 * 512
                     + 2 * 512 * 256
                     + 2 * 256 * n_pad)
    bytes_accessed = (2 * B_pad * HW * C * 2         # xl, xr (bf16)
                      + B_pad * 2 * 4                # demo
                      + weight_bytes
                      + B_pad * n_pad * 4)           # output

    out = pl.pallas_call(
        _fused_head_kernel,
        out_shape=jax.ShapeDtypeStruct((B_pad, n_pad), jnp.float32),
        grid=grid,
        in_specs=[
            pl.BlockSpec((B_TILE, HW, C), lambda i: (i, 0, 0)),   # xl
            pl.BlockSpec((B_TILE, HW, C), lambda i: (i, 0, 0)),   # xr
            pl.BlockSpec((B_TILE, 2), lambda i: (i, 0)),          # demo
            full(params["w_att"]), full(params["b_att"]),
            full(params["wd"]), full(params["bd"]),
            full(params["w1"]), full(params["w1d"]), full(params["b1"]),
            full(params["w2"]), full(params["b2"]),
            full(params["w3"]), full(params["b3"]),
        ],
        out_specs=pl.BlockSpec((B_TILE, n_pad), lambda i: (i, 0)),
        compiler_params=pltpu.CompilerParams(
            dimension_semantics=("parallel",)),
        cost_estimate=pl.CostEstimate(
            flops=flops, transcendentals=2 * B_pad * HW,
            bytes_accessed=bytes_accessed),
    )(xl, xr, demo_p,
      params["w_att"], params["b_att"],
      params["wd"], params["bd"],
      params["w1"], params["w1d"], params["b1"],
      params["w2"], params["b2"],
      params["w3"], params["b3"])

    return out[:B, :num_classes]


# ----------------------------------------------------------------------------
# Deterministic parameter construction (PyTorch-style uniform init)
# ----------------------------------------------------------------------------
def init_params(key, num_classes=8):
    C = 1024
    n_pad = 128   # pad final layer to a full 128-lane register
    ks = jax.random.split(key, 10)

    def u(k, shape, fan_in):
        bound = 1.0 / jnp.sqrt(float(fan_in))
        return jax.random.uniform(k, shape, jnp.float32, -bound, bound)

    # AttentionModule: Conv2d(1024, 1, kernel_size=1) -> weight stored as (1, C)
    w_att = u(ks[0], (1, C), C)
    b_att = u(ks[1], (1, 1), C)
    # demo_fc: Linear(2, 32) (stored transposed: x @ W)
    wd = u(ks[2], (2, 32), 2)
    bd = u(ks[3], (1, 32), 2)
    # classifier: Linear(2080, 512), rows [left | right | demo]
    w1_full = u(ks[4], (2 * C + 32, 512), 2 * C + 32)
    b1 = u(ks[5], (1, 512), 2 * C + 32)
    w2 = u(ks[6], (512, 256), 512)
    b2 = u(ks[7], (1, 256), 512)
    w3 = u(ks[8], (256, num_classes), 256)
    b3 = u(ks[9], (1, num_classes), 256)
    # Zero-pad the final layer to 128 output lanes (sliced back in the wrapper).
    w3p = jnp.zeros((256, n_pad), jnp.float32).at[:, :num_classes].set(w3)
    b3p = jnp.zeros((1, n_pad), jnp.float32).at[:, :num_classes].set(b3)

    bf16 = jnp.bfloat16
    return dict(
        w_att=w_att, b_att=b_att, wd=wd, bd=bd,
        w1=w1_full[:2 * C].astype(bf16),       # merged [left; right] rows
        w1d=w1_full[2 * C:].astype(bf16),      # demo rows
        b1=b1,
        w2=w2.astype(bf16), b2=b2,
        w3=w3p.astype(bf16), b3=b3p)


# ----------------------------------------------------------------------------
# Pure-JAX reference (same inference precision policy as the kernel)
# ----------------------------------------------------------------------------
def reference_forward(left_feat, right_feat, demo, p, num_classes=8):
    f32, bf16 = jnp.float32, jnp.bfloat16

    def att_pool(x):
        xb = x.astype(bf16).astype(f32)   # features shipped in bf16
        att = jax.nn.sigmoid(
            jnp.einsum("bchw,c->bhw", xb, p["w_att"][0]) + p["b_att"][0, 0])
        return jnp.mean(xb * att[:, None, :, :], axis=(2, 3))

    pooled = jnp.concatenate([att_pool(left_feat), att_pool(right_feat)], axis=-1)
    df = jnp.maximum(demo @ p["wd"] + p["bd"], 0.0)
    h1 = jnp.maximum(
        jnp.dot(pooled.astype(bf16), p["w1"], preferred_element_type=f32)
        + jnp.dot(df.astype(bf16), p["w1d"], preferred_element_type=f32)
        + p["b1"], 0.0)
    h2 = jnp.maximum(
        jnp.dot(h1.astype(bf16), p["w2"], preferred_element_type=f32)
        + p["b2"], 0.0)
    out = jnp.dot(h2.astype(bf16), p["w3"], preferred_element_type=f32) + p["b3"]
    return out[:, :num_classes]


if __name__ == "__main__":
    B, C, H, W = 2, 1024, 4, 4
    num_classes = 8

    key = jax.random.PRNGKey(0)
    k_l, k_r, k_d, k_p = jax.random.split(key, 4)
    left_feat = jax.random.normal(k_l, (B, C, H, W), jnp.float32)
    right_feat = jax.random.normal(k_r, (B, C, H, W), jnp.float32)
    demo = jax.random.normal(k_d, (B, 2), jnp.float32)
    params = init_params(k_p, num_classes)

    out = densenet_model_forward(left_feat, right_feat, demo, params,
                                 num_classes=num_classes)
    out = jax.block_until_ready(out)
    assert out.shape == (B, num_classes)

    ref = reference_forward(left_feat, right_feat, demo, params, num_classes)
    assert jnp.allclose(out, ref, atol=5e-3, rtol=5e-3), (out, ref)

    print("KERNEL_OK")
</pallas_src>

<mosaic_0001>
module attributes {stable_mosaic.version = 11 : i64} {
  func.func @_fused_head_kernel(%arg0: i32, %arg1: memref<8x16x1024xbf16, #tpu.memory_space<vmem>>, %arg2: memref<8x16x1024xbf16, #tpu.memory_space<vmem>>, %arg3: memref<8x2xf32, #tpu.memory_space<vmem>>, %arg4: memref<1x1024xf32, #tpu.memory_space<vmem>>, %arg5: memref<1x1xf32, #tpu.memory_space<vmem>>, %arg6: memref<2x32xf32, #tpu.memory_space<vmem>>, %arg7: memref<1x32xf32, #tpu.memory_space<vmem>>, %arg8: memref<2048x512xbf16, #tpu.memory_space<vmem>>, %arg9: memref<32x512xbf16, #tpu.memory_space<vmem>>, %arg10: memref<1x512xf32, #tpu.memory_space<vmem>>, %arg11: memref<512x256xbf16, #tpu.memory_space<vmem>>, %arg12: memref<1x256xf32, #tpu.memory_space<vmem>>, %arg13: memref<256x128xbf16, #tpu.memory_space<vmem>>, %arg14: memref<1x128xf32, #tpu.memory_space<vmem>>, %arg15: memref<8x128xf32, #tpu.memory_space<vmem>>) attributes {dimension_semantics = [#tpu.dimension_semantics<parallel>], iteration_bounds = array<i64: 1>, scalar_prefetch = 0 : i64, scratch_operands = 0 : i64, tpu.core_type = #tpu.core_type<tc>, window_params = [{transform_indices = @transform_0, window_bounds = array<i64: 8, 16, 1024>}, {transform_indices = @transform_1, window_bounds = array<i64: 8, 16, 1024>}, {transform_indices = @transform_2, window_bounds = array<i64: 8, 2>}, {pipeline_mode = #tpu.pipeline_mode<synchronous>, transform_indices = @transform_3, window_bounds = array<i64: 1, 1024>}, {pipeline_mode = #tpu.pipeline_mode<synchronous>, transform_indices = @transform_4, window_bounds = array<i64: 1, 1>}, {pipeline_mode = #tpu.pipeline_mode<synchronous>, transform_indices = @transform_5, window_bounds = array<i64: 2, 32>}, {pipeline_mode = #tpu.pipeline_mode<synchronous>, transform_indices = @transform_6, window_bounds = array<i64: 1, 32>}, {pipeline_mode = #tpu.pipeline_mode<synchronous>, transform_indices = @transform_7, window_bounds = array<i64: 2048, 512>}, {pipeline_mode = #tpu.pipeline_mode<synchronous>, transform_indices = @transform_8, window_bounds = array<i64: 32, 512>}, {pipeline_mode = #tpu.pipeline_mode<synchronous>, transform_indices = @transform_9, window_bounds = array<i64: 1, 512>}, {pipeline_mode = #tpu.pipeline_mode<synchronous>, transform_indices = @transform_10, window_bounds = array<i64: 512, 256>}, {pipeline_mode = #tpu.pipeline_mode<synchronous>, transform_indices = @transform_11, window_bounds = array<i64: 1, 256>}, {pipeline_mode = #tpu.pipeline_mode<synchronous>, transform_indices = @transform_12, window_bounds = array<i64: 256, 128>}, {pipeline_mode = #tpu.pipeline_mode<synchronous>, transform_indices = @transform_13, window_bounds = array<i64: 1, 128>}, {transform_indices = @transform_14, window_bounds = array<i64: 8, 128>}]} {
    %c0 = arith.constant 0 : index
    %c0_0 = arith.constant 0 : index
    %0 = vector.load %arg4[%c0, %c0_0] : memref<1x1024xf32, #tpu.memory_space<vmem>>, vector<1x1024xf32>
    %c0_1 = arith.constant 0 : index
    %c0_2 = arith.constant 0 : index
    %1 = vector.load %arg5[%c0_1, %c0_2] : memref<1x1xf32, #tpu.memory_space<vmem>>, vector<1x1xf32>
    %c0_3 = arith.constant 0 : index
    %c0_4 = arith.constant 0 : index
    %c0_5 = arith.constant 0 : index
    %2 = vector.load %arg1[%c0_3, %c0_4, %c0_5] : memref<8x16x1024xbf16, #tpu.memory_space<vmem>>, vector<8x16x1024xbf16>
    %3 = arith.extf %2 : vector<8x16x1024xbf16> to vector<8x16x1024xf32>
    %4 = vector.shape_cast %0 : vector<1x1024xf32> to vector<1x1x1024xf32>
    %5 = vector.broadcast %4 : vector<1x1x1024xf32> to vector<8x16x1024xf32>
    %6 = arith.mulf %3, %5 : vector<8x16x1024xf32>
    %cst = arith.constant dense<0.000000e+00> : vector<8x16xf32>
    %7 = vector.multi_reduction <add>, %6, %cst [2] : vector<8x16x1024xf32> to vector<8x16xf32>
    %8 = vector.shape_cast %7 : vector<8x16xf32> to vector<8x16x1xf32>
    %9 = vector.shape_cast %1 : vector<1x1xf32> to vector<1x1x1xf32>
    %10 = vector.broadcast %9 : vector<1x1x1xf32> to vector<8x16x1xf32>
    %11 = arith.addf %8, %10 : vector<8x16x1xf32>
    %12 = arith.negf %11 : vector<8x16x1xf32>
    %13 = math.exp %12 : vector<8x16x1xf32>
    %cst_6 = arith.constant 1.000000e+00 : f32
    %14 = vector.broadcast %cst_6 : f32 to vector<8x16x1xf32>
    %15 = arith.addf %14, %13 : vector<8x16x1xf32>
    %16 = arith.divf %14, %15 : vector<8x16x1xf32>
    %17 = vector.broadcast %16 : vector<8x16x1xf32> to vector<8x16x1024xf32>
    %18 = arith.mulf %3, %17 : vector<8x16x1024xf32>
    %cst_7 = arith.constant dense<0.000000e+00> : vector<8x1024xf32>
    %19 = vector.multi_reduction <add>, %18, %cst_7 [1] : vector<8x16x1024xf32> to vector<8x1024xf32>
    %cst_8 = arith.constant 6.250000e-02 : f32
    %20 = vector.broadcast %cst_8 : f32 to vector<8x1024xf32>
    %21 = arith.mulf %19, %20 : vector<8x1024xf32>
    %c0_9 = arith.constant 0 : index
    %c0_10 = arith.constant 0 : index
    %c0_11 = arith.constant 0 : index
    %22 = vector.load %arg2[%c0_9, %c0_10, %c0_11] : memref<8x16x1024xbf16, #tpu.memory_space<vmem>>, vector<8x16x1024xbf16>
    %23 = arith.extf %22 : vector<8x16x1024xbf16> to vector<8x16x1024xf32>
    %24 = vector.shape_cast %0 : vector<1x1024xf32> to vector<1x1x1024xf32>
    %25 = vector.broadcast %24 : vector<1x1x1024xf32> to vector<8x16x1024xf32>
    %26 = arith.mulf %23, %25 : vector<8x16x1024xf32>
    %cst_12 = arith.constant dense<0.000000e+00> : vector<8x16xf32>
    %27 = vector.multi_reduction <add>, %26, %cst_12 [2] : vector<8x16x1024xf32> to vector<8x16xf32>
    %28 = vector.shape_cast %27 : vector<8x16xf32> to vector<8x16x1xf32>
    %29 = vector.shape_cast %1 : vector<1x1xf32> to vector<1x1x1xf32>
    %30 = vector.broadcast %29 : vector<1x1x1xf32> to vector<8x16x1xf32>
    %31 = arith.addf %28, %30 : vector<8x16x1xf32>
    %32 = arith.negf %31 : vector<8x16x1xf32>
    %33 = math.exp %32 : vector<8x16x1xf32>
    %cst_13 = arith.constant 1.000000e+00 : f32
    %34 = vector.broadcast %cst_13 : f32 to vector<8x16x1xf32>
    %35 = arith.addf %34, %33 : vector<8x16x1xf32>
    %36 = arith.divf %34, %35 : vector<8x16x1xf32>
    %37 = vector.broadcast %36 : vector<8x16x1xf32> to vector<8x16x1024xf32>
    %38 = arith.mulf %23, %37 : vector<8x16x1024xf32>
    %cst_14 = arith.constant dense<0.000000e+00> : vector<8x1024xf32>
    %39 = vector.multi_reduction <add>, %38, %cst_14 [1] : vector<8x16x1024xf32> to vector<8x1024xf32>
    %cst_15 = arith.constant 6.250000e-02 : f32
    %40 = vector.broadcast %cst_15 : f32 to vector<8x1024xf32>
    %41 = arith.mulf %39, %40 : vector<8x1024xf32>
    %42 = tpu.concatenate %21, %41 in 1 : vector<8x1024xf32>, vector<8x1024xf32> -> vector<8x2048xf32>
    %c0_16 = arith.constant 0 : index
    %c0_17 = arith.constant 0 : index
    %43 = vector.load %arg3[%c0_16, %c0_17] : memref<8x2xf32, #tpu.memory_space<vmem>>, vector<8x2xf32>
    %c0_18 = arith.constant 0 : index
    %c0_19 = arith.constant 0 : index
    %44 = vector.load %arg6[%c0_18, %c0_19] : memref<2x32xf32, #tpu.memory_space<vmem>>, vector<2x32xf32>
    %cst_20 = arith.constant dense<0.000000e+00> : vector<8x32xf32>
    %45 = tpu.matmul %43, %44, %cst_20 {dimension_numbers = #tpu.dot_dimension_numbers<[1], [0], [0], [1], [0, 0, 1, 1], [], []>} : vector<8x2xf32>, vector<2x32xf32>, vector<8x32xf32> -> vector<8x32xf32>
    %c0_21 = arith.constant 0 : index
    %c0_22 = arith.constant 0 : index
    %46 = vector.load %arg7[%c0_21, %c0_22] : memref<1x32xf32, #tpu.memory_space<vmem>>, vector<1x32xf32>
    %47 = vector.broadcast %46 : vector<1x32xf32> to vector<8x32xf32>
    %48 = arith.addf %45, %47 : vector<8x32xf32>
    %cst_23 = arith.constant 0.000000e+00 : f32
    %49 = vector.broadcast %cst_23 : f32 to vector<8x32xf32>
    %50 = arith.maximumf %48, %49 : vector<8x32xf32>
    %51 = arith.truncf %42 : vector<8x2048xf32> to vector<8x2048xbf16>
    %c0_24 = arith.constant 0 : index
    %c0_25 = arith.constant 0 : index
    %52 = vector.load %arg8[%c0_24, %c0_25] : memref<2048x512xbf16, #tpu.memory_space<vmem>>, vector<2048x512xbf16>
    %cst_26 = arith.constant dense<0.000000e+00> : vector<8x512xf32>
    %53 = tpu.matmul %51, %52, %cst_26 {dimension_numbers = #tpu.dot_dimension_numbers<[1], [0], [0], [1], [0, 0, 1, 1], [], []>} : vector<8x2048xbf16>, vector<2048x512xbf16>, vector<8x512xf32> -> vector<8x512xf32>
    %54 = arith.truncf %50 : vector<8x32xf32> to vector<8x32xbf16>
    %c0_27 = arith.constant 0 : index
    %c0_28 = arith.constant 0 : index
    %55 = vector.load %arg9[%c0_27, %c0_28] : memref<32x512xbf16, #tpu.memory_space<vmem>>, vector<32x512xbf16>
    %cst_29 = arith.constant dense<0.000000e+00> : vector<8x512xf32>
    %56 = tpu.matmul %54, %55, %cst_29 {dimension_numbers = #tpu.dot_dimension_numbers<[1], [0], [0], [1], [0, 0, 1, 1], [], []>} : vector<8x32xbf16>, vector<32x512xbf16>, vector<8x512xf32> -> vector<8x512xf32>
    %57 = arith.addf %53, %56 : vector<8x512xf32>
    %c0_30 = arith.constant 0 : index
    %c0_31 = arith.constant 0 : index
    %58 = vector.load %arg10[%c0_30, %c0_31] : memref<1x512xf32, #tpu.memory_space<vmem>>, vector<1x512xf32>
    %59 = vector.broadcast %58 : vector<1x512xf32> to vector<8x512xf32>
    %60 = arith.addf %57, %59 : vector<8x512xf32>
    %cst_32 = arith.constant 0.000000e+00 : f32
    %61 = vector.broadcast %cst_32 : f32 to vector<8x512xf32>
    %62 = arith.maximumf %60, %61 : vector<8x512xf32>
    %63 = arith.truncf %62 : vector<8x512xf32> to vector<8x512xbf16>
    %c0_33 = arith.constant 0 : index
    %c0_34 = arith.constant 0 : index
    %64 = vector.load %arg11[%c0_33, %c0_34] : memref<512x256xbf16, #tpu.memory_space<vmem>>, vector<512x256xbf16>
    %cst_35 = arith.constant dense<0.000000e+00> : vector<8x256xf32>
    %65 = tpu.matmul %63, %64, %cst_35 {dimension_numbers = #tpu.dot_dimension_numbers<[1], [0], [0], [1], [0, 0, 1, 1], [], []>} : vector<8x512xbf16>, vector<512x256xbf16>, vector<8x256xf32> -> vector<8x256xf32>
    %c0_36 = arith.constant 0 : index
    %c0_37 = arith.constant 0 : index
    %66 = vector.load %arg12[%c0_36, %c0_37] : memref<1x256xf32, #tpu.memory_space<vmem>>, vector<1x256xf32>
    %67 = vector.broadcast %66 : vector<1x256xf32> to vector<8x256xf32>
    %68 = arith.addf %65, %67 : vector<8x256xf32>
    %cst_38 = arith.constant 0.000000e+00 : f32
    %69 = vector.broadcast %cst_38 : f32 to vector<8x256xf32>
    %70 = arith.maximumf %68, %69 : vector<8x256xf32>
    %71 = arith.truncf %70 : vector<8x256xf32> to vector<8x256xbf16>
    %c0_39 = arith.constant 0 : index
    %c0_40 = arith.constant 0 : index
    %72 = vector.load %arg13[%c0_39, %c0_40] : memref<256x128xbf16, #tpu.memory_space<vmem>>, vector<256x128xbf16>
    %cst_41 = arith.constant dense<0.000000e+00> : vector<8x128xf32>
    %73 = tpu.matmul %71, %72, %cst_41 {dimension_numbers = #tpu.dot_dimension_numbers<[1], [0], [0], [1], [0, 0, 1, 1], [], []>} : vector<8x256xbf16>, vector<256x128xbf16>, vector<8x128xf32> -> vector<8x128xf32>
    %c0_42 = arith.constant 0 : index
    %c0_43 = arith.constant 0 : index
    %74 = vector.load %arg14[%c0_42, %c0_43] : memref<1x128xf32, #tpu.memory_space<vmem>>, vector<1x128xf32>
    %75 = vector.broadcast %74 : vector<1x128xf32> to vector<8x128xf32>
    %76 = arith.addf %73, %75 : vector<8x128xf32>
    %c0_44 = arith.constant 0 : index
    %c0_45 = arith.constant 0 : index
    %77 = vector.load %arg15[%c0_44, %c0_45] : memref<8x128xf32, #tpu.memory_space<vmem>>, vector<8x128xf32>
    tpu.vector_store %arg15[%c0_44, %c0_45], %76 {strides = array<i32>} : memref<8x128xf32, #tpu.memory_space<vmem>>, vector<8x128xf32>,
    return
  }
  func.func @transform_0(%arg0: i32) -> (i32, i32, i32) {
    %c0_i32 = arith.constant 0 : i32
    %c0_i32_0 = arith.constant 0 : i32
    %c0_i32_1 = arith.constant 0 : i32
    return %arg0, %c0_i32, %c0_i32_0 : i32, i32, i32
  }
  func.func @transform_1(%arg0: i32) -> (i32, i32, i32) {
    %c0_i32 = arith.constant 0 : i32
    %c0_i32_0 = arith.constant 0 : i32
    %c0_i32_1 = arith.constant 0 : i32
    return %arg0, %c0_i32, %c0_i32_0 : i32, i32, i32
  }
  func.func @transform_2(%arg0: i32) -> (i32, i32) {
    %c0_i32 = arith.constant 0 : i32
    %c0_i32_0 = arith.constant 0 : i32
    return %arg0, %c0_i32 : i32, i32
  }
  func.func @transform_3(%arg0: i32) -> (i32, i32) {
    %c0_i32 = arith.constant 0 : i32
    %c0_i32_0 = arith.constant 0 : i32
    %c0_i32_1 = arith.constant 0 : i32
    return %c0_i32, %c0_i32_0 : i32, i32
  }
  func.func @transform_4(%arg0: i32) -> (i32, i32) {
    %c0_i32 = arith.constant 0 : i32
    %c0_i32_0 = arith.constant 0 : i32
    %c0_i32_1 = arith.constant 0 : i32
    return %c0_i32, %c0_i32_0 : i32, i32
  }
  func.func @transform_5(%arg0: i32) -> (i32, i32) {
    %c0_i32 = arith.constant 0 : i32
    %c0_i32_0 = arith.constant 0 : i32
    %c0_i32_1 = arith.constant 0 : i32
    return %c0_i32, %c0_i32_0 : i32, i32
  }
  func.func @transform_6(%arg0: i32) -> (i32, i32) {
    %c0_i32 = arith.constant 0 : i32
    %c0_i32_0 = arith.constant 0 : i32
    %c0_i32_1 = arith.constant 0 : i32
    return %c0_i32, %c0_i32_0 : i32, i32
  }
  func.func @transform_7(%arg0: i32) -> (i32, i32) {
    %c0_i32 = arith.constant 0 : i32
    %c0_i32_0 = arith.constant 0 : i32
    %c0_i32_1 = arith.constant 0 : i32
    return %c0_i32, %c0_i32_0 : i32, i32
  }
  func.func @transform_8(%arg0: i32) -> (i32, i32) {
    %c0_i32 = arith.constant 0 : i32
    %c0_i32_0 = arith.constant 0 : i32
    %c0_i32_1 = arith.constant 0 : i32
    return %c0_i32, %c0_i32_0 : i32, i32
  }
  func.func @transform_9(%arg0: i32) -> (i32, i32) {
    %c0_i32 = arith.constant 0 : i32
    %c0_i32_0 = arith.constant 0 : i32
    %c0_i32_1 = arith.constant 0 : i32
    return %c0_i32, %c0_i32_0 : i32, i32
  }
  func.func @transform_10(%arg0: i32) -> (i32, i32) {
    %c0_i32 = arith.constant 0 : i32
    %c0_i32_0 = arith.constant 0 : i32
    %c0_i32_1 = arith.constant 0 : i32
    return %c0_i32, %c0_i32_0 : i32, i32
  }
  func.func @transform_11(%arg0: i32) -> (i32, i32) {
    %c0_i32 = arith.constant 0 : i32
    %c0_i32_0 = arith.constant 0 : i32
    %c0_i32_1 = arith.constant 0 : i32
    return %c0_i32, %c0_i32_0 : i32, i32
  }
  func.func @transform_12(%arg0: i32) -> (i32, i32) {
    %c0_i32 = arith.constant 0 : i32
    %c0_i32_0 = arith.constant 0 : i32
    %c0_i32_1 = arith.constant 0 : i32
    return %c0_i32, %c0_i32_0 : i32, i32
  }
  func.func @transform_13(%arg0: i32) -> (i32, i32) {
    %c0_i32 = arith.constant 0 : i32
    %c0_i32_0 = arith.constant 0 : i32
    %c0_i32_1 = arith.constant 0 : i32
    return %c0_i32, %c0_i32_0 : i32, i32
  }
  func.func @transform_14(%arg0: i32) -> (i32, i32) {
    %c0_i32 = arith.constant 0 : i32
    %c0_i32_0 = arith.constant 0 : i32
    return %arg0, %c0_i32 : i32, i32
  }
}

</mosaic_0001>

<bundles_post_ra>
// kernel: densenet_model_forward.1
= control target key start
LH: loop header
LB: loop body
LE: loop exit
PB: predicated region body
PF: predicated region fallthrough
CT: control target
= control target key end

     0   :  { %s13379_s0 = inlined_call_operand.vmem [shape: bf16[8,16,1024], index: 0, kind: input, shape index: {}]   ;;  %s13380_s1 = inlined_call_operand.vmem [shape: bf16[8,16,1024], index: 1, kind: input, shape index: {}]   ;;  %s13381_s2 = inlined_call_operand.vmem [shape: f32[8,2], index: 2, kind: input, shape index: {}]   ;;  %s13382_s3 = inlined_call_operand.hbm [shape: f32[1,1024], index: 3, kind: input, shape index: {}]   ;;  %s13383_s4 = inlined_call_operand.<no memory space> [shape: f32[1,1], index: 4, kind: input, shape index: {}]   ;;  %s13384_s5 = inlined_call_operand.hbm [shape: f32[2,32], index: 5, kind: input, shape index: {}]   ;;  %s13385_s6 = inlined_call_operand.hbm [shape: f32[1,32], index: 6, kind: input, shape index: {}]   ;;  %s13386_s7 = inlined_call_operand.hbm [shape: bf16[2048,512], index: 7, kind: input, shape index: {}]   ;;  %s13387_s8 = inlined_call_operand.hbm [shape: bf16[32,512], index: 8, kind: input, shape index: {}]   ;;  %s13388_s9 = inlined_call_operand.hbm [shape: f32[1,512], index: 9, kind: input, shape index: {}]   ;;  %s13389_s10 = inlined_call_operand.hbm [shape: bf16[512,256], index: 10, kind: input, shape index: {}]   ;;  %s13390_s11 = inlined_call_operand.hbm [shape: f32[1,256], index: 11, kind: input, shape index: {}]   ;;  %s13391_s12 = inlined_call_operand.hbm [shape: bf16[256,128], index: 12, kind: input, shape index: {}]   ;;  %s13392_s13 = inlined_call_operand.hbm [shape: f32[1,128], index: 13, kind: input, shape index: {}]   ;;  %s13393_s14 = inlined_call_operand.vmem [shape: f32[8,128], index: 14, kind: output, shape index: {}]  }
   0x1   :  { %v19_v0 = vstv %s13383_s4 }
   0x2   :  { %20 = vst [vmem:[#allocation2] sm:$0x1] %v19_v0 }
   0x3   :  { %21 = vsyncpa [#allocation4], 0 }
   0x4   :  { %22 = vsyncpa [#allocation6], 0 }
   0x5   :  { %23 = vsyncpa [#allocation9], 0 }
   0x6   :  { %24 = vsyncpa [#allocation12], 0 }
   0x7   :  { %25 = vsyncpa [#allocation15], 0 }
   0x8   :  { %26 = vsyncpa [#allocation18], 0  ;;  %s9695_s15 = smov [#allocation5]   ;;  %s9696_s17 = smov [#allocation8]  }
   0x9   :  { %s51_s16 = sshll.u32 %s9695_s15, 4  ;;  %s70_s18 = sshll.u32 %s9696_s17, 4  ;;  %s52_s16 = int_to_ptr.vmem [resolvable:$true] %s51_s16  ;;  %s9792_s18 = int_to_ptr.vmem [resolvable:$true] %s70_s18 }
   0xa   :  { %s9463_s21 = scalar_lea.hbm %s13384_s5, 32 }
   0xb   :  { %p9464_p0 = scmp.ne.s32.totalorder %s13384_s5, %s9463_s21  ;;  %p9467_p1 = scmp.lt.u32.totalorder %s9463_s21, %s13384_s5 }
   0xd   :  { %p9469_p2 = pnand %p9467_p1, %p9464_p0 }
   0xf   :  { %9472 = shalt.err (!%p9469_p2)
}
  0x10   :  { %s9473_s25 = scalar_lea.vmem %s52_s16, 32  ;;  %p9478_p4 = scmp.lt.s32.totalorder %s52_s16, %s52_s16 }
  0x11   :  { %p9474_p3 = scmp.ne.s32.totalorder %s52_s16, %s9473_s25  ;;  %p9479_p5 = scmp.lt.s32.totalorder %s9473_s25, %s9473_s25 }
  0x13   :  { %p9480_p6 = por %p9479_p5, %p9478_p4 }
  0x15   :  { %p9481_p7 = pnand %p9480_p6, %p9474_p3 }
  0x17   :  { %9484 = shalt.err (!%p9481_p7)
}
  0x18   :  { %54 = dma.hbm_to_vmem [thread:$0]  %s13384_s5, 32, %s52_s16, [#allocation6]  }
  0x19   :  { %s9485_s30 = scalar_lea.hbm %s13386_s7, 65536 }
  0x1a   :  { %p9486_p8 = scmp.ne.s32.totalorder %s13386_s7, %s9485_s30  ;;  %p9489_p9 = scmp.lt.u32.totalorder %s9485_s30, %s13386_s7 }
  0x1c   :  { %p9491_p10 = pnand %p9489_p9, %p9486_p8 }
  0x1e   :  { %9494 = shalt.err (!%p9491_p10)
}
  0x1f   :  { %s9495_s21 = scalar_lea.vmem %s9792_s18, 65536  ;;  %p9500_p12 = scmp.lt.s32.totalorder %s9792_s18, %s9792_s18 }
  0x20   :  { %p9496_p11 = scmp.ne.s32.totalorder %s9792_s18, %s9495_s21  ;;  %p9501_p13 = scmp.lt.s32.totalorder %s9495_s21, %s9495_s21 }
  0x22   :  { %p9502_p0 = por %p9501_p13, %p9500_p12 }
  0x24   :  { %p9503_p1 = pnand %p9502_p0, %p9496_p11 }
  0x26   :  { %9506 = shalt.err (!%p9503_p1)
}
  0x27   :  { %s9697_s5 = smov 256   ;;  %s9698_s16 = smov 16  }
  0x28   :  { %76 = dma.hbm_to_vmem [thread:$0]  %s13386_s7, 65536, %s9792_s18, [#allocation9], %s9697_s5, %s9697_s5, %s9698_s16  }
  0x29   :  { %s9699_s23 = smov [#allocation11]   ;;  %s9700_s25 = smov [#allocation14]  }
  0x2a   :  { %s95_s24 = sshll.u32 %s9699_s23, 4  ;;  %s117_s26 = sshll.u32 %s9700_s25, 4  ;;  %s96_s24 = int_to_ptr.vmem [resolvable:$true] %s95_s24  ;;  %s118_s26 = int_to_ptr.vmem [resolvable:$true] %s117_s26 }
  0x2b   :  { %s9507_s29 = scalar_lea.hbm %s13388_s9, 64 }
  0x2c   :  { %p9508_p2 = scmp.ne.s32.totalorder %s13388_s9, %s9507_s29  ;;  %p9511_p3 = scmp.lt.u32.totalorder %s9507_s29, %s13388_s9 }
  0x2e   :  { %p9513_p4 = pnand %p9511_p3, %p9508_p2 }
  0x30   :  { %9516 = shalt.err (!%p9513_p4)
}
  0x31   :  { %s9517_s7 = scalar_lea.vmem %s96_s24, 64  ;;  %p9522_p6 = scmp.lt.s32.totalorder %s96_s24, %s96_s24 }
  0x32   :  { %p9518_p5 = scmp.ne.s32.totalorder %s96_s24, %s9517_s7  ;;  %p9523_p7 = scmp.lt.s32.totalorder %s9517_s7, %s9517_s7 }
  0x34   :  { %p9524_p8 = por %p9523_p7, %p9522_p6 }
  0x36   :  { %p9525_p9 = pnand %p9524_p8, %p9518_p5 }
  0x38   :  { %9528 = shalt.err (!%p9525_p9)
}
  0x39   :  { %98 = dma.hbm_to_vmem [thread:$0]  %s13388_s9, 64, %s96_s24, [#allocation12]  }
  0x3a   :  { %s9529_s4 = scalar_lea.hbm %s13390_s11, 32 }
  0x3b   :  { %p9530_p10 = scmp.ne.s32.totalorder %s13390_s11, %s9529_s4  ;;  %p9533_p11 = scmp.lt.u32.totalorder %s9529_s4, %s13390_s11 }
  0x3d   :  { %p9535_p12 = pnand %p9533_p11, %p9530_p10 }
  0x3f   :  { %9538 = shalt.err (!%p9535_p12)
}
  0x40   :  { %s9539_s29 = scalar_lea.vmem %s118_s26, 32  ;;  %p9544_p0 = scmp.lt.s32.totalorder %s118_s26, %s118_s26 }
  0x41   :  { %p9540_p13 = scmp.ne.s32.totalorder %s118_s26, %s9539_s29  ;;  %p9545_p1 = scmp.lt.s32.totalorder %s9539_s29, %s9539_s29 }
  0x43   :  { %p9546_p2 = por %p9545_p1, %p9544_p0 }
  0x45   :  { %p9547_p3 = pnand %p9546_p2, %p9540_p13 }
  0x47   :  { %9550 = shalt.err (!%p9547_p3)
}
  0x48   :  { %120 = dma.hbm_to_vmem [thread:$0]  %s13390_s11, 32, %s118_s26, [#allocation15]  }
  0x49   :  { %s9701_s30 = smov [#allocation3]   ;;  %s9702_s17 = smov [#allocation7]  }
  0x4a   :  { %s39_s15 = sshll.u32 %s9701_s30, 4  ;;  %s61_s19 = sshll.u32 %s9702_s17, 4  ;;  %s40_s15 = int_to_ptr.vmem [resolvable:$true] %s39_s15  ;;  %s62_s19 = int_to_ptr.vmem [resolvable:$true] %s61_s19 }
  0x4b   :  { %s9551_s20 = scalar_lea.hbm %s13382_s3, 128 }
  0x4c   :  { %p9552_p4 = scmp.ne.s32.totalorder %s13382_s3, %s9551_s20  ;;  %p9555_p5 = scmp.lt.u32.totalorder %s9551_s20, %s13382_s3 }
  0x4e   :  { %p9557_p6 = pnand %p9555_p5, %p9552_p4 }
  0x50   :  { %9560 = shalt.err (!%p9557_p6)
}
  0x51   :  { %s9561_s11 = scalar_lea.vmem %s40_s15, 128  ;;  %p9566_p8 = scmp.lt.s32.totalorder %s40_s15, %s40_s15 }
  0x52   :  { %p9562_p7 = scmp.ne.s32.totalorder %s40_s15, %s9561_s11  ;;  %p9567_p9 = scmp.lt.s32.totalorder %s9561_s11, %s9561_s11 }
  0x54   :  { %p9568_p10 = por %p9567_p9, %p9566_p8 }
  0x56   :  { %p9569_p11 = pnand %p9568_p10, %p9562_p7 }
  0x58   :  { %9572 = shalt.err (!%p9569_p11)
}
  0x59   :  { %42 = dma.hbm_to_vmem [thread:$0]  %s13382_s3, 128, %s40_s15, [#allocation4]  }
  0x5a   :  { %s9573_s29 = scalar_lea.hbm %s13385_s6, 16 }
  0x5b   :  { %p9574_p12 = scmp.ne.s32.totalorder %s13385_s6, %s9573_s29  ;;  %p9577_p13 = scmp.lt.u32.totalorder %s9573_s29, %s13385_s6 }
  0x5d   :  { %p9579_p0 = pnand %p9577_p13, %p9574_p12 }
  0x5f   :  { %9582 = shalt.err (!%p9579_p0)
}
  0x60   :  { %s9583_s7 = scalar_lea.vmem %s62_s19, 16  ;;  %s9587_s18 = scalar_lea.vmem %s62_s19, 32 }
  0x61   :  { %p9584_p1 = scmp.ne.s32.totalorder %s62_s19, %s9583_s7  ;;  %p9588_p2 = scmp.lt.s32.totalorder %s62_s19, %s62_s19 }
  0x62   :  { %p9589_p3 = scmp.lt.s32.totalorder %s9587_s18, %s9583_s7 }
  0x64   :  { %p9590_p4 = por %p9589_p3, %p9588_p2 }
  0x66   :  { %p9591_p5 = pnand %p9590_p4, %p9584_p1 }
  0x68   :  { %9594 = shalt.err (!%p9591_p5)
}
  0x69   :  { %64 = dma.hbm_to_vmem [thread:$0]  %s13385_s6, 16, %s62_s19, [#allocation6]  }
  0x6a   :  { %s9703_s20 = smov [#allocation10]   ;;  %s9704_s22 = smov [#allocation13]  }
  0x6b   :  { %s82_s21 = sshll.u32 %s9703_s20, 4  ;;  %s104_s4 = sshll.u32 %s9704_s22, 4  ;;  %s83_s21 = int_to_ptr.vmem [resolvable:$true] %s82_s21  ;;  %s9874_s4 = int_to_ptr.vmem [resolvable:$true] %s104_s4 }
  0x6c   :  { %s9595_s26 = scalar_lea.hbm %s13387_s8, 1024 }
  0x6d   :  { %p9596_p6 = scmp.ne.s32.totalorder %s13387_s8, %s9595_s26  ;;  %p9599_p7 = scmp.lt.u32.totalorder %s9595_s26, %s13387_s8 }
  0x6f   :  { %p9601_p8 = pnand %p9599_p7, %p9596_p6 }
  0x71   :  { %9604 = shalt.err (!%p9601_p8)
}
  0x72   :  { %s9605_s6 = scalar_lea.vmem %s83_s21, 1024  ;;  %p9610_p10 = scmp.lt.s32.totalorder %s83_s21, %s83_s21 }
  0x73   :  { %p9606_p9 = scmp.ne.s32.totalorder %s83_s21, %s9605_s6  ;;  %p9611_p11 = scmp.lt.s32.totalorder %s9605_s6, %s9605_s6 }
  0x75   :  { %p9612_p12 = por %p9611_p11, %p9610_p10 }
  0x77   :  { %p9613_p13 = pnand %p9612_p12, %p9606_p9 }
  0x79   :  { %9616 = shalt.err (!%p9613_p13)
}
  0x7a   :  { %88 = dma.hbm_to_vmem [thread:$0]  %s13387_s8, 1024, %s83_s21, [#allocation9], %s9697_s5, %s9697_s5, %s9698_s16  }
  0x7b   :  { %s9617_s17 = scalar_lea.hbm %s13389_s10, 8192 }
  0x7c   :  { %p9618_p0 = scmp.ne.s32.totalorder %s13389_s10, %s9617_s17  ;;  %p9621_p1 = scmp.lt.u32.totalorder %s9617_s17, %s13389_s10 }
  0x7e   :  { %p9623_p2 = pnand %p9621_p1, %p9618_p0 }
  0x80   :  { %9626 = shalt.err (!%p9623_p2)
}
  0x81   :  { %s9627_s20 = scalar_lea.vmem %s9874_s4, 8192  ;;  %p9632_p4 = scmp.lt.s32.totalorder %s9874_s4, %s9874_s4 }
  0x82   :  { %p9628_p3 = scmp.ne.s32.totalorder %s9874_s4, %s9627_s20  ;;  %p9633_p5 = scmp.lt.s32.totalorder %s9627_s20, %s9627_s20 }
  0x84   :  { %p9634_p6 = por %p9633_p5, %p9632_p4 }
  0x86   :  { %p9635_p7 = pnand %p9634_p6, %p9628_p3 }
  0x88   :  { %9638 = shalt.err (!%p9635_p7)
}
  0x89   :  { %s9705_s8 = smov 128   ;;  %s9706_s5 = smov 8  }
  0x8a   :  { %110 = dma.hbm_to_vmem [thread:$0]  %s13389_s10, 8192, %s9874_s4, [#allocation12], %s9705_s8, %s9705_s8, %s9706_s5  }
  0x8b   :  { %s9707_s22 = smov [#allocation16]   ;;  %s9639_s25 = scalar_lea.hbm %s13391_s12, 2048 }
  0x8c   :  { %s126_s23 = sshll.u32 %s9707_s22, 4  ;;  %p9640_p8 = scmp.ne.s32.totalorder %s13391_s12, %s9639_s25  ;;  %s127_s23 = int_to_ptr.vmem [resolvable:$true] %s126_s23 }
  0x8d   :  { %p9643_p9 = scmp.lt.u32.totalorder %s9639_s25, %s13391_s12 }
  0x8f   :  { %p9645_p10 = pnand %p9643_p9, %p9640_p8 }
  0x91   :  { %9648 = shalt.err (!%p9645_p10)
}
  0x92   :  { %s9649_s19 = scalar_lea.vmem %s127_s23, 2048  ;;  %p9654_p12 = scmp.lt.s32.totalorder %s127_s23, %s127_s23 }
  0x93   :  { %p9650_p11 = scmp.ne.s32.totalorder %s127_s23, %s9649_s19  ;;  %p9655_p13 = scmp.lt.s32.totalorder %s9649_s19, %s9649_s19 }
  0x95   :  { %p9656_p0 = por %p9655_p13, %p9654_p12 }
  0x97   :  { %p9657_p1 = pnand %p9656_p0, %p9650_p11 }
  0x99   :  { %9660 = shalt.err (!%p9657_p1)
}
  0x9a   :  { %s9708_s10 = smov 64   ;;  %s9709_s4 = smov 4  }
  0x9b   :  { %132 = dma.hbm_to_vmem [thread:$0]  %s13391_s12, 2048, %s127_s23, [#allocation15], %s9708_s10, %s9708_s10, %s9709_s4  }
  0x9c   :  { %s9710_s30 = smov [#allocation17]   ;;  %s9661_s3 = scalar_lea.hbm %s13392_s13, 16 }
  0x9d   :  { %s139_s17 = sshll.u32 %s9710_s30, 4  ;;  %p9662_p2 = scmp.ne.s32.totalorder %s13392_s13, %s9661_s3  ;;  %s140_s17 = int_to_ptr.vmem [resolvable:$true] %s139_s17 }
  0x9e   :  { %p9665_p3 = scmp.lt.u32.totalorder %s9661_s3, %s13392_s13 }
  0xa0   :  { %p9667_p4 = pnand %p9665_p3, %p9662_p2 }
  0xa2   :  { %9670 = shalt.err (!%p9667_p4)
}
  0xa3   :  { %s9671_s16 = scalar_lea.vmem %s140_s17, 16  ;;  %s9675_s12 = scalar_lea.vmem %s140_s17, 32 }
  0xa4   :  { %p9672_p5 = scmp.ne.s32.totalorder %s140_s17, %s9671_s16  ;;  %p9676_p6 = scmp.lt.s32.totalorder %s140_s17, %s140_s17 }
  0xa5   :  { %p9677_p7 = scmp.lt.s32.totalorder %s9675_s12, %s9671_s16 }
  0xa7   :  { %p9678_p8 = por %p9677_p7, %p9676_p6 }
  0xa9   :  { %p9679_p9 = pnand %p9678_p8, %p9672_p5 }
  0xab   :  { %9682 = shalt.err (!%p9679_p9)
}
  0xac   :  { %142 = dma.hbm_to_vmem [thread:$0]  %s13392_s13, 16, %s140_s17, [#allocation18]  }
  0xad   :  { %9683 = dma.done.wait [#allocation4], 128  }
  0xae   :  { %9684 = vsyncadd [#allocation4], 4294967168 }
  0xaf   :  { %9685 = dma.done.wait [#allocation6], 48  }
  0xb0   :  { %9686 = vsyncadd [#allocation6], 4294967248 }
  0xb1   :  { %9687 = dma.done.wait [#allocation9], 66560  }
  0xb2   :  { %9688 = vsyncadd [#allocation9], 4294900736 }
  0xb3   :  { %9689 = dma.done.wait [#allocation12], 8256  }
  0xb4   :  { %9690 = vsyncadd [#allocation12], 4294959040 }
  0xb5   :  { %9691 = dma.done.wait [#allocation15], 2080  }
  0xb6   :  { %9692 = vsyncadd [#allocation15], 4294965216 }
  0xb7   :  { %9693 = dma.done.wait [#allocation18], 16  }
  0xb8   :  { %9694 = vsyncadd [#allocation18], 4294967280  ;;  %v369_v1 = vlaneseq  ;;  %v9711_v2 = vmov 0.0   ;;  %vm9712_vm0 = vmmov 0   ;;  %v174_v8 = vld [vmem:[#allocation3] sm:$0xff]  ;;  %v9957_v13 = vld [vmem:[%s13379_s0 + $0x50] sm:$0xff] }
  0xb9   :  { %8410 = vmatprep.subr.mxu1 %v9711_v2  ;;  %8412 = vmatprep.mubr.msk.f32.mxu1 %vm9712_vm0, %v9711_v2  ;;  %v9945_v9 = vld [vmem:[%s13379_s0 + $0x40] sm:$0xff]  ;;  %v9950_v10 = vld [vmem:[%s13379_s0 + $0x48] sm:$0xff]  ;;  %v9965_v17 = vld [vmem:[%s13379_s0 + $0x58] sm:$0xff]  ;;  %v13404_v25 = vunpack.c.l.bf16 %v9957_v13  ;;  %v13403_v26 = vunpack.c.h.bf16 %v9957_v13  ;;  %vm3091_vm1 = vcmask 1041408   ;;  %vm3087_vm2 = vcmask 15360  }
  0xba   :  { %v9932_v3 = vshrl.u32 %v369_v1, 7  ;;  %v13411_v14 = vunpack.c.l.bf16 %v9945_v9  ;;  %v13409_v15 = vunpack.c.h.bf16 %v9945_v9  ;;  %v13408_v16 = vunpack.c.l.bf16 %v9950_v10  ;;  %v9993_v29 = vld [vmem:[%s13379_s0] sm:$0xff]  ;;  %v9998_v30 = vld [vmem:[%s13379_s0 + $0x8] sm:$0xff]  ;;  %v10013_v35 = vld [vmem:[%s13379_s0 + $0x10] sm:$0xff] }
  0xbb   :  { %v13406_v18 = vunpack.c.h.bf16 %v9950_v10  ;;  %v13399_v31 = vunpack.c.l.bf16 %v9965_v17  ;;  %v13398_v36 = vunpack.c.h.bf16 %v9965_v17  ;;  %v10026_v41 = vld [vmem:[%s13379_s0 + $0x18] sm:$0xff]  ;;  %v13445_v42 = vunpack.c.l.bf16 %v9993_v29  ;;  %v10049_v53 = vld [vmem:[%s13379_s0 + $0x60] sm:$0xff]  ;;  %v10054_v54 = vld [vmem:[%s13379_s0 + $0x68] sm:$0xff] }
  0xbc   :  { %13822 = vst [vmem:[#allocation25_spill] sm:$0xff] %v9932_v3  ;;  %v9935_v4 = vsub.s32 0, %v9932_v3  ;;  %v9938_v5 = vsub.s32 1, %v9932_v3  ;;  %v13395_v6 = vsub.s32 2, %v9932_v3  ;;  %v13394_v7 = vsub.s32 3, %v9932_v3  ;;  %13825 = vst [vmem:[#allocation28_spill] sm:$0xff] %v10054_v54 }
  0xbd   :  { %v387_v11 = vsub.s32 4, %v9932_v3  ;;  %v391_v12 = vsub.s32 5, %v9932_v3  ;;  %v395_v19 = vsub.s32 6, %v9932_v3  ;;  %v399_v20 = vsub.s32 7, %v9932_v3  ;;  %v10073_v63 = vld [vmem:[%s13379_s0 + $0x70] sm:$0xff] }
  0xbe   :  { %13823 = vst [vmem:[#allocation26_spill] sm:$0xff] %v9935_v4  ;;  %13824 = vst [vmem:[#allocation27_spill] sm:$0xff] %v9938_v5  ;;  %v9971_v21 = vrot.slane %v174_v8, %v9935_v4  ;;  %v9974_v22 = vrot.slane %v174_v8, %v9938_v5  ;;  %v9978_v23 = vrot.slane %v174_v8, %v13395_v6  ;;  %v13440_v43 = vunpack.c.h.bf16 %v9993_v29 }
  0xbf   :  { %v9982_v24 = vrot.slane %v174_v8, %v13394_v7  ;;  %v9986_v27 = vrot.slane %v174_v8, %v387_v11  ;;  %v9988_v28 = vrot.slane %v174_v8, %v391_v12  ;;  %v10016_v37 = vrot.slane %v174_v8, %v395_v19  ;;  %13826 = vst [vmem:[#allocation29_spill] sm:$0xff] %v10073_v63 }
  0xc0   :  { %v425_v32 = vmul.f32 %v9971_v21, %v13411_v14  ;;  %v426_v33 = vmul.f32 %v9974_v22, %v13409_v15  ;;  %v427_v34 = vmul.f32 %v9978_v23, %v13408_v16  ;;  %v10018_v38 = vrot.slane %v174_v8, %v399_v20 }
  0xc1   :  { %v428_v39 = vmul.f32 %v9982_v24, %v13406_v18  ;;  %v13436_v44 = vunpack.c.l.bf16 %v9998_v30  ;;  %v429_v45 = vmul.f32 %v9986_v27, %v13404_v25  ;;  %v430_v46 = vmul.f32 %v9988_v28, %v13403_v26  ;;  %v3079_v18 = vld [vmem:[#allocation5] sm:$0x3] }
  0xc2   :  { %v555_v40 = vadd.f32 %v426_v33, %v425_v32  ;;  %v13435_v47 = vunpack.c.h.bf16 %v9998_v30  ;;  %v13434_v48 = vunpack.c.l.bf16 %v10013_v35  ;;  %v13425_v50 = vunpack.c.h.bf16 %v10013_v35  ;;  %v10088_v32 = vld [vmem:[%s13379_s0 + $0x78] sm:$0xff]  ;;  %8411 = vmatpush3.msk.msra.mxu1 %vm3091_vm1, %v3079_v18 }
  0xc3   :  { %v409_v51 = vmul.f32 %v9971_v21, %v13445_v42  ;;  %v410_v52 = vmul.f32 %v9974_v22, %v13440_v43  ;;  %v431_v55 = vmul.f32 %v10016_v37, %v13399_v31  ;;  %v432_v56 = vmul.f32 %v10018_v38, %v13398_v36  ;;  %13827 = vst [vmem:[#allocation30_spill] sm:$0xff] %v10088_v32  ;;  %v10134_v31 = vld [vmem:[%s13379_s0 + $0x38] sm:$0xff] }
  0xc4   :  { %v556_v49 = vadd.f32 %v555_v40, %v427_v34  ;;  %v13424_v57 = vunpack.c.l.bf16 %v10026_v41  ;;  %v411_v58 = vmul.f32 %v9978_v23, %v13436_v44  ;;  %v13422_v60 = vunpack.c.h.bf16 %v10026_v41 }
  0xc5   :  { %v412_v61 = vmul.f32 %v9982_v24, %v13435_v47  ;;  %v537_v62 = vadd.f32 %v410_v52, %v409_v51  ;;  %v13402_v0 = vunpack.c.l.bf16 %v10049_v53  ;;  %v13397_v1 = vunpack.c.h.bf16 %v10049_v53 }
  0xc6   :  { %v557_v59 = vadd.f32 %v556_v49, %v428_v39  ;;  %v13396_v2 = vunpack.c.l.bf16 %v10054_v54  ;;  %v13400_v8 = vunpack.c.h.bf16 %v10054_v54  ;;  %v413_v12 = vmul.f32 %v9986_v27, %v13434_v48 }
  0xc7   :  { %v414_v19 = vmul.f32 %v9988_v28, %v13425_v50  ;;  %v538_v20 = vadd.f32 %v537_v62, %v411_v58  ;;  %v415_v33 = vmul.f32 %v10016_v37, %v13424_v57  ;;  %v13401_v34 = vunpack.c.l.bf16 %v10073_v63 }
  0xc8   :  { %v558_v11 = vadd.f32 %v557_v59, %v429_v45  ;;  %v433_v39 = vmul.f32 %v9971_v21, %v13402_v0  ;;  %v434_v40 = vmul.f32 %v9974_v22, %v13397_v1  ;;  %v10103_v45 = vld [vmem:[%s13379_s0 + $0x20] sm:$0xff]  ;;  %v13405_v52 = vunpack.c.h.bf16 %v10073_v63  ;;  %v10112_v59 = vld [vmem:[%s13379_s0 + $0x28] sm:$0xff] }
  0xc9   :  { %v539_v51 = vadd.f32 %v538_v20, %v412_v61  ;;  %v435_v58 = vmul.f32 %v9978_v23, %v13396_v2  ;;  %v416_v62 = vmul.f32 %v10018_v38, %v13422_v60  ;;  %v13407_v7 = vunpack.c.l.bf16 %v10088_v32  ;;  %v10125_v2 = vld [vmem:[%s13379_s0 + $0x30] sm:$0xff] }
  0xca   :  { %v559_v49 = vadd.f32 %v558_v11, %v430_v46  ;;  %v13410_v46 = vunpack.c.h.bf16 %v10088_v32  ;;  %v436_v61 = vmul.f32 %v9982_v24, %v13400_v8  ;;  %v564_v6 = vadd.f32 %v434_v40, %v433_v39  ;;  %v8465_v32 = vld [vmem:[#allocation8 + $0x424] ss:$16 sps:$4 sm:$0xff]  }
  0xcb   :  { %v540_v20 = vadd.f32 %v539_v51, %v413_v12  ;;  %v13421_v1 = vunpack.c.l.bf16 %v10103_v45  ;;  %v437_v36 = vmul.f32 %v9986_v27, %v13401_v34  ;;  %v13413_v12 = vunpack.c.l.bf16 %v10112_v59 }
  0xcc   :  { %v560_v11 = vadd.f32 %v559_v49, %v431_v55  ;;  %v13414_v55 = vunpack.c.h.bf16 %v10103_v45  ;;  %v13412_v39 = vunpack.c.h.bf16 %v10112_v59  ;;  %v438_v51 = vmul.f32 %v9988_v28, %v13405_v52  ;;  %v10167_v52 = vld [vmem:[%s13379_s0 + $0xb0] sm:$0xff] }
  0xcd   :  { %v541_v49 = vadd.f32 %v540_v20, %v414_v19  ;;  %v565_v8 = vadd.f32 %v564_v6, %v435_v58  ;;  %v13417_v34 = vunpack.c.l.bf16 %v10125_v2  ;;  %v13416_v0 = vunpack.c.h.bf16 %v10125_v2  ;;  %v10162_v20 = vld [vmem:[%s13379_s0 + $0xa8] sm:$0xff]  ;;  %13830 = vst [vmem:[#allocation33_spill] sm:$0xff] %v10167_v52 }
  0xce   :  { %v561_v40 = vadd.f32 %v560_v11, %v432_v56  ;;  %v417_v26 = vmul.f32 %v9971_v21, %v13421_v1  ;;  %v418_v25 = vmul.f32 %v9974_v22, %v13414_v55  ;;  %v10153_v56 = vld [vmem:[%s13379_s0 + $0xa0] sm:$0xff]  ;;  %v13415_v58 = vunpack.c.l.bf16 %v10134_v31  ;;  %13829 = vst [vmem:[#allocation32_spill] sm:$0xff] %v10162_v20 }
  0xcf   :  { %13828 = vst [vmem:[#allocation31_spill] sm:$0xff] %v10153_v56  ;;  %v542_v19 = vadd.f32 %v541_v49, %v415_v33  ;;  %v566_v6 = vadd.f32 %v565_v8, %v436_v61  ;;  %v419_v11 = vmul.f32 %v9978_v23, %v13413_v12  ;;  %v439_v8 = vmul.f32 %v10016_v37, %v13407_v7  ;;  %v10182_v49 = vld [vmem:[%s13379_s0 + $0xb8] sm:$0xff]  ;;  %v3078_v7 = vld [vmem:[%s13381_s2] sm:$0xff] }
  0xd0   :  { %562 = vadd.xlane.f32.xlu1 %v561_v40  ;;  %v440_v33 = vmul.f32 %v10018_v38, %v13410_v46  ;;  %v13423_v61 = vunpack.c.h.bf16 %v10134_v31  ;;  %v420_v40 = vmul.f32 %v9982_v24, %v13412_v39  ;;  %13831 = vst [vmem:[#allocation34_spill] sm:$0xff] %v10182_v49  ;;  %v546_v46 = vadd.f32 %v418_v25, %v417_v26 }
  0xd1   :  { %v543_v16 = vadd.f32 %v542_v19, %v416_v62  ;;  %v567_v15 = vadd.f32 %v566_v6, %v437_v36  ;;  %v13418_v14 = vunpack.c.l.bf16 %v10153_v56  ;;  %8413 = vmatmul.mubr.msk.f32.vlgmr.msra.gmra.mrb[0].mxu1 %vm3087_vm2, %v3078_v7  ;;  %v421_v39 = vmul.f32 %v9986_v27, %v13417_v34  ;;  %v10199_v62 = vld [vmem:[%s13379_s0 + $0xe0] sm:$0xff]  ;;  %v10210_v19 = vld [vmem:[%s13379_s0 + $0xe8] sm:$0xff] }
  0xd2   :  { %v13419_v12 = vunpack.c.h.bf16 %v10153_v56  ;;  %v13420_v55 = vunpack.c.l.bf16 %v10162_v20  ;;  %v13432_v18 = vunpack.c.h.bf16 %v10162_v20  ;;  %13832 = vst [vmem:[#allocation35_spill] sm:$0xff] %v10199_v62  ;;  %v422_v7 = vmul.f32 %v9988_v28, %v13416_v0  ;;  %13833 = vst [vmem:[#allocation36_spill] sm:$0xff] %v10210_v19 }
  0xd3   :  { %544 = vadd.xlane.f32.xlu0 %v543_v16  ;;  %v568_v25 = vadd.f32 %v567_v15, %v438_v51  ;;  %v423_v26 = vmul.f32 %v10016_v37, %v13415_v58  ;;  %v547_v36 = vadd.f32 %v546_v46, %v419_v11  ;;  %v13426_v6 = vunpack.c.l.bf16 %v10167_v52  ;;  %v10225_v46 = vld [vmem:[%s13379_s0 + $0xf0] sm:$0xff] }
  0xd4   :  { %v449_v15 = vmul.f32 %v9971_v21, %v13418_v14  ;;  %v450_v16 = vmul.f32 %v9974_v22, %v13419_v12  ;;  %v451_v51 = vmul.f32 %v9978_v23, %v13420_v55  ;;  %13834 = vst [vmem:[#allocation37_spill] sm:$0xff] %v10225_v46  ;;  %v13429_v0 = vunpack.c.h.bf16 %v10167_v52 }
  0xd5   :  { %v569_v11 = vadd.f32 %v568_v25, %v439_v8  ;;  %v548_v58 = vadd.f32 %v547_v36, %v420_v40  ;;  %v13427_v34 = vunpack.c.l.bf16 %v10182_v49  ;;  %v424_v14 = vmul.f32 %v10018_v38, %v13423_v61  ;;  %v10239_v8 = vld [vmem:[%s13379_s0 + $0xf8] sm:$0xff] }
  0xd6   :  { %v13433_v12 = vunpack.c.h.bf16 %v10182_v49  ;;  %v452_v55 = vmul.f32 %v9982_v24, %v13432_v18  ;;  %v582_v1 = vadd.f32 %v450_v16, %v449_v15  ;;  %13835 = vst [vmem:[#allocation38_spill] sm:$0xff] %v10239_v8  ;;  %v13428_v36 = vunpack.c.l.bf16 %v10199_v62  ;;  %v10251_v16 = vld [vmem:[%s13379_s0 + $0x120] sm:$0xff]  ;;  %v11098_v49 = vld [vmem:[%s13380_s1 + $0x148] sm:$0xff] }
  0xd7   :  { %v570_v40 = vadd.f32 %v569_v11, %v440_v33  ;;  %v549_v25 = vadd.f32 %v548_v58, %v421_v39  ;;  %v13430_v60 = vunpack.c.h.bf16 %v10199_v62  ;;  %v453_v61 = vmul.f32 %v9986_v27, %v13426_v6  ;;  %13836 = vst [vmem:[#allocation39_spill] sm:$0xff] %v10251_v16  ;;  %v10256_v39 = vld [vmem:[%s13379_s0 + $0x128] sm:$0xff]  ;;  %13972 = vst [vmem:[#allocation102_spill] sm:$0xff] %v11098_v49 }
  0xd8   :  { %v583_v57 = vadd.f32 %v582_v1, %v451_v51  ;;  %v13431_v50 = vunpack.c.l.bf16 %v10210_v19  ;;  %v13438_v15 = vunpack.c.h.bf16 %v10210_v19  ;;  %13837 = vst [vmem:[#allocation40_spill] sm:$0xff] %v10256_v39  ;;  %v454_v1 = vmul.f32 %v9988_v28, %v13429_v0 }
  0xd9   :  { %571 = vadd.xlane.f32.xlu1 %v570_v40  ;;  %v550_v58 = vadd.f32 %v549_v25, %v422_v7  ;;  %v455_v33 = vmul.f32 %v10016_v37, %v13427_v34  ;;  %v13437_v51 = vunpack.c.l.bf16 %v10225_v46  ;;  %v465_v6 = vmul.f32 %v9971_v21, %v13428_v36  ;;  %v10277_v25 = vld [vmem:[%s13379_s0 + $0x130] sm:$0xff] }
  0xda   :  { %v584_v11 = vadd.f32 %v583_v57, %v452_v55  ;;  %v466_v40 = vmul.f32 %v9974_v22, %v13430_v60  ;;  %v467_v7 = vmul.f32 %v9978_v23, %v13431_v50  ;;  %13838 = vst [vmem:[#allocation41_spill] sm:$0xff] %v10277_v25  ;;  %v456_v57 = vmul.f32 %v10018_v38, %v13433_v12 }
  0xdb   :  { %v551_v34 = vadd.f32 %v550_v58, %v423_v26  ;;  %v13439_v55 = vunpack.c.h.bf16 %v10225_v46  ;;  %v13444_v36 = vunpack.c.l.bf16 %v10239_v8  ;;  %v13446_v60 = vunpack.c.h.bf16 %v10239_v8  ;;  %v10291_v26 = vld [vmem:[%s13379_s0 + $0x138] sm:$0xff]  ;;  %v10407_v8 = vld [vmem:[%s13379_s0 + $0x1a0] sm:$0xff] }
  0xdc   :  { %v585_v0 = vadd.f32 %v584_v11, %v453_v61  ;;  %v468_v50 = vmul.f32 %v9982_v24, %v13438_v15  ;;  %v600_v18 = vadd.f32 %v466_v40, %v465_v6  ;;  %13839 = vst [vmem:[#allocation42_spill] sm:$0xff] %v10291_v26  ;;  %v13443_v12 = vunpack.c.l.bf16 %v10251_v16  ;;  %v10303_v40 = vld [vmem:[%s13379_s0 + $0x80] sm:$0xff]  ;;  %13853 = vst [vmem:[#allocation51_spill] sm:$0xff] %v10407_v8 }
  0xdd   :  { %v552_v58 = vadd.f32 %v551_v34, %v424_v14  ;;  %v13442_v48 = vunpack.c.h.bf16 %v10251_v16  ;;  %v13441_v47 = vunpack.c.l.bf16 %v10256_v39  ;;  %v469_v11 = vmul.f32 %v9986_v27, %v13437_v51  ;;  %13840 = vst [vmem:[#allocation43_spill] sm:$0xff] %v10303_v40  ;;  %v10308_v14 = vld [vmem:[%s13379_s0 + $0x88] sm:$0xff] }
  0xde   :  { %v586_v61 = vadd.f32 %v585_v0, %v454_v1  ;;  %v601_v44 = vadd.f32 %v600_v18, %v467_v7  ;;  %v13447_v6 = vunpack.c.h.bf16 %v10256_v39  ;;  %13841 = vst [vmem:[#allocation44_spill] sm:$0xff] %v10308_v14  ;;  %v470_v0 = vmul.f32 %v9988_v28, %v13439_v55  ;;  %v10327_v55 = vld [vmem:[%s13379_s0 + $0x90] sm:$0xff]  ;;  %v10352_v18 = vld [vmem:[%s13379_s0 + $0x160] sm:$0xff] }
  0xdf   :  { %553 = vadd.xlane.f32.xlu0 %v552_v58  ;;  %v13448_v34 = vunpack.c.l.bf16 %v10277_v25  ;;  %v481_v1 = vmul.f32 %v9971_v21, %v13443_v12  ;;  %v482_v15 = vmul.f32 %v9974_v22, %v13442_v48  ;;  %v483_v58 = vmul.f32 %v9978_v23, %v13441_v47  ;;  %13842 = vst [vmem:[#allocation45_spill] sm:$0xff] %v10327_v55 }
  0xe0   :  { %v587_v7 = vadd.f32 %v586_v61, %v455_v33  ;;  %v602_v51 = vadd.f32 %v601_v44, %v468_v50  ;;  %v471_v43 = vmul.f32 %v10016_v37, %v13444_v36  ;;  %v472_v44 = vmul.f32 %v10018_v38, %v13446_v60  ;;  %v10340_v61 = vld [vmem:[%s13379_s0 + $0x98] sm:$0xff]  ;;  %13844 = vst [vmem:[#allocation47_spill] sm:$0xff] %v10352_v18 }
  0xe1   :  { %13843 = vst [vmem:[#allocation46_spill] sm:$0xff] %v10340_v61  ;;  %v484_v12 = vmul.f32 %v9982_v24, %v13447_v6  ;;  %v618_v36 = vadd.f32 %v482_v15, %v481_v1  ;;  %v13449_v42 = vunpack.c.l.bf16 %v10303_v40  ;;  %v13451_v60 = vunpack.c.h.bf16 %v10303_v40 }
  0xe2   :  { %v588_v47 = vadd.f32 %v587_v7, %v456_v57  ;;  %v603_v48 = vadd.f32 %v602_v51, %v469_v11  ;;  %v13450_v50 = vunpack.c.l.bf16 %v10308_v14  ;;  %v485_v57 = vmul.f32 %v9986_v27, %v13448_v34  ;;  %v10363_v7 = vld [vmem:[%s13379_s0 + $0x168] sm:$0xff]  ;;  %v10380_v34 = vld [vmem:[%s13379_s0 + $0x170] sm:$0xff] }
  0xe3   :  { %v13845_v15 = vunpack.c.h.bf16 %v10277_v25  ;;  %v619_v1 = vadd.f32 %v618_v36, %v483_v58  ;;  %13846 = vst [vmem:[#allocation48_spill] sm:$0xff] %v10363_v7  ;;  %13847 = vst [vmem:[#allocation49_spill] sm:$0xff] %v10380_v34  ;;  %v13848_v33 = vunpack.c.l.bf16 %v10291_v26  ;;  %v13849_v6 = vunpack.c.h.bf16 %v10291_v26  ;;  %v8474_v25 = vld [vmem:[#allocation8 + $0x60] ss:$16 sps:$4 sm:$0xff]  }
  0xe4   :  { %589 = vadd.xlane.f32.xlu1 %v588_v47  ;;  %v604_v51 = vadd.f32 %v603_v48, %v470_v0  ;;  %v441_v47 = vmul.f32 %v9971_v21, %v13449_v42  ;;  %v442_v48 = vmul.f32 %v9974_v22, %v13451_v60  ;;  %v443_v58 = vmul.f32 %v9978_v23, %v13450_v50  ;;  %v10395_v50 = vld [vmem:[%s13379_s0 + $0x178] sm:$0xff] }
  0xe5   :  { %v486_v11 = vmul.f32 %v9988_v28, %v13845_v15  ;;  %v620_v15 = vadd.f32 %v619_v1, %v484_v12  ;;  %v487_v42 = vmul.f32 %v10016_v37, %v13848_v33  ;;  %13851 = vst [vmem:[#allocation50_spill] sm:$0xff] %v10395_v50  ;;  %v13460_v33 = vunpack.c.l.bf16 %v10352_v18 }
  0xe6   :  { %v605_v0 = vadd.f32 %v604_v51, %v471_v43  ;;  %v488_v43 = vmul.f32 %v10018_v38, %v13849_v6  ;;  %v13850_v51 = vunpack.c.h.bf16 %v10308_v14  ;;  %v573_v3 = vadd.f32 %v442_v48, %v441_v47 }
  0xe7   :  { %v621_v36 = vadd.f32 %v620_v15, %v485_v57  ;;  %v13852_v4 = vunpack.c.l.bf16 %v10327_v55  ;;  %v13463_v12 = vunpack.c.h.bf16 %v10352_v18  ;;  %v13466_v5 = vunpack.c.l.bf16 %v10363_v7  ;;  %v10418_v15 = vld [vmem:[%s13379_s0 + $0x1a8] sm:$0xff] }
  0xe8   :  { %v444_v1 = vmul.f32 %v9982_v24, %v13850_v51  ;;  %v606_v60 = vadd.f32 %v605_v0, %v472_v44  ;;  %v13854_v57 = vunpack.c.h.bf16 %v10327_v55  ;;  %v13855_v48 = vunpack.c.l.bf16 %v10340_v61  ;;  %13856 = vst [vmem:[#allocation52_spill] sm:$0xff] %v10418_v15 }
  0xe9   :  { %v445_v6 = vmul.f32 %v9986_v27, %v13852_v4  ;;  %v622_v44 = vadd.f32 %v621_v36, %v486_v11  ;;  %v574_v0 = vadd.f32 %v573_v3, %v443_v58  ;;  %v498_v11 = vmul.f32 %v9974_v22, %v13463_v12  ;;  %v10433_v3 = vld [vmem:[%s13379_s0 + $0x1b0] sm:$0xff] }
  0xea   :  { %607 = vadd.xlane.f32.xlu1 %v606_v60  ;;  %v446_v47 = vmul.f32 %v9988_v28, %v13854_v57  ;;  %v447_v4 = vmul.f32 %v10016_v37, %v13855_v48  ;;  %v497_v60 = vmul.f32 %v9971_v21, %v13460_v33  ;;  %v499_v36 = vmul.f32 %v9978_v23, %v13466_v5 }
  0xeb   :  { %13857 = vst [vmem:[#allocation53_spill] sm:$0xff] %v10433_v3  ;;  %v623_v58 = vadd.f32 %v622_v44, %v487_v42  ;;  %v575_v57 = vadd.f32 %v574_v0, %v444_v1  ;;  %v13858_v33 = vunpack.c.h.bf16 %v10340_v61  ;;  %v13859_v19 = vunpack.c.h.bf16 %v10363_v7  ;;  %v10447_v42 = vld [vmem:[%s13379_s0 + $0x1b8] sm:$0xff] }
  0xec   :  { %v636_v62 = vadd.f32 %v498_v11, %v497_v60  ;;  %13860 = vst [vmem:[#allocation54_spill] sm:$0xff] %v10447_v42  ;;  %v13471_v0 = vunpack.c.l.bf16 %v10407_v8  ;;  %v13472_v51 = vunpack.c.h.bf16 %v10407_v8  ;;  %v13475_v7 = vunpack.c.l.bf16 %v10418_v15  ;;  %v10459_v60 = vld [vmem:[%s13379_s0 + $0xc0] sm:$0xff] }
  0xed   :  { %v448_v46 = vmul.f32 %v10018_v38, %v13858_v33  ;;  %v500_v5 = vmul.f32 %v9982_v24, %v13859_v19  ;;  %v624_v1 = vadd.f32 %v623_v58, %v488_v43  ;;  %v576_v44 = vadd.f32 %v575_v57, %v445_v6  ;;  %13862 = vst [vmem:[#allocation55_spill] sm:$0xff] %v10459_v60  ;;  %v10464_v43 = vld [vmem:[%s13379_s0 + $0xc8] sm:$0xff] }
  0xee   :  { %v13861_v33 = vunpack.c.l.bf16 %v10380_v34  ;;  %v637_v48 = vadd.f32 %v636_v62, %v499_v36  ;;  %13863 = vst [vmem:[#allocation56_spill] sm:$0xff] %v10464_v43  ;;  %v13864_v11 = vunpack.c.h.bf16 %v10380_v34  ;;  %v13865_v36 = vunpack.c.l.bf16 %v10395_v50 }
  0xef   :  { %625 = vadd.xlane.f32.xlu1 %v624_v1  ;;  %v577_v6 = vadd.f32 %v576_v44, %v446_v47  ;;  %v513_v19 = vmul.f32 %v9971_v21, %v13471_v0  ;;  %v514_v1 = vmul.f32 %v9974_v22, %v13472_v51  ;;  %v515_v47 = vmul.f32 %v9978_v23, %v13475_v7  ;;  %v10485_v44 = vld [vmem:[%s13379_s0 + $0xd0] sm:$0xff] }
  0xf0   :  { %v501_v12 = vmul.f32 %v9986_v27, %v13861_v33  ;;  %v502_v62 = vmul.f32 %v9988_v28, %v13864_v11  ;;  %v503_v58 = vmul.f32 %v10016_v37, %v13865_v36  ;;  %v638_v33 = vadd.f32 %v637_v48, %v500_v5  ;;  %13866 = vst [vmem:[#allocation57_spill] sm:$0xff] %v10485_v44 }
  0xf1   :  { %v578_v11 = vadd.f32 %v577_v6, %v447_v4  ;;  %v13867_v5 = vunpack.c.h.bf16 %v10395_v50  ;;  %v13868_v8 = vunpack.c.h.bf16 %v10418_v15  ;;  %v654_v34 = vadd.f32 %v514_v1, %v513_v19  ;;  %v10499_v4 = vld [vmem:[%s13379_s0 + $0xd8] sm:$0xff]  ;;  %v10511_v19 = vld [vmem:[%s13379_s0 + $0x1e0] sm:$0xff] }
  0xf2   :  { %v639_v57 = vadd.f32 %v638_v33, %v501_v12  ;;  %13869 = vst [vmem:[#allocation58_spill] sm:$0xff] %v10499_v4  ;;  %v13481_v36 = vunpack.c.h.bf16 %v10459_v60  ;;  %v13480_v0 = vunpack.c.l.bf16 %v10464_v43  ;;  %v13870_v33 = vunpack.c.l.bf16 %v10433_v3  ;;  %13871 = vst [vmem:[#allocation59_spill] sm:$0xff] %v10511_v19  ;;  %v10560_v50 = vld [vmem:[%s13379_s0 + $0x100] sm:$0xff] }
  0xf3   :  { %v504_v48 = vmul.f32 %v10018_v38, %v13867_v5  ;;  %v516_v7 = vmul.f32 %v9982_v24, %v13868_v8  ;;  %v579_v6 = vadd.f32 %v578_v11, %v448_v46  ;;  %v13482_v5 = vunpack.c.l.bf16 %v10459_v60  ;;  %v10516_v46 = vld [vmem:[%s13379_s0 + $0x1e8] sm:$0xff]  ;;  %13879 = vst [vmem:[#allocation63_spill] sm:$0xff] %v10560_v50 }
  0xf4   :  { %v640_v12 = vadd.f32 %v639_v57, %v502_v62  ;;  %v517_v51 = vmul.f32 %v9986_v27, %v13870_v33  ;;  %v655_v15 = vadd.f32 %v654_v34, %v515_v47  ;;  %13872 = vst [vmem:[#allocation60_spill] sm:$0xff] %v10516_v46  ;;  %v13873_v62 = vunpack.c.h.bf16 %v10433_v3 }
  0xf5   :  { %580 = vadd.xlane.f32.xlu0 %v579_v6  ;;  %v457_v47 = vmul.f32 %v9971_v21, %v13482_v5  ;;  %v458_v8 = vmul.f32 %v9974_v22, %v13481_v36  ;;  %v459_v6 = vmul.f32 %v9978_v23, %v13480_v0  ;;  %v13875_v34 = vunpack.c.l.bf16 %v10447_v42  ;;  %v10548_v0 = vld [vmem:[%s13379_s0 + $0x1f8] sm:$0xff] }
  0xf6   :  { %v518_v57 = vmul.f32 %v9988_v28, %v13873_v62  ;;  %v641_v11 = vadd.f32 %v640_v12, %v503_v58  ;;  %v656_v33 = vadd.f32 %v655_v15, %v516_v7  ;;  %v10535_v62 = vld [vmem:[%s13379_s0 + $0x1f0] sm:$0xff]  ;;  %v13876_v58 = vunpack.c.h.bf16 %v10447_v42  ;;  %13877 = vst [vmem:[#allocation62_spill] sm:$0xff] %v10548_v0 }
  0xf7   :  { %13874 = vst [vmem:[#allocation61_spill] sm:$0xff] %v10535_v62  ;;  %v519_v1 = vmul.f32 %v10016_v37, %v13875_v34  ;;  %v13878_v3 = vunpack.c.h.bf16 %v10464_v43  ;;  %v591_v34 = vadd.f32 %v458_v8, %v457_v47  ;;  %v13491_v42 = vunpack.c.l.bf16 %v10511_v19  ;;  %v10588_v15 = vld [vmem:[%s13379_s0 + $0x110] sm:$0xff]  ;;  %v10615_v43 = vld [vmem:[%s13379_s0 + $0x140] sm:$0xff] }
  0xf8   :  { %v520_v7 = vmul.f32 %v10018_v38, %v13876_v58  ;;  %v642_v36 = vadd.f32 %v641_v11, %v504_v48  ;;  %v657_v5 = vadd.f32 %v656_v33, %v517_v51  ;;  %v13494_v58 = vunpack.c.h.bf16 %v10511_v19  ;;  %v10571_v33 = vld [vmem:[%s13379_s0 + $0x108] sm:$0xff]  ;;  %13884 = vst [vmem:[#allocation65_spill] sm:$0xff] %v10588_v15  ;;  %13890 = vst [vmem:[#allocation67_spill] sm:$0xff] %v10615_v43 }
  0xf9   :  { %v460_v60 = vmul.f32 %v9982_v24, %v13878_v3  ;;  %v13880_v48 = vunpack.c.l.bf16 %v10485_v44  ;;  %v13881_v8 = vunpack.c.h.bf16 %v10485_v44  ;;  %v592_v11 = vadd.f32 %v591_v34, %v459_v6  ;;  %13882 = vst [vmem:[#allocation64_spill] sm:$0xff] %v10571_v33 }
  0xfa   :  { %643 = vadd.xlane.f32.xlu1 %v642_v36  ;;  %v658_v51 = vadd.f32 %v657_v5, %v518_v57  ;;  %v529_v36 = vmul.f32 %v9971_v21, %v13491_v42  ;;  %v530_v5 = vmul.f32 %v9974_v22, %v13494_v58  ;;  %v13883_v34 = vunpack.c.l.bf16 %v10516_v46 }
  0xfb   :  { %v461_v3 = vmul.f32 %v9986_v27, %v13880_v48  ;;  %v462_v47 = vmul.f32 %v9988_v28, %v13881_v8  ;;  %v593_v48 = vadd.f32 %v592_v11, %v460_v60  ;;  %v13885_v12 = vunpack.c.l.bf16 %v10499_v4 }
  0xfc   :  { %v659_v57 = vadd.f32 %v658_v51, %v519_v1  ;;  %v531_v8 = vmul.f32 %v9978_v23, %v13883_v34  ;;  %v13886_v19 = vunpack.c.h.bf16 %v10499_v4  ;;  %v13887_v51 = vunpack.c.h.bf16 %v10516_v46  ;;  %v10603_v34 = vld [vmem:[%s13379_s0 + $0x118] sm:$0xff] }
  0xfd   :  { %v463_v42 = vmul.f32 %v10016_v37, %v13885_v12  ;;  %13888 = vst [vmem:[#allocation66_spill] sm:$0xff] %v10603_v34  ;;  %v594_v6 = vadd.f32 %v593_v48, %v461_v3  ;;  %v672_v44 = vadd.f32 %v530_v5, %v529_v36  ;;  %v13503_v12 = vunpack.c.l.bf16 %v10560_v50  ;;  %v10626_v48 = vld [vmem:[%s13379_s0 + $0x148] sm:$0xff] }
  0xfe   :  { %v464_v1 = vmul.f32 %v10018_v38, %v13886_v19  ;;  %v532_v11 = vmul.f32 %v9982_v24, %v13887_v51  ;;  %v660_v58 = vadd.f32 %v659_v57, %v520_v7  ;;  %v13889_v4 = vunpack.c.l.bf16 %v10535_v62  ;;  %13893 = vst [vmem:[#allocation68_spill] sm:$0xff] %v10626_v48 }
  0xff   :  { %v13506_v60 = vunpack.c.h.bf16 %v10560_v50  ;;  %v13509_v46 = vunpack.c.l.bf16 %v10571_v33  ;;  %v595_v7 = vadd.f32 %v594_v6, %v462_v47  ;;  %v13891_v3 = vunpack.c.h.bf16 %v10535_v62 }
 0x100   :  { %v533_v19 = vmul.f32 %v9986_v27, %v13889_v4  ;;  %661 = vadd.xlane.f32.xlu1 %v660_v58  ;;  %v13892_v5 = vunpack.c.l.bf16 %v10548_v0  ;;  %v673_v57 = vadd.f32 %v672_v44, %v531_v8  ;;  %v473_v58 = vmul.f32 %v9971_v21, %v13503_v12  ;;  %v10641_v44 = vld [vmem:[%s13379_s0 + $0x150] sm:$0xff] }
 0x101   :  { %v534_v36 = vmul.f32 %v9988_v28, %v13891_v3  ;;  %v474_v47 = vmul.f32 %v9974_v22, %v13506_v60  ;;  %v475_v6 = vmul.f32 %v9978_v23, %v13509_v46  ;;  %13894 = vst [vmem:[#allocation69_spill] sm:$0xff] %v10641_v44  ;;  %v596_v8 = vadd.f32 %v595_v7, %v463_v42  ;;  %v10655_v42 = vld [vmem:[%s13379_s0 + $0x158] sm:$0xff] }
 0x102   :  { %v535_v4 = vmul.f32 %v10016_v37, %v13892_v5  ;;  %v674_v3 = vadd.f32 %v673_v57, %v532_v11  ;;  %v13895_v12 = vunpack.c.h.bf16 %v10548_v0  ;;  %v13896_v62 = vunpack.c.h.bf16 %v10571_v33  ;;  %13897 = vst [vmem:[#allocation70_spill] sm:$0xff] %v10655_v42 }
 0x103   :  { %v609_v18 = vadd.f32 %v474_v47, %v473_v58  ;;  %v597_v11 = vadd.f32 %v596_v8, %v464_v1  ;;  %v13514_v57 = vunpack.c.l.bf16 %v10615_v43  ;;  %v13515_v51 = vunpack.c.h.bf16 %v10615_v43  ;;  %v10667_v58 = vld [vmem:[%s13379_s0 + $0x180] sm:$0xff]  ;;  %v10672_v1 = vld [vmem:[%s13379_s0 + $0x188] sm:$0xff] }
 0x104   :  { %v536_v50 = vmul.f32 %v10018_v38, %v13895_v12  ;;  %v476_v46 = vmul.f32 %v9982_v24, %v13896_v62  ;;  %v675_v7 = vadd.f32 %v674_v3, %v533_v19  ;;  %v13898_v12 = vunpack.c.l.bf16 %v10588_v15  ;;  %13899 = vst [vmem:[#allocation71_spill] sm:$0xff] %v10667_v58  ;;  %13900 = vst [vmem:[#allocation72_spill] sm:$0xff] %v10672_v1 }
 0x105   :  { %v610_v5 = vadd.f32 %v609_v18, %v475_v6  ;;  %v13518_v0 = vunpack.c.l.bf16 %v10626_v48  ;;  %598 = vadd.xlane.f32.xlu0 %v597_v11  ;;  %v13901_v47 = vunpack.c.h.bf16 %v10588_v15  ;;  %v13902_v6 = vunpack.c.l.bf16 %v10603_v34 }
 0x106   :  { %v477_v60 = vmul.f32 %v9986_v27, %v13898_v12  ;;  %v676_v19 = vadd.f32 %v675_v7, %v534_v36  ;;  %v489_v62 = vmul.f32 %v9971_v21, %v13514_v57  ;;  %v490_v11 = vmul.f32 %v9974_v22, %v13515_v51  ;;  %v10693_v7 = vld [vmem:[%s13379_s0 + $0x190] sm:$0xff] }
 0x107   :  { %v478_v18 = vmul.f32 %v9988_v28, %v13901_v47  ;;  %v479_v8 = vmul.f32 %v10016_v37, %v13902_v6  ;;  %v611_v12 = vadd.f32 %v610_v5, %v476_v46  ;;  %v491_v36 = vmul.f32 %v9978_v23, %v13518_v0  ;;  %13903 = vst [vmem:[#allocation73_spill] sm:$0xff] %v10693_v7 }
 0x108   :  { %v677_v47 = vadd.f32 %v676_v19, %v535_v4  ;;  %v13904_v46 = vunpack.c.h.bf16 %v10603_v34  ;;  %v13530_v51 = vunpack.c.h.bf16 %v10655_v42  ;;  %v13905_v43 = vunpack.c.h.bf16 %v10626_v48  ;;  %v8472_v34 = vld [vmem:[#allocation8 + $0x64] ss:$16 sps:$4 sm:$0xff]  }
 0x109   :  { %v612_v3 = vadd.f32 %v611_v12, %v477_v60  ;;  %v627_v15 = vadd.f32 %v490_v11, %v489_v62  ;;  %v13525_v26 = vunpack.c.l.bf16 %v10667_v58  ;;  %v13526_v4 = vunpack.c.h.bf16 %v10667_v58  ;;  %v10713_v12 = vld [vmem:[%s13379_s0 + $0x198] sm:$0xff]  ;;  %v10724_v62 = vld [vmem:[%s13379_s0 + $0x1c8] sm:$0xff] }
 0x10a   :  { %v480_v5 = vmul.f32 %v10018_v38, %v13904_v46  ;;  %v492_v0 = vmul.f32 %v9982_v24, %v13905_v43  ;;  %v678_v33 = vadd.f32 %v677_v47, %v536_v50  ;;  %v13527_v19 = vunpack.c.l.bf16 %v10672_v1  ;;  %13907 = vst [vmem:[#allocation74_spill] sm:$0xff] %v10713_v12  ;;  %v10719_v50 = vld [vmem:[%s13379_s0 + $0x1c0] sm:$0xff]  ;;  %13909 = vst [vmem:[#allocation76_spill] sm:$0xff] %v10724_v62 }
 0x10b   :  { %v613_v46 = vadd.f32 %v612_v3, %v478_v18  ;;  %v13906_v6 = vunpack.c.l.bf16 %v10641_v44  ;;  %v628_v60 = vadd.f32 %v627_v15, %v491_v36  ;;  %13908 = vst [vmem:[#allocation75_spill] sm:$0xff] %v10719_v50  ;;  %v13910_v15 = vunpack.c.h.bf16 %v10641_v44 }
 0x10c   :  { %679 = vadd.xlane.f32.xlu1 %v678_v33  ;;  %v505_v11 = vmul.f32 %v9971_v21, %v13525_v26  ;;  %v507_v33 = vmul.f32 %v9978_v23, %v13527_v19  ;;  %v13911_v43 = vunpack.c.l.bf16 %v10655_v42  ;;  %v496_v3 = vmul.f32 %v10018_v38, %v13530_v51 }
 0x10d   :  { %v493_v57 = vmul.f32 %v9986_v27, %v13906_v6  ;;  %v494_v18 = vmul.f32 %v9988_v28, %v13910_v15  ;;  %v614_v36 = vadd.f32 %v613_v46, %v479_v8  ;;  %v629_v47 = vadd.f32 %v628_v60, %v492_v0  ;;  %v10749_v0 = vld [vmem:[%s13379_s0 + $0x1d0] sm:$0xff] }
 0x10e   :  { %v506_v6 = vmul.f32 %v9974_v22, %v13526_v4  ;;  %v495_v15 = vmul.f32 %v10016_v37, %v13911_v43  ;;  %13912 = vst [vmem:[#allocation77_spill] sm:$0xff] %v10749_v0  ;;  %v13913_v60 = vunpack.c.h.bf16 %v10672_v1  ;;  %v13540_v43 = vunpack.c.l.bf16 %v10713_v12 }
 0x10f   :  { %v615_v8 = vadd.f32 %v614_v36, %v480_v5  ;;  %v630_v46 = vadd.f32 %v629_v47, %v493_v57  ;;  %v13535_v58 = vunpack.c.l.bf16 %v10719_v50  ;;  %v13538_v51 = vunpack.c.h.bf16 %v10719_v50 }
 0x110   :  { %v508_v4 = vmul.f32 %v9982_v24, %v13913_v60  ;;  %v645_v19 = vadd.f32 %v506_v6, %v505_v11  ;;  %v13539_v26 = vunpack.c.l.bf16 %v10724_v62  ;;  %v13914_v44 = vunpack.c.l.bf16 %v10693_v7  ;;  %v10769_v60 = vld [vmem:[%s13379_s0 + $0x1d8] sm:$0xff] }
 0x111   :  { %616 = vadd.xlane.f32.xlu0 %v615_v8  ;;  %v631_v42 = vadd.f32 %v630_v46, %v494_v18  ;;  %v13915_v11 = vunpack.c.h.bf16 %v10693_v7  ;;  %13916 = vst [vmem:[#allocation78_spill] sm:$0xff] %v10769_v60  ;;  %v521_v18 = vmul.f32 %v9971_v21, %v13535_v58  ;;  %v13543_v8 = vunpack.c.l.bf16 %v10749_v0 }
 0x112   :  { %v509_v5 = vmul.f32 %v9986_v27, %v13914_v44  ;;  %v646_v57 = vadd.f32 %v645_v19, %v507_v33  ;;  %v522_v44 = vmul.f32 %v9974_v22, %v13538_v51  ;;  %v523_v46 = vmul.f32 %v9978_v23, %v13539_v26 }
 0x113   :  { %v510_v6 = vmul.f32 %v9988_v28, %v13915_v11  ;;  %v632_v19 = vadd.f32 %v631_v42, %v495_v15  ;;  %v511_v11 = vmul.f32 %v10016_v37, %v13540_v43  ;;  %v13917_v50 = vunpack.c.h.bf16 %v10724_v62  ;;  %v8468_v62 = vld [vmem:[#allocation8 + $0x40] ss:$16 sps:$4 sm:$0xff]  }
 0x114   :  { %v647_v33 = vadd.f32 %v646_v57, %v508_v4  ;;  %v663_v42 = vadd.f32 %v522_v44, %v521_v18  ;;  %v13918_v4 = vunpack.c.h.bf16 %v10713_v12  ;;  %v13541_v26 = vunpack.c.l.bf16 %v10769_v60 }
 0x115   :  { %v633_v36 = vadd.f32 %v632_v19, %v496_v3  ;;  %v524_v51 = vmul.f32 %v9982_v24, %v13917_v50  ;;  %v525_v43 = vmul.f32 %v9986_v27, %v13543_v8  ;;  %v13919_v19 = vunpack.c.h.bf16 %v10749_v0  ;;  %v8456_v8 = vld [vmem:[#allocation8] ss:$16 sps:$4 sm:$0xff]   ;;  %v8460_v0 = vld [vmem:[#allocation8 + $0x24] ss:$16 sps:$4 sm:$0xff]  }
 0x116   :  { %v648_v58 = vadd.f32 %v647_v33, %v509_v5  ;;  %v512_v15 = vmul.f32 %v10018_v38, %v13918_v4  ;;  %v664_v47 = vadd.f32 %v663_v42, %v523_v46  ;;  %v13542_v5 = vunpack.c.h.bf16 %v10769_v60  ;;  %v8450_v60 = vld [vmem:[#allocation10 + $0xc] ss:$16 sps:$4 sm:$0xff]  }
 0x117   :  { %634 = vadd.xlane.f32.xlu0 %v633_v36  ;;  %v526_v50 = vmul.f32 %v9988_v28, %v13919_v19  ;;  %vm3743_vm3 = vcmask 261120   ;;  %vm2879_vm4 = vcmask 1041409   ;;  %vm2881_vm5 = vcmask 1042434  }
 0x118   :  { %v649_v57 = vadd.f32 %v648_v58, %v510_v6  ;;  %v665_v18 = vadd.f32 %v664_v47, %v524_v51  ;;  %v527_v58 = vmul.f32 %v10016_v37, %v13541_v26  ;;  %v528_v6 = vmul.f32 %v10018_v38, %v13542_v5  ;;  %v10808_v51 = vld [vmem:[#allocation2] ss:$0 sm:$0xff]  ;;  %v8454_v5 = vld [vmem:[#allocation8 + $0x4] ss:$16 sps:$4 sm:$0xff]  }
 0x119   :  { %6389 = vmatprep.subr.bf16.mxu0 %v8454_v5  ;;  %vm2883_vm6 = vcmask 1043459   ;;  %vm2885_vm7 = vcmask 1044484   ;;  %vm2887_vm8 = vcmask 1045509   ;;  %vm2889_vm9 = vcmask 1046534  }
 0x11a   :  { %v650_v3 = vadd.f32 %v649_v57, %v511_v11  ;;  %v666_v36 = vadd.f32 %v665_v18, %v525_v43  ;;  %v13544_v11 = vmov 0   ;;  %6390 = vmatpush1.bf16.msra.mxu0 %v8456_v8  ;;  %v8462_v8 = vld [vmem:[#allocation8 + $0x20] ss:$16 sps:$4 sm:$0xff]   ;;  %vm2891_vm10 = vcmask 1047559  }
 0x11b   :  { %8440 = vset.pattern.permute.xlu0 %v13544_v11  ;;  %8441 = vset.pattern.permute.xlu1 %v13544_v11 }
 0x11c   :  { %v651_v44 = vadd.f32 %v650_v3, %v512_v15  ;;  %v667_v33 = vadd.f32 %v666_v36, %v526_v50  ;;  %3779 = vmatprep.mubr.bf16.mxu1 %v13544_v11  ;;  %6391 = vmatprep.subr.bf16.mxu0 %v8460_v0 }
 0x11e   :  { %652 = vadd.xlane.f32.xlu0 %v651_v44  ;;  %v668_v46 = vadd.f32 %v667_v33, %v527_v58  ;;  %6392 = vmatpush1.bf16.msra.mxu0 %v8462_v8 }
 0x120   :  { %v669_v42 = vadd.f32 %v668_v46, %v528_v6 }
 0x122   :  { %670 = vadd.xlane.f32.xlu0 %v669_v42 }
 0x15d   :  { %v563_v15 = vpop.xlane.xlu1 %562 }
 0x15e   :  { %v689_v57 = vadd.f32 %v10808_v51, %v563_v15 }
 0x160   :  { %v545_v47 = vpop.xlane.xlu0 %544  ;;  %v7750_v19 = vmul.f32 -1.442695, %v689_v57 }
 0x161   :  { %v687_v43 = vadd.f32 %v10808_v51, %v545_v47 }
 0x163   :  { %v7748_v4 = vmul.f32 -1.442695, %v687_v43 }
 0x165   :  { %9334 = vpow2.f32 %v7748_v4 }
 0x166   :  { %v572_v3 = vpop.xlane.xlu1 %571  ;;  %9336 = vpow2.f32 %v7750_v19 }
 0x167   :  { %v690_v50 = vadd.f32 %v10808_v51, %v572_v3 }
 0x169   :  { %v7751_v36 = vmul.f32 -1.442695, %v690_v50 }
 0x16c   :  { %v554_v18 = vpop.xlane.xlu0 %553 }
 0x16d   :  { %v688_v44 = vadd.f32 %v10808_v51, %v554_v18 }
 0x16f   :  { %v9335_v58 = vpop.eup %9334  ;;  %v7749_v6 = vmul.f32 -1.442695, %v688_v44 }
 0x170   :  { %v751_v33 = vadd.f32 1.0, %v9335_v58  ;;  %v9337_v47 = vpop.eup %9336 }
 0x171   :  { %9338 = vpow2.f32 %v7749_v6  ;;  %v590_v46 = vpop.xlane.xlu1 %589  ;;  %v753_v15 = vadd.f32 1.0, %v9337_v47 }
 0x172   :  { %9340 = vrcp.f32 %v751_v33  ;;  %v692_v18 = vadd.f32 %v10808_v51, %v590_v46 }
 0x173   :  { %9342 = vpow2.f32 %v7751_v36 }
 0x174   :  { %v7753_v58 = vmul.f32 -1.442695, %v692_v18 }
 0x177   :  { %v608_v42 = vpop.xlane.xlu1 %607 }
 0x17b   :  { %v9339_v43 = vpop.eup %9338 }
 0x17c   :  { %v9341_v4 = vpop.eup %9340  ;;  %v752_v57 = vadd.f32 1.0, %v9339_v43  ;;  %v626_v3 = vpop.xlane.xlu1 %625 }
 0x17d   :  { %v9343_v26 = vpop.eup %9342  ;;  %801 = vperm.xlu0 %8440, %v9341_v4   ;;  %v696_v19 = vadd.f32 %v10808_v51, %v626_v3 }
 0x17e   :  { %9344 = vrcp.f32 %v752_v57  ;;  %v754_v50 = vadd.f32 1.0, %v9343_v26  ;;  %v10821_v26 = vld [vmem:[%s13380_s1 + $0x20] sm:$0xff] }
 0x17f   :  { %9346 = vrcp.f32 %v753_v15  ;;  %v7757_v44 = vmul.f32 -1.442695, %v696_v19  ;;  %13920 = vst [vmem:[#allocation79_spill] sm:$0xff] %v10821_v26  ;;  %v694_v19 = vadd.f32 %v10808_v51, %v608_v42 }
 0x181   :  { %9348 = vpow2.f32 %v7757_v44  ;;  %v10827_v44 = vld [vmem:[%s13380_s1 + $0x40] sm:$0xff]  ;;  %v7755_v42 = vmul.f32 -1.442695, %v694_v19  ;;  %v13926_v19 = vunpack.c.h.bf16 %v10821_v26 }
 0x182   :  { %v581_v36 = vpop.xlane.xlu0 %580  ;;  %9350 = vrcp.f32 %v754_v50  ;;  %13921 = vst [vmem:[#allocation80_spill] sm:$0xff] %v10827_v44  ;;  %v13927_v5 = vunpack.c.l.bf16 %v10827_v44 }
 0x183   :  { %v691_v6 = vadd.f32 %v10808_v51, %v581_v36  ;;  %9352 = vpow2.f32 %v7753_v58  ;;  %v8442_v58 = vld [vmem:[#allocation10] ss:$16 sps:$4 sm:$0xff]   ;;  %v8444_v36 = vld [vmem:[#allocation10 + $0x4] ss:$16 sps:$4 sm:$0xff]  }
 0x184   :  { %3747 = vmatprep.subr.bf16.mxu1 %v8444_v36 }
 0x185   :  { %v7752_v33 = vmul.f32 -1.442695, %v691_v6  ;;  %3748 = vmatpush1.bf16.msra.mxu1 %v8442_v58  ;;  %v13925_v58 = vunpack.c.l.bf16 %v10821_v26 }
 0x187   :  { %9354 = vpow2.f32 %v7752_v33  ;;  %v644_v43 = vpop.xlane.xlu1 %643  ;;  %v8447_v33 = vld [vmem:[#allocation10 + $0x24] ss:$16 sps:$4 sm:$0xff]  }
 0x188   :  { %v9345_v47 = vpop.eup %9344  ;;  %v698_v4 = vadd.f32 %v10808_v51, %v644_v43  ;;  %v10833_v43 = vld [vmem:[%s13380_s1 + $0x28] sm:$0xff]  ;;  %3749 = vmatprep.subr.bf16.mxu1 %v8447_v33 }
 0x189   :  { %806 = vperm.xlu1 %8441, %v9345_v47   ;;  %v9347_v46 = vpop.eup %9346  ;;  %13922 = vst [vmem:[#allocation81_spill] sm:$0xff] %v10833_v43 }
 0x18a   :  { %v7759_v57 = vmul.f32 -1.442695, %v698_v4  ;;  %v10847_v4 = vld [vmem:[%s13380_s1 + $0x80] sm:$0xff] }
 0x18b   :  { %v9349_v15 = vpop.eup %9348  ;;  %13924 = vst [vmem:[#allocation83_spill] sm:$0xff] %v10847_v4 }
 0x18c   :  { %v760_v3 = vadd.f32 1.0, %v9349_v15  ;;  %9356 = vpow2.f32 %v7759_v57  ;;  %v9351_v18 = vpop.eup %9350  ;;  %v8445_v57 = vld [vmem:[#allocation10 + $0x20] ss:$16 sps:$4 sm:$0xff]  }
 0x18d   :  { %811 = vperm.xlu1 %8441, %v9347_v46   ;;  %v662_v50 = vpop.xlane.xlu1 %661  ;;  %v9353_v47 = vpop.eup %9352  ;;  %v10840_v46 = vld [vmem:[%s13380_s1 + $0x48] sm:$0xff]  ;;  %3750 = vmatpush1.bf16.msra.mxu1 %v8445_v57 }
 0x18e   :  { %9358 = vrcp.f32 %v760_v3  ;;  %v700_v6 = vadd.f32 %v10808_v51, %v662_v50  ;;  %13923 = vst [vmem:[#allocation82_spill] sm:$0xff] %v10840_v46  ;;  %v756_v36 = vadd.f32 1.0, %v9353_v47  ;;  %v1719_v50 = vmul.f32 %v13925_v58, %v9971_v21  ;;  %3788 = vmatprep.subr.bf16.mxu1 %v8450_v60 }
 0x18f   :  { %v1720_v3 = vmul.f32 %v13926_v19, %v9974_v22  ;;  %v13928_v47 = vunpack.c.h.bf16 %v10827_v44  ;;  %v13931_v60 = vunpack.c.l.bf16 %v10833_v43  ;;  %v13933_v58 = vunpack.c.l.bf16 %v10840_v46 }
 0x190   :  { %v7761_v15 = vmul.f32 -1.442695, %v700_v6  ;;  %v8466_v6 = vld [vmem:[#allocation8 + $0x44] ss:$16 sps:$4 sm:$0xff]  }
 0x191   :  { %816 = vperm.xlu1 %8441, %v9351_v18   ;;  %v9355_v11 = vpop.eup %9354  ;;  %v1729_v26 = vmul.f32 %v13933_v58, %v9978_v23  ;;  %6393 = vmatprep.subr.bf16.mxu0 %v8466_v6  ;;  %v10908_v6 = vld [vmem:[%s13380_s1 + $0x90] sm:$0xff] }
 0x192   :  { %v755_v12 = vadd.f32 1.0, %v9355_v11  ;;  %9360 = vpow2.f32 %v7761_v15  ;;  %v599_v18 = vpop.xlane.xlu0 %598  ;;  %v1727_v11 = vmul.f32 %v13927_v5, %v9971_v21  ;;  %v1728_v15 = vmul.f32 %v13928_v47, %v9974_v22  ;;  %v10869_v5 = vld [vmem:[%s13380_s1 + $0x88] sm:$0xff]  ;;  %13938 = vst [vmem:[#allocation87_spill] sm:$0xff] %v10908_v6  ;;  %6394 = vmatpush1.bf16.msra.mxu0 %v8468_v62 }
 0x193   :  { %v693_v33 = vadd.f32 %v10808_v51, %v599_v18  ;;  %13929 = vst [vmem:[#allocation84_spill] sm:$0xff] %v10869_v5  ;;  %v1721_v47 = vmul.f32 %v13931_v60, %v9978_v23  ;;  %6395 = vmatprep.subr.bf16.mxu0 %v8472_v34 }
 0x194   :  { %9362 = vrcp.f32 %v755_v12  ;;  %v1857_v57 = vadd.f32 %v1728_v15, %v1727_v11 }
 0x195   :  { %9364 = vpow2.f32 %v7755_v42  ;;  %v7754_v18 = vmul.f32 -1.442695, %v693_v33  ;;  %v10874_v42 = vld [vmem:[%s13380_s1 + $0x30] sm:$0xff] }
 0x196   :  { %v9357_v12 = vpop.eup %9356  ;;  %9366 = vrcp.f32 %v756_v36  ;;  %13930 = vst [vmem:[#allocation85_spill] sm:$0xff] %v10874_v42  ;;  %v1848_v36 = vadd.f32 %v1720_v3, %v1719_v50  ;;  %v10883_v33 = vld [vmem:[%s13380_s1 + $0x50] sm:$0xff]  ;;  %v13934_v50 = vunpack.c.l.bf16 %v10847_v4  ;;  %v13563_v11 = vunpack.c.l.bf16 %v10874_v42  ;;  %6396 = vmatpush1.bf16.msra.mxu0 %v8474_v25 }
 0x197   :  { %v762_v44 = vadd.f32 1.0, %v9357_v12  ;;  %13932 = vst [vmem:[#allocation86_spill] sm:$0xff] %v10883_v33  ;;  %9368 = vpow2.f32 %v7754_v18  ;;  %v13935_v18 = vunpack.c.h.bf16 %v10847_v4  ;;  %v1858_v4 = vadd.f32 %v1857_v57, %v1729_v26 }
 0x198   :  { %v9359_v19 = vpop.eup %9358  ;;  %v1743_v0 = vmul.f32 %v13934_v50, %v9971_v21  ;;  %v1849_v58 = vadd.f32 %v1848_v36, %v1721_v47  ;;  %v13937_v50 = vunpack.c.h.bf16 %v10840_v46  ;;  %v10913_v47 = vld [vmem:[%s13380_s1 + $0x38] sm:$0xff]  ;;  %v13940_v36 = vunpack.c.l.bf16 %v10869_v5 }
 0x199   :  { %9370 = vrcp.f32 %v762_v44  ;;  %v680_v60 = vpop.xlane.xlu1 %679  ;;  %846 = vperm.xlu0 %8440, %v9359_v19   ;;  %v1744_v12 = vmul.f32 %v13935_v18, %v9974_v22  ;;  %v13936_v44 = vunpack.c.h.bf16 %v10833_v43  ;;  %13939 = vst [vmem:[#allocation88_spill] sm:$0xff] %v10913_v47  ;;  %v13944_v48 = vunpack.c.h.bf16 %v10874_v42 }
 0x19a   :  { %v702_v7 = vadd.f32 %v10808_v51, %v680_v60  ;;  %v1730_v1 = vmul.f32 %v13937_v50, %v9982_v24  ;;  %v1745_v18 = vmul.f32 %v13940_v36, %v9978_v23  ;;  %v10927_v36 = vld [vmem:[%s13380_s1 + $0x58] sm:$0xff]  ;;  %v13950_v34 = vunpack.c.l.bf16 %v10913_v47 }
 0x19b   :  { %v1722_v15 = vmul.f32 %v13936_v44, %v9982_v24  ;;  %v1875_v44 = vadd.f32 %v1744_v12, %v1743_v0  ;;  %13941 = vst [vmem:[#allocation89_spill] sm:$0xff] %v10927_v36  ;;  %v1724_v0 = vmul.f32 %v13944_v48, %v9988_v28  ;;  %v13951_v25 = vunpack.c.l.bf16 %v10927_v36 }
 0x19c   :  { %v9361_v19 = vpop.eup %9360  ;;  %v7763_v8 = vmul.f32 -1.442695, %v702_v7  ;;  %v1859_v50 = vadd.f32 %v1858_v4, %v1730_v1 }
 0x19d   :  { %v764_v60 = vadd.f32 1.0, %v9361_v19  ;;  %v1723_v19 = vmul.f32 %v13563_v11, %v9986_v27  ;;  %v1850_v7 = vadd.f32 %v1849_v58, %v1722_v15  ;;  %v13943_v11 = vunpack.c.h.bf16 %v10869_v5 }
 0x19e   :  { %v9363_v26 = vpop.eup %9362  ;;  %9372 = vpow2.f32 %v7763_v8  ;;  %v617_v57 = vpop.xlane.xlu0 %616  ;;  %v13942_v8 = vunpack.c.l.bf16 %v10883_v33  ;;  %v1876_v58 = vadd.f32 %v1875_v44, %v1745_v18  ;;  %v13945_v44 = vunpack.c.h.bf16 %v10883_v33 }
 0x19f   :  { %v9365_v3 = vpop.eup %9364  ;;  %9374 = vrcp.f32 %v764_v60  ;;  %v695_v62 = vadd.f32 %v10808_v51, %v617_v57  ;;  %821 = vperm.xlu1 %8441, %v9363_v26   ;;  %v1746_v15 = vmul.f32 %v13943_v11, %v9982_v24  ;;  %v1851_v4 = vadd.f32 %v1850_v7, %v1723_v19  ;;  %v8478_v26 = vld [vmem:[#allocation8 + $0x84] ss:$16 sps:$4 sm:$0xff]  }
 0x1a0   :  { %v9367_v12 = vpop.eup %9366  ;;  %v1731_v60 = vmul.f32 %v13942_v8, %v9986_v27  ;;  %v758_v8 = vadd.f32 1.0, %v9365_v3  ;;  %v1732_v43 = vmul.f32 %v13945_v44, %v9988_v28  ;;  %v10950_v3 = vld [vmem:[%s13380_s1 + $0x98] sm:$0xff]  ;;  %v10956_v7 = vld [vmem:[%s13380_s1 + $0xc0] sm:$0xff]  ;;  %6397 = vmatprep.subr.bf16.mxu0 %v8478_v26  ;;  %v13952_v26 = vunpack.c.h.bf16 %v10908_v6 }
 0x1a1   :  { %v7756_v57 = vmul.f32 -1.442695, %v695_v62  ;;  %v9369_v46 = vpop.eup %9368  ;;  %13946 = vst [vmem:[#allocation90_spill] sm:$0xff] %v10950_v3  ;;  %13947 = vst [vmem:[#allocation91_spill] sm:$0xff] %v10956_v7  ;;  %v1852_v5 = vadd.f32 %v1851_v4, %v1724_v0  ;;  %v13590_v33 = vunpack.c.l.bf16 %v10950_v3  ;;  %v10989_v0 = vld [vmem:[%s13380_s1 + $0xd8] sm:$0xff]  ;;  %v13955_v4 = vunpack.c.h.bf16 %v10913_v47 }
 0x1a2   :  { %v757_v1 = vadd.f32 1.0, %v9369_v46  ;;  %v1860_v48 = vadd.f32 %v1859_v50, %v1731_v60  ;;  %v13948_v50 = vunpack.c.l.bf16 %v10908_v6  ;;  %v1877_v60 = vadd.f32 %v1876_v58, %v1746_v15  ;;  %13954 = vst [vmem:[#allocation94_spill] sm:$0xff] %v10989_v0 }
 0x1a3   :  { %v9371_v39 = vpop.eup %9370  ;;  %9376 = vpow2.f32 %v7756_v57  ;;  %826 = vperm.xlu1 %8441, %v9367_v12   ;;  %v10965_v57 = vld [vmem:[%s13380_s1 + $0xc8] sm:$0xff]  ;;  %v13582_v15 = vunpack.c.l.bf16 %v10956_v7  ;;  %v13583_v58 = vunpack.c.h.bf16 %v10956_v7 }
 0x1a4   :  { %v10941_v62 = vpop.f32.mrb[0].mxu1  ;;  %v635_v11 = vpop.xlane.xlu0 %634  ;;  %856 = vperm.xlu0 %8440, %v9371_v39   ;;  %v8480_v39 = vld [vmem:[#allocation8 + $0x80] ss:$16 sps:$4 sm:$0xff]   ;;  %9378 = vrcp.f32 %v757_v1  ;;  %v1747_v12 = vmul.f32 %v13948_v50, %v9986_v27  ;;  %13949 = vst [vmem:[#allocation92_spill] sm:$0xff] %v10965_v57  ;;  %v1725_v1 = vmul.f32 %v13950_v34, %v10016_v37  ;;  %v1861_v46 = vadd.f32 %v1860_v48, %v1732_v43 }
 0x1a5   :  { %v697_v19 = vadd.f32 %v10808_v51, %v635_v11  ;;  %v8414_v44 = vpop.f32.mrb[1].mxu1  ;;  %9380 = vrcp.f32 %v758_v8  ;;  %v1748_v8 = vmul.f32 %v13952_v26, %v9988_v28  ;;  %v10984_v11 = vld [vmem:[%s13380_s1 + $0xd0] sm:$0xff]  ;;  %6398 = vmatpush1.bf16.msra.mxu0 %v8480_v39 }
 0x1a6   :  { %v1733_v44 = vmul.f32 %v13951_v25, %v10016_v37  ;;  %13953 = vst [vmem:[#allocation93_spill] sm:$0xff] %v10984_v11  ;;  %v1853_v39 = vadd.f32 %v1852_v5, %v1725_v1  ;;  %v13591_v5 = vunpack.c.h.bf16 %v10965_v57  ;;  %v8486_v7 = vld [vmem:[#allocation8 + $0xa0] ss:$16 sps:$4 sm:$0xff]  }
 0x1a7   :  { %v7758_v18 = vmul.f32 -1.442695, %v697_v19  ;;  %v1878_v19 = vadd.f32 %v1877_v60, %v1747_v12  ;;  %v1759_v60 = vmul.f32 %v13582_v15, %v9971_v21  ;;  %v1749_v15 = vmul.f32 %v13590_v33, %v10016_v37 }
 0x1a8   :  { %v9373_v50 = vpop.eup %9372  ;;  %v1862_v26 = vadd.f32 %v1861_v46, %v1733_v44 }
 0x1a9   :  { %v9375_v42 = vpop.eup %9374  ;;  %v766_v34 = vadd.f32 1.0, %v9373_v50  ;;  %9382 = vpow2.f32 %v7758_v18  ;;  %v1726_v18 = vmul.f32 %v13955_v4, %v10018_v38  ;;  %v1760_v50 = vmul.f32 %v13583_v58, %v9974_v22  ;;  %v8484_v4 = vld [vmem:[#allocation8 + $0xa4] ss:$16 sps:$4 sm:$0xff]  }
 0x1aa   :  { %866 = vperm.xlu0 %8440, %v9375_v42   ;;  %v13956_v42 = vunpack.c.h.bf16 %v10927_v36  ;;  %v1879_v58 = vadd.f32 %v1878_v19, %v1748_v8  ;;  %v13958_v36 = vunpack.c.l.bf16 %v10965_v57  ;;  %v11025_v19 = vld [vmem:[%s13380_s1 + $0x108] sm:$0xff]  ;;  %6399 = vmatprep.subr.bf16.mxu0 %v8484_v4  ;;  %v13964_v4 = vunpack.c.h.bf16 %v10984_v11 }
 0x1ab   :  { %v653_v43 = vpop.xlane.xlu0 %652  ;;  %9384 = vrcp.f32 %v766_v34  ;;  %v11009_v34 = vld [vmem:[%s13380_s1 + $0x100] sm:$0xff]  ;;  %v1893_v8 = vadd.f32 %v1760_v50, %v1759_v60  ;;  %13959 = vst [vmem:[#allocation96_spill] sm:$0xff] %v11025_v19  ;;  %v11027_v44 = vadd.f32 %v1853_v39, %v1726_v18  ;;  %v11038_v50 = vld [vmem:[%s13380_s1 + $0x110] sm:$0xff]  ;;  %6400 = vmatpush1.bf16.msra.mxu0 %v8486_v7  ;;  %v11066_v7 = vld [vmem:[%s13380_s1 + $0x118] sm:$0xff] }
 0x1ac   :  { %v699_v12 = vadd.f32 %v10808_v51, %v653_v43  ;;  %v1734_v25 = vmul.f32 %v13956_v42, %v10018_v38  ;;  %13957 = vst [vmem:[#allocation95_spill] sm:$0xff] %v11009_v34  ;;  %v1761_v33 = vmul.f32 %v13958_v36, %v9978_v23  ;;  %v1880_v60 = vadd.f32 %v1879_v58, %v1749_v15  ;;  %v11045_v39 = vld [vmem:[%s13380_s1 + $0x140] sm:$0xff] }
 0x1ad   :  { %v9377_v43 = vpop.eup %9376  ;;  %13961 = vst [vmem:[#allocation97_spill] sm:$0xff] %v11038_v50  ;;  %13962 = vst [vmem:[#allocation98_spill] sm:$0xff] %v11045_v39  ;;  %v13963_v15 = vunpack.c.l.bf16 %v10984_v11 }
 0x1ae   :  { %v7760_v48 = vmul.f32 -1.442695, %v699_v12  ;;  %v759_v1 = vadd.f32 1.0, %v9377_v43  ;;  %v9379_v6 = vpop.eup %9378  ;;  %v11029_v46 = vadd.f32 %v1862_v26, %v1734_v25  ;;  %v8490_v25 = vld [vmem:[#allocation8 + $0xc4] ss:$16 sps:$4 sm:$0xff]   ;;  %13966 = vst [vmem:[#allocation99_spill] sm:$0xff] %v11066_v7  ;;  %v1894_v11 = vadd.f32 %v1893_v8, %v1761_v33 }
 0x1af   :  { %v671_v43 = vpop.xlane.xlu0 %670  ;;  %831 = vperm.xlu1 %8441, %v9379_v6   ;;  %v9381_v42 = vpop.eup %9380  ;;  %v8492_v26 = vld [vmem:[#allocation8 + $0xc0] ss:$16 sps:$4 sm:$0xff]   ;;  %v1763_v58 = vmul.f32 %v13963_v15, %v9986_v27  ;;  %6401 = vmatprep.subr.bf16.mxu0 %v8490_v25  ;;  %v13970_v8 = vunpack.c.l.bf16 %v11009_v34  ;;  %v13971_v25 = vunpack.c.h.bf16 %v11009_v34 }
 0x1b0   :  { %9386 = vpow2.f32 %v7760_v48  ;;  %v13960_v48 = vunpack.c.h.bf16 %v10950_v3  ;;  %v701_v36 = vadd.f32 %v10808_v51, %v671_v43  ;;  %v1762_v51 = vmul.f32 %v13591_v5, %v9982_v24  ;;  %v11071_v5 = vld [vmem:[%s13380_s1] sm:$0xff]  ;;  %6402 = vmatpush1.bf16.msra.mxu0 %v8492_v26 }
 0x1b1   :  { %9388 = vrcp.f32 %v759_v1  ;;  %v11056_v1 = vmul.f32 %v13964_v4, %v9988_v28  ;;  %v13965_v43 = vunpack.c.l.bf16 %v10989_v0  ;;  %13967 = vst [vmem:[#allocation100_spill] sm:$0xff] %v11071_v5  ;;  %v13968_v4 = vunpack.c.h.bf16 %v10989_v0  ;;  %v7780_v0 = vld [vmem:[#allocation7] ss:$0 sm:$0xff]  ;;  %v8496_v3 = vld [vmem:[#allocation8 + $0xe4] ss:$16 sps:$4 sm:$0xff]  }
 0x1b2   :  { %v1750_v12 = vmul.f32 %v13960_v48, %v10018_v38  ;;  %v7762_v18 = vmul.f32 -1.442695, %v701_v36  ;;  %v11085_v36 = vld [vmem:[%s13380_s1 + $0x180] sm:$0xff]  ;;  %6403 = vmatprep.subr.bf16.mxu0 %v8496_v3 }
 0x1b3   :  { %v11061_v48 = vmul.f32 %v13965_v43, %v10016_v37  ;;  %v9383_v15 = vpop.eup %9382  ;;  %v11076_v6 = vmul.f32 %v13968_v4, %v10018_v38  ;;  %v13604_v43 = vunpack.c.l.bf16 %v11025_v19  ;;  %836 = vperm.xlu1 %8441, %v9381_v42   ;;  %13969 = vst [vmem:[#allocation101_spill] sm:$0xff] %v11085_v36  ;;  %v1775_v42 = vmul.f32 %v13970_v8, %v9971_v21  ;;  %v11106_v8 = vld [vmem:[%s13380_s1 + $0x8] sm:$0xff] }
 0x1b4   :  { %v761_v57 = vadd.f32 1.0, %v9383_v15  ;;  %9390 = vpow2.f32 %v7762_v18  ;;  %v11087_v33 = vadd.f32 %v1880_v60, %v1750_v12  ;;  %v1776_v15 = vmul.f32 %v13971_v25, %v9974_v22  ;;  %13973 = vst [vmem:[#allocation103_spill] sm:$0xff] %v11106_v8 }
 0x1b5   :  { %v9385_v4 = vpop.eup %9384  ;;  %v1895_v25 = vadd.f32 %v1894_v11, %v1762_v51  ;;  %v13975_v60 = vunpack.c.l.bf16 %v11038_v50  ;;  %v13976_v11 = vunpack.c.h.bf16 %v11038_v50 }
 0x1b6   :  { %9392 = vrcp.f32 %v761_v57  ;;  %876 = vperm.xlu0 %8440, %v9385_v4   ;;  %v1777_v57 = vmul.f32 %v13604_v43, %v9978_v23  ;;  %v13974_v4 = vunpack.c.h.bf16 %v11025_v19  ;;  %v1911_v26 = vadd.f32 %v1776_v15, %v1775_v42  ;;  %v11142_v42 = vld [vmem:[%s13380_s1 + $0x188] sm:$0xff] }
 0x1b7   :  { %v11122_v12 = vmul.f32 %v13975_v60, %v9986_v27  ;;  %v11127_v51 = vmul.f32 %v13976_v11, %v9988_v28  ;;  %v3162_v19 = vadd.f32 %v7780_v0, %v10941_v62  ;;  %v13977_v60 = vunpack.c.l.bf16 %v11045_v39  ;;  %13979 = vst [vmem:[#allocation104_spill] sm:$0xff] %v11142_v42  ;;  %v8448_v15 = vld [vmem:[#allocation10 + $0x8] ss:$16 sps:$4 sm:$0xff]  }
 0x1b8   :  { %v11117_v18 = vmul.f32 %v13974_v4, %v9982_v24  ;;  %v13978_v11 = vunpack.c.h.bf16 %v11045_v39  ;;  %v8498_v39 = vld [vmem:[#allocation8 + $0xe0] ss:$16 sps:$4 sm:$0xff]   ;;  %v13983_v62 = vunpack.c.l.bf16 %v11066_v7  ;;  %v1912_v14 = vadd.f32 %v1911_v26, %v1777_v57 }
 0x1b9   :  { %v1791_v20 = vmul.f32 %v13977_v60, %v9971_v21  ;;  %v13981_v60 = vunpack.c.h.bf16 %v11071_v5  ;;  %v3165_v43 = vmax.f32 %v3162_v19, 0.0  ;;  %v13985_v19 = vunpack.c.l.bf16 %v11085_v36  ;;  %6404 = vmatpush1.bf16.msra.mxu0 %v8498_v39 }
 0x1ba   :  { %v9387_v47 = vpop.eup %9386  ;;  %v1792_v50 = vmul.f32 %v13978_v11, %v9974_v22  ;;  %v11154_v11 = vld [vmem:[%s13380_s1 + $0x60] sm:$0xff]  ;;  %v11159_v56 = vmul.f32 %v13983_v62, %v10016_v37  ;;  %v13987_v62 = vunpack.c.h.bf16 %v11066_v7  ;;  %v13990_v26 = vunpack.c.l.bf16 %v11106_v8 }
 0x1bb   :  { %v9389_v4 = vpop.eup %9388  ;;  %v763_v34 = vadd.f32 1.0, %v9387_v47  ;;  %v13980_v47 = vunpack.c.l.bf16 %v11071_v5  ;;  %v1712_v52 = vmul.f32 %v13981_v60, %v9974_v22  ;;  %13982 = vst [vmem:[#allocation105_spill] sm:$0xff] %v11154_v11  ;;  %v8453_v60 = vld [vmem:[#allocation10 + $0x2c] ss:$16 sps:$4 sm:$0xff]   ;;  %v1807_v61 = vmul.f32 %v13985_v19, %v9971_v21  ;;  %v11187_v19 = vld [vmem:[%s13380_s1 + $0x10] sm:$0xff] }
 0x1bc   :  { %841 = vperm.xlu1 %8441, %v9389_v4   ;;  %v1896_v4 = vadd.f32 %v1895_v25, %v1763_v58  ;;  %v11173_v25 = vpack.c.bf16 %v3165_v43, %v3165_v43  ;;  %v11178_v55 = vmul.f32 %v13987_v62, %v10018_v38  ;;  %v13988_v5 = vunpack.c.l.bf16 %v11098_v49  ;;  %13989 = vst [vmem:[#allocation107_spill] sm:$0xff] %v11187_v19  ;;  %v8451_v43 = vld [vmem:[#allocation10 + $0x28] ss:$16 sps:$4 sm:$0xff]  }
 0x1bd   :  { %v1711_v0 = vmul.f32 %v13980_v47, %v9971_v21  ;;  %9394 = vrcp.f32 %v763_v34  ;;  %v11164_v47 = vld [vmem:[%s13380_s1 + $0x150] sm:$0xff]  ;;  %v13986_v34 = vunpack.c.h.bf16 %v11085_v36  ;;  %v1713_v57 = vmul.f32 %v13990_v26, %v9978_v23 }
 0x1be   :  { %13984 = vst [vmem:[#allocation106_spill] sm:$0xff] %v11164_v47  ;;  %v1793_v16 = vmul.f32 %v13988_v5, %v9978_v23  ;;  %v9391_v3 = vpop.eup %9390  ;;  %v11196_v5 = vld [vmem:[%s13380_s1 + $0x68] sm:$0xff]  ;;  %7791 = vmatmul.mubr.msk.bf16.vlgmr.msra.gmra.mrb[4].mxu1 %vm3743_vm3, %v11173_v25  ;;  %v8502_v26 = vld [vmem:[#allocation8 + $0x104] ss:$16 sps:$4 sm:$0xff]   ;;  %v1897_v36 = vadd.f32 %v1896_v4, %v11056_v1  ;;  %v13996_v4 = vunpack.c.h.bf16 %v11098_v49 }
 0x1bf   :  { %v1808_v58 = vmul.f32 %v13986_v34, %v9974_v22  ;;  %v1929_v34 = vadd.f32 %v1792_v50, %v1791_v20  ;;  %v1839_v62 = vadd.f32 %v1712_v52, %v1711_v0  ;;  %13991 = vst [vmem:[#allocation108_spill] sm:$0xff] %v11196_v5  ;;  %v765_v7 = vadd.f32 1.0, %v9391_v3  ;;  %v11203_v20 = vld [vmem:[%s13380_s1 + $0x158] sm:$0xff]  ;;  %3789 = vmatpush1.bf16.msra.mxu1 %v8448_v15  ;;  %v11213_v3 = vld [vmem:[%s13380_s1 + $0x190] sm:$0xff] }
 0x1c0   :  { %v9393_v40 = vpop.eup %9392  ;;  %13992 = vst [vmem:[#allocation109_spill] sm:$0xff] %v11203_v20  ;;  %v13993_v0 = vmov 0   ;;  %13994 = vst [vmem:[#allocation110_spill] sm:$0xff] %v11213_v3  ;;  %v13995_v50 = vunpack.c.l.bf16 %v11142_v42  ;;  %3790 = vmatprep.subr.bf16.mxu1 %v8453_v60  ;;  %v8459_v15 = vld [vmem:[#allocation8 + $0x404] ss:$16 sps:$4 sm:$0xff]   ;;  %6405 = vmatprep.subr.bf16.mxu0 %v8502_v26 }
 0x1c1   :  { %3820 = vmatprep.mubr.bf16.mxu1 %v13993_v0  ;;  %851 = vperm.xlu1 %8441, %v9393_v40   ;;  %v1947_v63 = vadd.f32 %v1808_v58, %v1807_v61  ;;  %v8504_v52 = vld [vmem:[#allocation8 + $0x100] ss:$16 sps:$4 sm:$0xff]   ;;  %9396 = vrcp.f32 %v765_v7  ;;  %v1913_v40 = vadd.f32 %v1912_v14, %v11117_v18  ;;  %v1794_v0 = vmul.f32 %v13996_v4, %v9982_v24 }
 0x1c2   :  { %v1809_v39 = vmul.f32 %v13995_v50, %v9978_v23  ;;  %v1930_v54 = vadd.f32 %v1929_v34, %v1793_v16  ;;  %v13997_v50 = vunpack.c.h.bf16 %v11106_v8  ;;  %v1840_v60 = vadd.f32 %v1839_v62, %v1713_v57  ;;  %v11231_v7 = vld [vmem:[%s13380_s1 + $0x1c0] sm:$0xff]  ;;  %6406 = vmatpush1.bf16.msra.mxu0 %v8504_v52 }
 0x1c3   :  { %13998 = vst [vmem:[#allocation111_spill] sm:$0xff] %v11231_v7  ;;  %v13999_v16 = vunpack.c.l.bf16 %v11154_v11  ;;  %v14000_v34 = vunpack.c.h.bf16 %v11154_v11  ;;  %3791 = vmatpush1.bf16.msra.mxu1 %v8451_v43  ;;  %v8457_v57 = vld [vmem:[#allocation8 + $0x400] ss:$16 sps:$4 sm:$0xff]   ;;  %v8508_v62 = vld [vmem:[#allocation8 + $0x124] ss:$16 sps:$4 sm:$0xff]   ;;  %v14001_v14 = vunpack.c.h.bf16 %v11142_v42  ;;  %v1914_v49 = vadd.f32 %v1913_v40, %v11122_v12 }
 0x1c4   :  { %v1714_v61 = vmul.f32 %v13997_v50, %v9982_v24  ;;  %v8510_v4 = vld [vmem:[#allocation8 + $0x120] ss:$16 sps:$4 sm:$0xff]   ;;  %v1948_v18 = vadd.f32 %v1947_v63, %v1809_v39  ;;  %6471 = vmatprep.subr.bf16.mxu1 %v8459_v15  ;;  %v14002_v43 = vunpack.c.l.bf16 %v11164_v47  ;;  %v13647_v11 = vunpack.c.l.bf16 %v11231_v7  ;;  %6407 = vmatprep.subr.bf16.mxu0 %v8508_v62  ;;  %v8514_v40 = vld [vmem:[#allocation8 + $0x144] ss:$16 sps:$4 sm:$0xff]  }
 0x1c5   :  { %v1735_v58 = vmul.f32 %v13999_v16, %v9971_v21  ;;  %v1736_v26 = vmul.f32 %v14000_v34, %v9974_v22  ;;  %v1810_v1 = vmul.f32 %v14001_v14, %v9982_v24  ;;  %v13652_v50 = vunpack.c.h.bf16 %v11231_v7  ;;  %v11259_v12 = vld [vmem:[%s13380_s1 + $0x1c8] sm:$0xff] }
 0x1c6   :  { %v1795_v34 = vmul.f32 %v14002_v43, %v9986_v27  ;;  %v1931_v52 = vadd.f32 %v1930_v54, %v1794_v0  ;;  %v14003_v63 = vunpack.c.l.bf16 %v11187_v19  ;;  %v1841_v15 = vadd.f32 %v1840_v60, %v1714_v61  ;;  %14004 = vst [vmem:[#allocation112_spill] sm:$0xff] %v11259_v12  ;;  %7792 = vmatmul.mubr.msk.bf16.vlgmr.msra.gmra.mrb[8].mxu1 %vm3743_vm3, %v11173_v25  ;;  %v11267_v54 = vld [vmem:[%s13380_s1 + $0x18] sm:$0xff] }
 0x1c7   :  { %v9395_v16 = vpop.eup %9394  ;;  %v1898_v14 = vadd.f32 %v1897_v36, %v11061_v48  ;;  %14005 = vst [vmem:[#allocation113_spill] sm:$0xff] %v11267_v54  ;;  %v14006_v61 = vunpack.c.l.bf16 %v11196_v5  ;;  %v1866_v62 = vadd.f32 %v1736_v26, %v1735_v58  ;;  %6472 = vmatpush1.bf16.msra.mxu1 %v8457_v57  ;;  %6408 = vmatpush1.bf16.msra.mxu0 %v8510_v4  ;;  %v8516_v43 = vld [vmem:[#allocation8 + $0x140] ss:$16 sps:$4 sm:$0xff]   ;;  %v14007_v25 = vunpack.c.h.bf16 %v11164_v47  ;;  %v8471_v58 = vld [vmem:[#allocation8 + $0x444] ss:$16 sps:$4 sm:$0xff]  }
 0x1c8   :  { %861 = vperm.xlu1 %8441, %v9395_v16   ;;  %v1715_v39 = vmul.f32 %v14003_v63, %v9986_v27  ;;  %v8463_v16 = vld [vmem:[#allocation8 + $0x420] ss:$16 sps:$4 sm:$0xff]   ;;  %v14008_v63 = vunpack.c.l.bf16 %v11213_v3  ;;  %v1949_v0 = vadd.f32 %v1948_v18, %v1810_v1  ;;  %6473 = vmatprep.subr.bf16.mxu1 %v8465_v32  ;;  %v1915_v26 = vadd.f32 %v1914_v49, %v11127_v51  ;;  %v8477_v4 = vld [vmem:[#allocation8 + $0x464] ss:$16 sps:$4 sm:$0xff]  }
 0x1c9   :  { %v1737_v60 = vmul.f32 %v14006_v61, %v9978_v23  ;;  %v1796_v48 = vmul.f32 %v14007_v25, %v9988_v28  ;;  %v11283_v61 = vld [vmem:[%s13380_s1 + $0x70] sm:$0xff]  ;;  %6409 = vmatprep.subr.bf16.mxu0 %v8514_v40  ;;  %v11289_v57 = vld [vmem:[%s13380_s1 + $0x198] sm:$0xff]  ;;  %v1823_v1 = vmul.f32 %v13647_v11, %v9971_v21  ;;  %v1824_v18 = vmul.f32 %v13652_v50, %v9974_v22 }
 0x1ca   :  { %v1811_v42 = vmul.f32 %v14008_v63, %v9986_v27  ;;  %14009 = vst [vmem:[#allocation114_spill] sm:$0xff] %v11283_v61  ;;  %14010 = vst [vmem:[#allocation115_spill] sm:$0xff] %v11289_v57  ;;  %v1932_v32 = vadd.f32 %v1931_v52, %v1795_v34  ;;  %v13653_v40 = vunpack.c.l.bf16 %v11267_v54  ;;  %v14011_v49 = vunpack.c.h.bf16 %v11187_v19  ;;  %v8469_v52 = vld [vmem:[#allocation8 + $0x440] ss:$16 sps:$4 sm:$0xff]   ;;  %v8520_v34 = vld [vmem:[#allocation8 + $0x164] ss:$16 sps:$4 sm:$0xff]  }
 0x1cb   :  { %v1842_v25 = vadd.f32 %v1841_v15, %v1715_v39  ;;  %v9397_v63 = vpop.eup %9396  ;;  %v11303_v36 = vadd.f32 %v1898_v14, %v11076_v6  ;;  %v14012_v11 = vunpack.c.h.bf16 %v11196_v5  ;;  %v1867_v7 = vadd.f32 %v1866_v62, %v1737_v60  ;;  %6474 = vmatpush1.bf16.msra.mxu1 %v8463_v16  ;;  %6410 = vmatpush1.bf16.msra.mxu0 %v8516_v43  ;;  %v11320_v62 = vld [vmem:[%s13380_s1 + $0x1d0] sm:$0xff]  ;;  %v14199_v19 = vld [vmem:[#allocation58_spill] sm:$0xff] }
 0x1cc   :  { %v1716_v51 = vmul.f32 %v14011_v49, %v9988_v28  ;;  %871 = vperm.xlu1 %8441, %v9397_v63   ;;  %v14013_v49 = vunpack.c.l.bf16 %v11203_v20  ;;  %v13654_v15 = vunpack.c.l.bf16 %v11289_v57  ;;  %v14014_v6 = vunpack.c.h.bf16 %v11213_v3  ;;  %6475 = vmatprep.subr.bf16.mxu1 %v8471_v58  ;;  %14015 = vst [vmem:[#allocation116_spill] sm:$0xff] %v11320_v62  ;;  %v14196_v3 = vld [vmem:[#allocation57_spill] sm:$0xff] }
 0x1cd   :  { %v1738_v47 = vmul.f32 %v14012_v11, %v9982_v24  ;;  %v1950_v50 = vadd.f32 %v1949_v0, %v1811_v42  ;;  %v8522_v11 = vld [vmem:[#allocation8 + $0x160] ss:$16 sps:$4 sm:$0xff]   ;;  %v1916_v60 = vadd.f32 %v1915_v26, %v11159_v56  ;;  %v14016_v43 = vunpack.c.l.bf16 %v11259_v12  ;;  %6411 = vmatprep.subr.bf16.mxu0 %v8520_v34 }
 0x1ce   :  { %v1797_v39 = vmul.f32 %v14013_v49, %v10016_v37  ;;  %v1812_v14 = vmul.f32 %v14014_v6, %v9988_v28  ;;  %v1965_v49 = vadd.f32 %v1824_v18, %v1823_v1  ;;  %v8526_v6 = vld [vmem:[#allocation8 + $0x184] ss:$16 sps:$4 sm:$0xff]   ;;  %v1933_v42 = vadd.f32 %v1932_v32, %v1796_v48  ;;  %v8475_v32 = vld [vmem:[#allocation8 + $0x460] ss:$16 sps:$4 sm:$0xff]  }
 0x1cf   :  { %v1825_v63 = vmul.f32 %v14016_v43, %v9978_v23  ;;  %v1717_v56 = vmul.f32 %v13653_v40, %v10016_v37  ;;  %v1843_v58 = vadd.f32 %v1842_v25, %v1716_v51  ;;  %v11333_v26 = vld [vmem:[%s13380_s1 + $0xa0] sm:$0xff]  ;;  %v14018_v1 = vunpack.c.l.bf16 %v11283_v61  ;;  %6476 = vmatpush1.bf16.msra.mxu1 %v8469_v52  ;;  %6412 = vmatpush1.bf16.msra.mxu0 %v8522_v11  ;;  %v11349_v43 = vld [vmem:[%s13380_s1 + $0x78] sm:$0xff] }
 0x1d0   :  { %14017 = vst [vmem:[#allocation117_spill] sm:$0xff] %v11333_v26  ;;  %v1868_v18 = vadd.f32 %v1867_v7, %v1738_v47  ;;  %v8528_v34 = vld [vmem:[#allocation8 + $0x180] ss:$16 sps:$4 sm:$0xff]   ;;  %v14019_v51 = vunpack.c.h.bf16 %v11203_v20  ;;  %v1813_v40 = vmul.f32 %v13654_v15, %v10016_v37  ;;  %v1951_v16 = vadd.f32 %v1950_v50, %v1812_v14  ;;  %14020 = vst [vmem:[#allocation118_spill] sm:$0xff] %v11349_v43  ;;  %v8483_v7 = vld [vmem:[#allocation8 + $0x484] ss:$16 sps:$4 sm:$0xff]  }
 0x1d1   :  { %v1739_v48 = vmul.f32 %v14018_v1, %v9986_v27  ;;  %6477 = vmatprep.subr.bf16.mxu1 %v8477_v4  ;;  %6413 = vmatprep.subr.bf16.mxu0 %v8526_v6  ;;  %v14021_v52 = vunpack.c.h.bf16 %v11259_v12  ;;  %v1966_v1 = vadd.f32 %v1965_v49, %v1825_v63  ;;  %v8532_v50 = vld [vmem:[#allocation8 + $0x1a4] ss:$16 sps:$4 sm:$0xff]   ;;  %v11358_v14 = vadd.f32 %v1916_v60, %v11178_v55  ;;  %v11366_v6 = vld [vmem:[%s13380_s1 + $0xa8] sm:$0xff] }
 0x1d2   :  { %v1798_v25 = vmul.f32 %v14019_v51, %v10018_v38  ;;  %v13659_v51 = vunpack.c.l.bf16 %v11333_v26  ;;  %v1934_v0 = vadd.f32 %v1933_v42, %v1797_v39  ;;  %v14022_v47 = vunpack.c.h.bf16 %v11267_v54  ;;  %14023 = vst [vmem:[#allocation119_spill] sm:$0xff] %v11366_v6  ;;  %v11378_v42 = vld [vmem:[%s13380_s1 + $0xe0] sm:$0xff] }
 0x1d3   :  { %v1826_v11 = vmul.f32 %v14021_v52, %v9982_v24  ;;  %v1844_v5 = vadd.f32 %v1843_v58, %v1717_v56  ;;  %v14024_v63 = vunpack.c.h.bf16 %v11289_v57  ;;  %v14025_v55 = vunpack.c.h.bf16 %v11283_v61  ;;  %14026 = vst [vmem:[#allocation120_spill] sm:$0xff] %v11378_v42  ;;  %6478 = vmatpush1.bf16.msra.mxu1 %v8475_v32  ;;  %v8481_v56 = vld [vmem:[#allocation8 + $0x480] ss:$16 sps:$4 sm:$0xff]   ;;  %6414 = vmatpush1.bf16.msra.mxu0 %v8528_v34  ;;  %v8489_v32 = vld [vmem:[#allocation8 + $0x4a4] ss:$16 sps:$4 sm:$0xff]  }
 0x1d4   :  { %v1718_v4 = vmul.f32 %v14022_v47, %v10018_v38  ;;  %v1869_v60 = vadd.f32 %v1868_v18, %v1739_v48  ;;  %v8534_v58 = vld [vmem:[#allocation8 + $0x1a0] ss:$16 sps:$4 sm:$0xff]   ;;  %v1952_v47 = vadd.f32 %v1951_v16, %v1813_v40  ;;  %v14028_v18 = vunpack.c.l.bf16 %v11320_v62  ;;  %6479 = vmatprep.subr.bf16.mxu1 %v8483_v7  ;;  %6415 = vmatprep.subr.bf16.mxu0 %v8532_v50  ;;  %v8513_v61 = vld [vmem:[#allocation8 + $0x524] ss:$16 sps:$4 sm:$0xff]  }
 0x1d5   :  { %v1814_v49 = vmul.f32 %v14024_v63, %v10018_v38  ;;  %v1740_v39 = vmul.f32 %v14025_v55, %v9988_v28  ;;  %1855 = vadd.xlane.f32.xlu0 %v11027_v44  ;;  %v11385_v52 = vld [vmem:[%s13380_s1 + $0x1d8] sm:$0xff]  ;;  %v1967_v34 = vadd.f32 %v1966_v1, %v1826_v11  ;;  %v13666_v15 = vunpack.c.l.bf16 %v11366_v6  ;;  %v8538_v63 = vld [vmem:[#allocation8 + $0x1c4] ss:$16 sps:$4 sm:$0xff]   ;;  %v11405_v7 = vld [vmem:[%s13380_s1 + $0xe8] sm:$0xff] }
 0x1d6   :  { %14027 = vst [vmem:[#allocation121_spill] sm:$0xff] %v11385_v52  ;;  %v1827_v55 = vmul.f32 %v14028_v18, %v9986_v27  ;;  %v1751_v44 = vmul.f32 %v13659_v51, %v9971_v21  ;;  %v14029_v40 = vunpack.c.h.bf16 %v11333_v26  ;;  %v11398_v48 = vadd.f32 %v1934_v0, %v1798_v25  ;;  %14030 = vst [vmem:[#allocation122_spill] sm:$0xff] %v11405_v7  ;;  %v8487_v25 = vld [vmem:[#allocation8 + $0x4a0] ss:$16 sps:$4 sm:$0xff]   ;;  %v8544_v11 = vld [vmem:[#allocation8 + $0x1e4] ss:$16 sps:$4 sm:$0xff]  }
 0x1d7   :  { %v11400_v12 = vadd.f32 %v1844_v5, %v1718_v4  ;;  %v14031_v18 = vunpack.c.l.bf16 %v11349_v43  ;;  %v11417_v5 = vld [vmem:[%s13380_s1 + $0x120] sm:$0xff]  ;;  %6480 = vmatpush1.bf16.msra.mxu1 %v8481_v56  ;;  %6416 = vmatpush1.bf16.msra.mxu0 %v8534_v58  ;;  %v11420_v1 = vadd.f32 %v1952_v47, %v1814_v49  ;;  %v11431_v50 = vld [vmem:[%s13380_s1 + $0xb0] sm:$0xff]  ;;  %v11437_v49 = vld [vmem:[%s13380_s1 + $0xb8] sm:$0xff]  ;;  %v1753_v47 = vmul.f32 %v13666_v15, %v9978_v23 }
 0x1d8   :  { %v1752_v16 = vmul.f32 %v14029_v40, %v9974_v22  ;;  %v1870_v40 = vadd.f32 %v1869_v60, %v1740_v39  ;;  %14032 = vst [vmem:[#allocation123_spill] sm:$0xff] %v11417_v5  ;;  %v8540_v4 = vld [vmem:[#allocation8 + $0x1c0] ss:$16 sps:$4 sm:$0xff]   ;;  %v14033_v39 = vunpack.c.h.bf16 %v11349_v43  ;;  %14035 = vst [vmem:[#allocation124_spill] sm:$0xff] %v11431_v50  ;;  %6481 = vmatprep.subr.bf16.mxu1 %v8489_v32  ;;  %v8495_v58 = vld [vmem:[#allocation8 + $0x4c4] ss:$16 sps:$4 sm:$0xff]   ;;  %6417 = vmatprep.subr.bf16.mxu0 %v8538_v63 }
 0x1d9   :  { %v1741_v51 = vmul.f32 %v14031_v18, %v10016_v37  ;;  %1864 = vadd.xlane.f32.xlu0 %v11029_v46  ;;  %v14034_v18 = vunpack.c.h.bf16 %v11320_v62  ;;  %v1968_v46 = vadd.f32 %v1967_v34, %v1827_v55  ;;  %14036 = vst [vmem:[#allocation125_spill] sm:$0xff] %v11437_v49  ;;  %v14037_v56 = vunpack.c.l.bf16 %v11378_v42  ;;  %v8493_v26 = vld [vmem:[#allocation8 + $0x4c0] ss:$16 sps:$4 sm:$0xff]  }
 0x1da   :  { %v1742_v60 = vmul.f32 %v14033_v39, %v10018_v38  ;;  %v1884_v39 = vadd.f32 %v1752_v16, %v1751_v44  ;;  %v14038_v55 = vunpack.c.h.bf16 %v11378_v42  ;;  %v14039_v44 = vunpack.c.l.bf16 %v11385_v52  ;;  %v8505_v57 = vld [vmem:[#allocation8 + $0x500] ss:$16 sps:$4 sm:$0xff]  }
 0x1db   :  { %v1828_v0 = vmul.f32 %v14034_v18, %v9988_v28  ;;  %v1767_v32 = vmul.f32 %v14037_v56, %v9971_v21  ;;  %v1871_v43 = vadd.f32 %v1870_v40, %v1741_v51  ;;  %v14040_v63 = vunpack.c.h.bf16 %v11385_v52  ;;  %6482 = vmatpush1.bf16.msra.mxu1 %v8487_v25  ;;  %6418 = vmatpush1.bf16.msra.mxu0 %v8540_v4  ;;  %v8546_v51 = vld [vmem:[#allocation8 + $0x1e0] ss:$16 sps:$4 sm:$0xff]   ;;  %v8501_v25 = vld [vmem:[#allocation8 + $0x4e4] ss:$16 sps:$4 sm:$0xff]  }
 0x1dc   :  { %v1768_v34 = vmul.f32 %v14038_v55, %v9974_v22  ;;  %v1829_v16 = vmul.f32 %v14039_v44, %v10016_v37  ;;  %v11463_v55 = vld [vmem:[%s13380_s1 + $0x128] sm:$0xff]  ;;  %v14042_v56 = vunpack.c.h.bf16 %v11366_v6  ;;  %v11475_v18 = vld [vmem:[%s13380_s1 + $0x160] sm:$0xff]  ;;  %6483 = vmatprep.subr.bf16.mxu1 %v8495_v58  ;;  %v1885_v42 = vadd.f32 %v1884_v39, %v1753_v47  ;;  %6419 = vmatprep.subr.bf16.mxu0 %v8544_v11 }
 0x1dd   :  { %v11457_v15 = vmul.f32 %v14040_v63, %v10018_v38  ;;  %14041 = vst [vmem:[#allocation126_spill] sm:$0xff] %v11463_v55  ;;  %1882 = vadd.xlane.f32.xlu0 %v11087_v33  ;;  %14043 = vst [vmem:[#allocation127_spill] sm:$0xff] %v11475_v18  ;;  %v1969_v4 = vadd.f32 %v1968_v46, %v1828_v0  ;;  %v14044_v44 = vunpack.c.l.bf16 %v11405_v7  ;;  %v14046_v58 = vunpack.c.l.bf16 %v11417_v5 }
 0x1de   :  { %v1754_v62 = vmul.f32 %v14042_v56, %v9982_v24  ;;  %v11484_v56 = vld [vmem:[%s13380_s1 + $0xf0] sm:$0xff]  ;;  %v1902_v63 = vadd.f32 %v1768_v34, %v1767_v32  ;;  %v14047_v46 = vunpack.c.h.bf16 %v11417_v5  ;;  %v11493_v39 = vadd.f32 %v1871_v43, %v1742_v60  ;;  %v11531_v5 = vld [vmem:[%s13380_s1 + $0x1e0] sm:$0xff] }
 0x1df   :  { %v1769_v40 = vmul.f32 %v14044_v44, %v9978_v23  ;;  %14045 = vst [vmem:[#allocation128_spill] sm:$0xff] %v11484_v56  ;;  %v1783_v0 = vmul.f32 %v14046_v58, %v9971_v21  ;;  %v14048_v11 = vunpack.c.l.bf16 %v11431_v50  ;;  %6484 = vmatpush1.bf16.msra.mxu1 %v8493_v26  ;;  %v8499_v34 = vld [vmem:[#allocation8 + $0x4e0] ss:$16 sps:$4 sm:$0xff]   ;;  %6420 = vmatpush1.bf16.msra.mxu0 %v8546_v51  ;;  %v14049_v58 = vunpack.c.h.bf16 %v11431_v50  ;;  %v8507_v51 = vld [vmem:[#allocation8 + $0x504] ss:$16 sps:$4 sm:$0xff]  }
 0x1e0   :  { %v1784_v47 = vmul.f32 %v14047_v46, %v9974_v22  ;;  %v14050_v43 = vunpack.c.l.bf16 %v11437_v49  ;;  %v14051_v46 = vunpack.c.h.bf16 %v11437_v49  ;;  %v11517_v26 = vld [vmem:[%s13380_s1 + $0x168] sm:$0xff]  ;;  %6485 = vmatprep.subr.bf16.mxu1 %v8501_v25  ;;  %14055 = vst [vmem:[#allocation131_spill] sm:$0xff] %v11531_v5  ;;  %v8552_v49 = vld [vmem:[#allocation8 + $0x204] ss:$16 sps:$4 sm:$0xff]   ;;  %v11536_v50 = vld [vmem:[%s13380_s1 + $0xf8] sm:$0xff]  ;;  %v14198_v20 = vunpack.c.h.bf16 %v14196_v3 }
 0x1e1   :  { %v1755_v44 = vmul.f32 %v14048_v11, %v9986_v27  ;;  %1900 = vadd.xlane.f32.xlu0 %v11303_v36  ;;  %v1756_v6 = vmul.f32 %v14049_v58, %v9988_v28  ;;  %14052 = vst [vmem:[#allocation129_spill] sm:$0xff] %v11517_v26  ;;  %v11522_v36 = vld [vmem:[%s13380_s1 + $0x1a0] sm:$0xff]  ;;  %v1970_v58 = vadd.f32 %v1969_v4, %v1829_v16  ;;  %14056 = vst [vmem:[#allocation132_spill] sm:$0xff] %v11536_v50 }
 0x1e2   :  { %v11507_v60 = vmul.f32 %v14050_v43, %v10016_v37  ;;  %v11512_v11 = vmul.f32 %v14051_v46, %v10018_v38  ;;  %14053 = vst [vmem:[#allocation130_spill] sm:$0xff] %v11522_v36  ;;  %v1886_v43 = vadd.f32 %v1885_v42, %v1754_v62  ;;  %v14054_v46 = vunpack.c.h.bf16 %v11405_v7  ;;  %v11541_v62 = vld [vmem:[%s13380_s1 + $0x130] sm:$0xff]  ;;  %6430 = vmatprep.subr.bf16.mxu0 %v8552_v49  ;;  %v11573_v42 = vld [vmem:[%s13380_s1 + $0x1e8] sm:$0xff] }
 0x1e3   :  { %v1903_v25 = vadd.f32 %v1902_v63, %v1769_v40  ;;  %14057 = vst [vmem:[#allocation133_spill] sm:$0xff] %v11541_v62  ;;  %v14058_v16 = vunpack.c.l.bf16 %v11463_v55  ;;  %v14059_v7 = vunpack.c.l.bf16 %v11475_v18  ;;  %v14060_v40 = vunpack.c.h.bf16 %v11475_v18  ;;  %6486 = vmatpush1.bf16.msra.mxu1 %v8499_v34  ;;  %14063 = vst [vmem:[#allocation135_spill] sm:$0xff] %v11573_v42 }
 0x1e4   :  { %v1770_v33 = vmul.f32 %v14054_v46, %v9982_v24  ;;  %v1920_v46 = vadd.f32 %v1784_v47, %v1783_v0  ;;  %v11560_v0 = vld [vmem:[%s13380_s1 + $0x1a8] sm:$0xff]  ;;  %6487 = vmatprep.subr.bf16.mxu1 %v8507_v51  ;;  %v1887_v34 = vadd.f32 %v1886_v43, %v1755_v44  ;;  %v11582_v43 = vld [vmem:[%s13380_s1 + $0x170] sm:$0xff] }
 0x1e5   :  { %v1785_v4 = vmul.f32 %v14058_v16, %v9978_v23  ;;  %v1799_v52 = vmul.f32 %v14059_v7, %v9971_v21  ;;  %v1800_v63 = vmul.f32 %v14060_v40, %v9974_v22  ;;  %1918 = vadd.xlane.f32.xlu0 %v11358_v14  ;;  %14061 = vst [vmem:[#allocation134_spill] sm:$0xff] %v11560_v0  ;;  %v14062_v14 = vunpack.c.l.bf16 %v11484_v56 }
 0x1e6   :  { %v1904_v7 = vadd.f32 %v1903_v25, %v1770_v33  ;;  %v14064_v40 = vunpack.c.h.bf16 %v11463_v55  ;;  %14065 = vst [vmem:[#allocation136_spill] sm:$0xff] %v11582_v43  ;;  %v14067_v33 = vunpack.c.l.bf16 %v11522_v36  ;;  %v1888_v55 = vadd.f32 %v1887_v34, %v1756_v6 }
 0x1e7   :  { %v1771_v16 = vmul.f32 %v14062_v14, %v9986_v27  ;;  %v1921_v47 = vadd.f32 %v1920_v46, %v1785_v4  ;;  %v14066_v14 = vunpack.c.l.bf16 %v11517_v26  ;;  %v1938_v32 = vadd.f32 %v1800_v63, %v1799_v52  ;;  %6488 = vmatpush1.bf16.msra.mxu1 %v8505_v57  ;;  %v8511_v4 = vld [vmem:[#allocation8 + $0x520] ss:$16 sps:$4 sm:$0xff]  }
 0x1e8   :  { %v1786_v51 = vmul.f32 %v14064_v40, %v9982_v24  ;;  %v1815_v25 = vmul.f32 %v14067_v33, %v9971_v21  ;;  %v14068_v46 = vunpack.c.h.bf16 %v11522_v36  ;;  %v14070_v63 = vunpack.c.h.bf16 %v11531_v5  ;;  %6489 = vmatprep.subr.bf16.mxu1 %v8513_v61  ;;  %v8519_v33 = vld [vmem:[#allocation8 + $0x544] ss:$16 sps:$4 sm:$0xff]  }
 0x1e9   :  { %v1801_v49 = vmul.f32 %v14066_v14, %v9978_v23  ;;  %1936 = vadd.xlane.f32.xlu0 %v11398_v48  ;;  %v14069_v14 = vunpack.c.l.bf16 %v11531_v5  ;;  %v1971_v57 = vadd.f32 %v1970_v58, %v11457_v15  ;;  %v14071_v48 = vunpack.c.h.bf16 %v11484_v56 }
 0x1ea   :  { %v1816_v40 = vmul.f32 %v14068_v46, %v9974_v22  ;;  %v1832_v18 = vmul.f32 %v14070_v63, %v9974_v22  ;;  %v13691_v46 = vunpack.c.h.bf16 %v11541_v62  ;;  %v1905_v44 = vadd.f32 %v1904_v7, %v1771_v16 }
 0x1eb   :  { %v1831_v52 = vmul.f32 %v14069_v14, %v9971_v21  ;;  %v1772_v36 = vmul.f32 %v14071_v48, %v9988_v28  ;;  %v11610_v21 = vld [vmem:[%s13380_s1 + $0x138] sm:$0xff]  ;;  %v14073_v22 = vunpack.c.l.bf16 %v11541_v62  ;;  %v1922_v14 = vadd.f32 %v1921_v47, %v1786_v51  ;;  %6490 = vmatpush1.bf16.msra.mxu1 %v8511_v4  ;;  %v11627_v47 = vld [vmem:[%s13380_s1 + $0x1b0] sm:$0xff] }
 0x1ec   :  { %14072 = vst [vmem:[#allocation137_spill] sm:$0xff] %v11610_v21  ;;  %v14074_v6 = vunpack.c.h.bf16 %v11517_v26  ;;  %v1939_v34 = vadd.f32 %v1938_v32, %v1801_v49  ;;  %v14075_v16 = vunpack.c.l.bf16 %v11560_v0  ;;  %v8517_v48 = vld [vmem:[#allocation8 + $0x540] ss:$16 sps:$4 sm:$0xff]   ;;  %14076 = vst [vmem:[#allocation138_spill] sm:$0xff] %v11627_v47  ;;  %v1956_v51 = vadd.f32 %v1816_v40, %v1815_v25  ;;  %6491 = vmatprep.subr.bf16.mxu1 %v8519_v33  ;;  %v8525_v40 = vld [vmem:[#allocation8 + $0x564] ss:$16 sps:$4 sm:$0xff]  }
 0x1ed   :  { %v1787_v61 = vmul.f32 %v14073_v22, %v9986_v27  ;;  %1954 = vadd.xlane.f32.xlu0 %v11420_v1  ;;  %v14077_v32 = vunpack.c.l.bf16 %v11573_v42  ;;  %v13703_v4 = vunpack.c.h.bf16 %v11536_v50  ;;  %v14078_v1 = vunpack.c.l.bf16 %v11536_v50  ;;  %v11642_v25 = vld [vmem:[%s13380_s1 + $0x1f0] sm:$0xff] }
 0x1ee   :  { %v1802_v58 = vmul.f32 %v14074_v6, %v9982_v24  ;;  %v1817_v7 = vmul.f32 %v14075_v16, %v9978_v23  ;;  %v1974_v6 = vadd.f32 %v1832_v18, %v1831_v52  ;;  %v1889_v16 = vadd.f32 %v1888_v55, %v11507_v60  ;;  %14079 = vst [vmem:[#allocation139_spill] sm:$0xff] %v11642_v25  ;;  %v11651_v60 = vld [vmem:[%s13380_s1 + $0x178] sm:$0xff] }
 0x1ef   :  { %v1833_v49 = vmul.f32 %v14077_v32, %v9978_v23  ;;  %v1773_v63 = vmul.f32 %v14078_v1, %v10016_v37  ;;  %v1906_v22 = vadd.f32 %v1905_v44, %v1772_v36  ;;  %v1788_v23 = vmul.f32 %v13691_v46, %v9988_v28  ;;  %14080 = vst [vmem:[#allocation140_spill] sm:$0xff] %v11651_v60 }
 0x1f0   :  { %v1923_v18 = vadd.f32 %v1922_v14, %v1787_v61  ;;  %v14081_v52 = vunpack.c.l.bf16 %v11582_v43  ;;  %v1940_v32 = vadd.f32 %v1939_v34, %v1802_v58  ;;  %v13693_v1 = vunpack.c.l.bf16 %v11627_v47  ;;  %6492 = vmatpush1.bf16.msra.mxu1 %v8517_v48  ;;  %v8523_v61 = vld [vmem:[#allocation8 + $0x560] ss:$16 sps:$4 sm:$0xff]   ;;  %1846 = vadd.xlane.f32.xlu1 %v11400_v12  ;;  %v8531_v58 = vld [vmem:[#allocation8 + $0x584] ss:$16 sps:$4 sm:$0xff]  }
 0x1f1   :  { %v14082_v36 = vunpack.c.h.bf16 %v11560_v0  ;;  %1972 = vadd.xlane.f32.xlu0 %v1971_v57  ;;  %v1957_v14 = vadd.f32 %v1956_v51, %v1817_v7  ;;  %v13692_v46 = vunpack.c.l.bf16 %v11642_v25  ;;  %v14083_v55 = vunpack.c.h.bf16 %v11573_v42  ;;  %6493 = vmatprep.subr.bf16.mxu1 %v8525_v40 }
 0x1f2   :  { %v1803_v33 = vmul.f32 %v14081_v52, %v9986_v27  ;;  %v1975_v52 = vadd.f32 %v1974_v6, %v1833_v49  ;;  %v1890_v34 = vadd.f32 %v1889_v16, %v11512_v11  ;;  %v13702_v48 = vunpack.c.h.bf16 %v11610_v21 }
 0x1f3   :  { %v1818_v44 = vmul.f32 %v14082_v36, %v9982_v24  ;;  %v1834_v15 = vmul.f32 %v14083_v55, %v9982_v24  ;;  %v1774_v36 = vmul.f32 %v13703_v4, %v10018_v38  ;;  %v1907_v12 = vadd.f32 %v1906_v22, %v1773_v63  ;;  %v8529_v63 = vld [vmem:[#allocation8 + $0x580] ss:$16 sps:$4 sm:$0xff]  }
 0x1f4   :  { %v14084_v57 = vunpack.c.l.bf16 %v11610_v21  ;;  %v13701_v51 = vunpack.c.l.bf16 %v11651_v60  ;;  %v14085_v24 = vunpack.c.h.bf16 %v11582_v43  ;;  %v1924_v6 = vadd.f32 %v1923_v18, %v1788_v23  ;;  %6494 = vmatpush1.bf16.msra.mxu1 %v8523_v61  ;;  %1873 = vadd.xlane.f32.xlu1 %v11493_v39  ;;  %v11685_v22 = vld [vmem:[%s13380_s1 + $0x1b8] sm:$0xff] }
 0x1f5   :  { %v1941_v11 = vadd.f32 %v1940_v32, %v1803_v33  ;;  %v13695_v16 = vunpack.c.h.bf16 %v11627_v47  ;;  %v1819_v55 = vmul.f32 %v13693_v1, %v9986_v27  ;;  %14086 = vst [vmem:[#allocation141_spill] sm:$0xff] %v11685_v22  ;;  %v1958_v40 = vadd.f32 %v1957_v14, %v1818_v44  ;;  %6495 = vmatprep.subr.bf16.mxu1 %v8531_v58  ;;  %v8537_v33 = vld [vmem:[#allocation8 + $0x5a4] ss:$16 sps:$4 sm:$0xff]   ;;  %v11694_v32 = vld [vmem:[%s13380_s1 + $0x1f8] sm:$0xff] }
 0x1f6   :  { %v1789_v7 = vmul.f32 %v14084_v57, %v10016_v37  ;;  %v1804_v49 = vmul.f32 %v14085_v24, %v9988_v28  ;;  %v13698_v57 = vunpack.c.h.bf16 %v11642_v25  ;;  %v1835_v23 = vmul.f32 %v13692_v46, %v9986_v27  ;;  %14087 = vst [vmem:[#allocation142_spill] sm:$0xff] %v11694_v32 }
 0x1f7   :  { %v1976_v18 = vadd.f32 %v1975_v52, %v1834_v15  ;;  %v1908_v39 = vadd.f32 %v1907_v12, %v1774_v36  ;;  %v1790_v61 = vmul.f32 %v13702_v48, %v10018_v38  ;;  %v13700_v44 = vunpack.c.h.bf16 %v11651_v60  ;;  %v8535_v36 = vld [vmem:[#allocation8 + $0x5a0] ss:$16 sps:$4 sm:$0xff]  }
 0x1f8   :  { %v1805_v14 = vmul.f32 %v13701_v51, %v10016_v37  ;;  %v1925_v27 = vadd.f32 %v1924_v6, %v1789_v7  ;;  %v1942_v15 = vadd.f32 %v1941_v11, %v1804_v49  ;;  %v13699_v52 = vunpack.c.l.bf16 %v11685_v22  ;;  %6496 = vmatpush1.bf16.msra.mxu1 %v8529_v63  ;;  %1891 = vadd.xlane.f32.xlu1 %v1890_v34  ;;  %v8543_v7 = vld [vmem:[#allocation8 + $0x5c4] ss:$16 sps:$4 sm:$0xff]  }
 0x1f9   :  { %v1820_v58 = vmul.f32 %v13695_v16, %v9988_v28  ;;  %v1959_v12 = vadd.f32 %v1958_v40, %v1819_v55  ;;  %v13697_v24 = vunpack.c.l.bf16 %v11694_v32  ;;  %v1836_v46 = vmul.f32 %v13698_v57, %v9988_v28  ;;  %6497 = vmatprep.subr.bf16.mxu1 %v8537_v33  ;;  %v8541_v55 = vld [vmem:[#allocation8 + $0x5c0] ss:$16 sps:$4 sm:$0xff]   ;;  %v8549_v33 = vld [vmem:[#allocation8 + $0x5e4] ss:$16 sps:$4 sm:$0xff]  }
 0x1fa   :  { %v1977_v1 = vadd.f32 %v1976_v18, %v1835_v23  ;;  %v1806_v49 = vmul.f32 %v13700_v44, %v10018_v38  ;;  %v1926_v6 = vadd.f32 %v1925_v27, %v1790_v61  ;;  %v1943_v11 = vadd.f32 %v1942_v15, %v1805_v14  ;;  %v8547_v27 = vld [vmem:[#allocation8 + $0x5e0] ss:$16 sps:$4 sm:$0xff]  }
 0x1fb   :  { %v13694_v63 = vunpack.c.h.bf16 %v11685_v22  ;;  %v1821_v34 = vmul.f32 %v13699_v52, %v10016_v37  ;;  %v1960_v40 = vadd.f32 %v1959_v12, %v1820_v58  ;;  %v13696_v28 = vunpack.c.h.bf16 %v11694_v32 }
 0x1fc   :  { %6498 = vmatpush1.bf16.msra.mxu1 %v8535_v36  ;;  %1909 = vadd.xlane.f32.xlu1 %v1908_v39  ;;  %v1837_v23 = vmul.f32 %v13697_v24, %v10016_v37  ;;  %v1978_v18 = vadd.f32 %v1977_v1, %v1836_v46  ;;  %v1944_v61 = vadd.f32 %v1943_v11, %v1806_v49  ;;  %v802_v36 = vpop.permute.xlu0 %801  ;;  %v14088_v1 = vunpack.c.l.bf16 %v9993_v29 }
 0x1fd   :  { %6499 = vmatprep.subr.bf16.mxu1 %v8543_v7  ;;  %v1822_v14 = vmul.f32 %v13694_v63, %v10018_v38  ;;  %v1961_v15 = vadd.f32 %v1960_v40, %v1821_v34  ;;  %v1838_v39 = vmul.f32 %v13696_v28, %v10018_v38  ;;  %v14089_v7 = vunpack.c.h.bf16 %v9993_v29 }
 0x1fe   :  { %v1979_v58 = vadd.f32 %v1978_v18, %v1837_v23  ;;  %v879_v12 = vmul.f32 %v802_v36, %v14088_v1  ;;  %v14091_v34 = vunpack.c.h.bf16 %v9998_v30  ;;  %v14092_v38 = vunpack.c.l.bf16 %v10013_v35 }
 0x1ff   :  { %v1962_v37 = vadd.f32 %v1961_v15, %v1822_v14  ;;  %v880_v49 = vmul.f32 %v802_v36, %v14089_v7  ;;  %v14093_v23 = vunpack.c.h.bf16 %v10013_v35  ;;  %v14095_v14 = vunpack.c.h.bf16 %v10026_v41 }
 0x200   :  { %6500 = vmatpush1.bf16.msra.mxu1 %v8541_v55  ;;  %1927 = vadd.xlane.f32.xlu1 %v1926_v6  ;;  %v1980_v46 = vadd.f32 %v1979_v58, %v1838_v39  ;;  %v14090_v6 = vunpack.c.l.bf16 %v9998_v30  ;;  %v882_v55 = vmul.f32 %v802_v36, %v14091_v34  ;;  %v883_v40 = vmul.f32 %v802_v36, %v14092_v38 }
 0x201   :  { %6501 = vmatprep.subr.bf16.mxu1 %v8549_v33  ;;  %v884_v18 = vmul.f32 %v802_v36, %v14093_v23  ;;  %v14094_v33 = vunpack.c.l.bf16 %v10026_v41  ;;  %v14096_v15 = vunpack.c.l.bf16 %v10103_v45  ;;  %v14097_v58 = vunpack.c.h.bf16 %v10103_v45 }
 0x202   :  { %v881_v11 = vmul.f32 %v802_v36, %v14090_v6  ;;  %v14098_v1 = vunpack.c.l.bf16 %v10112_v59  ;;  %v14099_v6 = vunpack.c.h.bf16 %v10112_v59  ;;  %v14100_v34 = vunpack.c.l.bf16 %v10125_v2 }
 0x203   :  { %v14101_v41 = vunpack.c.h.bf16 %v10125_v2  ;;  %v14102_v23 = vunpack.c.l.bf16 %v10134_v31 }
 0x204   :  { %6502 = vmatpush1.bf16.msra.mxu1 %v8547_v27  ;;  %1945 = vadd.xlane.f32.xlu1 %v1944_v61  ;;  %v885_v61 = vmul.f32 %v802_v36, %v14094_v33  ;;  %v886_v27 = vmul.f32 %v802_v36, %v14095_v14  ;;  %v14103_v14 = vunpack.c.h.bf16 %v10134_v31 }
 0x208   :  { %v807_v29 = vpop.permute.xlu1 %806  ;;  %1963 = vadd.xlane.f32.xlu1 %v1962_v37 }
 0x209   :  { %v887_v39 = vmul.f32 %v807_v29, %v14096_v15  ;;  %v888_v30 = vmul.f32 %v807_v29, %v14097_v58  ;;  %v889_v7 = vmul.f32 %v807_v29, %v14098_v1  ;;  %v890_v35 = vmul.f32 %v807_v29, %v14099_v6 }
 0x20a   :  { %v891_v38 = vmul.f32 %v807_v29, %v14100_v34  ;;  %v892_v36 = vmul.f32 %v807_v29, %v14101_v41  ;;  %v893_v33 = vmul.f32 %v807_v29, %v14102_v23  ;;  %v894_v45 = vmul.f32 %v807_v29, %v14103_v14 }
 0x20b   :  { %v1007_v15 = vadd.f32 %v887_v39, %v879_v12  ;;  %v1014_v58 = vadd.f32 %v888_v30, %v880_v49  ;;  %v1021_v63 = vadd.f32 %v889_v7, %v881_v11  ;;  %v1028_v1 = vadd.f32 %v890_v35, %v882_v55 }
 0x20c   :  { %v1035_v16 = vadd.f32 %v891_v38, %v883_v40  ;;  %v1042_v59 = vadd.f32 %v892_v36, %v884_v18  ;;  %v1049_v6 = vadd.f32 %v893_v33, %v885_v61  ;;  %v1056_v37 = vadd.f32 %v894_v45, %v886_v27  ;;  %v812_v28 = vpop.permute.xlu1 %811  ;;  %1981 = vadd.xlane.f32.xlu1 %v1980_v46 }
 0x20d   :  { %v1008_v24 = vrot.slane %v1007_v15, 4  ;;  %v1015_v34 = vrot.slane %v1014_v58, 4  ;;  %v1022_v57 = vrot.slane %v1021_v63, 4  ;;  %v1029_v2 = vrot.slane %v1028_v1, 4 }
 0x20e   :  { %v1036_v41 = vrot.slane %v1035_v16, 4  ;;  %v1043_v52 = vrot.slane %v1042_v59, 4  ;;  %v1050_v23 = vrot.slane %v1049_v6, 4  ;;  %v1057_v12 = vrot.slane %v1056_v37, 4 }
 0x20f   :  { %v11760_v44 = vadd.f32 %v1008_v24, %v1007_v15  ;;  %v1023_v31 = vadd.f32 %v1022_v57, %v1021_v63  ;;  %v11762_v55 = vadd.f32 %v1015_v34, %v1014_v58  ;;  %v11764_v18 = vadd.f32 %v1029_v2, %v1028_v1 }
 0x210   :  { %v1037_v49 = vadd.f32 %v1036_v41, %v1035_v16  ;;  %v1051_v11 = vadd.f32 %v1050_v23, %v1049_v6  ;;  %v11766_v27 = vadd.f32 %v1043_v52, %v1042_v59  ;;  %v817_v46 = vpop.permute.xlu1 %816  ;;  %v11771_v24 = vadd.f32 %v1057_v12, %v1056_v37  ;;  %v14118_v23 = vld [vmem:[#allocation28_spill] sm:$0xff] }
 0x211   :  { %v1024_v40 = vrot.slane %v1023_v31, 2  ;;  %14104 = vst [vmem:[#allocation143_spill] sm:$0xff] %v11764_v18  ;;  %v14107_v57 = vunpack.c.l.bf16 %v9945_v9  ;;  %v14108_v7 = vunpack.c.h.bf16 %v9945_v9  ;;  %v14109_v38 = vunpack.c.l.bf16 %v9950_v10 }
 0x212   :  { %v1038_v61 = vrot.slane %v1037_v49, 2  ;;  %v1052_v29 = vrot.slane %v1051_v11, 2  ;;  %14106 = vst [vmem:[#allocation145_spill] sm:$0xff] %v11771_v24  ;;  %v14110_v36 = vunpack.c.h.bf16 %v9950_v10  ;;  %v14112_v45 = vunpack.c.l.bf16 %v9957_v13 }
 0x213   :  { %v11769_v30 = vadd.f32 %v1024_v40, %v1023_v31  ;;  %v895_v16 = vmul.f32 %v812_v28, %v14107_v57  ;;  %v896_v35 = vmul.f32 %v812_v28, %v14108_v7  ;;  %v897_v52 = vmul.f32 %v812_v28, %v14109_v38  ;;  %v14124_v7 = vld [vmem:[#allocation30_spill] sm:$0xff] }
 0x214   :  { %v11775_v63 = vadd.f32 %v1038_v61, %v1037_v49  ;;  %v898_v33 = vmul.f32 %v812_v28, %v14110_v36  ;;  %v11783_v14 = vadd.f32 %v1052_v29, %v1051_v11  ;;  %v899_v15 = vmul.f32 %v812_v28, %v14112_v45 }
 0x215   :  { %14105 = vst [vmem:[#allocation144_spill] sm:$0xff] %v11769_v30  ;;  %v14113_v58 = vunpack.c.h.bf16 %v9957_v13  ;;  %v14114_v59 = vunpack.c.l.bf16 %v10049_v53  ;;  %v14115_v9 = vunpack.c.l.bf16 %v9965_v17  ;;  %v14116_v34 = vunpack.c.h.bf16 %v9965_v17  ;;  %v14121_v13 = vld [vmem:[#allocation29_spill] sm:$0xff] }
 0x216   :  { %14111 = vst [vmem:[#allocation146_spill] sm:$0xff] %v11783_v14  ;;  %v14117_v10 = vunpack.c.h.bf16 %v10049_v53  ;;  %v14119_v31 = vunpack.c.l.bf16 %v14118_v23  ;;  %v14120_v49 = vunpack.c.h.bf16 %v14118_v23  ;;  %v14122_v40 = vunpack.c.l.bf16 %v14121_v13 }
 0x217   :  { %v900_v1 = vmul.f32 %v812_v28, %v14113_v58  ;;  %v903_v6 = vmul.f32 %v817_v46, %v14114_v59  ;;  %v901_v37 = vmul.f32 %v812_v28, %v14115_v9  ;;  %v902_v2 = vmul.f32 %v812_v28, %v14116_v34 }
 0x218   :  { %v904_v41 = vmul.f32 %v817_v46, %v14117_v10  ;;  %v905_v12 = vmul.f32 %v817_v46, %v14119_v31  ;;  %v906_v11 = vmul.f32 %v817_v46, %v14120_v49  ;;  %v907_v61 = vmul.f32 %v817_v46, %v14122_v40 }
 0x219   :  { %v14123_v29 = vunpack.c.h.bf16 %v14121_v13  ;;  %v14125_v38 = vunpack.c.l.bf16 %v14124_v7  ;;  %v14126_v17 = vunpack.c.h.bf16 %v14124_v7  ;;  %v1063_v53 = vadd.f32 %v903_v6, %v895_v16 }
 0x21a   :  { %v1070_v45 = vadd.f32 %v904_v41, %v896_v35  ;;  %v1077_v58 = vadd.f32 %v905_v12, %v897_v52  ;;  %v1084_v59 = vadd.f32 %v906_v11, %v898_v33  ;;  %v1091_v9 = vadd.f32 %v907_v61, %v899_v15  ;;  %v14138_v12 = vld [vmem:[#allocation45_spill] sm:$0xff] }
 0x21b   :  { %v908_v57 = vmul.f32 %v817_v46, %v14123_v29  ;;  %v909_v36 = vmul.f32 %v817_v46, %v14125_v38  ;;  %v910_v28 = vmul.f32 %v817_v46, %v14126_v17  ;;  %v1064_v23 = vrot.slane %v1063_v53, 4  ;;  %v14129_v17 = vld [vmem:[#allocation39_spill] sm:$0xff] }
 0x21c   :  { %v1071_v31 = vrot.slane %v1070_v45, 4  ;;  %v1078_v49 = vrot.slane %v1077_v58, 4  ;;  %v1085_v51 = vrot.slane %v1084_v59, 4  ;;  %v1092_v13 = vrot.slane %v1091_v9, 4 }
 0x21d   :  { %v1098_v34 = vadd.f32 %v908_v57, %v900_v1  ;;  %v1105_v10 = vadd.f32 %v909_v36, %v901_v37  ;;  %v1112_v40 = vadd.f32 %v910_v28, %v902_v2  ;;  %v11810_v4 = vadd.f32 %v1064_v23, %v1063_v53  ;;  %v11823_v57 = vpop.permute.xlu0 %846 }
 0x21e   :  { %v1079_v46 = vadd.f32 %v1078_v49, %v1077_v58  ;;  %v11812_v35 = vadd.f32 %v1085_v51, %v1084_v59  ;;  %v1093_v52 = vadd.f32 %v1092_v13, %v1091_v9  ;;  %v11821_v11 = vadd.f32 %v1071_v31, %v1070_v45  ;;  %v822_v51 = vpop.permute.xlu1 %821  ;;  %v14132_v9 = vld [vmem:[#allocation43_spill] sm:$0xff] }
 0x21f   :  { %v1099_v29 = vrot.slane %v1098_v34, 4  ;;  %v1106_v48 = vrot.slane %v1105_v10, 4  ;;  %v1113_v16 = vrot.slane %v1112_v40, 4  ;;  %v14130_v28 = vunpack.c.l.bf16 %v14129_v17 }
 0x220   :  { %14127 = vst [vmem:[#allocation28_spill] sm:$0xff] %v11812_v35  ;;  %v1080_v2 = vrot.slane %v1079_v46, 2  ;;  %v1094_v61 = vrot.slane %v1093_v52, 2  ;;  %v14134_v31 = vunpack.c.h.bf16 %v14132_v9  ;;  %v14140_v37 = vunpack.c.h.bf16 %v14138_v12 }
 0x221   :  { %v11814_v33 = vadd.f32 %v1099_v29, %v1098_v34  ;;  %v1107_v15 = vadd.f32 %v1106_v48, %v1105_v10  ;;  %v11827_v36 = vadd.f32 %v1113_v16, %v1112_v40  ;;  %v11832_v53 = vmul.f32 %v11823_v57, %v14130_v28  ;;  %v14135_v40 = vld [vmem:[#allocation44_spill] sm:$0xff]  ;;  %v14141_v48 = vld [vmem:[#allocation46_spill] sm:$0xff] }
 0x222   :  { %v11834_v58 = vadd.f32 %v1080_v2, %v1079_v46  ;;  %v14133_v34 = vunpack.c.l.bf16 %v14132_v9  ;;  %v11839_v23 = vadd.f32 %v1094_v61, %v1093_v52  ;;  %v912_v49 = vmul.f32 %v822_v51, %v14134_v31  ;;  %v827_v9 = vpop.permute.xlu1 %826  ;;  %v14144_v31 = vld [vmem:[#allocation31_spill] sm:$0xff] }
 0x223   :  { %14128 = vst [vmem:[#allocation29_spill] sm:$0xff] %v11827_v36  ;;  %v1108_v59 = vrot.slane %v1107_v15, 2  ;;  %v14136_v13 = vunpack.c.l.bf16 %v14135_v40  ;;  %v14137_v16 = vunpack.c.h.bf16 %v14135_v40  ;;  %v14139_v46 = vunpack.c.l.bf16 %v14138_v12 }
 0x224   :  { %14131 = vst [vmem:[#allocation30_spill] sm:$0xff] %v11834_v58  ;;  %v911_v10 = vmul.f32 %v822_v51, %v14133_v34  ;;  %v916_v1 = vmul.f32 %v822_v51, %v14140_v37  ;;  %v14142_v38 = vunpack.c.l.bf16 %v14141_v48  ;;  %v14143_v52 = vunpack.c.h.bf16 %v14141_v48  ;;  %v14150_v37 = vld [vmem:[#allocation33_spill] sm:$0xff] }
 0x225   :  { %v913_v29 = vmul.f32 %v822_v51, %v14136_v13  ;;  %v914_v28 = vmul.f32 %v822_v51, %v14137_v16  ;;  %v915_v2 = vmul.f32 %v822_v51, %v14139_v46  ;;  %v14145_v41 = vunpack.c.l.bf16 %v14144_v31  ;;  %v14147_v16 = vld [vmem:[#allocation32_spill] sm:$0xff] }
 0x226   :  { %v917_v34 = vmul.f32 %v822_v51, %v14142_v38  ;;  %v918_v61 = vmul.f32 %v822_v51, %v14143_v52  ;;  %v14146_v13 = vunpack.c.h.bf16 %v14144_v31  ;;  %v14148_v39 = vunpack.c.l.bf16 %v14147_v16  ;;  %v14153_v51 = vld [vmem:[#allocation34_spill] sm:$0xff] }
 0x227   :  { %v919_v7 = vmul.f32 %v827_v9, %v14145_v41  ;;  %v14149_v46 = vunpack.c.h.bf16 %v14147_v16  ;;  %v14151_v6 = vunpack.c.l.bf16 %v14150_v37  ;;  %v14152_v38 = vunpack.c.h.bf16 %v14150_v37 }
 0x228   :  { %v920_v40 = vmul.f32 %v827_v9, %v14146_v13  ;;  %v921_v45 = vmul.f32 %v827_v9, %v14148_v39  ;;  %v14154_v52 = vunpack.c.l.bf16 %v14153_v51  ;;  %v14155_v41 = vunpack.c.h.bf16 %v14153_v51 }
 0x229   :  { %v922_v12 = vmul.f32 %v827_v9, %v14149_v46  ;;  %v923_v32 = vmul.f32 %v827_v9, %v14151_v6  ;;  %v924_v48 = vmul.f32 %v827_v9, %v14152_v38  ;;  %v11871_v31 = vadd.f32 %v1108_v59, %v1107_v15 }
 0x22a   :  { %v925_v25 = vmul.f32 %v827_v9, %v14154_v52  ;;  %v926_v42 = vmul.f32 %v827_v9, %v14155_v41  ;;  %v1119_v13 = vadd.f32 %v919_v7, %v911_v10  ;;  %v1133_v5 = vadd.f32 %v921_v45, %v913_v29  ;;  %v14163_v41 = vld [vmem:[#allocation41_spill] sm:$0xff] }
 0x22b   :  { %14156 = vst [vmem:[#allocation39_spill] sm:$0xff] %v11871_v31  ;;  %v1140_v39 = vadd.f32 %v922_v12, %v914_v28  ;;  %v1147_v22 = vadd.f32 %v923_v32, %v915_v2  ;;  %v1154_v16 = vadd.f32 %v924_v48, %v916_v1  ;;  %v11873_v6 = vadd.f32 %v920_v40, %v912_v49  ;;  %v857_v49 = vpop.permute.xlu0 %856  ;;  %v14159_v40 = vld [vmem:[#allocation40_spill] sm:$0xff] }
 0x22c   :  { %v1161_v46 = vadd.f32 %v925_v25, %v917_v34  ;;  %v1168_v47 = vadd.f32 %v926_v42, %v918_v61  ;;  %v1120_v0 = vrot.slane %v1119_v13, 4  ;;  %v1134_v37 = vrot.slane %v1133_v5, 4 }
 0x22d   :  { %v1141_v38 = vrot.slane %v1140_v39, 4  ;;  %v1148_v52 = vrot.slane %v1147_v22, 4  ;;  %v1155_v43 = vrot.slane %v1154_v16, 4  ;;  %v14157_v1 = vunpack.c.h.bf16 %v14129_v17 }
 0x22e   :  { %v1162_v51 = vrot.slane %v1161_v46, 4  ;;  %v1135_v45 = vadd.f32 %v1134_v37, %v1133_v5  ;;  %v1169_v59 = vrot.slane %v1168_v47, 4  ;;  %v11884_v29 = vadd.f32 %v1120_v0, %v1119_v13  ;;  %v14167_v37 = vld [vmem:[#allocation42_spill] sm:$0xff] }
 0x22f   :  { %v1149_v25 = vadd.f32 %v1148_v52, %v1147_v22  ;;  %v11882_v10 = vmul.f32 %v11823_v57, %v14157_v1  ;;  %v1127_v28 = vrot.slane %v11873_v6, 4  ;;  %v11887_v34 = vadd.f32 %v1141_v38, %v1140_v39  ;;  %v11957_v60 = vpop.permute.xlu0 %866 }
 0x230   :  { %v1163_v42 = vadd.f32 %v1162_v51, %v1161_v46  ;;  %v1136_v2 = vrot.slane %v1135_v45, 2  ;;  %v11889_v5 = vadd.f32 %v1155_v43, %v1154_v16  ;;  %v14160_v22 = vunpack.c.l.bf16 %v14159_v40 }
 0x231   :  { %14158 = vst [vmem:[#allocation43_spill] sm:$0xff] %v11887_v34  ;;  %v1150_v61 = vrot.slane %v1149_v25, 2  ;;  %v11896_v17 = vadd.f32 %v1169_v59, %v1168_v47  ;;  %v14162_v48 = vunpack.c.h.bf16 %v14159_v40  ;;  %v14164_v13 = vunpack.c.l.bf16 %v14163_v41  ;;  %v14170_v59 = vld [vmem:[#allocation47_spill] sm:$0xff] }
 0x232   :  { %v1164_v9 = vrot.slane %v1163_v42, 2  ;;  %v11894_v12 = vmul.f32 %v11823_v57, %v14160_v22  ;;  %v14165_v43 = vunpack.c.h.bf16 %v14163_v41  ;;  %v11913_v46 = vadd.f32 %v1136_v2, %v1135_v45  ;;  %v832_v45 = vpop.permute.xlu1 %831  ;;  %v14173_v2 = vld [vmem:[#allocation48_spill] sm:$0xff] }
 0x233   :  { %14161 = vst [vmem:[#allocation44_spill] sm:$0xff] %v11896_v17  ;;  %v11901_v0 = vmul.f32 %v11823_v57, %v14162_v48  ;;  %v11906_v39 = vmul.f32 %v11823_v57, %v14164_v13  ;;  %v14168_v47 = vunpack.c.l.bf16 %v14167_v37  ;;  %v14169_v52 = vunpack.c.h.bf16 %v14167_v37  ;;  %v14177_v37 = vld [vmem:[#allocation49_spill] sm:$0xff] }
 0x234   :  { %v11911_v16 = vmul.f32 %v11823_v57, %v14165_v43  ;;  %14166 = vst [vmem:[#allocation45_spill] sm:$0xff] %v11913_v46  ;;  %v14171_v1 = vunpack.c.l.bf16 %v14170_v59  ;;  %v11929_v22 = vadd.f32 %v1150_v61, %v1149_v25  ;;  %v11931_v48 = vadd.f32 %v1164_v9, %v1163_v42  ;;  %v14180_v25 = vld [vmem:[#allocation50_spill] sm:$0xff] }
 0x235   :  { %v11918_v38 = vmul.f32 %v11823_v57, %v14168_v47  ;;  %v11923_v51 = vmul.f32 %v11823_v57, %v14169_v52  ;;  %v14174_v41 = vunpack.c.l.bf16 %v14173_v2  ;;  %v14175_v43 = vunpack.c.h.bf16 %v14173_v2  ;;  %v14184_v2 = vld [vmem:[#allocation55_spill] sm:$0xff]  ;;  %v14213_v46 = vld [vmem:[#allocation38_spill] sm:$0xff] }
 0x236   :  { %v11927_v40 = vmul.f32 %v857_v49, %v14171_v1  ;;  %14172 = vst [vmem:[#allocation46_spill] sm:$0xff] %v11931_v48  ;;  %v14178_v57 = vunpack.c.l.bf16 %v14177_v37  ;;  %v14179_v1 = vunpack.c.h.bf16 %v14177_v37  ;;  %v14181_v42 = vunpack.c.l.bf16 %v14180_v25  ;;  %v14187_v37 = vld [vmem:[#allocation52_spill] sm:$0xff] }
 0x237   :  { %v11935_v13 = vmul.f32 %v857_v49, %v14174_v41  ;;  %v11939_v47 = vmul.f32 %v857_v49, %v14175_v43  ;;  %v14182_v9 = vunpack.c.h.bf16 %v14180_v25  ;;  %v14185_v43 = vunpack.c.l.bf16 %v14184_v2 }
 0x238   :  { %v11943_v52 = vmul.f32 %v857_v49, %v14178_v57  ;;  %v11947_v32 = vmul.f32 %v857_v49, %v14179_v1  ;;  %v11951_v61 = vmul.f32 %v857_v49, %v14181_v42  ;;  %v14186_v57 = vunpack.c.h.bf16 %v14184_v2  ;;  %v14190_v42 = vld [vmem:[#allocation53_spill] sm:$0xff] }
 0x239   :  { %14176 = vst [vmem:[#allocation31_spill] sm:$0xff] %v11939_v47  ;;  %v11955_v41 = vmul.f32 %v857_v49, %v14182_v9  ;;  %v927_v15 = vmul.f32 %v832_v45, %v14185_v43  ;;  %v14188_v1 = vunpack.c.l.bf16 %v14187_v37  ;;  %v14191_v21 = vunpack.c.l.bf16 %v14190_v42  ;;  %v14193_v9 = vld [vmem:[#allocation56_spill] sm:$0xff] }
 0x23a   :  { %v11963_v7 = vmul.f32 %v832_v45, %v14186_v57  ;;  %v14194_v62 = vunpack.c.l.bf16 %v14193_v9  ;;  %v14195_v56 = vunpack.c.h.bf16 %v14193_v9  ;;  %v14197_v2 = vunpack.c.l.bf16 %v14196_v3 }
 0x23b   :  { %14183 = vst [vmem:[#allocation32_spill] sm:$0xff] %v11955_v41  ;;  %v11968_v26 = vmul.f32 %v11957_v60, %v14188_v1  ;;  %v11973_v25 = vmul.f32 %v11957_v60, %v14191_v21  ;;  %v932_v54 = vmul.f32 %v832_v45, %v14198_v20  ;;  %v14200_v1 = vunpack.c.l.bf16 %v14199_v19  ;;  %v837_v21 = vpop.permute.xlu1 %836  ;;  %v14207_v20 = vld [vmem:[#allocation36_spill] sm:$0xff] }
 0x23c   :  { %v929_v50 = vmul.f32 %v832_v45, %v14194_v62  ;;  %v930_v43 = vmul.f32 %v832_v45, %v14195_v56  ;;  %v931_v57 = vmul.f32 %v832_v45, %v14197_v2  ;;  %v14201_v31 = vunpack.c.h.bf16 %v14199_v19  ;;  %v14203_v62 = vld [vmem:[#allocation51_spill] sm:$0xff] }
 0x23d   :  { %14189 = vst [vmem:[#allocation33_spill] sm:$0xff] %v11968_v26  ;;  %14192 = vst [vmem:[#allocation34_spill] sm:$0xff] %v11973_v25  ;;  %v933_v8 = vmul.f32 %v832_v45, %v14200_v1  ;;  %v14202_v48 = vunpack.c.h.bf16 %v14170_v59  ;;  %v14204_v9 = vunpack.c.h.bf16 %v14203_v62  ;;  %v14205_v2 = vld [vmem:[#allocation35_spill] sm:$0xff]  ;;  %v14208_v36 = vunpack.c.l.bf16 %v14207_v20 }
 0x23e   :  { %v934_v14 = vmul.f32 %v832_v45, %v14201_v31  ;;  %v14206_v17 = vunpack.c.l.bf16 %v14205_v2  ;;  %v14209_v1 = vunpack.c.h.bf16 %v14207_v20  ;;  %v1017_v31 = vrot.slane %v11762_v55, 2  ;;  %v14210_v45 = vld [vmem:[#allocation37_spill] sm:$0xff]  ;;  %v12015_v20 = vpop.permute.xlu0 %876 }
 0x23f   :  { %v11989_v41 = vmul.f32 %v857_v49, %v14202_v48  ;;  %v11994_v56 = vmul.f32 %v11957_v60, %v14204_v9  ;;  %v937_v24 = vmul.f32 %v837_v21, %v14208_v36  ;;  %v14211_v59 = vunpack.c.l.bf16 %v14210_v45 }
 0x240   :  { %v935_v3 = vmul.f32 %v837_v21, %v14206_v17  ;;  %v938_v19 = vmul.f32 %v837_v21, %v14209_v1  ;;  %v14212_v48 = vunpack.c.h.bf16 %v14210_v45  ;;  %v14214_v9 = vunpack.c.l.bf16 %v14213_v46 }
 0x241   :  { %v939_v49 = vmul.f32 %v837_v21, %v14211_v59  ;;  %v14215_v30 = vunpack.c.h.bf16 %v14213_v46  ;;  %v1189_v36 = vadd.f32 %v937_v24, %v929_v50  ;;  %v1073_v1 = vrot.slane %v11821_v11, 2 }
 0x242   :  { %v940_v26 = vmul.f32 %v837_v21, %v14212_v48  ;;  %v941_v58 = vmul.f32 %v837_v21, %v14214_v9  ;;  %v12011_v47 = vadd.f32 %v935_v3, %v927_v15  ;;  %v12013_v34 = vadd.f32 %v938_v19, %v930_v43  ;;  %v842_v43 = vpop.permute.xlu1 %841 }
 0x243   :  { %v942_v17 = vmul.f32 %v837_v21, %v14215_v30  ;;  %v1203_v35 = vadd.f32 %v939_v49, %v931_v57  ;;  %v1190_v18 = vrot.slane %v1189_v36, 4  ;;  %v1128_v9 = vadd.f32 %v1127_v28, %v11873_v6  ;;  %v14224_v57 = vld [vmem:[#allocation61_spill] sm:$0xff] }
 0x244   :  { %14216 = vst [vmem:[#allocation40_spill] sm:$0xff] %v12013_v34  ;;  %v12018_v59 = vadd.f32 %v940_v26, %v932_v54  ;;  %v1217_v45 = vadd.f32 %v941_v58, %v933_v8  ;;  %v14218_v30 = vunpack.c.h.bf16 %v14190_v42  ;;  %v14219_v50 = vrot.slane %v11766_v27, 2  ;;  %v14232_v8 = vld [vmem:[#allocation64_spill] sm:$0xff] }
 0x245   :  { %v12020_v48 = vadd.f32 %v942_v17, %v934_v14  ;;  %v14220_v46 = vunpack.c.h.bf16 %v14205_v2  ;;  %v14221_v14 = vld [vmem:[#allocation60_spill] sm:$0xff]  ;;  %v1204_v28 = vrot.slane %v1203_v35, 4  ;;  %v14225_v3 = vunpack.c.l.bf16 %v14224_v57  ;;  %v14228_v17 = vld [vmem:[#allocation59_spill] sm:$0xff] }
 0x246   :  { %v12026_v15 = vmul.f32 %v11957_v60, %v14218_v30  ;;  %v12031_v24 = vadd.f32 %v14219_v50, %v11766_v27  ;;  %v14222_v58 = vunpack.c.l.bf16 %v14221_v14  ;;  %v1218_v42 = vrot.slane %v1217_v45, 4 }
 0x247   :  { %14217 = vst [vmem:[#allocation41_spill] sm:$0xff] %v12020_v48  ;;  %v936_v54 = vmul.f32 %v837_v21, %v14220_v46  ;;  %v12045_v27 = vmul.f32 %v12015_v20, %v14225_v3  ;;  %v1018_v2 = vadd.f32 %v1017_v31, %v11762_v55  ;;  %v12048_v21 = vadd.f32 %v1190_v18, %v1189_v36  ;;  %v14230_v46 = vld [vmem:[#allocation63_spill] sm:$0xff]  ;;  %v14235_v18 = vld [vmem:[#allocation65_spill] sm:$0xff]  ;;  %v14238_v48 = vld [vmem:[#allocation66_spill] sm:$0xff] }
 0x248   :  { %v12040_v6 = vmul.f32 %v12015_v20, %v14222_v58  ;;  %v14229_v30 = vunpack.c.h.bf16 %v14228_v17  ;;  %v14231_v58 = vunpack.c.l.bf16 %v14230_v46  ;;  %v14234_v34 = vunpack.c.h.bf16 %v14232_v8 }
 0x249   :  { %14226 = vst [vmem:[#allocation47_spill] sm:$0xff] %v12045_v27  ;;  %14227 = vst [vmem:[#allocation48_spill] sm:$0xff] %v12048_v21  ;;  %v14236_v31 = vunpack.c.l.bf16 %v14235_v18  ;;  %v14237_v19 = vunpack.c.h.bf16 %v14235_v18  ;;  %v14239_v21 = vunpack.c.l.bf16 %v14238_v48  ;;  %v1019_v27 = vrot.slane %v1018_v2, 1 }
 0x24a   :  { %14223 = vst [vmem:[#allocation42_spill] sm:$0xff] %v12040_v6  ;;  %v12055_v50 = vmul.f32 %v12015_v20, %v14229_v30  ;;  %v943_v26 = vmul.f32 %v842_v43, %v14231_v58  ;;  %v14233_v6 = vunpack.c.l.bf16 %v14232_v8  ;;  %v946_v55 = vmul.f32 %v842_v43, %v14234_v34 }
 0x24b   :  { %v947_v36 = vmul.f32 %v842_v43, %v14236_v31  ;;  %v948_v49 = vmul.f32 %v842_v43, %v14237_v19  ;;  %v949_v14 = vmul.f32 %v842_v43, %v14239_v21  ;;  %v14240_v30 = vunpack.c.h.bf16 %v14238_v48  ;;  %v14251_v21 = vld [vmem:[#allocation69_spill] sm:$0xff] }
 0x24c   :  { %v945_v3 = vmul.f32 %v842_v43, %v14233_v6  ;;  %v12071_v58 = vadd.f32 %v1204_v28, %v1203_v35  ;;  %v12073_v25 = vadd.f32 %v1218_v42, %v1217_v45  ;;  %v14243_v6 = vunpack.c.h.bf16 %v14230_v46  ;;  %v12096_v28 = vpop.permute.xlu1 %851  ;;  %v14253_v46 = vld [vmem:[#allocation70_spill] sm:$0xff] }
 0x24d   :  { %v950_v37 = vmul.f32 %v842_v43, %v14240_v30  ;;  %v12079_v34 = vadd.f32 %v11906_v39, %v947_v36  ;;  %v12084_v18 = vadd.f32 %v11918_v38, %v949_v14  ;;  %v1074_v35 = vadd.f32 %v1073_v1, %v11821_v11  ;;  %14246 = vst [vmem:[#allocation56_spill] sm:$0xff] %v12096_v28 }
 0x24e   :  { %14241 = vst [vmem:[#allocation49_spill] sm:$0xff] %v12073_v25  ;;  %v12076_v8 = vadd.f32 %v11894_v12, %v945_v3  ;;  %v944_v19 = vmul.f32 %v842_v43, %v14243_v6  ;;  %v12091_v45 = vadd.f32 %v11832_v53, %v943_v26  ;;  %v12094_v12 = vadd.f32 %v11901_v0, %v946_v55  ;;  %v14249_v0 = vld [vmem:[#allocation67_spill] sm:$0xff] }
 0x24f   :  { %14244 = vst [vmem:[#allocation55_spill] sm:$0xff] %v12084_v18  ;;  %v12087_v48 = vadd.f32 %v11923_v51, %v950_v37  ;;  %v1129_v39 = vrot.slane %v1128_v9, 2  ;;  %v1182_v42 = vadd.f32 %v936_v54, %v11963_v7  ;;  %v12101_v38 = vadd.f32 %v11911_v16, %v948_v49  ;;  %v14247_v51 = vld [vmem:[#allocation68_spill] sm:$0xff] }
 0x250   :  { %14242 = vst [vmem:[#allocation50_spill] sm:$0xff] %v12076_v8  ;;  %v14248_v37 = vunpack.c.l.bf16 %v14247_v51  ;;  %v1020_v1 = vadd.f32 %v1019_v27, %v1018_v2  ;;  %v14250_v26 = vunpack.c.l.bf16 %v14249_v0  ;;  %v14252_v7 = vunpack.c.l.bf16 %v14251_v21 }
 0x251   :  { %14245 = vst [vmem:[#allocation53_spill] sm:$0xff] %v12087_v48  ;;  %v14254_v16 = vunpack.c.l.bf16 %v14253_v46  ;;  %v14256_v27 = vunpack.c.h.bf16 %v14249_v0  ;;  %v1075_v55 = vrot.slane %v1074_v35, 1  ;;  %v1130_v31 = vadd.f32 %v1129_v39, %v1128_v9 }
 0x252   :  { %v961_v11 = vmul.f32 %v12096_v28, %v14248_v37  ;;  %v12110_v14 = vmul.f32 %v12096_v28, %v14250_v26  ;;  %v963_v54 = vmul.f32 %v12096_v28, %v14252_v7  ;;  %v14257_v36 = vunpack.c.h.bf16 %v14247_v51  ;;  %v12142_v51 = vpop.permute.xlu1 %861 }
 0x253   :  { %v965_v49 = vmul.f32 %v12096_v28, %v14254_v16  ;;  %v960_v2 = vmul.f32 %v12096_v28, %v14256_v27  ;;  %v1183_v37 = vrot.slane %v1182_v42, 4  ;;  %v1238_v26 = vadd.f32 %v11882_v10, %v944_v19  ;;  %v14261_v27 = vld [vmem:[#allocation72_spill] sm:$0xff]  ;;  %v14264_v19 = vld [vmem:[#allocation71_spill] sm:$0xff] }
 0x254   :  { %v12119_v3 = vadd.f32 %v11935_v13, %v961_v11  ;;  %v12127_v30 = vmul.f32 %v12096_v28, %v14257_v36  ;;  %v14260_v13 = vunpack.c.h.bf16 %v14251_v21  ;;  %v1076_v0 = vadd.f32 %v1075_v55, %v1074_v35 }
 0x255   :  { %v12130_v6 = vadd.f32 %v11951_v61, %v965_v49  ;;  %v1131_v7 = vrot.slane %v1130_v31, 1  ;;  %v1294_v9 = vadd.f32 %v11989_v41, %v960_v2  ;;  %v12140_v39 = vadd.f32 %v11943_v52, %v963_v54 }
 0x256   :  { %14255 = vst [vmem:[#allocation57_spill] sm:$0xff] %v12119_v3  ;;  %14258 = vst [vmem:[#allocation58_spill] sm:$0xff] %v12127_v30  ;;  %v12136_v11 = vmul.f32 %v12096_v28, %v14260_v13  ;;  %v1184_v16 = vadd.f32 %v1183_v37, %v1182_v42  ;;  %v1239_v61 = vrot.slane %v1238_v26, 4  ;;  %v1456_v49 = vmul.f32 0.0625, %v1020_v1  ;;  %v14267_v37 = vld [vmem:[#allocation73_spill] sm:$0xff] }
 0x257   :  { %14259 = vst [vmem:[#allocation51_spill] sm:$0xff] %v12130_v6  ;;  %v14262_v36 = vunpack.c.l.bf16 %v14261_v27  ;;  %v14265_v21 = vunpack.c.h.bf16 %v14264_v19  ;;  %v14266_v41 = vunpack.c.h.bf16 %v14224_v57  ;;  %v1047_v54 = vrot.slane %v12031_v24, 1 }
 0x258   :  { %v1132_v42 = vadd.f32 %v1131_v7, %v1130_v31  ;;  %v1185_v2 = vrot.slane %v1184_v16, 2  ;;  %v1240_v1 = vadd.f32 %v1239_v61, %v1238_v26  ;;  %v1295_v55 = vrot.slane %v1294_v9, 4 }
 0x259   :  { %v12147_v10 = vmul.f32 %v12142_v51, %v14262_v36  ;;  %v976_v35 = vmul.f32 %v12142_v51, %v14265_v21  ;;  %v12155_v52 = vmul.f32 %v12015_v20, %v14266_v41  ;;  %v14268_v13 = vunpack.c.l.bf16 %v14267_v37 }
 0x25a   :  { %v1464_v21 = vmul.f32 0.0625, %v1076_v0  ;;  %v14269_v57 = vunpack.c.h.bf16 %v14267_v37  ;;  %v1186_v53 = vadd.f32 %v1185_v2, %v1184_v16  ;;  %v1241_v6 = vrot.slane %v1240_v1, 2  ;;  %v12172_v0 = vpop.permute.xlu1 %871  ;;  %v14271_v2 = vld [vmem:[#allocation76_spill] sm:$0xff] }
 0x25b   :  { %14263 = vst [vmem:[#allocation35_spill] sm:$0xff] %v12147_v10  ;;  %v12161_v36 = vmul.f32 %v12142_v51, %v14268_v13  ;;  %v1350_v43 = vadd.f32 %v11994_v56, %v976_v35  ;;  %v1296_v25 = vadd.f32 %v1295_v55, %v1294_v9  ;;  %v1472_v31 = vmul.f32 0.0625, %v1132_v42  ;;  %v14274_v55 = vld [vmem:[#allocation77_spill] sm:$0xff] }
 0x25c   :  { %v980_v41 = vmul.f32 %v12142_v51, %v14269_v57  ;;  %v1048_v26 = vadd.f32 %v1047_v54, %v12031_v24  ;;  %v14270_v61 = vrot.slane %v11814_v33, 2  ;;  %v1157_v56 = vrot.slane %v11889_v5, 2 }
 0x25d   :  { %v1351_v7 = vrot.slane %v1350_v43, 4  ;;  %v1187_v35 = vrot.slane %v1186_v53, 1  ;;  %v1242_v37 = vadd.f32 %v1241_v6, %v1240_v1  ;;  %v1297_v48 = vrot.slane %v1296_v25, 2 }
 0x25e   :  { %v1102_v13 = vadd.f32 %v14270_v61, %v11814_v33  ;;  %v2893_v16 = vsel %vm2879_vm4, %v1464_v21, %v1456_v49  ;;  %v14272_v9 = vunpack.c.l.bf16 %v14271_v2  ;;  %v14275_v24 = vunpack.c.l.bf16 %v14274_v55  ;;  %v14276_v33 = vld [vmem:[#allocation75_spill] sm:$0xff] }
 0x25f   :  { %v14277_v57 = vunpack.c.h.bf16 %v14276_v33  ;;  %v2894_v28 = vsel %vm2881_vm5, %v1472_v31, %v2893_v16  ;;  %v1188_v6 = vadd.f32 %v1187_v35, %v1186_v53  ;;  %v1243_v1 = vrot.slane %v1242_v37, 1 }
 0x260   :  { %v12178_v42 = vmul.f32 %v12172_v0, %v14272_v9  ;;  %v12183_v54 = vmul.f32 %v12172_v0, %v14275_v24  ;;  %v1298_v46 = vadd.f32 %v1297_v48, %v1296_v25  ;;  %v1352_v49 = vadd.f32 %v1351_v7, %v1350_v43 }
 0x261   :  { %v992_v61 = vmul.f32 %v12172_v0, %v14277_v57  ;;  %v14278_v9 = vunpack.c.h.bf16 %v14274_v55  ;;  %v1158_v24 = vadd.f32 %v1157_v56, %v11889_v5  ;;  %v1244_v10 = vadd.f32 %v1243_v1, %v1242_v37 }
 0x262   :  { %14273 = vst [vmem:[#allocation36_spill] sm:$0xff] %v12178_v42  ;;  %v1103_v42 = vrot.slane %v1102_v13, 1  ;;  %v1299_v3 = vrot.slane %v1298_v46, 1  ;;  %v1353_v8 = vrot.slane %v1352_v49, 2  ;;  %v1480_v57 = vmul.f32 0.0625, %v1188_v6 }
 0x263   :  { %v1406_v21 = vadd.f32 %v12055_v50, %v992_v61  ;;  %v996_v18 = vmul.f32 %v12172_v0, %v14278_v9  ;;  %v1159_v53 = vrot.slane %v1158_v24, 1  ;;  %v14279_v25 = vrot.slane %v12018_v59, 4 }
 0x264   :  { %v1104_v31 = vadd.f32 %v1103_v42, %v1102_v13  ;;  %v1300_v50 = vadd.f32 %v1299_v3, %v1298_v46  ;;  %v1354_v43 = vadd.f32 %v1353_v8, %v1352_v49  ;;  %v1488_v7 = vmul.f32 0.0625, %v1244_v10 }
 0x265   :  { %v1407_v30 = vrot.slane %v1406_v21, 4  ;;  %v1212_v48 = vadd.f32 %v14279_v25, %v12018_v59  ;;  %v2895_v35 = vsel %vm2883_vm6, %v1480_v57, %v2894_v28  ;;  %v1160_v55 = vadd.f32 %v1159_v53, %v1158_v24 }
 0x266   :  { %v1267_v5 = vrot.slane %v12101_v38, 4  ;;  %v1355_v56 = vrot.slane %v1354_v43, 1  ;;  %v1496_v37 = vmul.f32 0.0625, %v1300_v50  ;;  %v2896_v13 = vsel %vm2885_vm7, %v1488_v7, %v2895_v35 }
 0x267   :  { %v1408_v16 = vadd.f32 %v1407_v30, %v1406_v21  ;;  %v1213_v61 = vrot.slane %v1212_v48, 2  ;;  %v1322_v42 = vadd.f32 %v11947_v32, %v12136_v11  ;;  %v1378_v46 = vadd.f32 %v12026_v15, %v980_v41 }
 0x268   :  { %v1268_v8 = vadd.f32 %v1267_v5, %v12101_v38  ;;  %v1356_v28 = vadd.f32 %v1355_v56, %v1354_v43  ;;  %v2897_v3 = vsel %vm2887_vm8, %v1496_v37, %v2896_v13  ;;  %v1434_v10 = vadd.f32 %v12155_v52, %v996_v18 }
 0x269   :  { %v1409_v6 = vrot.slane %v1408_v16, 2  ;;  %v1214_v59 = vadd.f32 %v1213_v61, %v1212_v48  ;;  %v1323_v30 = vrot.slane %v1322_v42, 4  ;;  %v1379_v9 = vrot.slane %v1378_v46, 4 }
 0x26a   :  { %v1269_v21 = vrot.slane %v1268_v8, 2  ;;  %v1504_v24 = vmul.f32 0.0625, %v1356_v28  ;;  %v1435_v53 = vrot.slane %v1434_v10, 4  ;;  %v1460_v32 = vmul.f32 0.0625, %v1048_v26 }
 0x26b   :  { %v1410_v1 = vadd.f32 %v1409_v6, %v1408_v16  ;;  %v1215_v49 = vrot.slane %v1214_v59, 1  ;;  %v1324_v57 = vadd.f32 %v1323_v30, %v1322_v42  ;;  %v1380_v38 = vadd.f32 %v1379_v9, %v1378_v46 }
 0x26c   :  { %v1270_v48 = vadd.f32 %v1269_v21, %v1268_v8  ;;  %v2898_v15 = vsel %vm2889_vm9, %v1504_v24, %v2897_v3  ;;  %v1436_v50 = vadd.f32 %v1435_v53, %v1434_v10  ;;  %v1468_v43 = vmul.f32 0.0625, %v1104_v31 }
 0x26d   :  { %v1411_v11 = vrot.slane %v1410_v1, 1  ;;  %v1216_v25 = vadd.f32 %v1215_v49, %v1214_v59  ;;  %v1325_v41 = vrot.slane %v1324_v57, 2  ;;  %v1381_v18 = vrot.slane %v1380_v38, 2 }
 0x26e   :  { %v1271_v35 = vrot.slane %v1270_v48, 1  ;;  %v1476_v52 = vmul.f32 0.0625, %v1160_v55  ;;  %v1437_v61 = vrot.slane %v1436_v50, 2  ;;  %v2921_v56 = vsel %vm2879_vm4, %v1468_v43, %v1460_v32 }
 0x26f   :  { %v1412_v7 = vadd.f32 %v1411_v11, %v1410_v1  ;;  %v1326_v16 = vadd.f32 %v1325_v41, %v1324_v57  ;;  %v1484_v5 = vmul.f32 0.0625, %v1216_v25  ;;  %v1382_v13 = vadd.f32 %v1381_v18, %v1380_v38 }
 0x270   :  { %v1272_v26 = vadd.f32 %v1271_v35, %v1270_v48  ;;  %v2922_v42 = vsel %vm2881_vm5, %v1476_v52, %v2921_v56  ;;  %v1438_v59 = vadd.f32 %v1437_v61, %v1436_v50  ;;  %v14280_v31 = vunpack.c.l.bf16 %v14264_v19 }
 0x271   :  { %v1512_v37 = vmul.f32 0.0625, %v1412_v7  ;;  %v1327_v6 = vrot.slane %v1326_v16, 1  ;;  %v2923_v8 = vsel %vm2883_vm6, %v1484_v5, %v2922_v42  ;;  %v1383_v28 = vrot.slane %v1382_v13, 1 }
 0x272   :  { %v975_v46 = vmul.f32 %v12142_v51, %v14280_v31  ;;  %v1492_v3 = vmul.f32 0.0625, %v1272_v26  ;;  %v14281_v30 = vunpack.c.l.bf16 %v14203_v62  ;;  %v1439_v21 = vrot.slane %v1438_v59, 1 }
 0x273   :  { %v2899_v55 = vsel %vm2891_vm10, %v1512_v37, %v2898_v15  ;;  %v1328_v49 = vadd.f32 %v1327_v6, %v1326_v16  ;;  %v14283_v9 = vunpack.c.l.bf16 %v14276_v33  ;;  %v1384_v57 = vadd.f32 %v1383_v28, %v1382_v13  ;;  %v12245_v13 = vpop.xlane.xlu0 %1855 }
 0x274   :  { %v983_v10 = vmul.f32 %v11957_v60, %v14281_v30  ;;  %v12217_v1 = vpack.c.bf16 %v2899_v55, %v2899_v55  ;;  %v2924_v19 = vsel %vm2885_vm7, %v1492_v3, %v2923_v8  ;;  %v14284_v53 = vunpack.c.l.bf16 %v14228_v17 }
 0x275   :  { %v991_v24 = vmul.f32 %v12172_v0, %v14283_v9  ;;  %v14285_v62 = vrot.slane %v11760_v44, 2  ;;  %v1440_v25 = vadd.f32 %v1439_v21, %v1438_v59  ;;  %v1500_v48 = vmul.f32 0.0625, %v1328_v49 }
 0x276   :  { %14282 = vst [vmem:[#allocation37_spill] sm:$0xff] %v12217_v1  ;;  %v999_v32 = vmul.f32 %v12015_v20, %v14284_v53  ;;  %6421 = vmatprep.mubr.bf16.mxu0 %v12217_v1  ;;  %v14286_v33 = vrot.slane %v11810_v4, 2  ;;  %v1122_v15 = vrot.slane %v11884_v29, 2  ;;  %v1508_v41 = vmul.f32 0.0625, %v1384_v57  ;;  %v14446_v1 = vld [vmem:[#allocation106_spill] sm:$0xff] }
 0x277   :  { %v1011_v11 = vadd.f32 %v14285_v62, %v11760_v44  ;;  %v14287_v17 = vrot.slane %v12011_v47, 4  ;;  %v1232_v7 = vrot.slane %v12091_v45, 4  ;;  %v1516_v35 = vmul.f32 0.0625, %v1440_v25 }
 0x278   :  { %v1067_v38 = vadd.f32 %v14286_v33, %v11810_v4  ;;  %v2925_v44 = vsel %vm2887_vm8, %v1500_v48, %v2924_v19  ;;  %v1123_v52 = vadd.f32 %v1122_v15, %v11884_v29  ;;  %v1343_v29 = vadd.f32 %v983_v10, %v975_v46  ;;  %v12258_v48 = vpop.xlane.xlu0 %1864 }
 0x279   :  { %v1012_v50 = vrot.slane %v1011_v11, 1  ;;  %v1177_v43 = vadd.f32 %v14287_v17, %v12011_v47  ;;  %v2926_v16 = vsel %vm2889_vm9, %v1508_v41, %v2925_v44  ;;  %v1233_v5 = vadd.f32 %v1232_v7, %v12091_v45 }
 0x27a   :  { %v1068_v18 = vrot.slane %v1067_v38, 1  ;;  %v2927_v56 = vsel %vm2891_vm10, %v1516_v35, %v2926_v16  ;;  %v1124_v26 = vrot.slane %v1123_v52, 1  ;;  %v1287_v47 = vadd.f32 %v11927_v40, %v12110_v14 }
 0x27b   :  { %v1013_v61 = vadd.f32 %v1012_v50, %v1011_v11  ;;  %v1178_v4 = vrot.slane %v1177_v43, 2  ;;  %v12247_v42 = vpack.c.bf16 %v2927_v56, %v2927_v56  ;;  %v1234_v59 = vrot.slane %v1233_v5, 2 }
 0x27c   :  { %v1069_v37 = vadd.f32 %v1068_v18, %v1067_v38  ;;  %v1125_v8 = vadd.f32 %v1124_v26, %v1123_v52  ;;  %v1288_v31 = vrot.slane %v1287_v47, 4  ;;  %v1399_v55 = vadd.f32 %v999_v32, %v991_v24  ;;  %v14292_v26 = vld [vmem:[#allocation34_spill] sm:$0xff] }
 0x27d   :  { %14288 = vst [vmem:[#allocation38_spill] sm:$0xff] %v12247_v42  ;;  %v1179_v6 = vadd.f32 %v1178_v4, %v1177_v43  ;;  %v1455_v28 = vmul.f32 0.0625, %v1013_v61  ;;  %6503 = vmatprep.mubr.bf16.mxu1 %v12247_v42  ;;  %v1235_v3 = vadd.f32 %v1234_v59, %v1233_v5  ;;  %v1344_v30 = vrot.slane %v1343_v29, 4 }
 0x27e   :  { %v1463_v49 = vmul.f32 0.0625, %v1069_v37  ;;  %v1289_v21 = vadd.f32 %v1288_v31, %v1287_v47  ;;  %v1400_v9 = vrot.slane %v1399_v55, 4  ;;  %v1471_v40 = vmul.f32 0.0625, %v1125_v8  ;;  %v12272_v8 = vpop.xlane.xlu0 %1882 }
 0x27f   :  { %v1180_v45 = vrot.slane %v1179_v6, 1  ;;  %v14289_v14 = vrot.slane %v11775_v63, 1  ;;  %v1236_v53 = vrot.slane %v1235_v3, 1  ;;  %v1345_v46 = vadd.f32 %v1344_v30, %v1343_v29 }
 0x280   :  { %v2880_v10 = vsel %vm2879_vm4, %v1463_v49, %v1455_v28  ;;  %v1290_v24 = vrot.slane %v1289_v21, 2  ;;  %v1401_v32 = vadd.f32 %v1400_v9, %v1399_v55  ;;  %v14290_v11 = vrot.slane %v11839_v23, 1 }
 0x281   :  { %v1041_v57 = vadd.f32 %v14289_v14, %v11775_v63  ;;  %v1181_v19 = vadd.f32 %v1180_v45, %v1179_v6  ;;  %v2882_v62 = vsel %vm2881_vm5, %v1471_v40, %v2880_v10  ;;  %v1237_v33 = vadd.f32 %v1236_v53, %v1235_v3 }
 0x282   :  { %v1097_v25 = vadd.f32 %v14290_v11, %v11839_v23  ;;  %v1346_v38 = vrot.slane %v1345_v46, 2  ;;  %v1152_v63 = vrot.slane %v11929_v22, 1  ;;  %v1291_v41 = vadd.f32 %v1290_v24, %v1289_v21 }
 0x283   :  { %v1479_v15 = vmul.f32 0.0625, %v1181_v19  ;;  %v1402_v50 = vrot.slane %v1401_v32, 2  ;;  %v1206_v17 = vrot.slane %v12071_v58, 2  ;;  %v14291_v43 = vrot.slane %v12079_v34, 4 }
 0x284   :  { %v1347_v35 = vadd.f32 %v1346_v38, %v1345_v46  ;;  %v1487_v44 = vmul.f32 0.0625, %v1237_v33  ;;  %v1153_v23 = vadd.f32 %v1152_v63, %v11929_v22  ;;  %v1292_v52 = vrot.slane %v1291_v41, 1 }
 0x285   :  { %v1261_v7 = vadd.f32 %v14291_v43, %v12079_v34  ;;  %v2884_v18 = vsel %vm2883_vm6, %v1479_v15, %v2882_v62  ;;  %v1403_v16 = vadd.f32 %v1402_v50, %v1401_v32  ;;  %v1207_v61 = vadd.f32 %v1206_v17, %v12071_v58  ;;  %v14293_v58 = vld [vmem:[#allocation47_spill] sm:$0xff]  ;;  %v8550_v62 = vld [vmem:[#allocation8 + $0x200] ss:$16 sps:$4 sm:$0xff]   ;;  %v12280_v15 = vpop.xlane.xlu0 %1900  ;;  %v8555_v43 = vld [vmem:[#allocation8 + $0x224] ss:$16 sps:$4 sm:$0xff]  }
 0x286   :  { %v1348_v5 = vrot.slane %v1347_v35, 1  ;;  %v2886_v56 = vsel %vm2885_vm7, %v1487_v44, %v2884_v18  ;;  %v1316_v37 = vrot.slane %v12140_v39, 4  ;;  %v1371_v47 = vadd.f32 %v14292_v26, %v12161_v36  ;;  %v14296_v18 = vld [vmem:[#allocation52_spill] sm:$0xff] }
 0x287   :  { %v1262_v4 = vrot.slane %v1261_v7, 2  ;;  %v1293_v34 = vadd.f32 %v1292_v52, %v1291_v41  ;;  %v1404_v6 = vrot.slane %v1403_v16, 1  ;;  %v1208_v59 = vrot.slane %v1207_v61, 1 }
 0x288   :  { %v1349_v22 = vadd.f32 %v1348_v5, %v1347_v35  ;;  %v1317_v31 = vadd.f32 %v1316_v37, %v12140_v39  ;;  %v1372_v55 = vrot.slane %v1371_v47, 4  ;;  %v1427_v28 = vadd.f32 %v14293_v58, %v12183_v54  ;;  %v14299_v37 = vld [vmem:[#allocation60_spill] sm:$0xff] }
 0x289   :  { %v1263_v29 = vadd.f32 %v1262_v4, %v1261_v7  ;;  %v1405_v45 = vadd.f32 %v1404_v6, %v1403_v16  ;;  %v1495_v3 = vmul.f32 0.0625, %v1293_v34  ;;  %v1209_v30 = vadd.f32 %v1208_v59, %v1207_v61  ;;  %v14301_v34 = vld [vmem:[#allocation143_spill] sm:$0xff] }
 0x28a   :  { %v1503_v21 = vmul.f32 0.0625, %v1349_v22  ;;  %v1318_v9 = vrot.slane %v1317_v31, 2  ;;  %v1373_v36 = vadd.f32 %v1372_v55, %v1371_v47  ;;  %v1428_v40 = vrot.slane %v1427_v28, 4 }
 0x28b   :  { %v1264_v49 = vrot.slane %v1263_v29, 1  ;;  %v1511_v14 = vmul.f32 0.0625, %v1405_v45  ;;  %v2888_v19 = vsel %vm2887_vm8, %v1495_v3, %v2886_v56  ;;  %v1459_v46 = vmul.f32 0.0625, %v1041_v57 }
 0x28c   :  { %v2890_v10 = vsel %vm2889_vm9, %v1503_v21, %v2888_v19  ;;  %v1319_v39 = vadd.f32 %v1318_v9, %v1317_v31  ;;  %v1374_v24 = vrot.slane %v1373_v36, 2  ;;  %v1429_v32 = vadd.f32 %v1428_v40, %v1427_v28  ;;  %v8558_v28 = vld [vmem:[#allocation8 + $0x244] ss:$16 sps:$4 sm:$0xff]   ;;  %v12313_v19 = vpop.xlane.xlu1 %1846 }
 0x28d   :  { %v1265_v53 = vadd.f32 %v1264_v49, %v1263_v29  ;;  %v2892_v54 = vsel %vm2891_vm10, %v1511_v14, %v2890_v10  ;;  %v1467_v11 = vmul.f32 0.0625, %v1097_v25  ;;  %v1475_v33 = vmul.f32 0.0625, %v1153_v23  ;;  %v8553_v29 = vld [vmem:[#allocation8 + $0x220] ss:$16 sps:$4 sm:$0xff]   ;;  %v14305_v49 = vld [vmem:[#allocation43_spill] sm:$0xff]  ;;  %v12311_v14 = vpop.xlane.xlu0 %1918 }
 0x28e   :  { %v1483_v38 = vmul.f32 0.0625, %v1209_v30  ;;  %v12282_v63 = vpack.c.bf16 %v2892_v54, %v2892_v54  ;;  %v1320_v41 = vrot.slane %v1319_v39, 1  ;;  %v1375_v50 = vadd.f32 %v1374_v24, %v1373_v36  ;;  %v14306_v9 = vld [vmem:[#allocation40_spill] sm:$0xff] }
 0x28f   :  { %v1430_v17 = vrot.slane %v1429_v32, 2  ;;  %v1491_v57 = vmul.f32 0.0625, %v1265_v53  ;;  %v2914_v7 = vsel %vm2879_vm4, %v1467_v11, %v1459_v46  ;;  %v14295_v35 = vunpack.c.h.bf16 %v14261_v27  ;;  %v8556_v11 = vld [vmem:[#allocation8 + $0x240] ss:$16 sps:$4 sm:$0xff]  }
 0x290   :  { %14294 = vst [vmem:[#allocation61_spill] sm:$0xff] %v12282_v63  ;;  %v14297_v52 = vunpack.c.h.bf16 %v14296_v18  ;;  %6422 = vmatmul.mubr.bf16.vlgmr.msra.gmra.mrb[0].mxu0 %v12282_v63  ;;  %v1321_v23 = vadd.f32 %v1320_v41, %v1319_v39  ;;  %v1376_v16 = vrot.slane %v1375_v50, 1  ;;  %v2915_v4 = vsel %vm2881_vm5, %v1475_v33, %v2914_v7 }
 0x291   :  { %v978_v44 = vmul.f32 %v12142_v51, %v14295_v35  ;;  %v1431_v61 = vadd.f32 %v1430_v17, %v1429_v32  ;;  %6431 = vmatpush1.bf16.msra.mxu0 %v8550_v62  ;;  %v2916_v5 = vsel %vm2883_vm6, %v1483_v38, %v2915_v4  ;;  %v14298_v56 = vunpack.c.h.bf16 %v14271_v2  ;;  %v14303_v2 = vld [vmem:[#allocation28_spill] sm:$0xff]  ;;  %v14309_v17 = vld [vmem:[#allocation31_spill] sm:$0xff] }
 0x292   :  { %v986_v25 = vmul.f32 %v11957_v60, %v14297_v52  ;;  %v14300_v26 = vunpack.c.h.bf16 %v14299_v37  ;;  %v14302_v6 = vrot.slane %v14301_v34, 2  ;;  %v1377_v22 = vadd.f32 %v1376_v16, %v1375_v50  ;;  %6432 = vmatprep.subr.bf16.mxu0 %v8555_v43  ;;  %v14308_v50 = vld [vmem:[#allocation58_spill] sm:$0xff] }
 0x293   :  { %v994_v27 = vmul.f32 %v12172_v0, %v14298_v56  ;;  %v1432_v31 = vrot.slane %v1431_v61, 1  ;;  %v1499_v55 = vmul.f32 0.0625, %v1321_v23  ;;  %v2917_v58 = vsel %vm2885_vm7, %v1491_v57, %v2916_v5  ;;  %v8561_v57 = vld [vmem:[#allocation8 + $0x264] ss:$16 sps:$4 sm:$0xff]   ;;  %v12322_v23 = vpop.xlane.xlu1 %1873 }
 0x294   :  { %v1002_v47 = vmul.f32 %v12015_v20, %v14300_v26  ;;  %v1032_v59 = vadd.f32 %v14302_v6, %v14301_v34  ;;  %v14304_v3 = vrot.slane %v14303_v2, 2  ;;  %v1143_v21 = vrot.slane %v14305_v49, 2  ;;  %v8559_v34 = vld [vmem:[#allocation8 + $0x260] ss:$16 sps:$4 sm:$0xff]   ;;  %v1937_v6 = vpop.xlane.xlu0 %1936 }
 0x295   :  { %v14307_v36 = vrot.slane %v14306_v9, 4  ;;  %v1433_v53 = vadd.f32 %v1432_v31, %v1431_v61  ;;  %v1507_v46 = vmul.f32 0.0625, %v1377_v22  ;;  %v2918_v10 = vsel %vm2887_vm8, %v1499_v55, %v2917_v58  ;;  %6433 = vmatpush1.bf16.msra.mxu0 %v8553_v29 }
 0x296   :  { %v1033_v45 = vrot.slane %v1032_v59, 1  ;;  %v1088_v30 = vadd.f32 %v14304_v3, %v14303_v2  ;;  %v1253_v39 = vrot.slane %v12094_v12, 4  ;;  %v1144_v62 = vadd.f32 %v1143_v21, %v14305_v49  ;;  %6434 = vmatprep.subr.bf16.mxu0 %v8558_v28  ;;  %v12330_v3 = vld [vmem:[#allocation2] ss:$0 sm:$0xff] }
 0x297   :  { %v1198_v40 = vadd.f32 %v14307_v36, %v14306_v9  ;;  %v1515_v33 = vmul.f32 0.0625, %v1433_v53  ;;  %v2919_v38 = vsel %vm2889_vm9, %v1507_v46, %v2918_v10  ;;  %v1308_v43 = vadd.f32 %v14309_v17, %v14308_v50 }
 0x298   :  { %v1034_v24 = vadd.f32 %v1033_v45, %v1032_v59  ;;  %v1089_v32 = vrot.slane %v1088_v30, 1  ;;  %v1254_v41 = vadd.f32 %v1253_v39, %v12094_v12  ;;  %v1145_v35 = vrot.slane %v1144_v62, 1 }
 0x299   :  { %v1199_v54 = vrot.slane %v1198_v40, 2  ;;  %v1364_v52 = vadd.f32 %v986_v25, %v978_v44  ;;  %v2920_v16 = vsel %vm2891_vm10, %v1515_v33, %v2919_v38  ;;  %v1309_v4 = vrot.slane %v1308_v43, 4  ;;  %6435 = vmatpush1.bf16.msra.mxu0 %v8556_v11  ;;  %v8564_v44 = vld [vmem:[#allocation8 + $0x284] ss:$16 sps:$4 sm:$0xff]   ;;  %v1955_v11 = vpop.xlane.xlu0 %1954 }
 0x29a   :  { %v1090_v7 = vadd.f32 %v1089_v32, %v1088_v30  ;;  %v1255_v61 = vrot.slane %v1254_v41, 2  ;;  %v1420_v5 = vadd.f32 %v1002_v47, %v994_v27  ;;  %v12325_v56 = vpack.c.bf16 %v2920_v16, %v2920_v16  ;;  %6436 = vmatprep.subr.bf16.mxu0 %v8561_v57  ;;  %v12328_v47 = vpop.xlane.xlu1 %1891  ;;  %v8565_v57 = vld [vmem:[#allocation8 + $0x2a0] ss:$16 sps:$4 sm:$0xff]   ;;  %v8570_v16 = vld [vmem:[#allocation8 + $0x2c4] ss:$16 sps:$4 sm:$0xff]  }
 0x29b   :  { %v1200_v18 = vadd.f32 %v1199_v54, %v1198_v40  ;;  %v1146_v37 = vadd.f32 %v1145_v35, %v1144_v62  ;;  %v1365_v26 = vrot.slane %v1364_v52, 4  ;;  %v1310_v29 = vadd.f32 %v1309_v4, %v1308_v43  ;;  %v8562_v40 = vld [vmem:[#allocation8 + $0x280] ss:$16 sps:$4 sm:$0xff]  }
 0x29c   :  { %14310 = vst [vmem:[#allocation59_spill] sm:$0xff] %v12325_v56  ;;  %v1256_v59 = vadd.f32 %v1255_v61, %v1254_v41  ;;  %v1421_v22 = vrot.slane %v1420_v5, 4  ;;  %v1458_v31 = vmul.f32 0.0625, %v1034_v24  ;;  %6504 = vmatmul.mubr.bf16.vlgmr.msra.gmra.mrb[12].mxu1 %v12325_v56  ;;  %v1466_v58 = vmul.f32 0.0625, %v1090_v7  ;;  %v8567_v24 = vld [vmem:[#allocation8 + $0x2a4] ss:$16 sps:$4 sm:$0xff]  }
 0x29d   :  { %v1201_v12 = vrot.slane %v1200_v18, 1  ;;  %v1366_v55 = vadd.f32 %v1365_v26, %v1364_v52  ;;  %v1474_v27 = vmul.f32 0.0625, %v1146_v37  ;;  %v1311_v45 = vrot.slane %v1310_v29, 2  ;;  %6437 = vmatpush1.bf16.msra.mxu0 %v8559_v34 }
 0x29e   :  { %v1257_v28 = vrot.slane %v1256_v59, 1  ;;  %v1422_v2 = vadd.f32 %v1421_v22, %v1420_v5  ;;  %v1984_v30 = vadd.f32 %v12330_v3, %v12245_v13  ;;  %v2907_v9 = vsel %vm2879_vm4, %v1466_v58, %v1458_v31  ;;  %6438 = vmatprep.subr.bf16.mxu0 %v8564_v44  ;;  %v1910_v33 = vpop.xlane.xlu1 %1909  ;;  %v1973_v31 = vpop.xlane.xlu0 %1972 }
 0x29f   :  { %v1202_v25 = vadd.f32 %v1201_v12, %v1200_v18  ;;  %v1367_v49 = vrot.slane %v1366_v55, 2  ;;  %v1985_v36 = vadd.f32 %v12330_v3, %v12258_v48  ;;  %v1312_v46 = vadd.f32 %v1311_v45, %v1310_v29 }
 0x2a0   :  { %v1258_v53 = vadd.f32 %v1257_v28, %v1256_v59  ;;  %v1423_v10 = vrot.slane %v1422_v2, 2  ;;  %v2908_v39 = vsel %vm2881_vm5, %v1474_v27, %v2907_v9  ;;  %v7765_v13 = vmul.f32 -1.442695, %v1984_v30  ;;  %v8568_v59 = vld [vmem:[#allocation8 + $0x2c0] ss:$16 sps:$4 sm:$0xff]  }
 0x2a1   :  { %v1482_v21 = vmul.f32 0.0625, %v1202_v25  ;;  %v1368_v32 = vadd.f32 %v1367_v49, %v1366_v55  ;;  %v7766_v54 = vmul.f32 -1.442695, %v1985_v36  ;;  %v1313_v38 = vrot.slane %v1312_v46, 1  ;;  %6439 = vmatpush1.bf16.msra.mxu0 %v8562_v40  ;;  %v8571_v49 = vld [vmem:[#allocation8 + $0x2e0] ss:$16 sps:$4 sm:$0xff]  }
 0x2a2   :  { %v1424_v41 = vadd.f32 %v1423_v10, %v1422_v2  ;;  %v1490_v50 = vmul.f32 0.0625, %v1258_v53  ;;  %v1987_v48 = vadd.f32 %v12330_v3, %v12272_v8  ;;  %9398 = vpow2.f32 %v7765_v13  ;;  %6440 = vmatprep.subr.bf16.mxu0 %v8567_v24  ;;  %v1928_v37 = vpop.xlane.xlu1 %1927  ;;  %v8576_v36 = vld [vmem:[#allocation8 + $0x304] ss:$16 sps:$4 sm:$0xff]  }
 0x2a3   :  { %v2909_v62 = vsel %vm2883_vm6, %v1482_v21, %v2908_v39  ;;  %v1369_v17 = vrot.slane %v1368_v32, 1  ;;  %v1989_v43 = vadd.f32 %v12330_v3, %v12280_v15  ;;  %v1991_v7 = vadd.f32 %v12330_v3, %v12311_v14 }
 0x2a4   :  { %v1314_v35 = vadd.f32 %v1313_v38, %v1312_v46  ;;  %v1425_v18 = vrot.slane %v1424_v41, 1  ;;  %v2910_v52 = vsel %vm2885_vm7, %v1490_v50, %v2909_v62  ;;  %9400 = vpow2.f32 %v7766_v54  ;;  %v14312_v62 = vld [vmem:[#allocation144_spill] sm:$0xff] }
 0x2a5   :  { %v1370_v61 = vadd.f32 %v1369_v17, %v1368_v32  ;;  %v7768_v4 = vmul.f32 -1.442695, %v1987_v48  ;;  %v7770_v8 = vmul.f32 -1.442695, %v1989_v43  ;;  %v7772_v5 = vmul.f32 -1.442695, %v1991_v7  ;;  %6441 = vmatpush1.bf16.msra.mxu0 %v8565_v57 }
 0x2a6   :  { %v1426_v12 = vadd.f32 %v1425_v18, %v1424_v41  ;;  %v1498_v26 = vmul.f32 0.0625, %v1314_v35  ;;  %v1993_v15 = vadd.f32 %v12330_v3, %v1937_v6  ;;  %v1983_v34 = vadd.f32 %v12330_v3, %v12313_v19  ;;  %6442 = vmatprep.subr.bf16.mxu0 %v8570_v16  ;;  %v8573_v6 = vld [vmem:[#allocation8 + $0x2e4] ss:$16 sps:$4 sm:$0xff]   ;;  %v1946_v28 = vpop.xlane.xlu1 %1945  ;;  %v8574_v50 = vld [vmem:[#allocation8 + $0x300] ss:$16 sps:$4 sm:$0xff]   ;;  %v14316_v35 = vld [vmem:[#allocation45_spill] sm:$0xff] }
 0x2a7   :  { %v1506_v14 = vmul.f32 0.0625, %v1370_v61  ;;  %9402 = vpow2.f32 %v7768_v4  ;;  %v1995_v29 = vadd.f32 %v12330_v3, %v1955_v11  ;;  %v1986_v22 = vadd.f32 %v12330_v3, %v12322_v23  ;;  %v14314_v17 = vld [vmem:[#allocation30_spill] sm:$0xff] }
 0x2a8   :  { %v1514_v44 = vmul.f32 0.0625, %v1426_v12  ;;  %v2911_v25 = vsel %vm2887_vm8, %v1498_v26, %v2910_v52  ;;  %9404 = vpow2.f32 %v7770_v8  ;;  %v7774_v55 = vmul.f32 -1.442695, %v1993_v15  ;;  %v8579_v7 = vld [vmem:[#allocation8 + $0x324] ss:$16 sps:$4 sm:$0xff]   ;;  %v14320_v26 = vld [vmem:[#allocation57_spill] sm:$0xff] }
 0x2a9   :  { %v2912_v58 = vsel %vm2889_vm9, %v1506_v14, %v2911_v25  ;;  %9406 = vpow2.f32 %v7772_v5  ;;  %v7764_v19 = vmul.f32 -1.442695, %v1983_v34  ;;  %v7776_v27 = vmul.f32 -1.442695, %v1995_v29  ;;  %6443 = vmatpush1.bf16.msra.mxu0 %v8568_v59  ;;  %v14317_v52 = vld [vmem:[#allocation48_spill] sm:$0xff]  ;;  %v14318_v61 = vld [vmem:[#allocation50_spill] sm:$0xff] }
 0x2aa   :  { %v2913_v45 = vsel %vm2891_vm10, %v1514_v44, %v2912_v58  ;;  %9408 = vpow2.f32 %v7774_v55  ;;  %v7767_v2 = vmul.f32 -1.442695, %v1986_v22  ;;  %v1997_v23 = vadd.f32 %v12330_v3, %v1973_v31  ;;  %6444 = vmatprep.subr.bf16.mxu0 %v8573_v6  ;;  %v1964_v32 = vpop.xlane.xlu1 %1963  ;;  %v14321_v34 = vld [vmem:[#allocation35_spill] sm:$0xff]  ;;  %v14322_v14 = vld [vmem:[#allocation33_spill] sm:$0xff]  ;;  %v8577_v6 = vld [vmem:[#allocation8 + $0x320] ss:$16 sps:$4 sm:$0xff]  }
 0x2ab   :  { %v12356_v30 = vpack.c.bf16 %v2913_v45, %v2913_v45  ;;  %9410 = vpow2.f32 %v7764_v19  ;;  %v1988_v21 = vadd.f32 %v12330_v3, %v12328_v47  ;;  %v1990_v9 = vadd.f32 %v12330_v3, %v1910_v33  ;;  %v8582_v45 = vld [vmem:[#allocation8 + $0x344] ss:$16 sps:$4 sm:$0xff]  }
 0x2ac   :  { %9412 = vpow2.f32 %v7776_v27  ;;  %v7778_v40 = vmul.f32 -1.442695, %v1997_v23  ;;  %v1992_v53 = vadd.f32 %v12330_v3, %v1928_v37  ;;  %v1994_v46 = vadd.f32 %v12330_v3, %v1946_v28  ;;  %v9399_v10 = vpop.eup %9398 }
 0x2ad   :  { %14311 = vst [vmem:[#allocation63_spill] sm:$0xff] %v12356_v30  ;;  %6462 = vmatprep.mubr.bf16.mxu0 %v12356_v30  ;;  %9414 = vpow2.f32 %v7767_v2  ;;  %v7769_v39 = vmul.f32 -1.442695, %v1988_v21  ;;  %v7771_v24 = vmul.f32 -1.442695, %v1990_v9  ;;  %v14313_v47 = vrot.slane %v14312_v62, 1  ;;  %6445 = vmatpush1.bf16.msra.mxu0 %v8571_v49 }
 0x2ae   :  { %v9401_v54 = vpop.eup %9400  ;;  %v2048_v11 = vadd.f32 1.0, %v9399_v10  ;;  %9416 = vpow2.f32 %v7778_v40  ;;  %v7773_v33 = vmul.f32 -1.442695, %v1992_v53  ;;  %v12369_v38 = vmul.f32 -1.442695, %v1994_v46  ;;  %6446 = vmatprep.subr.bf16.mxu0 %v8576_v36  ;;  %v1982_v12 = vpop.xlane.xlu1 %1981 }
 0x2af   :  { %v12367_v13 = vadd.f32 %v14313_v47, %v14312_v62  ;;  %v2049_v41 = vadd.f32 1.0, %v9401_v54  ;;  %9418 = vpow2.f32 %v7769_v39  ;;  %v1996_v48 = vadd.f32 %v12330_v3, %v1964_v32 }
 0x2b0   :  { %v14315_v43 = vrot.slane %v14314_v17, 1  ;;  %9420 = vrcp.f32 %v2048_v11  ;;  %v1138_v18 = vrot.slane %v14316_v35, 1  ;;  %v1192_v16 = vrot.slane %v14317_v52, 2  ;;  %v8585_v11 = vld [vmem:[#allocation8 + $0x364] ss:$16 sps:$4 sm:$0xff]  }
 0x2b1   :  { %v14319_v4 = vrot.slane %v14318_v61, 4  ;;  %v9403_v5 = vpop.eup %9402  ;;  %9422 = vrcp.f32 %v2049_v41  ;;  %v12382_v37 = vmul.f32 -1.442695, %v1996_v48  ;;  %v1302_v15 = vrot.slane %v14320_v26, 4  ;;  %6447 = vmatpush1.bf16.msra.mxu0 %v8574_v50 }
 0x2b2   :  { %v12375_v57 = vadd.f32 %v14315_v43, %v14314_v17  ;;  %v1357_v59 = vadd.f32 %v14322_v14, %v14321_v34  ;;  %v9405_v29 = vpop.eup %9404  ;;  %v2051_v22 = vadd.f32 1.0, %v9403_v5  ;;  %9424 = vpow2.f32 %v7771_v24  ;;  %6448 = vmatprep.subr.bf16.mxu0 %v8579_v7  ;;  %v8580_v24 = vld [vmem:[#allocation8 + $0x340] ss:$16 sps:$4 sm:$0xff]   ;;  %v8588_v34 = vld [vmem:[#allocation8 + $0x384] ss:$16 sps:$4 sm:$0xff]  }
 0x2b3   :  { %v1247_v8 = vadd.f32 %v14319_v4, %v14318_v61  ;;  %v1998_v31 = vadd.f32 %v12330_v3, %v1982_v12  ;;  %v12389_v44 = vadd.f32 %v1138_v18, %v14316_v35  ;;  %v9407_v25 = vpop.eup %9406  ;;  %v2053_v55 = vadd.f32 1.0, %v9405_v29  ;;  %v14323_v43 = vld [vmem:[#allocation36_spill] sm:$0xff]  ;;  %v14324_v7 = vld [vmem:[#allocation42_spill] sm:$0xff] }
 0x2b4   :  { %9426 = vpow2.f32 %v7773_v33  ;;  %v1193_v58 = vadd.f32 %v1192_v16, %v14317_v52  ;;  %v9409_v27 = vpop.eup %9408  ;;  %v2055_v28 = vadd.f32 1.0, %v9407_v25  ;;  %v1303_v3 = vadd.f32 %v1302_v15, %v14320_v26 }
 0x2b5   :  { %v1248_v19 = vrot.slane %v1247_v8, 2  ;;  %9428 = vrcp.f32 %v2051_v22  ;;  %v12392_v2 = vmul.f32 -1.442695, %v1998_v31  ;;  %v9411_v23 = vpop.eup %9410  ;;  %v2057_v49 = vadd.f32 1.0, %v9409_v27  ;;  %6449 = vmatpush1.bf16.msra.mxu0 %v8577_v6  ;;  %v8586_v27 = vld [vmem:[#allocation8 + $0x380] ss:$16 sps:$4 sm:$0xff]  }
 0x2b6   :  { %9430 = vrcp.f32 %v2053_v55  ;;  %v1194_v21 = vrot.slane %v1193_v58, 1  ;;  %v9413_v36 = vpop.eup %9412  ;;  %v2047_v40 = vadd.f32 1.0, %v9411_v23  ;;  %v1304_v53 = vrot.slane %v1303_v3, 2  ;;  %6450 = vmatprep.subr.bf16.mxu0 %v8582_v45 }
 0x2b7   :  { %v1249_v9 = vadd.f32 %v1248_v19, %v1247_v8  ;;  %9432 = vrcp.f32 %v2055_v28  ;;  %v1358_v46 = vrot.slane %v1357_v59, 4  ;;  %v9415_v10 = vpop.eup %9414  ;;  %v2059_v39 = vadd.f32 1.0, %v9413_v36  ;;  %v8583_v8 = vld [vmem:[#allocation8 + $0x360] ss:$16 sps:$4 sm:$0xff]  }
 0x2b8   :  { %9434 = vrcp.f32 %v2057_v49  ;;  %v1195_v32 = vadd.f32 %v1194_v21, %v1193_v58  ;;  %v9417_v47 = vpop.eup %9416  ;;  %v2050_v54 = vadd.f32 1.0, %v9415_v10  ;;  %v1305_v33 = vadd.f32 %v1304_v53, %v1303_v3  ;;  %v8591_v49 = vld [vmem:[#allocation8 + $0x3a4] ss:$16 sps:$4 sm:$0xff]  }
 0x2b9   :  { %v1250_v62 = vrot.slane %v1249_v9, 1  ;;  %9436 = vrcp.f32 %v2047_v40  ;;  %v1359_v41 = vadd.f32 %v1358_v46, %v1357_v59  ;;  %v9419_v50 = vpop.eup %9418  ;;  %v2061_v48 = vadd.f32 1.0, %v9417_v47  ;;  %6451 = vmatpush1.bf16.msra.mxu0 %v8580_v24  ;;  %v14326_v40 = vld [vmem:[#allocation70_spill] sm:$0xff]  ;;  %v14328_v46 = vld [vmem:[#allocation56_spill] sm:$0xff] }
 0x2ba   :  { %9438 = vrcp.f32 %v2059_v39  ;;  %v1413_v35 = vadd.f32 %v14324_v7, %v14323_v43  ;;  %v9421_v18 = vpop.eup %9420  ;;  %v2052_v52 = vadd.f32 1.0, %v9419_v50  ;;  %v1306_v16 = vrot.slane %v1305_v33, 1  ;;  %6452 = vmatprep.subr.bf16.mxu0 %v8585_v11  ;;  %v14329_v11 = vld [vmem:[#allocation74_spill] sm:$0xff] }
 0x2bb   :  { %v1251_v17 = vadd.f32 %v1250_v62, %v1249_v9  ;;  %9440 = vrcp.f32 %v2050_v54  ;;  %v1360_v61 = vrot.slane %v1359_v41, 2  ;;  %v9423_v4 = vpop.eup %9422  ;;  %2102 = vperm.xlu1 %8441, %v9421_v18   ;;  %v1457_v12 = vmul.f32 0.0625, %v12367_v13  ;;  %v8648_v9 = vld [vmem:[#allocation8 + $0x804] ss:$16 sps:$4 sm:$0xff]   ;;  %v14333_v18 = vld [vmem:[#allocation145_spill] sm:$0xff] }
 0x2bc   :  { %9442 = vrcp.f32 %v2061_v48  ;;  %v1414_v5 = vrot.slane %v1413_v35, 4  ;;  %v1465_v26 = vmul.f32 0.0625, %v12375_v57  ;;  %v9425_v15 = vpop.eup %9424  ;;  %v1307_v14 = vadd.f32 %v1306_v16, %v1305_v33  ;;  %v14331_v50 = vld [vmem:[#allocation54_spill] sm:$0xff]  ;;  %6553 = vmatprep.subr.bf16.mxu1 %v8648_v9 }
 0x2bd   :  { %9444 = vrcp.f32 %v2052_v52  ;;  %v1361_v59 = vadd.f32 %v1360_v61, %v1359_v41  ;;  %v1473_v29 = vmul.f32 0.0625, %v12389_v44  ;;  %v2054_v31 = vadd.f32 1.0, %v9425_v15  ;;  %6453 = vmatpush1.bf16.msra.mxu0 %v8583_v8  ;;  %v14335_v61 = vld [vmem:[#allocation29_spill] sm:$0xff] }
 0x2be   :  { %v9427_v22 = vpop.eup %9426  ;;  %9446 = vpow2.f32 %v12369_v38  ;;  %v1415_v25 = vadd.f32 %v1414_v5, %v1413_v35  ;;  %v1481_v55 = vmul.f32 0.0625, %v1195_v32  ;;  %v1489_v57 = vmul.f32 0.0625, %v1251_v17  ;;  %v14325_v38 = vld [vmem:[#allocation55_spill] sm:$0xff]  ;;  %6454 = vmatprep.subr.bf16.mxu0 %v8588_v34  ;;  %v8646_v32 = vld [vmem:[#allocation8 + $0x800] ss:$16 sps:$4 sm:$0xff]  }
 0x2bf   :  { %v9429_v6 = vpop.eup %9428  ;;  %v2056_v58 = vadd.f32 1.0, %v9427_v22  ;;  %9448 = vpow2.f32 %v12382_v37  ;;  %v1362_v13 = vrot.slane %v1361_v59, 1  ;;  %2107 = vperm.xlu1 %8441, %v9423_v4   ;;  %v1497_v45 = vmul.f32 0.0625, %v1307_v14  ;;  %v14339_v14 = vld [vmem:[#allocation44_spill] sm:$0xff]  ;;  %6554 = vmatpush1.bf16.msra.mxu1 %v8646_v32 }
 0x2c0   :  { %v9431_v19 = vpop.eup %9430  ;;  %9450 = vrcp.f32 %v2054_v31  ;;  %v1416_v28 = vrot.slane %v1415_v25, 2  ;;  %v2900_v44 = vsel %vm2879_vm4, %v1465_v26, %v1457_v12  ;;  %v1274_v23 = vrot.slane %v14325_v38, 4  ;;  %v8594_v12 = vld [vmem:[#allocation8 + $0x3c4] ss:$16 sps:$4 sm:$0xff]  }
 0x2c1   :  { %v12403_v3 = vpop.eup %9432  ;;  %9452 = vrcp.f32 %v2056_v58  ;;  %v1363_v21 = vadd.f32 %v1362_v13, %v1361_v59  ;;  %v2901_v37 = vsel %vm2881_vm5, %v1473_v29, %v2900_v44  ;;  %v14327_v53 = vunpack.c.h.bf16 %v14326_v40  ;;  %6455 = vmatpush1.bf16.msra.mxu0 %v8586_v27  ;;  %v14337_v26 = vld [vmem:[#allocation78_spill] sm:$0xff]  ;;  %v14340_v29 = vld [vmem:[#allocation41_spill] sm:$0xff] }
 0x2c2   :  { %v12407_v36 = vpop.eup %9434  ;;  %9454 = vpow2.f32 %v12392_v2  ;;  %v1417_v39 = vadd.f32 %v1416_v28, %v1415_v25  ;;  %v2902_v24 = vsel %vm2883_vm6, %v1481_v55, %v2901_v37  ;;  %v14330_v33 = vunpack.c.h.bf16 %v14329_v11  ;;  %v8589_v2 = vld [vmem:[#allocation8 + $0x3a0] ss:$16 sps:$4 sm:$0xff]   ;;  %6456 = vmatprep.subr.bf16.mxu0 %v8591_v49  ;;  %v14342_v25 = vld [vmem:[#allocation53_spill] sm:$0xff] }
 0x2c3   :  { %v966_v10 = vmul.f32 %v14328_v46, %v14327_v53  ;;  %v9437_v62 = vpop.eup %9436  ;;  %v1505_v47 = vmul.f32 0.0625, %v1363_v21  ;;  %v2903_v54 = vsel %vm2885_vm7, %v1489_v57, %v2902_v24  ;;  %v14332_v48 = vunpack.c.h.bf16 %v14331_v50  ;;  %2117 = vperm.xlu1 %8441, %v9429_v6   ;;  %v8654_v6 = vld [vmem:[#allocation8 + $0x824] ss:$16 sps:$4 sm:$0xff]   ;;  %v8652_v44 = vld [vmem:[#allocation8 + $0x820] ss:$16 sps:$4 sm:$0xff]  }
 0x2c4   :  { %v982_v41 = vmul.f32 %v12142_v51, %v14330_v33  ;;  %v12421_v43 = vpop.eup %9438  ;;  %v1418_v7 = vrot.slane %v1417_v39, 1  ;;  %v2904_v35 = vsel %vm2887_vm8, %v1497_v45, %v2903_v54  ;;  %v14334_v52 = vrot.slane %v14333_v18, 2  ;;  %2097 = vperm.xlu0 %8440, %v9437_v62   ;;  %v14343_v28 = vld [vmem:[#allocation32_spill] sm:$0xff]  ;;  %6555 = vmatprep.subr.bf16.mxu1 %v8654_v6 }
 0x2c5   :  { %v990_v17 = vmul.f32 %v11957_v60, %v14332_v48  ;;  %v14336_v4 = vrot.slane %v14335_v61, 2  ;;  %v9441_v5 = vpop.eup %9440  ;;  %v14338_v15 = vunpack.c.h.bf16 %v14337_v26  ;;  %v1171_v59 = vrot.slane %v14339_v14, 2  ;;  %6457 = vmatpush1.bf16.msra.mxu0 %v8589_v2  ;;  %v8592_v46 = vld [vmem:[#allocation8 + $0x3c0] ss:$16 sps:$4 sm:$0xff]   ;;  %v8597_v33 = vld [vmem:[#allocation8 + $0x3e4] ss:$16 sps:$4 sm:$0xff]   ;;  %6556 = vmatpush1.bf16.msra.mxu1 %v8652_v44 }
 0x2c6   :  { %v1060_v16 = vadd.f32 %v14334_v52, %v14333_v18  ;;  %v14341_v22 = vrot.slane %v14340_v29, 4  ;;  %v1281_v55 = vrot.slane %v14342_v25, 4  ;;  %v12438_v58 = vpop.eup %9442  ;;  %v1419_v13 = vadd.f32 %v1418_v7, %v1417_v39  ;;  %6458 = vmatprep.subr.bf16.mxu0 %v8594_v12  ;;  %v8660_v2 = vld [vmem:[#allocation8 + $0x844] ss:$16 sps:$4 sm:$0xff]  }
 0x2c7   :  { %v1116_v8 = vadd.f32 %v14336_v4, %v14335_v61  ;;  %v998_v34 = vmul.f32 %v12172_v0, %v14338_v15  ;;  %v1336_v45 = vadd.f32 %v14343_v28, %v966_v10  ;;  %v9445_v49 = vpop.eup %9444  ;;  %v1172_v21 = vadd.f32 %v1171_v59, %v14339_v14  ;;  %2127 = vperm.xlu1 %8441, %v9431_v19   ;;  %v8658_v14 = vld [vmem:[#allocation8 + $0x840] ss:$16 sps:$4 sm:$0xff]   ;;  %v8666_v44 = vld [vmem:[#allocation8 + $0x864] ss:$16 sps:$4 sm:$0xff]  }
 0x2c8   :  { %v1226_v31 = vadd.f32 %v14341_v22, %v14340_v29  ;;  %v1061_v57 = vrot.slane %v1060_v16, 1  ;;  %v1282_v9 = vadd.f32 %v1281_v55, %v14342_v25  ;;  %v1392_v40 = vadd.f32 %v990_v17, %v982_v41  ;;  %v9447_v53 = vpop.eup %9446  ;;  %2112 = vperm.xlu0 %8440, %v9441_v5   ;;  %v8600_v25 = vld [vmem:[#allocation8 + $0x604] ss:$16 sps:$4 sm:$0xff]   ;;  %6557 = vmatprep.subr.bf16.mxu1 %v8660_v2 }
 0x2c9   :  { %v1117_v27 = vrot.slane %v1116_v8, 1  ;;  %v1513_v24 = vmul.f32 0.0625, %v1419_v13  ;;  %v2905_v39 = vsel %vm2889_vm9, %v1505_v47, %v2904_v35  ;;  %v1337_v54 = vrot.slane %v1336_v45, 4  ;;  %v9449_v10 = vpop.eup %9448  ;;  %v14344_v35 = vld [vmem:[#allocation62_spill] sm:$0xff]  ;;  %6459 = vmatpush1.bf16.msra.mxu0 %v8592_v46  ;;  %6558 = vmatpush1.bf16.msra.mxu1 %v8658_v14 }
 0x2ca   :  { %v1227_v37 = vrot.slane %v1226_v31, 2  ;;  %v1062_v62 = vadd.f32 %v1061_v57, %v1060_v16  ;;  %v2058_v32 = vadd.f32 1.0, %v9447_v53  ;;  %v1173_v48 = vrot.slane %v1172_v21, 1  ;;  %v9451_v52 = vpop.eup %9450  ;;  %6460 = vmatprep.subr.bf16.mxu0 %v8597_v33  ;;  %6559 = vmatprep.subr.bf16.mxu1 %v8666_v44  ;;  %v8609_v44 = vld [vmem:[#allocation8 + $0x664] ss:$16 sps:$4 sm:$0xff]  }
 0x2cb   :  { %v1283_v18 = vrot.slane %v1282_v9, 2  ;;  %v2060_v41 = vadd.f32 1.0, %v9449_v10  ;;  %v1118_v17 = vadd.f32 %v1117_v27, %v1116_v8  ;;  %v1338_v61 = vadd.f32 %v1337_v54, %v1336_v45  ;;  %v12444_v4 = vpop.eup %9452  ;;  %2137 = vperm.xlu1 %8441, %v12403_v3   ;;  %v8595_v8 = vld [vmem:[#allocation8 + $0x3e0] ss:$16 sps:$4 sm:$0xff]   ;;  %v8603_v10 = vld [vmem:[#allocation8 + $0x624] ss:$16 sps:$4 sm:$0xff]  }
 0x2cc   :  { %v1228_v7 = vadd.f32 %v1227_v37, %v1226_v31  ;;  %v1393_v19 = vrot.slane %v1392_v40, 4  ;;  %v2906_v47 = vsel %vm2891_vm10, %v1513_v24, %v2905_v39  ;;  %v14345_v16 = vunpack.c.h.bf16 %v14344_v35  ;;  %v9455_v59 = vpop.eup %9454  ;;  %2122 = vperm.xlu0 %8440, %v9445_v49  }
 0x2cd   :  { %v1174_v15 = vadd.f32 %v1173_v48, %v1172_v21  ;;  %9456 = vrcp.f32 %v2058_v32  ;;  %v1284_v29 = vadd.f32 %v1283_v18, %v1282_v9  ;;  %v1339_v22 = vrot.slane %v1338_v61, 2  ;;  %v8664_v9 = vld [vmem:[#allocation8 + $0x860] ss:$16 sps:$4 sm:$0xff]   ;;  %6461 = vmatpush1.bf16.msra.mxu0 %v8595_v8  ;;  %v14351_v8 = vld [vmem:[#allocation51_spill] sm:$0xff] }
 0x2ce   :  { %v1006_v12 = vmul.f32 %v12015_v20, %v14345_v16  ;;  %v1229_v5 = vrot.slane %v1228_v7, 1  ;;  %v1394_v31 = vadd.f32 %v1393_v19, %v1392_v40  ;;  %9458 = vrcp.f32 %v2060_v41  ;;  %v8598_v40 = vld [vmem:[#allocation8 + $0x600] ss:$16 sps:$4 sm:$0xff]   ;;  %6512 = vmatprep.subr.bf16.mxu0 %v8600_v25  ;;  %6560 = vmatpush1.bf16.msra.mxu1 %v8664_v9  ;;  %v14352_v25 = vld [vmem:[#allocation39_spill] sm:$0xff] }
 0x2cf   :  { %v1462_v13 = vmul.f32 0.0625, %v1062_v62  ;;  %v1285_v57 = vrot.slane %v1284_v29, 1  ;;  %v1340_v27 = vadd.f32 %v1339_v22, %v1338_v61  ;;  %v1470_v45 = vmul.f32 0.0625, %v1118_v17  ;;  %2147 = vperm.xlu1 %8441, %v12407_v36   ;;  %v14347_v32 = vld [vmem:[#allocation46_spill] sm:$0xff]  ;;  %v14348_v17 = vld [vmem:[#allocation49_spill] sm:$0xff] }
 0x2d0   :  { %v1230_v55 = vadd.f32 %v1229_v5, %v1228_v7  ;;  %v1448_v6 = vadd.f32 %v1006_v12, %v998_v34  ;;  %v1395_v28 = vrot.slane %v1394_v31, 2  ;;  %v2062_v21 = vadd.f32 1.0, %v9455_v59  ;;  %2132 = vperm.xlu0 %8440, %v9451_v52   ;;  %v14349_v5 = vld [vmem:[#allocation146_spill] sm:$0xff] }
 0x2d1   :  { %v1478_v37 = vmul.f32 0.0625, %v1174_v15  ;;  %v1286_v49 = vadd.f32 %v1285_v57, %v1284_v29  ;;  %v1341_v46 = vrot.slane %v1340_v27, 1  ;;  %v2935_v24 = vsel %vm2879_vm4, %v1470_v45, %v1462_v13  ;;  %v8606_v15 = vld [vmem:[#allocation8 + $0x644] ss:$16 sps:$4 sm:$0xff]   ;;  %v8604_v45 = vld [vmem:[#allocation8 + $0x640] ss:$16 sps:$4 sm:$0xff]  }
 0x2d2   :  { %v1449_v3 = vrot.slane %v1448_v6, 4  ;;  %v1486_v53 = vmul.f32 0.0625, %v1230_v55  ;;  %v1396_v34 = vadd.f32 %v1395_v28, %v1394_v31  ;;  %v12453_v39 = vpack.c.bf16 %v2906_v47, %v2906_v47  ;;  %v8601_v47 = vld [vmem:[#allocation8 + $0x620] ss:$16 sps:$4 sm:$0xff]  }
 0x2d3   :  { %v2936_v54 = vsel %vm2881_vm5, %v1478_v37, %v2935_v24  ;;  %v1166_v33 = vrot.slane %v14347_v32, 1  ;;  %v1342_v48 = vadd.f32 %v1341_v46, %v1340_v27  ;;  %v1494_v36 = vmul.f32 0.0625, %v1286_v49  ;;  %2157 = vperm.xlu1 %8441, %v12421_v43   ;;  %v8670_v9 = vld [vmem:[#allocation8 + $0x880] ss:$16 sps:$4 sm:$0xff]  }
 0x2d4   :  { %14346 = vst [vmem:[#allocation64_spill] sm:$0xff] %v12453_v39  ;;  %v1450_v62 = vadd.f32 %v1449_v3, %v1448_v6  ;;  %v1397_v7 = vrot.slane %v1396_v34, 1  ;;  %v2937_v18 = vsel %vm2883_vm6, %v1486_v53, %v2936_v54  ;;  %9460 = vrcp.f32 %v2062_v21  ;;  %6463 = vmatmul.mubr.bf16.vlgmr.msra.gmra.mrb[4].mxu0 %v12453_v39  ;;  %2142 = vperm.xlu0 %8440, %v12444_v4  }
 0x2d5   :  { %v1220_v61 = vrot.slane %v14348_v17, 2  ;;  %6513 = vmatpush1.bf16.msra.mxu0 %v8598_v40  ;;  %v1502_v52 = vmul.f32 0.0625, %v1342_v48  ;;  %v2938_v2 = vsel %vm2885_vm7, %v1494_v36, %v2937_v18  ;;  %v1275_v16 = vadd.f32 %v1274_v23, %v14325_v38  ;;  %v8672_v40 = vld [vmem:[#allocation8 + $0x884] ss:$16 sps:$4 sm:$0xff]  }
 0x2d6   :  { %v1451_v41 = vrot.slane %v1450_v62, 2  ;;  %v1398_v19 = vadd.f32 %v1397_v7, %v1396_v34  ;;  %6514 = vmatprep.subr.bf16.mxu0 %v8603_v10  ;;  %v14350_v14 = vrot.slane %v14349_v5, 1  ;;  %v1330_v29 = vrot.slane %v14351_v8, 4  ;;  %6561 = vmatprep.subr.bf16.mxu1 %v8672_v40  ;;  %v8612_v18 = vld [vmem:[#allocation8 + $0x684] ss:$16 sps:$4 sm:$0xff]  }
 0x2d7   :  { %v1221_v43 = vadd.f32 %v1220_v61, %v14348_v17  ;;  %v9457_v22 = vpop.eup %9456  ;;  %v2939_v31 = vsel %vm2887_vm8, %v1502_v52, %v2938_v2  ;;  %v14353_v55 = vrot.slane %v14352_v25, 1  ;;  %v1167_v23 = vadd.f32 %v1166_v33, %v14347_v32  ;;  %2167 = vperm.xlu1 %8441, %v12438_v58   ;;  %v8607_v32 = vld [vmem:[#allocation8 + $0x660] ss:$16 sps:$4 sm:$0xff]   ;;  %6562 = vmatpush1.bf16.msra.mxu1 %v8670_v9  ;;  %v8633_v9 = vld [vmem:[#allocation8 + $0x764] ss:$16 sps:$4 sm:$0xff]  }
 0x2d8   :  { %v1452_v12 = vadd.f32 %v1451_v41, %v1450_v62  ;;  %v1055_v59 = vadd.f32 %v14350_v14, %v14349_v5  ;;  %v1276_v6 = vrot.slane %v1275_v16, 2  ;;  %v9459_v13 = vpop.eup %9458  ;;  %v1331_v27 = vadd.f32 %v1330_v29, %v14351_v8  ;;  %2152 = vperm.xlu0 %8440, %v9457_v22   ;;  %v8613_v14 = vld [vmem:[#allocation8 + $0x6a0] ss:$16 sps:$4 sm:$0xff]   ;;  %v8678_v8 = vld [vmem:[#allocation8 + $0x8a4] ss:$16 sps:$4 sm:$0xff]  }
 0x2d9   :  { %v1111_v38 = vadd.f32 %v14353_v55, %v14352_v25  ;;  %v1222_v57 = vrot.slane %v1221_v43, 1  ;;  %v1510_v28 = vmul.f32 0.0625, %v1398_v19  ;;  %6515 = vmatpush1.bf16.msra.mxu0 %v8601_v47  ;;  %v1477_v24 = vmul.f32 0.0625, %v1167_v23  ;;  %v8610_v47 = vld [vmem:[#allocation8 + $0x680] ss:$16 sps:$4 sm:$0xff]   ;;  %6563 = vmatprep.subr.bf16.mxu1 %v8678_v8 }
 0x2da   :  { %v1453_v4 = vrot.slane %v1452_v12, 1  ;;  %v1277_v21 = vadd.f32 %v1276_v6, %v1275_v16  ;;  %6516 = vmatprep.subr.bf16.mxu0 %v8606_v15  ;;  %v1332_v53 = vrot.slane %v1331_v27, 2  ;;  %v1461_v46 = vmul.f32 0.0625, %v1055_v59  ;;  %v8618_v59 = vld [vmem:[#allocation8 + $0x6c4] ss:$16 sps:$4 sm:$0xff]  }
 0x2db   :  { %v1223_v37 = vadd.f32 %v1222_v57, %v1221_v43  ;;  %v1469_v34 = vmul.f32 0.0625, %v1111_v38  ;;  %v2940_v58 = vsel %vm2889_vm9, %v1510_v28, %v2939_v31  ;;  %v8676_v43 = vld [vmem:[#allocation8 + $0x8a0] ss:$16 sps:$4 sm:$0xff]   ;;  %v14355_v22 = vunpack.c.l.bf16 %v14329_v11  ;;  %v8621_v25 = vld [vmem:[#allocation8 + $0x6e4] ss:$16 sps:$4 sm:$0xff]  }
 0x2dc   :  { %v1454_v3 = vadd.f32 %v1453_v4, %v1452_v12  ;;  %v1278_v49 = vrot.slane %v1277_v21, 1  ;;  %v1333_v54 = vadd.f32 %v1332_v53, %v1331_v27  ;;  %2162 = vperm.xlu0 %8440, %v9459_v13   ;;  %v8615_v12 = vld [vmem:[#allocation8 + $0x6a4] ss:$16 sps:$4 sm:$0xff]   ;;  %v8616_v29 = vld [vmem:[#allocation8 + $0x6c0] ss:$16 sps:$4 sm:$0xff]   ;;  %6564 = vmatpush1.bf16.msra.mxu1 %v8676_v43  ;;  %v14356_v55 = vunpack.c.l.bf16 %v14337_v26 }
 0x2dd   :  { %v1485_v10 = vmul.f32 0.0625, %v1223_v37  ;;  %6517 = vmatpush1.bf16.msra.mxu0 %v8604_v45  ;;  %v2928_v48 = vsel %vm2879_vm4, %v1469_v34, %v1461_v46  ;;  %v981_v31 = vmul.f32 %v12142_v51, %v14355_v22  ;;  %v14357_v23 = vunpack.c.l.bf16 %v14331_v50  ;;  %v8619_v57 = vld [vmem:[#allocation8 + $0x6e0] ss:$16 sps:$4 sm:$0xff]   ;;  %v8624_v11 = vld [vmem:[#allocation8 + $0x704] ss:$16 sps:$4 sm:$0xff]  }
 0x2de   :  { %v1518_v62 = vmul.f32 0.0625, %v1454_v3  ;;  %v1279_v33 = vadd.f32 %v1278_v49, %v1277_v21  ;;  %v9461_v7 = vpop.eup %9460  ;;  %6518 = vmatprep.subr.bf16.mxu0 %v8609_v44  ;;  %v1334_v41 = vrot.slane %v1333_v54, 1  ;;  %v2929_v17 = vsel %vm2881_vm5, %v1477_v24, %v2928_v48  ;;  %v8622_v28 = vld [vmem:[#allocation8 + $0x700] ss:$16 sps:$4 sm:$0xff]   ;;  %v8627_v26 = vld [vmem:[#allocation8 + $0x724] ss:$16 sps:$4 sm:$0xff]  }
 0x2df   :  { %v2930_v52 = vsel %vm2883_vm6, %v1485_v10, %v2929_v17  ;;  %v997_v38 = vmul.f32 %v12172_v0, %v14356_v55  ;;  %v989_v6 = vmul.f32 %v11957_v60, %v14357_v23  ;;  %v14358_v13 = vunpack.c.l.bf16 %v14344_v35  ;;  %v8682_v44 = vld [vmem:[#allocation8 + $0x8c0] ss:$16 sps:$4 sm:$0xff]   ;;  %v8684_v50 = vld [vmem:[#allocation8 + $0x8c4] ss:$16 sps:$4 sm:$0xff]  }
 0x2e0   :  { %v2941_v36 = vsel %vm2891_vm10, %v1518_v62, %v2940_v58  ;;  %v1493_v19 = vmul.f32 0.0625, %v1279_v33  ;;  %v1335_v2 = vadd.f32 %v1334_v41, %v1333_v54  ;;  %2172 = vperm.xlu0 %8440, %v9461_v7   ;;  %v8625_v60 = vld [vmem:[#allocation8 + $0x720] ss:$16 sps:$4 sm:$0xff]   ;;  %6565 = vmatprep.subr.bf16.mxu1 %v8684_v50  ;;  %v8630_v35 = vld [vmem:[#allocation8 + $0x744] ss:$16 sps:$4 sm:$0xff]   ;;  %v12502_v58 = vpop.f32.mrb[4].mxu1 }
 0x2e1   :  { %v12482_v61 = vpack.c.bf16 %v2941_v36, %v2941_v36  ;;  %6519 = vmatpush1.bf16.msra.mxu0 %v8607_v32  ;;  %v1005_v4 = vmul.f32 %v12015_v20, %v14358_v13  ;;  %v1385_v51 = vadd.f32 %v989_v6, %v981_v31  ;;  %6566 = vmatpush1.bf16.msra.mxu1 %v8682_v44  ;;  %v8628_v3 = vld [vmem:[#allocation8 + $0x740] ss:$16 sps:$4 sm:$0xff]   ;;  %v8690_v53 = vld [vmem:[#allocation8 + $0x8e4] ss:$16 sps:$4 sm:$0xff]   ;;  %v12504_v33 = vpop.f32.mrb[5].mxu1 }
 0x2e2   :  { %v2931_v16 = vsel %vm2885_vm7, %v1493_v19, %v2930_v52  ;;  %6520 = vmatprep.subr.bf16.mxu0 %v8612_v18  ;;  %v1501_v15 = vmul.f32 0.0625, %v1335_v2  ;;  %v8688_v37 = vld [vmem:[#allocation8 + $0x8e0] ss:$16 sps:$4 sm:$0xff]   ;;  %6567 = vmatprep.subr.bf16.mxu1 %v8690_v53  ;;  %v8636_v34 = vld [vmem:[#allocation8 + $0x784] ss:$16 sps:$4 sm:$0xff]   ;;  %14359 = vst [vmem:[#allocation66_spill] sm:$0xff] %v12502_v58 }
 0x2e3   :  { %14354 = vst [vmem:[#allocation65_spill] sm:$0xff] %v12482_v61  ;;  %6544 = vmatprep.mubr.bf16.mxu0 %v12482_v61  ;;  %v1441_v27 = vadd.f32 %v1005_v4, %v997_v38  ;;  %v1386_v45 = vrot.slane %v1385_v51, 4  ;;  %v8631_v46 = vld [vmem:[#allocation8 + $0x760] ss:$16 sps:$4 sm:$0xff]   ;;  %v8696_v54 = vld [vmem:[#allocation8 + $0x904] ss:$16 sps:$4 sm:$0xff]  }
 0x2e4   :  { %v12488_v5 = vsel %vm2887_vm8, %v1501_v15, %v2931_v16  ;;  %v8694_v62 = vld [vmem:[#allocation8 + $0x900] ss:$16 sps:$4 sm:$0xff]   ;;  %14360 = vst [vmem:[#allocation68_spill] sm:$0xff] %v12504_v33  ;;  %v8702_v7 = vld [vmem:[#allocation8 + $0x924] ss:$16 sps:$4 sm:$0xff]   ;;  %v3785_v41 = vpop.f32.mrb[6].mxu1  ;;  %v14447_v33 = vunpack.c.l.bf16 %v14446_v1 }
 0x2e5   :  { %6521 = vmatpush1.bf16.msra.mxu0 %v8610_v47  ;;  %v1442_v0 = vrot.slane %v1441_v27, 4  ;;  %v1387_v20 = vadd.f32 %v1386_v45, %v1385_v51  ;;  %6568 = vmatpush1.bf16.msra.mxu1 %v8688_v37  ;;  %v8634_v32 = vld [vmem:[#allocation8 + $0x780] ss:$16 sps:$4 sm:$0xff]   ;;  %v8639_v36 = vld [vmem:[#allocation8 + $0x7a4] ss:$16 sps:$4 sm:$0xff]   ;;  %v3786_v19 = vpop.f32.mrb[7].mxu1 }
 0x2e6   :  { %6522 = vmatprep.subr.bf16.mxu0 %v8615_v12  ;;  %6569 = vmatprep.subr.bf16.mxu1 %v8696_v54  ;;  %v8700_v48 = vld [vmem:[#allocation8 + $0x920] ss:$16 sps:$4 sm:$0xff]   ;;  %v8708_v52 = vld [vmem:[#allocation8 + $0x944] ss:$16 sps:$4 sm:$0xff]   ;;  %v12506_v2 = vpop.f32.mrb[8].mxu1  ;;  %v14424_v61 = vld [vmem:[#allocation95_spill] sm:$0xff] }
 0x2e7   :  { %v1443_v21 = vadd.f32 %v1442_v0, %v1441_v27  ;;  %v1388_v40 = vrot.slane %v1387_v20, 2  ;;  %14361 = vst [vmem:[#allocation67_spill] sm:$0xff] %v12506_v2  ;;  %v8637_v47 = vld [vmem:[#allocation8 + $0x7a0] ss:$16 sps:$4 sm:$0xff]   ;;  %v12508_v16 = vpop.f32.mrb[9].mxu1  ;;  %v14425_v39 = vunpack.c.l.bf16 %v14424_v61 }
 0x2e8   :  { %14362 = vst [vmem:[#allocation69_spill] sm:$0xff] %v12508_v16  ;;  %v8706_v12 = vld [vmem:[#allocation8 + $0x940] ss:$16 sps:$4 sm:$0xff]   ;;  %v8642_v15 = vld [vmem:[#allocation8 + $0x7c4] ss:$16 sps:$4 sm:$0xff]  }
 0x2e9   :  { %6523 = vmatpush1.bf16.msra.mxu0 %v8613_v14  ;;  %v1444_v49 = vrot.slane %v1443_v21, 2  ;;  %v1389_v24 = vadd.f32 %v1388_v40, %v1387_v20  ;;  %6570 = vmatpush1.bf16.msra.mxu1 %v8694_v62  ;;  %v8714_v43 = vld [vmem:[#allocation8 + $0x964] ss:$16 sps:$4 sm:$0xff]   ;;  %v8640_v22 = vld [vmem:[#allocation8 + $0x7c0] ss:$16 sps:$4 sm:$0xff]  }
 0x2ea   :  { %6524 = vmatprep.subr.bf16.mxu0 %v8618_v59  ;;  %6571 = vmatprep.subr.bf16.mxu1 %v8702_v7  ;;  %v3826_v59 = vpop.f32.mrb[10].mxu1  ;;  %v8712_v31 = vld [vmem:[#allocation8 + $0x960] ss:$16 sps:$4 sm:$0xff]   ;;  %v8720_v38 = vld [vmem:[#allocation8 + $0x984] ss:$16 sps:$4 sm:$0xff]  }
 0x2eb   :  { %v1445_v10 = vadd.f32 %v1444_v49, %v1443_v21  ;;  %v1390_v18 = vrot.slane %v1389_v24, 1  ;;  %v8643_v6 = vld [vmem:[#allocation8 + $0x7e0] ss:$16 sps:$4 sm:$0xff]   ;;  %v8657_v45 = vld [vmem:[#allocation8 + $0xa24] ss:$16 sps:$4 sm:$0xff]  }
 0x2ec   :  { %v8718_v13 = vld [vmem:[#allocation8 + $0x980] ss:$16 sps:$4 sm:$0xff]   ;;  %v8732_v0 = vld [vmem:[#allocation8 + $0x9c4] ss:$16 sps:$4 sm:$0xff]  }
 0x2ed   :  { %6525 = vmatpush1.bf16.msra.mxu0 %v8616_v29  ;;  %v1446_v17 = vrot.slane %v1445_v10, 1  ;;  %6572 = vmatpush1.bf16.msra.mxu1 %v8700_v48  ;;  %v1391_v14 = vadd.f32 %v1390_v18, %v1389_v24  ;;  %v3827_v29 = vpop.f32.mrb[11].mxu1  ;;  %v8649_v27 = vld [vmem:[#allocation8 + $0xa00] ss:$16 sps:$4 sm:$0xff]   ;;  %v8663_v50 = vld [vmem:[#allocation8 + $0xa44] ss:$16 sps:$4 sm:$0xff]  }
 0x2ee   :  { %6526 = vmatprep.subr.bf16.mxu0 %v8621_v25  ;;  %6573 = vmatprep.subr.bf16.mxu1 %v8708_v52  ;;  %v8645_v25 = vld [vmem:[#allocation8 + $0x7e4] ss:$16 sps:$4 sm:$0xff]   ;;  %v8655_v44 = vld [vmem:[#allocation8 + $0xa20] ss:$16 sps:$4 sm:$0xff]  }
 0x2ef   :  { %v1447_v8 = vadd.f32 %v1446_v17, %v1445_v10  ;;  %v1509_v55 = vmul.f32 0.0625, %v1391_v14  ;;  %v8736_v20 = vld [vmem:[#allocation8 + $0x9e0] ss:$16 sps:$4 sm:$0xff]   ;;  %v8669_v21 = vld [vmem:[#allocation8 + $0xa64] ss:$16 sps:$4 sm:$0xff]  }
 0x2f0   :  { %v8675_v37 = vld [vmem:[#allocation8 + $0xa84] ss:$16 sps:$4 sm:$0xff]   ;;  %v8673_v53 = vld [vmem:[#allocation8 + $0xa80] ss:$16 sps:$4 sm:$0xff]  }
 0x2f1   :  { %6527 = vmatpush1.bf16.msra.mxu0 %v8619_v57  ;;  %6574 = vmatpush1.bf16.msra.mxu1 %v8706_v12  ;;  %v1517_v23 = vmul.f32 0.0625, %v1447_v8  ;;  %v2933_v4 = vsel %vm2889_vm9, %v1509_v55, %v12488_v5  ;;  %v8651_v57 = vld [vmem:[#allocation8 + $0xa04] ss:$16 sps:$4 sm:$0xff]   ;;  %v8730_v5 = vld [vmem:[#allocation8 + $0x9c0] ss:$16 sps:$4 sm:$0xff]   ;;  %v14370_v55 = vld [vmem:[#allocation85_spill] sm:$0xff] }
 0x2f2   :  { %6528 = vmatprep.subr.bf16.mxu0 %v8624_v11  ;;  %6575 = vmatprep.subr.bf16.mxu1 %v8714_v43  ;;  %v8726_v11 = vld [vmem:[#allocation8 + $0x9a4] ss:$16 sps:$4 sm:$0xff]   ;;  %v8679_v40 = vld [vmem:[#allocation8 + $0xaa0] ss:$16 sps:$4 sm:$0xff]   ;;  %v14367_v43 = vld [vmem:[#allocation81_spill] sm:$0xff] }
 0x2f3   :  { %v2934_v51 = vsel %vm2891_vm10, %v1517_v23, %v2933_v4  ;;  %v8687_v49 = vld [vmem:[#allocation8 + $0xac4] ss:$16 sps:$4 sm:$0xff]   ;;  %v8691_v62 = vld [vmem:[#allocation8 + $0xae0] ss:$16 sps:$4 sm:$0xff]   ;;  %v14368_v8 = vunpack.c.l.bf16 %v14367_v43 }
 0x2f4   :  { %v8744_v24 = vld [vmem:[#allocation8 + $0xc04] ss:$16 sps:$4 sm:$0xff]   ;;  %v8697_v10 = vld [vmem:[#allocation8 + $0xb00] ss:$16 sps:$4 sm:$0xff]  }
 0x2f5   :  { %6529 = vmatpush1.bf16.msra.mxu0 %v8622_v28  ;;  %6576 = vmatpush1.bf16.msra.mxu1 %v8712_v31  ;;  %v8724_v28 = vld [vmem:[#allocation8 + $0x9a0] ss:$16 sps:$4 sm:$0xff]   ;;  %v8699_v54 = vld [vmem:[#allocation8 + $0xb04] ss:$16 sps:$4 sm:$0xff]  }
 0x2f6   :  { %6530 = vmatprep.subr.bf16.mxu0 %v8627_v26  ;;  %6577 = vmatprep.subr.bf16.mxu1 %v8720_v38  ;;  %v12513_v26 = vpack.c.bf16 %v2934_v51, %v2934_v51  ;;  %v8703_v48 = vld [vmem:[#allocation8 + $0xb20] ss:$16 sps:$4 sm:$0xff]   ;;  %v8711_v7 = vld [vmem:[#allocation8 + $0xb44] ss:$16 sps:$4 sm:$0xff]   ;;  %v14371_v38 = vunpack.c.l.bf16 %v14370_v55 }
 0x2f7   :  { %v8717_v18 = vld [vmem:[#allocation8 + $0xb64] ss:$16 sps:$4 sm:$0xff]   ;;  %v8715_v17 = vld [vmem:[#allocation8 + $0xb60] ss:$16 sps:$4 sm:$0xff]  }
 0x2f8   :  { %14363 = vst [vmem:[#allocation72_spill] sm:$0xff] %v12513_v26  ;;  %v8723_v19 = vld [vmem:[#allocation8 + $0xb84] ss:$16 sps:$4 sm:$0xff]  }
 0x2f9   :  { %6531 = vmatpush1.bf16.msra.mxu0 %v8625_v60  ;;  %6578 = vmatpush1.bf16.msra.mxu1 %v8718_v13  ;;  %v8738_v60 = vld [vmem:[#allocation8 + $0x9e4] ss:$16 sps:$4 sm:$0xff]  }
 0x2fa   :  { %6532 = vmatprep.subr.bf16.mxu0 %v8630_v35  ;;  %6579 = vmatprep.subr.bf16.mxu1 %v8726_v11  ;;  %v8661_v35 = vld [vmem:[#allocation8 + $0xa40] ss:$16 sps:$4 sm:$0xff]  }
 0x2fb   :  { %v14373_v4 = vld [vmem:[#allocation88_spill] sm:$0xff] }
 0x2fc   :  { %v14375_v51 = vunpack.c.h.bf16 %v14373_v4 }
 0x2fd   :  { %6533 = vmatpush1.bf16.msra.mxu0 %v8628_v3  ;;  %6580 = vmatpush1.bf16.msra.mxu1 %v8724_v28  ;;  %v8667_v3 = vld [vmem:[#allocation8 + $0xa60] ss:$16 sps:$4 sm:$0xff]   ;;  %v8729_v28 = vld [vmem:[#allocation8 + $0xba4] ss:$16 sps:$4 sm:$0xff]  }
 0x2fe   :  { %6534 = vmatprep.subr.bf16.mxu0 %v8633_v9  ;;  %6581 = vmatprep.subr.bf16.mxu1 %v8732_v0  ;;  %v8681_v9 = vld [vmem:[#allocation8 + $0xaa4] ss:$16 sps:$4 sm:$0xff]  }
 0x301   :  { %6535 = vmatpush1.bf16.msra.mxu0 %v8631_v46  ;;  %6582 = vmatpush1.bf16.msra.mxu1 %v8730_v5  ;;  %v8685_v46 = vld [vmem:[#allocation8 + $0xac0] ss:$16 sps:$4 sm:$0xff]  }
 0x302   :  { %6536 = vmatprep.subr.bf16.mxu0 %v8636_v34  ;;  %6583 = vmatprep.subr.bf16.mxu1 %v8738_v60  ;;  %v8693_v34 = vld [vmem:[#allocation8 + $0xae4] ss:$16 sps:$4 sm:$0xff]  }
 0x303   :  { %v14379_v60 = vld [vmem:[#allocation82_spill] sm:$0xff] }
 0x305   :  { %6537 = vmatpush1.bf16.msra.mxu0 %v8634_v32  ;;  %6584 = vmatpush1.bf16.msra.mxu1 %v8736_v20  ;;  %v8705_v32 = vld [vmem:[#allocation8 + $0xb24] ss:$16 sps:$4 sm:$0xff]  }
 0x306   :  { %6538 = vmatprep.subr.bf16.mxu0 %v8639_v36  ;;  %6635 = vmatprep.subr.bf16.mxu1 %v8744_v24  ;;  %v8709_v36 = vld [vmem:[#allocation8 + $0xb40] ss:$16 sps:$4 sm:$0xff]  }
 0x309   :  { %6539 = vmatpush1.bf16.msra.mxu0 %v8637_v47  ;;  %v14364_v47 = vld [vmem:[#allocation79_spill] sm:$0xff] }
 0x30a   :  { %6540 = vmatprep.subr.bf16.mxu0 %v8642_v15  ;;  %v14365_v12 = vunpack.c.l.bf16 %v14364_v47  ;;  %v14366_v14 = vunpack.c.h.bf16 %v14364_v47 }
 0x30d   :  { %6541 = vmatpush1.bf16.msra.mxu0 %v8640_v22  ;;  %v14369_v22 = vunpack.c.h.bf16 %v14367_v43  ;;  %v14394_v43 = vld [vmem:[#allocation87_spill] sm:$0xff] }
 0x30e   :  { %6542 = vmatprep.subr.bf16.mxu0 %v8645_v25  ;;  %v8721_v25 = vld [vmem:[#allocation8 + $0xb80] ss:$16 sps:$4 sm:$0xff]  }
 0x311   :  { %6543 = vmatpush1.bf16.msra.mxu0 %v8643_v6  ;;  %v14372_v6 = vunpack.c.h.bf16 %v14370_v55  ;;  %v14396_v55 = vunpack.c.h.bf16 %v14394_v43 }
 0x312   :  { %6594 = vmatprep.subr.bf16.mxu0 %v8651_v57  ;;  %v14374_v57 = vunpack.c.l.bf16 %v14373_v4 }
 0x314   :  { %6545 = vmatmul.mubr.bf16.vlgmr.msra.gmra.mrb[8].mxu0 %v12513_v26 }
 0x315   :  { %6595 = vmatpush1.bf16.msra.mxu0 %v8649_v27 }
 0x316   :  { %6596 = vmatprep.subr.bf16.mxu0 %v8657_v45  ;;  %v14376_v45 = vld [vmem:[#allocation80_spill] sm:$0xff] }
 0x317   :  { %v14377_v0 = vunpack.c.l.bf16 %v14376_v45  ;;  %v14378_v5 = vunpack.c.h.bf16 %v14376_v45 }
 0x319   :  { %6597 = vmatpush1.bf16.msra.mxu0 %v8655_v44 }
 0x31a   :  { %6598 = vmatprep.subr.bf16.mxu0 %v8663_v50 }
 0x31d   :  { %6599 = vmatpush1.bf16.msra.mxu0 %v8661_v35  ;;  %v14380_v35 = vunpack.c.l.bf16 %v14379_v60 }
 0x31e   :  { %6600 = vmatprep.subr.bf16.mxu0 %v8669_v21  ;;  %v14381_v21 = vunpack.c.h.bf16 %v14379_v60 }
 0x321   :  { %6601 = vmatpush1.bf16.msra.mxu0 %v8667_v3 }
 0x322   :  { %6602 = vmatprep.subr.bf16.mxu0 %v8675_v37  ;;  %v14382_v37 = vld [vmem:[#allocation86_spill] sm:$0xff] }
 0x325   :  { %6603 = vmatpush1.bf16.msra.mxu0 %v8673_v53  ;;  %v14383_v53 = vunpack.c.l.bf16 %v14382_v37 }
 0x326   :  { %6604 = vmatprep.subr.bf16.mxu0 %v8681_v9 }
 0x329   :  { %6605 = vmatpush1.bf16.msra.mxu0 %v8679_v40  ;;  %v14384_v40 = vunpack.c.h.bf16 %v14382_v37  ;;  %v14403_v37 = vld [vmem:[#allocation103_spill] sm:$0xff] }
 0x32a   :  { %6606 = vmatprep.subr.bf16.mxu0 %v8687_v49 }
 0x32d   :  { %6607 = vmatpush1.bf16.msra.mxu0 %v8685_v46  ;;  %v14385_v46 = vld [vmem:[#allocation89_spill] sm:$0xff] }
 0x32e   :  { %6608 = vmatprep.subr.bf16.mxu0 %v8693_v34  ;;  %v14386_v34 = vunpack.c.l.bf16 %v14385_v46 }
 0x331   :  { %6609 = vmatpush1.bf16.msra.mxu0 %v8691_v62  ;;  %v14387_v62 = vunpack.c.h.bf16 %v14385_v46  ;;  %v14405_v46 = vunpack.c.h.bf16 %v14403_v37 }
 0x332   :  { %6610 = vmatprep.subr.bf16.mxu0 %v8699_v54 }
 0x335   :  { %6611 = vmatpush1.bf16.msra.mxu0 %v8697_v10 }
 0x336   :  { %6612 = vmatprep.subr.bf16.mxu0 %v8705_v32  ;;  %v14388_v32 = vld [vmem:[#allocation83_spill] sm:$0xff] }
 0x339   :  { %6613 = vmatpush1.bf16.msra.mxu0 %v8703_v48  ;;  %v14389_v48 = vunpack.c.l.bf16 %v14388_v32 }
 0x33a   :  { %6614 = vmatprep.subr.bf16.mxu0 %v8711_v7  ;;  %v2103_v41 = vpop.permute.xlu1 %2102 }
 0x33b   :  { %v2183_v15 = vmul.f32 %v2103_v41, %v14365_v12  ;;  %v2184_v59 = vmul.f32 %v2103_v41, %v14366_v14  ;;  %v2185_v29 = vmul.f32 %v2103_v41, %v14368_v8  ;;  %v2186_v31 = vmul.f32 %v2103_v41, %v14369_v22 }
 0x33c   :  { %v2187_v23 = vmul.f32 %v2103_v41, %v14371_v38  ;;  %v2188_v13 = vmul.f32 %v2103_v41, %v14372_v6  ;;  %v2189_v11 = vmul.f32 %v2103_v41, %v14374_v57  ;;  %v2190_v27 = vmul.f32 %v2103_v41, %v14375_v51  ;;  %v14391_v41 = vld [vmem:[#allocation84_spill] sm:$0xff]  ;;  %v14397_v6 = vld [vmem:[#allocation90_spill] sm:$0xff] }
 0x33d   :  { %6615 = vmatpush1.bf16.msra.mxu0 %v8709_v36  ;;  %v14390_v36 = vunpack.c.h.bf16 %v14388_v32  ;;  %v14393_v47 = vunpack.c.h.bf16 %v14391_v41  ;;  %v14395_v8 = vunpack.c.l.bf16 %v14394_v43  ;;  %v14398_v4 = vunpack.c.l.bf16 %v14397_v6  ;;  %v14406_v32 = vld [vmem:[#allocation107_spill] sm:$0xff] }
 0x33e   :  { %6616 = vmatprep.subr.bf16.mxu0 %v8717_v18  ;;  %v2108_v52 = vpop.permute.xlu1 %2107  ;;  %v14399_v51 = vunpack.c.h.bf16 %v14397_v6 }
 0x33f   :  { %v12534_v44 = vmul.f32 %v2108_v52, %v14377_v0  ;;  %v12538_v50 = vmul.f32 %v2108_v52, %v14378_v5  ;;  %v12542_v20 = vmul.f32 %v2108_v52, %v14380_v35  ;;  %v12546_v3 = vmul.f32 %v2108_v52, %v14381_v21  ;;  %v8735_v0 = vld [vmem:[#allocation8 + $0xbc4] ss:$16 sps:$4 sm:$0xff]  }
 0x340   :  { %v12550_v9 = vmul.f32 %v2108_v52, %v14383_v53  ;;  %v12554_v49 = vmul.f32 %v2108_v52, %v14384_v40  ;;  %v12558_v24 = vmul.f32 %v2108_v52, %v14386_v34  ;;  %v12562_v54 = vmul.f32 %v2108_v52, %v14387_v62  ;;  %v8727_v52 = vld [vmem:[#allocation8 + $0xba0] ss:$16 sps:$4 sm:$0xff]  }
 0x341   :  { %6617 = vmatpush1.bf16.msra.mxu0 %v8715_v17  ;;  %v14392_v17 = vunpack.c.l.bf16 %v14391_v41  ;;  %v14404_v53 = vunpack.c.l.bf16 %v14403_v37  ;;  %v14409_v41 = vld [vmem:[#allocation113_spill] sm:$0xff] }
 0x342   :  { %6618 = vmatprep.subr.bf16.mxu0 %v8723_v19  ;;  %v2118_v10 = vpop.permute.xlu1 %2117  ;;  %v14411_v43 = vunpack.c.h.bf16 %v14409_v41 }
 0x343   :  { %v12566_v7 = vmul.f32 %v2118_v10, %v14389_v48  ;;  %v12570_v18 = vmul.f32 %v2118_v10, %v14390_v36  ;;  %v12574_v19 = vmul.f32 %v2118_v10, %v14392_v17  ;;  %v12578_v12 = vmul.f32 %v2118_v10, %v14393_v47  ;;  %v2098_v14 = vpop.permute.xlu0 %2097 }
 0x344   :  { %v12582_v22 = vmul.f32 %v2118_v10, %v14395_v8  ;;  %v12586_v38 = vmul.f32 %v2118_v10, %v14396_v55  ;;  %v12590_v57 = vmul.f32 %v2118_v10, %v14398_v4  ;;  %v12594_v45 = vmul.f32 %v2118_v10, %v14399_v51  ;;  %v14412_v55 = vld [vmem:[#allocation91_spill] sm:$0xff] }
 0x345   :  { %6619 = vmatpush1.bf16.msra.mxu0 %v8721_v25  ;;  %v14400_v25 = vld [vmem:[#allocation100_spill] sm:$0xff]  ;;  %v2177_v40 = vmul.f32 %v2098_v14, %v14404_v53  ;;  %v2178_v34 = vmul.f32 %v2098_v14, %v14405_v46  ;;  %v14407_v48 = vunpack.c.l.bf16 %v14406_v32  ;;  %v14408_v10 = vunpack.c.h.bf16 %v14406_v32 }
 0x346   :  { %6620 = vmatprep.subr.bf16.mxu0 %v8729_v28  ;;  %v14401_v5 = vunpack.c.l.bf16 %v14400_v25  ;;  %v14402_v35 = vunpack.c.h.bf16 %v14400_v25  ;;  %v2128_v62 = vpop.permute.xlu1 %2127  ;;  %v14410_v17 = vunpack.c.l.bf16 %v14409_v41  ;;  %v2182_v8 = vmul.f32 %v2098_v14, %v14411_v43  ;;  %v8733_v32 = vld [vmem:[#allocation8 + $0xbc0] ss:$16 sps:$4 sm:$0xff]  }
 0x347   :  { %v2179_v36 = vmul.f32 %v2098_v14, %v14407_v48  ;;  %v2180_v28 = vmul.f32 %v2098_v14, %v14408_v10  ;;  %v14413_v6 = vunpack.c.l.bf16 %v14412_v55  ;;  %v14414_v51 = vunpack.c.h.bf16 %v14412_v55  ;;  %v14418_v48 = vld [vmem:[#allocation93_spill] sm:$0xff]  ;;  %v14421_v43 = vld [vmem:[#allocation94_spill] sm:$0xff] }
 0x348   :  { %v2175_v60 = vmul.f32 %v2098_v14, %v14401_v5  ;;  %v2176_v21 = vmul.f32 %v2098_v14, %v14402_v35  ;;  %v2181_v47 = vmul.f32 %v2098_v14, %v14410_v17  ;;  %v14415_v5 = vld [vmem:[#allocation92_spill] sm:$0xff]  ;;  %v14419_v14 = vunpack.c.l.bf16 %v14418_v48 }
 0x349   :  { %v12614_v4 = vmul.f32 %v2128_v62, %v14413_v6  ;;  %v12618_v25 = vmul.f32 %v2128_v62, %v14414_v51  ;;  %v14416_v35 = vunpack.c.l.bf16 %v14415_v5  ;;  %v14417_v53 = vunpack.c.h.bf16 %v14415_v5  ;;  %6621 = vmatpush1.bf16.msra.mxu0 %v8727_v52  ;;  %v8741_v5 = vld [vmem:[#allocation8 + $0xbe4] ss:$16 sps:$4 sm:$0xff]  }
 0x34a   :  { %v12630_v10 = vmul.f32 %v2128_v62, %v14419_v14  ;;  %v14420_v41 = vunpack.c.h.bf16 %v14418_v48  ;;  %v14422_v55 = vunpack.c.l.bf16 %v14421_v43  ;;  %v14423_v51 = vunpack.c.h.bf16 %v14421_v43  ;;  %6622 = vmatprep.subr.bf16.mxu0 %v8735_v0  ;;  %v2138_v14 = vpop.permute.xlu1 %2137 }
 0x34b   :  { %v12622_v37 = vmul.f32 %v2128_v62, %v14416_v35  ;;  %v12626_v46 = vmul.f32 %v2128_v62, %v14417_v53  ;;  %v2303_v52 = vadd.f32 %v2183_v15, %v2175_v60  ;;  %v2310_v53 = vadd.f32 %v2184_v59, %v2176_v21 }
 0x34c   :  { %v12634_v17 = vmul.f32 %v2128_v62, %v14420_v41  ;;  %v12638_v6 = vmul.f32 %v2128_v62, %v14422_v55  ;;  %v12642_v35 = vmul.f32 %v2128_v62, %v14423_v51  ;;  %v2317_v16 = vadd.f32 %v2185_v29, %v2177_v40  ;;  %v14427_v62 = vld [vmem:[#allocation96_spill] sm:$0xff] }
 0x34d   :  { %v2324_v2 = vadd.f32 %v2186_v31, %v2178_v34  ;;  %v2331_v26 = vadd.f32 %v2187_v23, %v2179_v36  ;;  %v2338_v56 = vadd.f32 %v2188_v13, %v2180_v28  ;;  %v2345_v48 = vadd.f32 %v2189_v11, %v2181_v47  ;;  %6623 = vmatpush1.bf16.msra.mxu0 %v8733_v32  ;;  %v8739_v29 = vld [vmem:[#allocation8 + $0xbe0] ss:$16 sps:$4 sm:$0xff]   ;;  %v14430_v31 = vld [vmem:[#allocation97_spill] sm:$0xff]  ;;  %v8747_v34 = vld [vmem:[#allocation8 + $0xe04] ss:$16 sps:$4 sm:$0xff]  }
 0x34e   :  { %v2352_v41 = vadd.f32 %v2190_v27, %v2182_v8  ;;  %v12646_v42 = vmul.f32 %v2138_v14, %v14425_v39  ;;  %v14426_v55 = vunpack.c.h.bf16 %v14424_v61  ;;  %v14428_v0 = vunpack.c.l.bf16 %v14427_v62  ;;  %v14433_v61 = vld [vmem:[#allocation99_spill] sm:$0xff]  ;;  %6624 = vmatprep.subr.bf16.mxu0 %v8741_v5  ;;  %v2148_v32 = vpop.permute.xlu1 %2147 }
 0x34f   :  { %v14429_v15 = vunpack.c.h.bf16 %v14427_v62  ;;  %v14431_v23 = vunpack.c.l.bf16 %v14430_v31  ;;  %v14432_v39 = vunpack.c.h.bf16 %v14430_v31  ;;  %v14434_v27 = vunpack.c.l.bf16 %v14433_v61  ;;  %v14436_v31 = vld [vmem:[#allocation98_spill] sm:$0xff] }
 0x350   :  { %v12650_v43 = vmul.f32 %v2138_v14, %v14426_v55  ;;  %v12654_v51 = vmul.f32 %v2138_v14, %v14428_v0  ;;  %v14435_v21 = vunpack.c.h.bf16 %v14433_v61  ;;  %v2304_v36 = vrot.slane %v2303_v52, 4 }
 0x351   :  { %v12658_v59 = vmul.f32 %v2138_v14, %v14429_v15  ;;  %v12662_v13 = vmul.f32 %v2138_v14, %v14431_v23  ;;  %v12666_v11 = vmul.f32 %v2138_v14, %v14432_v39  ;;  %v12670_v60 = vmul.f32 %v2138_v14, %v14434_v27  ;;  %6625 = vmatpush1.bf16.msra.mxu0 %v8739_v29 }
 0x352   :  { %v12674_v40 = vmul.f32 %v2138_v14, %v14435_v21  ;;  %v2311_v28 = vrot.slane %v2310_v53, 4  ;;  %v2318_v47 = vrot.slane %v2317_v16, 4  ;;  %v2325_v8 = vrot.slane %v2324_v2, 4  ;;  %v14441_v14 = vld [vmem:[#allocation102_spill] sm:$0xff]  ;;  %6676 = vmatprep.subr.bf16.mxu0 %v8747_v34  ;;  %v14476_v34 = vld [vmem:[#allocation108_spill] sm:$0xff] }
 0x353   :  { %v2332_v55 = vrot.slane %v2331_v26, 4  ;;  %v2339_v62 = vrot.slane %v2338_v56, 4  ;;  %v2346_v0 = vrot.slane %v2345_v48, 4  ;;  %v2353_v15 = vrot.slane %v2352_v41, 4 }
 0x354   :  { %v14437_v23 = vunpack.c.l.bf16 %v14436_v31  ;;  %v14439_v27 = vunpack.c.h.bf16 %v14436_v31  ;;  %v14442_v5 = vunpack.c.l.bf16 %v14441_v14  ;;  %v14444_v63 = vunpack.c.h.bf16 %v14441_v14  ;;  %v14451_v31 = vld [vmem:[#allocation109_spill] sm:$0xff] }
 0x355   :  { %v12694_v58 = vmul.f32 %v2148_v32, %v14447_v33  ;;  %v12708_v14 = vadd.f32 %v2311_v28, %v2310_v53  ;;  %v2319_v29 = vadd.f32 %v2318_v47, %v2317_v16  ;;  %v2333_v33 = vadd.f32 %v2332_v55, %v2331_v26  ;;  %v2113_v26 = vpop.permute.xlu0 %2112  ;;  %v14462_v47 = vld [vmem:[#allocation104_spill] sm:$0xff] }
 0x356   :  { %v12678_v39 = vmul.f32 %v2148_v32, %v14437_v23  ;;  %v12682_v61 = vmul.f32 %v2148_v32, %v14439_v27  ;;  %v12686_v21 = vmul.f32 %v2148_v32, %v14442_v5  ;;  %v12690_v30 = vmul.f32 %v2148_v32, %v14444_v63 }
 0x357   :  { %14448 = vst [vmem:[#allocation75_spill] sm:$0xff] %v12694_v58  ;;  %v14449_v23 = vunpack.c.h.bf16 %v14446_v1  ;;  %v14452_v27 = vunpack.c.l.bf16 %v14451_v31  ;;  %v14453_v5 = vunpack.c.h.bf16 %v14451_v31  ;;  %v2305_v63 = vadd.f32 %v2304_v36, %v2303_v52 }
 0x358   :  { %14438 = vst [vmem:[#allocation71_spill] sm:$0xff] %v12678_v39  ;;  %14440 = vst [vmem:[#allocation73_spill] sm:$0xff] %v12682_v61  ;;  %v12712_v58 = vadd.f32 %v2339_v62, %v2338_v56  ;;  %v2347_v1 = vadd.f32 %v2346_v0, %v2345_v48  ;;  %v2334_v52 = vrot.slane %v2333_v33, 2  ;;  %v14477_v31 = vunpack.c.l.bf16 %v14476_v34 }
 0x359   :  { %14443 = vst [vmem:[#allocation76_spill] sm:$0xff] %v12686_v21  ;;  %14445 = vst [vmem:[#allocation77_spill] sm:$0xff] %v12690_v30  ;;  %v12698_v39 = vmul.f32 %v2148_v32, %v14449_v23  ;;  %v12702_v61 = vmul.f32 %v2148_v32, %v14452_v27  ;;  %v12706_v21 = vmul.f32 %v2148_v32, %v14453_v5  ;;  %v2306_v27 = vrot.slane %v2305_v63, 2 }
 0x35a   :  { %v12710_v30 = vadd.f32 %v2325_v8, %v2324_v2  ;;  %14455 = vst [vmem:[#allocation52_spill] sm:$0xff] %v12712_v58  ;;  %v12714_v23 = vadd.f32 %v2353_v15, %v2352_v41  ;;  %v2320_v32 = vrot.slane %v2319_v29, 2  ;;  %v2348_v16 = vrot.slane %v2347_v1, 2  ;;  %v14459_v41 = vld [vmem:[#allocation101_spill] sm:$0xff]  ;;  %v14467_v15 = vld [vmem:[#allocation110_spill] sm:$0xff] }
 0x35b   :  { %14450 = vst [vmem:[#allocation34_spill] sm:$0xff] %v12698_v39  ;;  %14454 = vst [vmem:[#allocation47_spill] sm:$0xff] %v12706_v21  ;;  %v12716_v39 = vpop.permute.xlu1 %2157  ;;  %v12722_v56 = vadd.f32 %v2306_v27, %v2305_v63  ;;  %v14460_v36 = vunpack.c.l.bf16 %v14459_v41  ;;  %v14463_v8 = vunpack.c.l.bf16 %v14462_v47  ;;  %v12736_v62 = vadd.f32 %v2334_v52, %v2333_v33  ;;  %v14479_v21 = vld [vmem:[#allocation114_spill] sm:$0xff] }
 0x35c   :  { %14456 = vst [vmem:[#allocation60_spill] sm:$0xff] %v12714_v23  ;;  %v12724_v48 = vadd.f32 %v2320_v32, %v2319_v29  ;;  %v12738_v0 = vadd.f32 %v2348_v16, %v2347_v1  ;;  %v14468_v5 = vunpack.c.l.bf16 %v14467_v15  ;;  %v14470_v29 = vld [vmem:[#allocation115_spill] sm:$0xff]  ;;  %v14481_v2 = vunpack.c.h.bf16 %v14479_v21 }
 0x35d   :  { %14457 = vst [vmem:[#allocation143_spill] sm:$0xff] %v12722_v56  ;;  %v12729_v28 = vmul.f32 %v12716_v39, %v14460_v36  ;;  %v12734_v55 = vmul.f32 %v12716_v39, %v14463_v8  ;;  %14465 = vst [vmem:[#allocation58_spill] sm:$0xff] %v12736_v62  ;;  %v14471_v27 = vunpack.c.l.bf16 %v14470_v29  ;;  %v14473_v8 = vld [vmem:[#allocation105_spill] sm:$0xff]  ;;  %v14480_v36 = vunpack.c.l.bf16 %v14479_v21 }
 0x35e   :  { %14458 = vst [vmem:[#allocation28_spill] sm:$0xff] %v12724_v48  ;;  %14466 = vst [vmem:[#allocation31_spill] sm:$0xff] %v12738_v0  ;;  %v12743_v63 = vmul.f32 %v12716_v39, %v14468_v5  ;;  %v14474_v53 = vunpack.c.l.bf16 %v14473_v8  ;;  %v14475_v1 = vunpack.c.h.bf16 %v14473_v8  ;;  %v2204_v29 = vmul.f32 %v2113_v26, %v14481_v2 }
 0x35f   :  { %14461 = vst [vmem:[#allocation43_spill] sm:$0xff] %v12729_v28  ;;  %14464 = vst [vmem:[#allocation40_spill] sm:$0xff] %v12734_v55  ;;  %v12748_v32 = vmul.f32 %v12716_v39, %v14471_v27  ;;  %v14478_v27 = vunpack.c.h.bf16 %v14476_v34  ;;  %v2203_v23 = vmul.f32 %v2113_v26, %v14480_v36 }
 0x360   :  { %14469 = vst [vmem:[#allocation144_spill] sm:$0xff] %v12743_v63  ;;  %v2199_v33 = vmul.f32 %v2113_v26, %v14474_v53  ;;  %v2200_v52 = vmul.f32 %v2113_v26, %v14475_v1  ;;  %v2201_v63 = vmul.f32 %v2113_v26, %v14477_v31  ;;  %v14482_v53 = vld [vmem:[#allocation118_spill] sm:$0xff]  ;;  %v2394_v36 = vadd.f32 %v2204_v29, %v12554_v49  ;;  %v2123_v29 = vpop.permute.xlu0 %2122 }
 0x361   :  { %14472 = vst [vmem:[#allocation30_spill] sm:$0xff] %v12748_v32  ;;  %v2202_v32 = vmul.f32 %v2113_v26, %v14478_v27  ;;  %v14483_v58 = vunpack.c.l.bf16 %v14482_v53  ;;  %v14484_v1 = vunpack.c.h.bf16 %v14482_v53  ;;  %v2387_v27 = vadd.f32 %v2203_v23, %v12550_v9 }
 0x362   :  { %v2359_v5 = vadd.f32 %v2199_v33, %v12534_v44  ;;  %v2366_v0 = vadd.f32 %v2200_v52, %v12538_v50  ;;  %v2373_v31 = vadd.f32 %v2201_v63, %v12542_v20  ;;  %v2395_v44 = vrot.slane %v2394_v36, 4 }
 0x363   :  { %v2205_v8 = vmul.f32 %v2113_v26, %v14483_v58  ;;  %v2206_v16 = vmul.f32 %v2113_v26, %v14484_v1  ;;  %v2380_v34 = vadd.f32 %v2202_v32, %v12546_v3  ;;  %v2388_v1 = vrot.slane %v2387_v27, 4 }
 0x364   :  { %v2360_v58 = vrot.slane %v2359_v5, 4  ;;  %v2367_v62 = vrot.slane %v2366_v0, 4  ;;  %v2374_v53 = vrot.slane %v2373_v31, 4  ;;  %v12782_v49 = vadd.f32 %v2395_v44, %v2394_v36  ;;  %v14489_v36 = vld [vmem:[#allocation111_spill] sm:$0xff]  ;;  %v14494_v44 = vld [vmem:[#allocation112_spill] sm:$0xff] }
 0x365   :  { %v2401_v21 = vadd.f32 %v2205_v8, %v12558_v24  ;;  %v2408_v2 = vadd.f32 %v2206_v16, %v12562_v54  ;;  %v2381_v26 = vrot.slane %v2380_v34, 4  ;;  %v2389_v9 = vadd.f32 %v2388_v1, %v2387_v27  ;;  %v2168_v54 = vpop.permute.xlu1 %2167 }
 0x366   :  { %v2361_v52 = vadd.f32 %v2360_v58, %v2359_v5  ;;  %v12778_v20 = vadd.f32 %v2367_v62, %v2366_v0  ;;  %v2375_v3 = vadd.f32 %v2374_v53, %v2373_v31  ;;  %14485 = vst [vmem:[#allocation45_spill] sm:$0xff] %v12782_v49  ;;  %v14491_v58 = vunpack.c.h.bf16 %v14489_v36  ;;  %v14515_v49 = vld [vmem:[#allocation125_spill] sm:$0xff] }
 0x367   :  { %v2402_v33 = vrot.slane %v2401_v21, 4  ;;  %v2409_v50 = vrot.slane %v2408_v2, 4  ;;  %v12780_v63 = vadd.f32 %v2381_v26, %v2380_v34  ;;  %v2390_v5 = vrot.slane %v2389_v9, 2 }
 0x368   :  { %v2362_v32 = vrot.slane %v2361_v52, 2  ;;  %v2376_v8 = vrot.slane %v2375_v3, 2  ;;  %v12800_v53 = vmul.f32 %v2168_v54, %v14491_v58  ;;  %v14516_v55 = vunpack.c.l.bf16 %v14515_v49 }
 0x369   :  { %v2403_v24 = vadd.f32 %v2402_v33, %v2401_v21  ;;  %v12784_v23 = vadd.f32 %v2409_v50, %v2408_v2  ;;  %v14490_v21 = vunpack.c.l.bf16 %v14489_v36  ;;  %v12802_v26 = vadd.f32 %v2390_v5, %v2389_v9  ;;  %v14509_v5 = vld [vmem:[#allocation119_spill] sm:$0xff] }
 0x36a   :  { %v12790_v34 = vadd.f32 %v2362_v32, %v2361_v52  ;;  %v12792_v27 = vadd.f32 %v2376_v8, %v2375_v3  ;;  %v14495_v33 = vunpack.c.l.bf16 %v14494_v44  ;;  %v14496_v52 = vunpack.c.h.bf16 %v14494_v44  ;;  %v2133_v8 = vpop.permute.xlu0 %2132  ;;  %v12834_v32 = vpop.f32.mrb[0].mxu0 }
 0x36b   :  { %14486 = vst [vmem:[#allocation48_spill] sm:$0xff] %v12784_v23  ;;  %v2404_v0 = vrot.slane %v2403_v24, 2  ;;  %v12796_v2 = vmul.f32 %v2168_v54, %v14490_v21  ;;  %14492 = vst [vmem:[#allocation35_spill] sm:$0xff] %v12802_v26  ;;  %v14498_v21 = vld [vmem:[#allocation116_spill] sm:$0xff]  ;;  %v14510_v26 = vunpack.c.l.bf16 %v14509_v5  ;;  %v12844_v23 = vpop.f32.mrb[1].mxu0 }
 0x36c   :  { %14487 = vst [vmem:[#allocation50_spill] sm:$0xff] %v12790_v34  ;;  %14488 = vst [vmem:[#allocation57_spill] sm:$0xff] %v12792_v27  ;;  %v12808_v50 = vmul.f32 %v2168_v54, %v14495_v33  ;;  %v12812_v3 = vmul.f32 %v2168_v54, %v14496_v52  ;;  %v14499_v36 = vunpack.c.l.bf16 %v14498_v21  ;;  %v14500_v9 = vunpack.c.h.bf16 %v14498_v21  ;;  %v14502_v33 = vld [vmem:[#allocation121_spill] sm:$0xff]  ;;  %v6427_v27 = vpop.f32.mrb[2].mxu0 }
 0x36d   :  { %v12804_v1 = vadd.f32 %v2404_v0, %v2403_v24  ;;  %v14503_v44 = vunpack.c.l.bf16 %v14502_v33  ;;  %v14504_v31 = vunpack.c.h.bf16 %v14502_v33  ;;  %v2217_v0 = vmul.f32 %v2123_v29, %v14510_v26  ;;  %v14512_v33 = vld [vmem:[#allocation124_spill] sm:$0xff]  ;;  %v6428_v28 = vpop.f32.mrb[3].mxu0 }
 0x36e   :  { %14497 = vst [vmem:[#allocation36_spill] sm:$0xff] %v12812_v3  ;;  %v12818_v58 = vmul.f32 %v2168_v54, %v14499_v36  ;;  %v12822_v24 = vmul.f32 %v2168_v54, %v14500_v9  ;;  %v14506_v36 = vld [vmem:[#allocation117_spill] sm:$0xff] }
 0x36f   :  { %14493 = vst [vmem:[#allocation33_spill] sm:$0xff] %v12804_v1  ;;  %v12828_v52 = vmul.f32 %v2168_v54, %v14503_v44  ;;  %v12832_v62 = vmul.f32 %v2168_v54, %v14504_v31  ;;  %v14507_v15 = vunpack.c.l.bf16 %v14506_v36  ;;  %v14508_v9 = vunpack.c.h.bf16 %v14506_v36 }
 0x370   :  { %14501 = vst [vmem:[#allocation42_spill] sm:$0xff] %v12822_v24  ;;  %v14511_v1 = vunpack.c.h.bf16 %v14509_v5  ;;  %v14513_v54 = vunpack.c.l.bf16 %v14512_v33  ;;  %v14517_v36 = vunpack.c.h.bf16 %v14515_v49 }
 0x371   :  { %14505 = vst [vmem:[#allocation55_spill] sm:$0xff] %v12832_v62  ;;  %v2215_v21 = vmul.f32 %v2123_v29, %v14507_v15  ;;  %v2216_v16 = vmul.f32 %v2123_v29, %v14508_v9  ;;  %v14514_v62 = vunpack.c.h.bf16 %v14512_v33  ;;  %v2221_v15 = vmul.f32 %v2123_v29, %v14516_v55 }
 0x372   :  { %v2218_v44 = vmul.f32 %v2123_v29, %v14511_v1  ;;  %v2219_v31 = vmul.f32 %v2123_v29, %v14513_v54  ;;  %v2222_v9 = vmul.f32 %v2123_v29, %v14517_v36  ;;  %v2429_v1 = vadd.f32 %v2217_v0, %v12574_v19  ;;  %v2143_v19 = vpop.permute.xlu0 %2142 }
 0x373   :  { %v2220_v24 = vmul.f32 %v2123_v29, %v14514_v62  ;;  %v2415_v26 = vadd.f32 %v2215_v21, %v12566_v7  ;;  %v2422_v5 = vadd.f32 %v2216_v16, %v12570_v18  ;;  %v2457_v33 = vadd.f32 %v2221_v15, %v12590_v57  ;;  %v14518_v15 = vld [vmem:[#allocation120_spill] sm:$0xff] }
 0x374   :  { %v2436_v48 = vadd.f32 %v2218_v44, %v12578_v12  ;;  %v2443_v54 = vadd.f32 %v2219_v31, %v12582_v22  ;;  %v2464_v55 = vadd.f32 %v2222_v9, %v12594_v45  ;;  %v2430_v27 = vrot.slane %v2429_v1, 4 }
 0x375   :  { %v2450_v62 = vadd.f32 %v2220_v24, %v12586_v38  ;;  %v2416_v49 = vrot.slane %v2415_v26, 4  ;;  %v2423_v29 = vrot.slane %v2422_v5, 4  ;;  %v2458_v18 = vrot.slane %v2457_v33, 4 }
 0x376   :  { %v2437_v36 = vrot.slane %v2436_v48, 4  ;;  %v2444_v7 = vrot.slane %v2443_v54, 4  ;;  %v2465_v16 = vrot.slane %v2464_v55, 4  ;;  %v2431_v28 = vadd.f32 %v2430_v27, %v2429_v1 }
 0x377   :  { %v2451_v21 = vrot.slane %v2450_v62, 4  ;;  %v2417_v0 = vadd.f32 %v2416_v49, %v2415_v26  ;;  %v12862_v12 = vadd.f32 %v2423_v29, %v2422_v5  ;;  %v2459_v57 = vadd.f32 %v2458_v18, %v2457_v33  ;;  %v14521_v49 = vld [vmem:[#allocation122_spill] sm:$0xff]  ;;  %v12886_v18 = vpop.f32.mrb[12].mxu1 }
 0x378   :  { %v12864_v22 = vadd.f32 %v2437_v36, %v2436_v48  ;;  %v2445_v38 = vadd.f32 %v2444_v7, %v2443_v54  ;;  %v12868_v45 = vadd.f32 %v2465_v16, %v2464_v55  ;;  %v2432_v31 = vrot.slane %v2431_v28, 2  ;;  %v14524_v55 = vld [vmem:[#allocation128_spill] sm:$0xff]  ;;  %14527 = vst [vmem:[#allocation70_spill] sm:$0xff] %v12886_v18  ;;  %v14580_v18 = vld [vmem:[#allocation66_spill] sm:$0xff] }
 0x379   :  { %v12866_v24 = vadd.f32 %v2451_v21, %v2450_v62  ;;  %v2418_v44 = vrot.slane %v2417_v0, 2  ;;  %v14519_v9 = vunpack.c.l.bf16 %v14518_v15  ;;  %v14520_v56 = vunpack.c.h.bf16 %v14518_v15  ;;  %v14530_v15 = vld [vmem:[#allocation132_spill] sm:$0xff] }
 0x37a   :  { %v2446_v26 = vrot.slane %v2445_v38, 2  ;;  %v2460_v5 = vrot.slane %v2459_v57, 2  ;;  %v14522_v1 = vunpack.c.l.bf16 %v14521_v49  ;;  %v14523_v54 = vunpack.c.h.bf16 %v14521_v49 }
 0x37b   :  { %v2231_v34 = vmul.f32 %v2133_v8, %v14519_v9  ;;  %v2232_v3 = vmul.f32 %v2133_v8, %v14520_v56  ;;  %v12878_v29 = vadd.f32 %v2418_v44, %v2417_v0  ;;  %v12880_v33 = vadd.f32 %v2432_v31, %v2431_v28  ;;  %v2153_v28 = vpop.permute.xlu0 %2152  ;;  %v12896_v31 = vpop.f32.mrb[13].mxu1 }
 0x37c   :  { %v2233_v48 = vmul.f32 %v2133_v8, %v14522_v1  ;;  %v2234_v62 = vmul.f32 %v2133_v8, %v14523_v54  ;;  %v14525_v27 = vunpack.c.l.bf16 %v14524_v55  ;;  %v14526_v7 = vunpack.c.h.bf16 %v14524_v55  ;;  %14533 = vst [vmem:[#allocation54_spill] sm:$0xff] %v12896_v31 }
 0x37d   :  { %v12888_v56 = vadd.f32 %v2446_v26, %v2445_v38  ;;  %v12890_v16 = vadd.f32 %v2460_v5, %v2459_v57  ;;  %v14531_v9 = vunpack.c.l.bf16 %v14530_v15  ;;  %v14532_v0 = vunpack.c.h.bf16 %v14530_v15  ;;  %v6509_v57 = vpop.f32.mrb[14].mxu1 }
 0x37e   :  { %v2235_v36 = vmul.f32 %v2133_v8, %v14525_v27  ;;  %v2236_v21 = vmul.f32 %v2133_v8, %v14526_v7  ;;  %v2471_v1 = vadd.f32 %v2231_v34, %v12614_v4  ;;  %v12900_v54 = vadd.f32 %v2232_v3, %v12618_v25  ;;  %v6510_v4 = vpop.f32.mrb[15].mxu1 }
 0x37f   :  { %14528 = vst [vmem:[#allocation56_spill] sm:$0xff] %v12888_v56  ;;  %14529 = vst [vmem:[#allocation74_spill] sm:$0xff] %v12890_v16  ;;  %v2237_v49 = vmul.f32 %v2133_v8, %v14531_v9  ;;  %v2238_v44 = vmul.f32 %v2133_v8, %v14532_v0  ;;  %v2485_v55 = vadd.f32 %v2233_v48, %v12622_v37  ;;  %v14540_v0 = vld [vmem:[#allocation126_spill] sm:$0xff] }
 0x380   :  { %v12904_v38 = vadd.f32 %v2234_v62, %v12626_v46  ;;  %v2499_v26 = vadd.f32 %v2235_v36, %v12630_v10  ;;  %v12908_v5 = vadd.f32 %v2236_v21, %v12634_v17  ;;  %v2472_v34 = vrot.slane %v2471_v1, 4  ;;  %v14567_v37 = vld [vmem:[#allocation130_spill] sm:$0xff] }
 0x381   :  { %v2513_v8 = vadd.f32 %v2237_v49, %v12638_v6  ;;  %v12912_v27 = vadd.f32 %v2238_v44, %v12642_v35  ;;  %v2486_v3 = vrot.slane %v2485_v55, 4  ;;  %v14535_v6 = vld [vmem:[#allocation123_spill] sm:$0xff]  ;;  %v14541_v44 = vunpack.c.l.bf16 %v14540_v0 }
 0x382   :  { %v2500_v46 = vrot.slane %v2499_v26, 4  ;;  %v12918_v17 = vadd.f32 %v2472_v34, %v2471_v1  ;;  %v14536_v35 = vunpack.c.l.bf16 %v14535_v6  ;;  %v14537_v21 = vunpack.c.h.bf16 %v14535_v6  ;;  %v12934_v1 = vpop.permute.xlu0 %2162  ;;  %v14546_v6 = vld [vmem:[#allocation137_spill] sm:$0xff] }
 0x383   :  { %14534 = vst [vmem:[#allocation145_spill] sm:$0xff] %v12912_v27  ;;  %v2514_v62 = vrot.slane %v2513_v8, 4  ;;  %v12920_v36 = vadd.f32 %v2486_v3, %v2485_v55  ;;  %v2249_v57 = vmul.f32 %v2143_v19, %v14541_v44  ;;  %v14542_v4 = vunpack.c.h.bf16 %v14540_v0  ;;  %v14543_v55 = vld [vmem:[#allocation133_spill] sm:$0xff] }
 0x384   :  { %v2247_v7 = vmul.f32 %v2143_v19, %v14536_v35  ;;  %v2248_v15 = vmul.f32 %v2143_v19, %v14537_v21  ;;  %v12926_v9 = vadd.f32 %v2500_v46, %v2499_v26  ;;  %v14544_v34 = vunpack.c.l.bf16 %v14543_v55 }
 0x385   :  { %v12928_v49 = vadd.f32 %v2514_v62, %v2513_v8  ;;  %v2250_v10 = vmul.f32 %v2143_v19, %v14542_v4  ;;  %v14545_v35 = vunpack.c.h.bf16 %v14543_v55  ;;  %v14547_v21 = vunpack.c.l.bf16 %v14546_v6 }
 0x386   :  { %14538 = vst [vmem:[#allocation29_spill] sm:$0xff] %v12926_v9  ;;  %v2251_v3 = vmul.f32 %v2143_v19, %v14544_v34  ;;  %v14548_v8 = vunpack.c.h.bf16 %v14546_v6  ;;  %v12945_v62 = vadd.f32 %v2247_v7, %v12646_v42  ;;  %v2534_v0 = vadd.f32 %v2248_v15, %v12650_v43  ;;  %v14558_v6 = vld [vmem:[#allocation136_spill] sm:$0xff] }
 0x387   :  { %14539 = vst [vmem:[#allocation78_spill] sm:$0xff] %v12928_v49  ;;  %v2252_v48 = vmul.f32 %v2143_v19, %v14545_v35  ;;  %v2253_v26 = vmul.f32 %v2143_v19, %v14547_v21  ;;  %v12949_v44 = vadd.f32 %v2249_v57, %v12654_v51  ;;  %v12952_v4 = vadd.f32 %v2250_v10, %v12658_v59  ;;  %v2173_v51 = vpop.permute.xlu0 %2172 }
 0x388   :  { %v2254_v46 = vmul.f32 %v2143_v19, %v14548_v8  ;;  %v12955_v55 = vadd.f32 %v2251_v3, %v12662_v13  ;;  %v14552_v19 = vld [vmem:[#allocation127_spill] sm:$0xff]  ;;  %v14559_v21 = vunpack.c.l.bf16 %v14558_v6  ;;  %v14560_v8 = vunpack.c.h.bf16 %v14558_v6 }
 0x389   :  { %v12958_v34 = vadd.f32 %v2252_v48, %v12666_v11  ;;  %v12961_v35 = vadd.f32 %v2253_v26, %v12670_v60  ;;  %v14553_v7 = vunpack.c.l.bf16 %v14552_v19  ;;  %v14554_v10 = vunpack.c.h.bf16 %v14552_v19  ;;  %v14555_v48 = vld [vmem:[#allocation129_spill] sm:$0xff]  ;;  %v14561_v19 = vld [vmem:[#allocation140_spill] sm:$0xff] }
 0x38a   :  { %14549 = vst [vmem:[#allocation44_spill] sm:$0xff] %v12955_v55  ;;  %v12964_v42 = vadd.f32 %v2254_v46, %v12674_v40  ;;  %v14556_v60 = vunpack.c.l.bf16 %v14555_v48  ;;  %v14557_v40 = vunpack.c.h.bf16 %v14555_v48  ;;  %v2267_v26 = vmul.f32 %v2153_v28, %v14559_v21  ;;  %v14566_v48 = vld [vmem:[#allocation76_spill] sm:$0xff] }
 0x38b   :  { %14550 = vst [vmem:[#allocation41_spill] sm:$0xff] %v12961_v35  ;;  %v2263_v59 = vmul.f32 %v2153_v28, %v14553_v7  ;;  %v2264_v13 = vmul.f32 %v2153_v28, %v14554_v10  ;;  %v12984_v46 = vmul.f32 %v2153_v28, %v14560_v8  ;;  %v14562_v7 = vunpack.c.l.bf16 %v14561_v19  ;;  %v14569_v8 = vld [vmem:[#allocation134_spill] sm:$0xff]  ;;  %v14582_v35 = vld [vmem:[#allocation131_spill] sm:$0xff] }
 0x38c   :  { %14551 = vst [vmem:[#allocation53_spill] sm:$0xff] %v12964_v42  ;;  %v2265_v57 = vmul.f32 %v2153_v28, %v14556_v60  ;;  %v12978_v3 = vmul.f32 %v2153_v28, %v14557_v40  ;;  %v14563_v15 = vunpack.c.h.bf16 %v14561_v19  ;;  %v14565_v60 = vld [vmem:[#allocation71_spill] sm:$0xff]  ;;  %v14568_v21 = vunpack.c.l.bf16 %v14567_v37 }
 0x38d   :  { %v2269_v10 = vmul.f32 %v2153_v28, %v14562_v7  ;;  %v12993_v43 = vadd.f32 %v2263_v59, %v14565_v60  ;;  %v14570_v25 = vunpack.c.l.bf16 %v14569_v8  ;;  %v14571_v19 = vld [vmem:[#allocation75_spill] sm:$0xff]  ;;  %v14574_v59 = vld [vmem:[#allocation138_spill] sm:$0xff] }
 0x38e   :  { %v12990_v11 = vmul.f32 %v2153_v28, %v14563_v15  ;;  %v12996_v40 = vadd.f32 %v2265_v57, %v14566_v48  ;;  %v13001_v6 = vmul.f32 %v12934_v1, %v14568_v21  ;;  %v13009_v28 = vadd.f32 %v2267_v26, %v14571_v19  ;;  %v14577_v48 = vld [vmem:[#allocation141_spill] sm:$0xff] }
 0x38f   :  { %v13006_v7 = vmul.f32 %v12934_v1, %v14570_v25  ;;  %v13012_v15 = vadd.f32 %v2269_v10, %v12702_v61  ;;  %v14575_v60 = vunpack.c.l.bf16 %v14574_v59  ;;  %v14578_v31 = vunpack.c.l.bf16 %v14577_v48 }
 0x390   :  { %14564 = vst [vmem:[#allocation32_spill] sm:$0xff] %v12990_v11  ;;  %14572 = vst [vmem:[#allocation62_spill] sm:$0xff] %v13009_v28  ;;  %v13026_v25 = vadd.f32 %v12834_v32, %v14580_v18  ;;  %v14583_v26 = vunpack.c.l.bf16 %v14582_v35  ;;  %v14584_v61 = vunpack.c.h.bf16 %v14582_v35  ;;  %v14588_v28 = vld [vmem:[#allocation139_spill] sm:$0xff]  ;;  %v14591_v18 = vld [vmem:[#allocation142_spill] sm:$0xff] }
 0x391   :  { %14573 = vst [vmem:[#allocation46_spill] sm:$0xff] %v13012_v15  ;;  %v13017_v57 = vmul.f32 %v12934_v1, %v14575_v60  ;;  %v13022_v21 = vmul.f32 %v12934_v1, %v14578_v31  ;;  %v14585_v15 = vld [vmem:[#allocation135_spill] sm:$0xff]  ;;  %v14589_v31 = vunpack.c.l.bf16 %v14588_v28  ;;  %v14590_v55 = vunpack.c.h.bf16 %v14588_v28 }
 0x392   :  { %14581 = vst [vmem:[#allocation51_spill] sm:$0xff] %v13026_v25  ;;  %v2295_v19 = vmul.f32 %v2173_v51, %v14583_v26  ;;  %v2296_v10 = vmul.f32 %v2173_v51, %v14584_v61  ;;  %v14586_v49 = vunpack.c.l.bf16 %v14585_v15  ;;  %v14587_v60 = vunpack.c.h.bf16 %v14585_v15 }
 0x393   :  { %14576 = vst [vmem:[#allocation49_spill] sm:$0xff] %v13017_v57  ;;  %14579 = vst [vmem:[#allocation146_spill] sm:$0xff] %v13022_v21  ;;  %v2299_v21 = vmul.f32 %v2173_v51, %v14589_v31  ;;  %v13042_v32 = vmul.f32 %v2173_v51, %v14590_v55  ;;  %v14592_v9 = vunpack.c.l.bf16 %v14591_v18  ;;  %v14593_v35 = vunpack.c.h.bf16 %v14591_v18 }
 0x394   :  { %v2297_v16 = vmul.f32 %v2173_v51, %v14586_v49  ;;  %v13036_v57 = vmul.f32 %v2173_v51, %v14587_v60  ;;  %v13051_v49 = vadd.f32 %v2295_v19, %v12796_v2  ;;  %v14595_v60 = vld [vmem:[#allocation68_spill] sm:$0xff]  ;;  %v14600_v2 = vunpack.c.h.bf16 %v14567_v37 }
 0x395   :  { %v2301_v26 = vmul.f32 %v2173_v51, %v14592_v9  ;;  %v13048_v61 = vmul.f32 %v2173_v51, %v14593_v35  ;;  %v13058_v31 = vadd.f32 %v12844_v23, %v14595_v60  ;;  %v13061_v55 = vadd.f32 %v2299_v21, %v12818_v58 }
 0x396   :  { %v13054_v15 = vadd.f32 %v2297_v16, %v12808_v50  ;;  %v14599_v9 = vunpack.c.h.bf16 %v14459_v41  ;;  %v2280_v19 = vmul.f32 %v12934_v1, %v14600_v2  ;;  %v14601_v50 = vrot.slane %v12708_v14, 2 }
 0x397   :  { %14594 = vst [vmem:[#allocation39_spill] sm:$0xff] %v13048_v61  ;;  %14596 = vst [vmem:[#allocation79_spill] sm:$0xff] %v13058_v31  ;;  %v13064_v28 = vadd.f32 %v2301_v26, %v12828_v52  ;;  %v14602_v23 = vrot.slane %v12778_v20, 2  ;;  %v2425_v21 = vrot.slane %v12862_v12, 2  ;;  %v14603_v52 = vrot.slane %v12900_v54, 4  ;;  %v14604_v26 = vld [vmem:[#allocation73_spill] sm:$0xff] }
 0x398   :  { %14597 = vst [vmem:[#allocation81_spill] sm:$0xff] %v13061_v55  ;;  %v2272_v51 = vmul.f32 %v12716_v39, %v14599_v9  ;;  %v2314_v16 = vadd.f32 %v14601_v50, %v12708_v14  ;;  %v2535_v18 = vrot.slane %v2534_v0, 4  ;;  %v2590_v35 = vadd.f32 %v2264_v13, %v14604_v26 }
 0x399   :  { %14598 = vst [vmem:[#allocation85_spill] sm:$0xff] %v13064_v28  ;;  %v2370_v58 = vadd.f32 %v14602_v23, %v12778_v20  ;;  %v2480_v41 = vadd.f32 %v14603_v52, %v12900_v54  ;;  %v2702_v60 = vadd.f32 %v2296_v10, %v12800_v53  ;;  %v2426_v14 = vadd.f32 %v2425_v21, %v12862_v12 }
 0x39a   :  { %v2646_v37 = vadd.f32 %v2280_v19, %v2272_v51  ;;  %v2315_v9 = vrot.slane %v2314_v16, 1  ;;  %v2536_v28 = vadd.f32 %v2535_v18, %v2534_v0  ;;  %v2591_v55 = vrot.slane %v2590_v35, 4 }
 0x39b   :  { %v2371_v2 = vrot.slane %v2370_v58, 1  ;;  %v2481_v50 = vrot.slane %v2480_v41, 2  ;;  %v2703_v23 = vrot.slane %v2702_v60, 4  ;;  %v2427_v25 = vrot.slane %v2426_v14, 1 }
 0x39c   :  { %v2647_v20 = vrot.slane %v2646_v37, 4  ;;  %v2316_v56 = vadd.f32 %v2315_v9, %v2314_v16  ;;  %v2537_v54 = vrot.slane %v2536_v28, 2  ;;  %v2592_v52 = vadd.f32 %v2591_v55, %v2590_v35 }
 0x39d   :  { %v2372_v31 = vadd.f32 %v2371_v2, %v2370_v58  ;;  %v2482_v61 = vadd.f32 %v2481_v50, %v2480_v41  ;;  %v2704_v13 = vadd.f32 %v2703_v23, %v2702_v60  ;;  %v2428_v51 = vadd.f32 %v2427_v25, %v2426_v14 }
 0x39e   :  { %v2648_v11 = vadd.f32 %v2647_v20, %v2646_v37  ;;  %v2752_v53 = vmul.f32 0.0625, %v2316_v56  ;;  %v2538_v26 = vadd.f32 %v2537_v54, %v2536_v28  ;;  %v2593_v42 = vrot.slane %v2592_v52, 2 }
 0x39f   :  { %v2483_v19 = vrot.slane %v2482_v61, 1  ;;  %v2760_v10 = vmul.f32 0.0625, %v2372_v31  ;;  %v2705_v21 = vrot.slane %v2704_v13, 2  ;;  %v2768_v18 = vmul.f32 0.0625, %v2428_v51 }
 0x3a0   :  { %v2649_v12 = vrot.slane %v2648_v11, 2  ;;  %v14605_v16 = vunpack.c.h.bf16 %v14462_v47  ;;  %v2539_v41 = vrot.slane %v2538_v26, 1  ;;  %v2594_v55 = vadd.f32 %v2593_v42, %v2592_v52 }
 0x3a1   :  { %v2484_v0 = vadd.f32 %v2483_v19, %v2482_v61  ;;  %v3021_v27 = vsel %vm2879_vm4, %v2760_v10, %v2752_v53  ;;  %v2706_v37 = vadd.f32 %v2705_v21, %v2704_v13  ;;  %v14606_v31 = vunpack.c.h.bf16 %v14569_v8 }
 0x3a2   :  { %v2274_v58 = vmul.f32 %v12716_v39, %v14605_v16  ;;  %v2650_v35 = vadd.f32 %v2649_v12, %v2648_v11  ;;  %v3022_v56 = vsel %vm2881_vm5, %v2768_v18, %v3021_v27  ;;  %v14607_v61 = vrot.slane %v12710_v30, 2 }
 0x3a3   :  { %v2776_v25 = vmul.f32 0.0625, %v2484_v0  ;;  %v2282_v28 = vmul.f32 %v12934_v1, %v14606_v31  ;;  %v2540_v9 = vadd.f32 %v2539_v41, %v2538_v26  ;;  %v2595_v2 = vrot.slane %v2594_v55, 1 }
 0x3a4   :  { %v2328_v60 = vadd.f32 %v14607_v61, %v12710_v30  ;;  %v2651_v47 = vrot.slane %v2650_v35, 1  ;;  %v2707_v14 = vrot.slane %v2706_v37, 1  ;;  %v14608_v11 = vrot.slane %v12780_v63, 2 }
 0x3a5   :  { %v3023_v50 = vsel %vm2883_vm6, %v2776_v25, %v3022_v56  ;;  %v2439_v27 = vrot.slane %v12864_v22, 2  ;;  %v2596_v8 = vadd.f32 %v2595_v2, %v2594_v55  ;;  %v2784_v52 = vmul.f32 0.0625, %v2540_v9  ;;  %v14610_v55 = vld [vmem:[#allocation77_spill] sm:$0xff] }
 0x3a6   :  { %v2329_v42 = vrot.slane %v2328_v60, 1  ;;  %v2384_v20 = vadd.f32 %v14608_v11, %v12780_v63  ;;  %v2652_v23 = vadd.f32 %v2651_v47, %v2650_v35  ;;  %v2708_v54 = vadd.f32 %v2707_v14, %v2706_v37  ;;  %v14611_v37 = vld [vmem:[#allocation36_spill] sm:$0xff] }
 0x3a7   :  { %v2440_v30 = vadd.f32 %v2439_v27, %v12864_v22  ;;  %v14609_v19 = vrot.slane %v12904_v38, 4  ;;  %v2792_v10 = vmul.f32 0.0625, %v2596_v8  ;;  %v3024_v21 = vsel %vm2885_vm7, %v2784_v52, %v3023_v50 }
 0x3a8   :  { %v2330_v13 = vadd.f32 %v2329_v42, %v2328_v60  ;;  %v2385_v51 = vrot.slane %v2384_v20, 1  ;;  %v2800_v26 = vmul.f32 0.0625, %v2652_v23  ;;  %v2808_v12 = vmul.f32 0.0625, %v2708_v54 }
 0x3a9   :  { %v2494_v53 = vadd.f32 %v14609_v19, %v12904_v38  ;;  %v2441_v0 = vrot.slane %v2440_v30, 1  ;;  %v2549_v16 = vrot.slane %v12952_v4, 4  ;;  %v3025_v41 = vsel %vm2887_vm8, %v2792_v10, %v3024_v21 }
 0x3aa   :  { %v2386_v63 = vadd.f32 %v2385_v51, %v2384_v20  ;;  %v2604_v35 = vadd.f32 %v12978_v3, %v14610_v55  ;;  %v2660_v22 = vadd.f32 %v2282_v28, %v2274_v58  ;;  %v2716_v25 = vadd.f32 %v13036_v57, %v14611_v37 }
 0x3ab   :  { %v2495_v18 = vrot.slane %v2494_v53, 2  ;;  %v3026_v38 = vsel %vm2889_vm9, %v2800_v26, %v3025_v41  ;;  %v2442_v56 = vadd.f32 %v2441_v0, %v2440_v30  ;;  %v2550_v61 = vadd.f32 %v2549_v16, %v12952_v4  ;;  %v14612_v4 = vld [vmem:[#allocation143_spill] sm:$0xff]  ;;  %v14614_v26 = vld [vmem:[#allocation50_spill] sm:$0xff] }
 0x3ac   :  { %v3027_v60 = vsel %vm2891_vm10, %v2808_v12, %v3026_v38  ;;  %v2605_v9 = vrot.slane %v2604_v35, 4  ;;  %v2661_v2 = vrot.slane %v2660_v22, 4  ;;  %v2717_v47 = vrot.slane %v2716_v25, 4 }
 0x3ad   :  { %v2496_v31 = vadd.f32 %v2495_v18, %v2494_v53  ;;  %v13115_v14 = vpack.c.bf16 %v3027_v60, %v3027_v60  ;;  %v2551_v42 = vrot.slane %v2550_v61, 2  ;;  %v2754_v3 = vmul.f32 0.0625, %v2330_v13 }
 0x3ae   :  { %v2606_v58 = vadd.f32 %v2605_v9, %v2604_v35  ;;  %v2662_v28 = vadd.f32 %v2661_v2, %v2660_v22  ;;  %v2718_v11 = vadd.f32 %v2717_v47, %v2716_v25  ;;  %v2762_v57 = vmul.f32 0.0625, %v2386_v63 }
 0x3af   :  { %v2497_v50 = vrot.slane %v2496_v31, 1  ;;  %6585 = vmatprep.mubr.bf16.mxu1 %v13115_v14  ;;  %v2552_v27 = vadd.f32 %v2551_v42, %v2550_v61  ;;  %v2770_v8 = vmul.f32 0.0625, %v2442_v56  ;;  %v14613_v23 = vrot.slane %v14612_v4, 1 }
 0x3b0   :  { %v2607_v52 = vrot.slane %v2606_v58, 2  ;;  %v2663_v51 = vrot.slane %v2662_v28, 2  ;;  %v2719_v30 = vrot.slane %v2718_v11, 2  ;;  %v3035_v19 = vsel %vm2879_vm4, %v2762_v57, %v2754_v3  ;;  %v14617_v3 = vld [vmem:[#allocation43_spill] sm:$0xff] }
 0x3b1   :  { %v2498_v20 = vadd.f32 %v2497_v50, %v2496_v31  ;;  %v2309_v54 = vadd.f32 %v14613_v23, %v14612_v4  ;;  %v2553_v53 = vrot.slane %v2552_v27, 1  ;;  %v3036_v10 = vsel %vm2881_vm5, %v2770_v8, %v3035_v19 }
 0x3b2   :  { %v14615_v12 = vrot.slane %v14614_v26, 1  ;;  %v2608_v63 = vadd.f32 %v2607_v52, %v2606_v58  ;;  %v2664_v0 = vadd.f32 %v2663_v51, %v2662_v28  ;;  %v2720_v18 = vadd.f32 %v2719_v30, %v2718_v11 }
 0x3b3   :  { %v2778_v13 = vmul.f32 0.0625, %v2498_v20  ;;  %v2420_v16 = vrot.slane %v12878_v29, 1  ;;  %v2554_v41 = vadd.f32 %v2553_v53, %v2552_v27  ;;  %v2474_v35 = vrot.slane %v12918_v17, 2  ;;  %v13141_v53 = vpop.f32.mrb[4].mxu0 }
 0x3b4   :  { %v2365_v21 = vadd.f32 %v14615_v12, %v14614_v26  ;;  %v14616_v22 = vrot.slane %v12945_v62, 4  ;;  %v2609_v25 = vrot.slane %v2608_v63, 1  ;;  %v2665_v38 = vrot.slane %v2664_v0, 1  ;;  %v13145_v12 = vpop.f32.mrb[5].mxu0 }
 0x3b5   :  { %v3037_v55 = vsel %vm2883_vm6, %v2778_v13, %v3036_v10  ;;  %v2721_v56 = vrot.slane %v2720_v18, 1  ;;  %v2421_v31 = vadd.f32 %v2420_v16, %v12878_v29  ;;  %v2786_v61 = vmul.f32 0.0625, %v2554_v41  ;;  %v6468_v41 = vpop.f32.mrb[6].mxu0 }
 0x3b6   :  { %v2529_v37 = vadd.f32 %v14616_v22, %v12945_v62  ;;  %v2475_v60 = vadd.f32 %v2474_v35, %v12918_v17  ;;  %v2584_v2 = vrot.slane %v12993_v43, 4  ;;  %v2610_v47 = vadd.f32 %v2609_v25, %v2608_v63  ;;  %v6469_v22 = vpop.f32.mrb[7].mxu0  ;;  %v8742_v41 = vld [vmem:[#allocation8 + $0xc00] ss:$16 sps:$4 sm:$0xff]  }
 0x3b7   :  { %v2666_v50 = vadd.f32 %v2665_v38, %v2664_v0  ;;  %v2722_v42 = vadd.f32 %v2721_v56, %v2720_v18  ;;  %v2639_v58 = vadd.f32 %v13001_v6, %v14617_v3  ;;  %v3038_v28 = vsel %vm2885_vm7, %v2786_v61, %v3037_v55  ;;  %v14618_v38 = vld [vmem:[#allocation28_spill] sm:$0xff]  ;;  %v14620_v61 = vld [vmem:[#allocation57_spill] sm:$0xff] }
 0x3b8   :  { %v2530_v9 = vrot.slane %v2529_v37, 2  ;;  %v2476_v62 = vrot.slane %v2475_v60, 1  ;;  %v2585_v57 = vadd.f32 %v2584_v2, %v12993_v43  ;;  %v2794_v20 = vmul.f32 0.0625, %v2610_v47 }
 0x3b9   :  { %v2802_v29 = vmul.f32 0.0625, %v2666_v50  ;;  %v2810_v27 = vmul.f32 0.0625, %v2722_v42  ;;  %v2640_v8 = vrot.slane %v2639_v58, 4  ;;  %v2696_v52 = vrot.slane %v13051_v49, 4 }
 0x3ba   :  { %v2531_v11 = vadd.f32 %v2530_v9, %v2529_v37  ;;  %v2477_v17 = vadd.f32 %v2476_v62, %v2475_v60  ;;  %v2586_v23 = vrot.slane %v2585_v57, 2  ;;  %v3039_v51 = vsel %vm2887_vm8, %v2794_v20, %v3038_v28 }
 0x3bb   :  { %v2641_v30 = vadd.f32 %v2640_v8, %v2639_v58  ;;  %v2751_v19 = vmul.f32 0.0625, %v2309_v54  ;;  %v2759_v6 = vmul.f32 0.0625, %v2365_v21  ;;  %v3040_v13 = vsel %vm2889_vm9, %v2802_v29, %v3039_v51  ;;  %v14623_v51 = vld [vmem:[#allocation40_spill] sm:$0xff] }
 0x3bc   :  { %v2532_v4 = vrot.slane %v2531_v11, 1  ;;  %v2587_v43 = vadd.f32 %v2586_v23, %v2585_v57  ;;  %v2697_v26 = vadd.f32 %v2696_v52, %v13051_v49  ;;  %v3041_v63 = vsel %vm2891_vm10, %v2810_v27, %v3040_v13 }
 0x3bd   :  { %v2642_v0 = vrot.slane %v2641_v30, 2  ;;  %v2767_v18 = vmul.f32 0.0625, %v2421_v31  ;;  %v2775_v16 = vmul.f32 0.0625, %v2477_v17  ;;  %v13148_v55 = vpack.c.bf16 %v3041_v63, %v3041_v63 }
 0x3be   :  { %v2533_v10 = vadd.f32 %v2532_v4, %v2531_v11  ;;  %v2588_v54 = vrot.slane %v2587_v43, 1  ;;  %v2698_v21 = vrot.slane %v2697_v26, 2  ;;  %v3014_v25 = vsel %vm2879_vm4, %v2759_v6, %v2751_v19 }
 0x3bf   :  { %v2643_v37 = vadd.f32 %v2642_v0, %v2641_v30  ;;  %v14619_v49 = vrot.slane %v14618_v38, 1  ;;  %v14621_v60 = vrot.slane %v14620_v61, 1  ;;  %6626 = vmatprep.mubr.bf16.mxu0 %v13148_v55  ;;  %v3015_v47 = vsel %vm2881_vm5, %v2767_v18, %v3014_v25 }
 0x3c0   :  { %v2783_v35 = vmul.f32 0.0625, %v2533_v10  ;;  %v2589_v31 = vadd.f32 %v2588_v54, %v2587_v43  ;;  %v2699_v2 = vadd.f32 %v2698_v21, %v2697_v26  ;;  %v2434_v50 = vrot.slane %v12880_v33, 1 }
 0x3c1   :  { %v2323_v56 = vadd.f32 %v14619_v49, %v14618_v38  ;;  %v2379_v9 = vadd.f32 %v14621_v60, %v14620_v61  ;;  %v2644_v42 = vrot.slane %v2643_v37, 1  ;;  %v3016_v3 = vsel %vm2883_vm6, %v2775_v16, %v3015_v47  ;;  %v8750_v38 = vld [vmem:[#allocation8 + $0xc24] ss:$16 sps:$4 sm:$0xff]  }
 0x3c2   :  { %v2488_v58 = vrot.slane %v12920_v36, 2  ;;  %v14622_v28 = vrot.slane %v12949_v44, 4  ;;  %v2700_v11 = vrot.slane %v2699_v2, 1  ;;  %v2791_v57 = vmul.f32 0.0625, %v2589_v31  ;;  %v14624_v47 = vld [vmem:[#allocation110_spill] sm:$0xff] }
 0x3c3   :  { %v3017_v20 = vsel %vm2885_vm7, %v2783_v35, %v3016_v3  ;;  %v2435_v29 = vadd.f32 %v2434_v50, %v12880_v33  ;;  %v2645_v27 = vadd.f32 %v2644_v42, %v2643_v37  ;;  %v2598_v4 = vrot.slane %v12996_v40, 4 }
 0x3c4   :  { %v2543_v62 = vadd.f32 %v14622_v28, %v12949_v44  ;;  %v2489_v8 = vadd.f32 %v2488_v58, %v12920_v36  ;;  %v2701_v23 = vadd.f32 %v2700_v11, %v2699_v2  ;;  %v3018_v52 = vsel %vm2887_vm8, %v2791_v57, %v3017_v20  ;;  %v8748_v11 = vld [vmem:[#allocation8 + $0xc20] ss:$16 sps:$4 sm:$0xff]  }
 0x3c5   :  { %v2653_v30 = vadd.f32 %v13006_v7, %v14623_v51  ;;  %v2710_v44 = vrot.slane %v13054_v15, 4  ;;  %v2799_v19 = vmul.f32 0.0625, %v2645_v27  ;;  %v2599_v10 = vadd.f32 %v2598_v4, %v12996_v40 }
 0x3c6   :  { %v2544_v17 = vrot.slane %v2543_v62, 2  ;;  %v2490_v6 = vrot.slane %v2489_v8, 1  ;;  %v2807_v33 = vmul.f32 0.0625, %v2701_v23  ;;  %v2753_v26 = vmul.f32 0.0625, %v2323_v56 }
 0x3c7   :  { %v2654_v43 = vrot.slane %v2653_v30, 4  ;;  %v2711_v36 = vadd.f32 %v2710_v44, %v13054_v15  ;;  %v3019_v63 = vsel %vm2889_vm9, %v2799_v19, %v3018_v52  ;;  %v2600_v16 = vrot.slane %v2599_v10, 2  ;;  %v8756_v52 = vld [vmem:[#allocation8 + $0xc44] ss:$16 sps:$4 sm:$0xff]  }
 0x3c8   :  { %v2545_v13 = vadd.f32 %v2544_v17, %v2543_v62  ;;  %v2491_v0 = vadd.f32 %v2490_v6, %v2489_v8  ;;  %v3020_v7 = vsel %vm2891_vm10, %v2807_v33, %v3019_v63  ;;  %v2761_v35 = vmul.f32 0.0625, %v2379_v9  ;;  %v14629_v17 = vld [vmem:[#allocation45_spill] sm:$0xff] }
 0x3c9   :  { %v2655_v54 = vadd.f32 %v2654_v43, %v2653_v30  ;;  %v2712_v21 = vrot.slane %v2711_v36, 2  ;;  %v13177_v22 = vpack.c.bf16 %v3020_v7, %v3020_v7  ;;  %v2601_v40 = vadd.f32 %v2600_v16, %v2599_v10 }
 0x3ca   :  { %v2546_v18 = vrot.slane %v2545_v13, 1  ;;  %v2769_v25 = vmul.f32 0.0625, %v2435_v29  ;;  %v2777_v56 = vmul.f32 0.0625, %v2491_v0  ;;  %v3028_v61 = vsel %vm2879_vm4, %v2761_v35, %v2753_v26  ;;  %v14627_v29 = vld [vmem:[#allocation52_spill] sm:$0xff] }
 0x3cb   :  { %v2656_v49 = vrot.slane %v2655_v54, 2  ;;  %v2713_v15 = vadd.f32 %v2712_v21, %v2711_v36  ;;  %6586 = vmatmul.mubr.bf16.vlgmr.msra.gmra.mrb[16].mxu1 %v13177_v22  ;;  %v2602_v60 = vrot.slane %v2601_v40, 1  ;;  %v14625_v50 = vunpack.c.h.bf16 %v14624_v47  ;;  %v8754_v0 = vld [vmem:[#allocation8 + $0xc40] ss:$16 sps:$4 sm:$0xff]  }
 0x3cc   :  { %v2547_v37 = vadd.f32 %v2546_v18, %v2545_v13  ;;  %v3029_v2 = vsel %vm2881_vm5, %v2769_v25, %v3028_v61  ;;  %6636 = vmatpush1.bf16.msra.mxu1 %v8742_v41  ;;  %v14626_v28 = vunpack.c.h.bf16 %v14574_v59  ;;  %v14628_v27 = vrot.slane %v14627_v29, 2 }
 0x3cd   :  { %v2276_v9 = vmul.f32 %v12716_v39, %v14625_v50  ;;  %v2657_v42 = vadd.f32 %v2656_v49, %v2655_v54  ;;  %v2714_v3 = vrot.slane %v2713_v15, 1  ;;  %v3030_v58 = vsel %vm2883_vm6, %v2777_v56, %v3029_v2  ;;  %6637 = vmatprep.subr.bf16.mxu1 %v8750_v38  ;;  %v8745_v2 = vld [vmem:[#allocation8 + $0xe00] ss:$16 sps:$4 sm:$0xff]  }
 0x3ce   :  { %v2785_v31 = vmul.f32 0.0625, %v2547_v37  ;;  %v2284_v62 = vmul.f32 %v12934_v1, %v14626_v28  ;;  %v2603_v57 = vadd.f32 %v2602_v60, %v2601_v40  ;;  %v2342_v8 = vadd.f32 %v14628_v27, %v14627_v29  ;;  %v14632_v37 = vld [vmem:[#allocation34_spill] sm:$0xff] }
 0x3cf   :  { %v14630_v4 = vrot.slane %v14629_v17, 2  ;;  %v2658_v51 = vrot.slane %v2657_v42, 1  ;;  %v2715_v30 = vadd.f32 %v2714_v3, %v2713_v15  ;;  %v2453_v59 = vrot.slane %v12866_v24, 2 }
 0x3d0   :  { %v3031_v20 = vsel %vm2885_vm7, %v2785_v31, %v3030_v58  ;;  %v14631_v44 = vrot.slane %v12908_v5, 4  ;;  %v2793_v6 = vmul.f32 0.0625, %v2603_v57  ;;  %v2343_v13 = vrot.slane %v2342_v8, 1  ;;  %6638 = vmatpush1.bf16.msra.mxu1 %v8748_v11 }
 0x3d1   :  { %v2398_v23 = vadd.f32 %v14630_v4, %v14629_v17  ;;  %v2563_v33 = vrot.slane %v12958_v34, 4  ;;  %v2659_v43 = vadd.f32 %v2658_v51, %v2657_v42  ;;  %v2809_v36 = vmul.f32 0.0625, %v2715_v30  ;;  %6639 = vmatprep.subr.bf16.mxu1 %v8756_v52  ;;  %v14634_v4 = vld [vmem:[#allocation115_spill] sm:$0xff]  ;;  %v8766_v51 = vld [vmem:[#allocation8 + $0xc80] ss:$16 sps:$4 sm:$0xff]  }
 0x3d2   :  { %v2508_v19 = vadd.f32 %v14631_v44, %v12908_v5  ;;  %v2454_v26 = vadd.f32 %v2453_v59, %v12866_v24  ;;  %v3032_v18 = vsel %vm2887_vm8, %v2793_v6, %v3031_v20  ;;  %v2344_v16 = vadd.f32 %v2343_v13, %v2342_v8  ;;  %v8762_v5 = vld [vmem:[#allocation8 + $0xc64] ss:$16 sps:$4 sm:$0xff]   ;;  %v8751_v6 = vld [vmem:[#allocation8 + $0xe20] ss:$16 sps:$4 sm:$0xff]  }
 0x3d3   :  { %v2399_v10 = vrot.slane %v2398_v23, 1  ;;  %v2564_v7 = vadd.f32 %v2563_v33, %v12958_v34  ;;  %v2801_v54 = vmul.f32 0.0625, %v2659_v43  ;;  %v2618_v40 = vadd.f32 %v12984_v46, %v14632_v37  ;;  %v14633_v24 = vld [vmem:[#allocation42_spill] sm:$0xff] }
 0x3d4   :  { %v2509_v63 = vrot.slane %v2508_v19, 2  ;;  %v2455_v21 = vrot.slane %v2454_v26, 1  ;;  %v2674_v38 = vadd.f32 %v2284_v62, %v2276_v9  ;;  %v2730_v49 = vadd.f32 %v13042_v32, %v14633_v24  ;;  %6640 = vmatpush1.bf16.msra.mxu1 %v8754_v0  ;;  %v8760_v34 = vld [vmem:[#allocation8 + $0xc60] ss:$16 sps:$4 sm:$0xff]   ;;  %v8768_v46 = vld [vmem:[#allocation8 + $0xc84] ss:$16 sps:$4 sm:$0xff]  }
 0x3d5   :  { %v2400_v41 = vadd.f32 %v2399_v10, %v2398_v23  ;;  %v2565_v25 = vrot.slane %v2564_v7, 2  ;;  %v2756_v15 = vmul.f32 0.0625, %v2344_v16  ;;  %v3033_v56 = vsel %vm2889_vm9, %v2801_v54, %v3032_v18  ;;  %6641 = vmatprep.subr.bf16.mxu1 %v8762_v5  ;;  %v8753_v62 = vld [vmem:[#allocation8 + $0xe24] ss:$16 sps:$4 sm:$0xff]  }
 0x3d6   :  { %v2510_v35 = vadd.f32 %v2509_v63, %v2508_v19  ;;  %v2456_v61 = vadd.f32 %v2455_v21, %v2454_v26  ;;  %v2619_v31 = vrot.slane %v2618_v40, 4  ;;  %v3034_v47 = vsel %vm2891_vm10, %v2809_v36, %v3033_v56  ;;  %v8774_v13 = vld [vmem:[#allocation8 + $0xca4] ss:$16 sps:$4 sm:$0xff]   ;;  %v8757_v21 = vld [vmem:[#allocation8 + $0xe40] ss:$16 sps:$4 sm:$0xff]  }
 0x3d7   :  { %v2566_v50 = vadd.f32 %v2565_v25, %v2564_v7  ;;  %v2675_v42 = vrot.slane %v2674_v38, 4  ;;  %v2731_v3 = vrot.slane %v2730_v49, 4  ;;  %v13210_v9 = vpack.c.bf16 %v3034_v47, %v3034_v47  ;;  %v14637_v26 = vld [vmem:[#allocation60_spill] sm:$0xff] }
 0x3d8   :  { %v2511_v60 = vrot.slane %v2510_v35, 1  ;;  %v2620_v32 = vadd.f32 %v2619_v31, %v2618_v40  ;;  %v2764_v28 = vmul.f32 0.0625, %v2400_v41  ;;  %v2772_v29 = vmul.f32 0.0625, %v2456_v61  ;;  %6642 = vmatpush1.bf16.msra.mxu1 %v8760_v34  ;;  %v8759_v0 = vld [vmem:[#allocation8 + $0xe44] ss:$16 sps:$4 sm:$0xff]   ;;  %v14641_v40 = vld [vmem:[#allocation145_spill] sm:$0xff] }
 0x3d9   :  { %v2567_v11 = vrot.slane %v2566_v50, 1  ;;  %v2676_v57 = vadd.f32 %v2675_v42, %v2674_v38  ;;  %v2732_v20 = vadd.f32 %v2731_v3, %v2730_v49  ;;  %6627 = vmatmul.mubr.bf16.vlgmr.msra.gmra.mrb[12].mxu0 %v13210_v9  ;;  %v14635_v23 = vunpack.c.h.bf16 %v14634_v4  ;;  %6643 = vmatprep.subr.bf16.mxu1 %v8768_v46  ;;  %v14639_v7 = vld [vmem:[#allocation48_spill] sm:$0xff]  ;;  %v14643_v46 = vld [vmem:[#allocation53_spill] sm:$0xff] }
 0x3da   :  { %v2512_v58 = vadd.f32 %v2511_v60, %v2510_v35  ;;  %v2621_v27 = vrot.slane %v2620_v32, 2  ;;  %v3049_v17 = vsel %vm2879_vm4, %v2764_v28, %v2756_v15  ;;  %6677 = vmatpush1.bf16.msra.mxu0 %v8745_v2  ;;  %v14636_v43 = vunpack.c.h.bf16 %v14577_v48  ;;  %v8772_v38 = vld [vmem:[#allocation8 + $0xca0] ss:$16 sps:$4 sm:$0xff]   ;;  %v8780_v61 = vld [vmem:[#allocation8 + $0xcc4] ss:$16 sps:$4 sm:$0xff]  }
 0x3db   :  { %v2278_v52 = vmul.f32 %v12716_v39, %v14635_v23  ;;  %v2568_v30 = vadd.f32 %v2567_v11, %v2566_v50  ;;  %v2677_v59 = vrot.slane %v2676_v57, 2  ;;  %v2733_v44 = vrot.slane %v2732_v20, 2  ;;  %6678 = vmatprep.subr.bf16.mxu0 %v8753_v62  ;;  %v8765_v47 = vld [vmem:[#allocation8 + $0xe64] ss:$16 sps:$4 sm:$0xff]   ;;  %v14644_v11 = vld [vmem:[#allocation47_spill] sm:$0xff] }
 0x3dc   :  { %v2780_v8 = vmul.f32 0.0625, %v2512_v58  ;;  %v3050_v19 = vsel %vm2881_vm5, %v2772_v29, %v3049_v17  ;;  %v2622_v10 = vadd.f32 %v2621_v27, %v2620_v32  ;;  %v2286_v36 = vmul.f32 %v12934_v1, %v14636_v43  ;;  %6644 = vmatpush1.bf16.msra.mxu1 %v8766_v51  ;;  %v8778_v29 = vld [vmem:[#allocation8 + $0xcc0] ss:$16 sps:$4 sm:$0xff]   ;;  %v8786_v23 = vld [vmem:[#allocation8 + $0xce4] ss:$16 sps:$4 sm:$0xff]   ;;  %v14647_v43 = vld [vmem:[#allocation39_spill] sm:$0xff] }
 0x3dd   :  { %v14638_v39 = vrot.slane %v14637_v26, 2  ;;  %v2678_v18 = vadd.f32 %v2677_v59, %v2676_v57  ;;  %v2734_v16 = vadd.f32 %v2733_v44, %v2732_v20  ;;  %v2788_v41 = vmul.f32 0.0625, %v2568_v30  ;;  %6645 = vmatprep.subr.bf16.mxu1 %v8774_v13  ;;  %v14645_v57 = vld [vmem:[#allocation32_spill] sm:$0xff] }
 0x3de   :  { %v3051_v33 = vsel %vm2883_vm6, %v2780_v8, %v3050_v19  ;;  %v14640_v5 = vrot.slane %v14639_v7, 2  ;;  %v2623_v35 = vrot.slane %v2622_v10, 1  ;;  %v2467_v48 = vrot.slane %v12868_v45, 2  ;;  %6679 = vmatpush1.bf16.msra.mxu0 %v8751_v6  ;;  %v8763_v4 = vld [vmem:[#allocation8 + $0xe60] ss:$16 sps:$4 sm:$0xff]  }
 0x3df   :  { %v2356_v63 = vadd.f32 %v14638_v39, %v14637_v26  ;;  %v14642_v1 = vrot.slane %v14641_v40, 4  ;;  %v2679_v24 = vrot.slane %v2678_v18, 1  ;;  %v2735_v49 = vrot.slane %v2734_v16, 1  ;;  %6680 = vmatprep.subr.bf16.mxu0 %v8759_v0  ;;  %v8771_v19 = vld [vmem:[#allocation8 + $0xe84] ss:$16 sps:$4 sm:$0xff]  }
 0x3e0   :  { %v2412_v54 = vadd.f32 %v14640_v5, %v14639_v7  ;;  %v3052_v15 = vsel %vm2885_vm7, %v2788_v41, %v3051_v33  ;;  %v2624_v60 = vadd.f32 %v2623_v35, %v2622_v10  ;;  %v2468_v34 = vadd.f32 %v2467_v48, %v12868_v45  ;;  %6646 = vmatpush1.bf16.msra.mxu1 %v8772_v38  ;;  %v14646_v33 = vld [vmem:[#allocation55_spill] sm:$0xff]  ;;  %v8784_v0 = vld [vmem:[#allocation8 + $0xce0] ss:$16 sps:$4 sm:$0xff]  }
 0x3e1   :  { %v2357_v37 = vrot.slane %v2356_v63, 1  ;;  %v2522_v25 = vadd.f32 %v14642_v1, %v14641_v40  ;;  %v2680_v50 = vadd.f32 %v2679_v24, %v2678_v18  ;;  %v2736_v42 = vadd.f32 %v2735_v49, %v2734_v16  ;;  %6647 = vmatprep.subr.bf16.mxu1 %v8780_v61  ;;  %v8769_v5 = vld [vmem:[#allocation8 + $0xe80] ss:$16 sps:$4 sm:$0xff]   ;;  %v8777_v40 = vld [vmem:[#allocation8 + $0xea4] ss:$16 sps:$4 sm:$0xff]   ;;  %v14648_v24 = vld [vmem:[#allocation51_spill] sm:$0xff] }
 0x3e2   :  { %v2413_v56 = vrot.slane %v2412_v54, 1  ;;  %v2577_v58 = vrot.slane %v14643_v46, 4  ;;  %v2796_v32 = vmul.f32 0.0625, %v2624_v60  ;;  %v2469_v28 = vrot.slane %v2468_v34, 1  ;;  %6681 = vmatpush1.bf16.msra.mxu0 %v8757_v21  ;;  %v8790_v61 = vld [vmem:[#allocation8 + $0xd00] ss:$16 sps:$4 sm:$0xff]  }
 0x3e3   :  { %v2358_v31 = vadd.f32 %v2357_v37, %v2356_v63  ;;  %v2523_v2 = vrot.slane %v2522_v25, 2  ;;  %v2632_v20 = vadd.f32 %v14645_v57, %v14644_v11  ;;  %v2804_v27 = vmul.f32 0.0625, %v2680_v50  ;;  %6682 = vmatprep.subr.bf16.mxu0 %v8765_v47  ;;  %v14649_v60 = vld [vmem:[#allocation79_spill] sm:$0xff] }
 0x3e4   :  { %v2414_v3 = vadd.f32 %v2413_v56, %v2412_v54  ;;  %v2812_v8 = vmul.f32 0.0625, %v2736_v42  ;;  %v2578_v45 = vadd.f32 %v2577_v58, %v14643_v46  ;;  %v2688_v17 = vadd.f32 %v2286_v36, %v2278_v52  ;;  %6648 = vmatpush1.bf16.msra.mxu1 %v8778_v29  ;;  %v8792_v54 = vld [vmem:[#allocation8 + $0xd04] ss:$16 sps:$4 sm:$0xff]  }
 0x3e5   :  { %v2524_v62 = vadd.f32 %v2523_v2, %v2522_v25  ;;  %v3053_v51 = vsel %vm2887_vm8, %v2796_v32, %v3052_v15  ;;  %v2470_v30 = vadd.f32 %v2469_v28, %v2468_v34  ;;  %v2633_v44 = vrot.slane %v2632_v20, 4  ;;  %6649 = vmatprep.subr.bf16.mxu1 %v8786_v23  ;;  %v14650_v34 = vld [vmem:[#allocation58_spill] sm:$0xff] }
 0x3e6   :  { %v3054_v6 = vsel %vm2889_vm9, %v2804_v27, %v3053_v51  ;;  %v2579_v13 = vrot.slane %v2578_v45, 2  ;;  %v2689_v10 = vrot.slane %v2688_v17, 4  ;;  %v2744_v26 = vadd.f32 %v14647_v43, %v14646_v33  ;;  %6683 = vmatpush1.bf16.msra.mxu0 %v8763_v4  ;;  %v8798_v58 = vld [vmem:[#allocation8 + $0xd24] ss:$16 sps:$4 sm:$0xff]   ;;  %v8796_v51 = vld [vmem:[#allocation8 + $0xd20] ss:$16 sps:$4 sm:$0xff]  }
 0x3e7   :  { %v2525_v59 = vrot.slane %v2524_v62, 1  ;;  %v3055_v52 = vsel %vm2891_vm10, %v2812_v8, %v3054_v6  ;;  %v2634_v39 = vadd.f32 %v2633_v44, %v2632_v20  ;;  %v2758_v63 = vmul.f32 0.0625, %v2358_v31  ;;  %6684 = vmatprep.subr.bf16.mxu0 %v8771_v19  ;;  %v14654_v20 = vld [vmem:[#allocation56_spill] sm:$0xff]  ;;  %v14658_v6 = vld [vmem:[#allocation62_spill] sm:$0xff] }
 0x3e8   :  { %v13243_v18 = vpack.c.bf16 %v3055_v52, %v3055_v52  ;;  %v2580_v16 = vadd.f32 %v2579_v13, %v2578_v45  ;;  %v2690_v41 = vadd.f32 %v2689_v10, %v2688_v17  ;;  %v2745_v7 = vrot.slane %v2744_v26, 4  ;;  %6650 = vmatpush1.bf16.msra.mxu1 %v8784_v0  ;;  %v14655_v17 = vld [vmem:[#allocation29_spill] sm:$0xff]  ;;  %v8804_v52 = vld [vmem:[#allocation8 + $0xd44] ss:$16 sps:$4 sm:$0xff]  }
 0x3e9   :  { %v2526_v36 = vadd.f32 %v2525_v59, %v2524_v62  ;;  %v2635_v21 = vrot.slane %v2634_v39, 2  ;;  %v2766_v35 = vmul.f32 0.0625, %v2414_v3  ;;  %v2774_v37 = vmul.f32 0.0625, %v2470_v30  ;;  %6651 = vmatprep.subr.bf16.mxu1 %v8792_v54  ;;  %v8783_v62 = vld [vmem:[#allocation8 + $0xec4] ss:$16 sps:$4 sm:$0xff]  }
 0x3ea   :  { %6667 = vmatprep.mubr.bf16.mxu1 %v13243_v18  ;;  %v2581_v1 = vrot.slane %v2580_v16, 1  ;;  %v2691_v25 = vrot.slane %v2690_v41, 2  ;;  %v2746_v38 = vadd.f32 %v2745_v7, %v2744_v26  ;;  %v13248_v49 = vadd.f32 %v13141_v53, %v14648_v24  ;;  %6685 = vmatpush1.bf16.msra.mxu0 %v8769_v5  ;;  %v8775_v53 = vld [vmem:[#allocation8 + $0xea0] ss:$16 sps:$4 sm:$0xff]   ;;  %v14660_v7 = vld [vmem:[#allocation49_spill] sm:$0xff] }
 0x3eb   :  { %v2782_v48 = vmul.f32 0.0625, %v2526_v36  ;;  %v2636_v15 = vadd.f32 %v2635_v21, %v2634_v39  ;;  %v3063_v56 = vsel %vm2879_vm4, %v2766_v35, %v2758_v63  ;;  %v13253_v31 = vadd.f32 %v13145_v12, %v14649_v60  ;;  %6686 = vmatprep.subr.bf16.mxu0 %v8777_v40  ;;  %v14652_v12 = vld [vmem:[#allocation35_spill] sm:$0xff]  ;;  %v14656_v59 = vld [vmem:[#allocation44_spill] sm:$0xff] }
 0x3ec   :  { %v14651_v2 = vrot.slane %v14650_v34, 1  ;;  %v2582_v50 = vadd.f32 %v2581_v1, %v2580_v16  ;;  %v2692_v42 = vadd.f32 %v2691_v25, %v2690_v41  ;;  %v2747_v3 = vrot.slane %v2746_v38, 2  ;;  %6652 = vmatpush1.bf16.msra.mxu1 %v8790_v61  ;;  %v8781_v26 = vld [vmem:[#allocation8 + $0xec0] ss:$16 sps:$4 sm:$0xff]   ;;  %v8789_v63 = vld [vmem:[#allocation8 + $0xee4] ss:$16 sps:$4 sm:$0xff]  }
 0x3ed   :  { %v3064_v46 = vsel %vm2881_vm5, %v2774_v37, %v3063_v56  ;;  %v2637_v32 = vrot.slane %v2636_v15, 1  ;;  %v14653_v11 = vrot.slane %v14652_v12, 1  ;;  %v2448_v29 = vrot.slane %v14654_v20, 1  ;;  %6653 = vmatprep.subr.bf16.mxu1 %v8798_v58  ;;  %v14659_v41 = vld [vmem:[#allocation144_spill] sm:$0xff]  ;;  %v14661_v37 = vld [vmem:[#allocation81_spill] sm:$0xff] }
 0x3ee   :  { %v2337_v47 = vadd.f32 %v14651_v2, %v14650_v34  ;;  %v3065_v28 = vsel %vm2883_vm6, %v2782_v48, %v3064_v46  ;;  %v2693_v27 = vrot.slane %v2692_v42, 1  ;;  %v2748_v8 = vadd.f32 %v2747_v3, %v2746_v38  ;;  %6687 = vmatpush1.bf16.msra.mxu0 %v8775_v53  ;;  %v8802_v1 = vld [vmem:[#allocation8 + $0xd40] ss:$16 sps:$4 sm:$0xff]   ;;  %v8810_v60 = vld [vmem:[#allocation8 + $0xd64] ss:$16 sps:$4 sm:$0xff]  }
 0x3ef   :  { %v2393_v57 = vadd.f32 %v14653_v11, %v14652_v12  ;;  %v2790_v45 = vmul.f32 0.0625, %v2582_v50  ;;  %v2502_v4 = vrot.slane %v14655_v17, 2  ;;  %v2638_v23 = vadd.f32 %v2637_v32, %v2636_v15  ;;  %6688 = vmatprep.subr.bf16.mxu0 %v8783_v62  ;;  %v8787_v61 = vld [vmem:[#allocation8 + $0xee0] ss:$16 sps:$4 sm:$0xff]   ;;  %v8795_v50 = vld [vmem:[#allocation8 + $0xf04] ss:$16 sps:$4 sm:$0xff]  }
 0x3f0   :  { %v2449_v30 = vadd.f32 %v2448_v29, %v14654_v20  ;;  %v14657_v44 = vrot.slane %v14656_v59, 4  ;;  %v2612_v13 = vrot.slane %v14658_v6, 4  ;;  %v2694_v10 = vadd.f32 %v2693_v27, %v2692_v42  ;;  %6654 = vmatpush1.bf16.msra.mxu1 %v8796_v51  ;;  %v8808_v11 = vld [vmem:[#allocation8 + $0xd60] ss:$16 sps:$4 sm:$0xff]  }
 0x3f1   :  { %v2749_v33 = vrot.slane %v2748_v8, 1  ;;  %v3066_v43 = vsel %vm2885_vm7, %v2790_v45, %v3065_v28  ;;  %v2503_v36 = vadd.f32 %v2502_v4, %v14655_v17  ;;  %v2798_v39 = vmul.f32 0.0625, %v2638_v23  ;;  %6655 = vmatprep.subr.bf16.mxu1 %v8804_v52  ;;  %v8816_v45 = vld [vmem:[#allocation8 + $0xd84] ss:$16 sps:$4 sm:$0xff]   ;;  %v14662_v23 = vld [vmem:[#allocation31_spill] sm:$0xff] }
 0x3f2   :  { %v2557_v19 = vadd.f32 %v14657_v44, %v14656_v59  ;;  %v2613_v16 = vadd.f32 %v2612_v13, %v14658_v6  ;;  %v2667_v5 = vadd.f32 %v14660_v7, %v14659_v41  ;;  %v2806_v21 = vmul.f32 0.0625, %v2694_v10  ;;  %6689 = vmatpush1.bf16.msra.mxu0 %v8781_v26  ;;  %v14666_v52 = vld [vmem:[#allocation74_spill] sm:$0xff] }
 0x3f3   :  { %v2750_v54 = vadd.f32 %v2749_v33, %v2748_v8  ;;  %v2504_v35 = vrot.slane %v2503_v36, 1  ;;  %v2724_v48 = vrot.slane %v14661_v37, 4  ;;  %v3067_v40 = vsel %vm2887_vm8, %v2798_v39, %v3066_v43  ;;  %6690 = vmatprep.subr.bf16.mxu0 %v8789_v63  ;;  %v8793_v8 = vld [vmem:[#allocation8 + $0xf00] ss:$16 sps:$4 sm:$0xff]   ;;  %v14664_v33 = vld [vmem:[#allocation33_spill] sm:$0xff] }
 0x3f4   :  { %v2558_v0 = vrot.slane %v2557_v19, 2  ;;  %v2614_v38 = vrot.slane %v2613_v16, 2  ;;  %v2668_v24 = vrot.slane %v2667_v5, 4  ;;  %v3068_v56 = vsel %vm2889_vm9, %v2806_v21, %v3067_v40  ;;  %6656 = vmatpush1.bf16.msra.mxu1 %v8802_v1  ;;  %v8814_v39 = vld [vmem:[#allocation8 + $0xd80] ss:$16 sps:$4 sm:$0xff]  }
 0x3f5   :  { %v2814_v15 = vmul.f32 0.0625, %v2750_v54  ;;  %v2505_v34 = vadd.f32 %v2504_v35, %v2503_v36  ;;  %v2725_v2 = vadd.f32 %v2724_v48, %v14661_v37  ;;  %v2755_v53 = vmul.f32 0.0625, %v2337_v47  ;;  %6657 = vmatprep.subr.bf16.mxu1 %v8810_v60  ;;  %v14667_v41 = vld [vmem:[#allocation78_spill] sm:$0xff]  ;;  %v14668_v37 = vld [vmem:[#allocation41_spill] sm:$0xff] }
 0x3f6   :  { %v2559_v25 = vadd.f32 %v2558_v0, %v2557_v19  ;;  %v2615_v3 = vadd.f32 %v2614_v38, %v2613_v16  ;;  %v2669_v46 = vadd.f32 %v2668_v24, %v2667_v5  ;;  %v2763_v28 = vmul.f32 0.0625, %v2393_v57  ;;  %6691 = vmatpush1.bf16.msra.mxu0 %v8787_v61  ;;  %v8799_v5 = vld [vmem:[#allocation8 + $0xf20] ss:$16 sps:$4 sm:$0xff]   ;;  %v8822_v54 = vld [vmem:[#allocation8 + $0xda4] ss:$16 sps:$4 sm:$0xff]  }
 0x3f7   :  { %v3069_v58 = vsel %vm2891_vm10, %v2814_v15, %v3068_v56  ;;  %v2726_v32 = vrot.slane %v2725_v2, 2  ;;  %v2771_v62 = vmul.f32 0.0625, %v2449_v30  ;;  %v2779_v4 = vmul.f32 0.0625, %v2505_v34  ;;  %6692 = vmatprep.subr.bf16.mxu0 %v8795_v50  ;;  %v8801_v30 = vld [vmem:[#allocation8 + $0xf24] ss:$16 sps:$4 sm:$0xff]  }
 0x3f8   :  { %v2560_v42 = vrot.slane %v2559_v25, 1  ;;  %v13280_v12 = vpack.c.bf16 %v3069_v58, %v3069_v58  ;;  %v2616_v29 = vrot.slane %v2615_v3, 1  ;;  %v2670_v27 = vrot.slane %v2669_v46, 2  ;;  %6658 = vmatpush1.bf16.msra.mxu1 %v8808_v11  ;;  %v14670_v1 = vld [vmem:[#allocation46_spill] sm:$0xff] }
 0x3f9   :  { %v2727_v17 = vadd.f32 %v2726_v32, %v2725_v2  ;;  %v3042_v47 = vsel %vm2879_vm4, %v2763_v28, %v2755_v53  ;;  %v14663_v51 = vrot.slane %v14662_v23, 1  ;;  %v14665_v43 = vrot.slane %v14664_v33, 1  ;;  %6659 = vmatprep.subr.bf16.mxu1 %v8816_v45  ;;  %v8807_v38 = vld [vmem:[#allocation8 + $0xf44] ss:$16 sps:$4 sm:$0xff]   ;;  %v8805_v2 = vld [vmem:[#allocation8 + $0xf40] ss:$16 sps:$4 sm:$0xff]  }
 0x3fa   :  { %v2561_v20 = vadd.f32 %v2560_v42, %v2559_v25  ;;  %6708 = vmatprep.mubr.bf16.mxu0 %v13280_v12  ;;  %v2617_v59 = vadd.f32 %v2616_v29, %v2615_v3  ;;  %v2671_v44 = vadd.f32 %v2670_v27, %v2669_v46  ;;  %v3043_v6 = vsel %vm2881_vm5, %v2771_v62, %v3042_v47  ;;  %v14671_v61 = vld [vmem:[#allocation30_spill] sm:$0xff]  ;;  %v14673_v53 = vld [vmem:[#allocation85_spill] sm:$0xff]  ;;  %v6546_v32 = vpop.f32.mrb[8].mxu0 }
 0x3fb   :  { %v2351_v57 = vadd.f32 %v14663_v51, %v14662_v23  ;;  %v2728_v13 = vrot.slane %v2727_v17, 1  ;;  %v3044_v10 = vsel %vm2883_vm6, %v2779_v4, %v3043_v6  ;;  %v2407_v26 = vadd.f32 %v14665_v43, %v14664_v33  ;;  %6693 = vmatpush1.bf16.msra.mxu0 %v8793_v8  ;;  %v14672_v60 = vld [vmem:[#allocation146_spill] sm:$0xff]  ;;  %v6548_v29 = vpop.f32.mrb[9].mxu0 }
 0x3fc   :  { %v2787_v19 = vmul.f32 0.0625, %v2561_v20  ;;  %v2462_v36 = vrot.slane %v14666_v52, 1  ;;  %v2672_v63 = vrot.slane %v2671_v44, 1  ;;  %v2795_v0 = vmul.f32 0.0625, %v2617_v59  ;;  %6694 = vmatprep.subr.bf16.mxu0 %v8801_v30  ;;  %v8820_v50 = vld [vmem:[#allocation8 + $0xda0] ss:$16 sps:$4 sm:$0xff]   ;;  %6660 = vmatpush1.bf16.msra.mxu1 %v8814_v39 }
 0x3fd   :  { %v2516_v7 = vrot.slane %v14667_v41, 2  ;;  %v2729_v21 = vadd.f32 %v2728_v13, %v2727_v17  ;;  %v14669_v48 = vrot.slane %v14668_v37, 4  ;;  %v2626_v25 = vrot.slane %v14670_v1, 4  ;;  %6661 = vmatprep.subr.bf16.mxu1 %v8822_v54  ;;  %v8828_v27 = vld [vmem:[#allocation8 + $0xdc4] ss:$16 sps:$4 sm:$0xff]   ;;  %v6550_v47 = vpop.f32.mrb[10].mxu0 }
 0x3fe   :  { %v3045_v16 = vsel %vm2885_vm7, %v2787_v19, %v3044_v10  ;;  %v2463_v35 = vadd.f32 %v2462_v36, %v14666_v52  ;;  %v2673_v24 = vadd.f32 %v2672_v63, %v2671_v44  ;;  %v2681_v34 = vadd.f32 %v14672_v60, %v14671_v61  ;;  %v8813_v23 = vld [vmem:[#allocation8 + $0xf64] ss:$16 sps:$4 sm:$0xff]   ;;  %v6551_v19 = vpop.f32.mrb[11].mxu0  ;;  %v8826_v33 = vld [vmem:[#allocation8 + $0xdc0] ss:$16 sps:$4 sm:$0xff]  }
 0x3ff   :  { %v2571_v40 = vadd.f32 %v14669_v48, %v14668_v37  ;;  %v3046_v15 = vsel %vm2887_vm8, %v2795_v0, %v3045_v16  ;;  %v2517_v56 = vadd.f32 %v2516_v7, %v14667_v41  ;;  %v2811_v42 = vmul.f32 0.0625, %v2729_v21  ;;  %6695 = vmatpush1.bf16.msra.mxu0 %v8799_v5  ;;  %v8811_v36 = vld [vmem:[#allocation8 + $0xf60] ss:$16 sps:$4 sm:$0xff]   ;;  %v8834_v39 = vld [vmem:[#allocation8 + $0xde4] ss:$16 sps:$4 sm:$0xff]  }
 0x400   :  { %v2627_v46 = vadd.f32 %v2626_v25, %v14670_v1  ;;  %v2738_v58 = vrot.slane %v14673_v53, 4  ;;  %v2803_v28 = vmul.f32 0.0625, %v2673_v24  ;;  %v2682_v11 = vrot.slane %v2681_v34, 4  ;;  %6696 = vmatprep.subr.bf16.mxu0 %v8807_v38  ;;  %6662 = vmatpush1.bf16.msra.mxu1 %v8820_v50  ;;  %v8819_v7 = vld [vmem:[#allocation8 + $0xf84] ss:$16 sps:$4 sm:$0xff]  }
 0x401   :  { %v2572_v3 = vrot.slane %v2571_v40, 2  ;;  %v2518_v62 = vrot.slane %v2517_v56, 1  ;;  %v2757_v20 = vmul.f32 0.0625, %v2351_v57  ;;  %v2765_v4 = vmul.f32 0.0625, %v2407_v26  ;;  %6663 = vmatprep.subr.bf16.mxu1 %v8828_v27  ;;  %v14674_v21 = vld [vmem:[#allocation70_spill] sm:$0xff] }
 0x402   :  { %v2628_v45 = vrot.slane %v2627_v46, 2  ;;  %v2739_v17 = vadd.f32 %v2738_v58, %v14673_v53  ;;  %v3047_v51 = vsel %vm2889_vm9, %v2803_v28, %v3046_v15  ;;  %v2683_v59 = vadd.f32 %v2682_v11, %v2681_v34  ;;  %v14675_v37 = vld [vmem:[#allocation54_spill] sm:$0xff]  ;;  %v8838_v53 = vld [vmem:[#allocation8 + $0x8] ss:$16 sps:$4 sm:$0xff]   ;;  %v8846_v28 = vld [vmem:[#allocation8 + $0x2c] ss:$16 sps:$4 sm:$0xff]  }
 0x403   :  { %v2573_v8 = vadd.f32 %v2572_v3, %v2571_v40  ;;  %v2519_v30 = vadd.f32 %v2518_v62, %v2517_v56  ;;  %v2773_v44 = vmul.f32 0.0625, %v2463_v35  ;;  %v3048_v57 = vsel %vm2891_vm10, %v2811_v42, %v3047_v51  ;;  %6697 = vmatpush1.bf16.msra.mxu0 %v8805_v2  ;;  %v8832_v38 = vld [vmem:[#allocation8 + $0xde0] ss:$16 sps:$4 sm:$0xff]   ;;  %v8840_v2 = vld [vmem:[#allocation8 + $0xc] ss:$16 sps:$4 sm:$0xff]  }
 0x404   :  { %v2629_v13 = vadd.f32 %v2628_v45, %v2627_v46  ;;  %v2740_v10 = vrot.slane %v2739_v17, 2  ;;  %v2684_v43 = vrot.slane %v2683_v59, 2  ;;  %v3056_v26 = vsel %vm2879_vm4, %v2765_v4, %v2757_v20  ;;  %6698 = vmatprep.subr.bf16.mxu0 %v8813_v23  ;;  %6664 = vmatpush1.bf16.msra.mxu1 %v8826_v33  ;;  %v8817_v61 = vld [vmem:[#allocation8 + $0xf80] ss:$16 sps:$4 sm:$0xff]   ;;  %v8831_v62 = vld [vmem:[#allocation8 + $0xfc4] ss:$16 sps:$4 sm:$0xff]  }
 0x405   :  { %v2574_v6 = vrot.slane %v2573_v8, 1  ;;  %v2781_v52 = vmul.f32 0.0625, %v2519_v30  ;;  %v3057_v41 = vsel %vm2881_vm5, %v2773_v44, %v3056_v26  ;;  %v6506_v35 = vadd.f32 %v14674_v21, %v13248_v49  ;;  %6665 = vmatprep.subr.bf16.mxu1 %v8834_v39  ;;  %v8823_v58 = vld [vmem:[#allocation8 + $0xfa0] ss:$16 sps:$4 sm:$0xff]   ;;  %v8844_v27 = vld [vmem:[#allocation8 + $0x28] ss:$16 sps:$4 sm:$0xff]  }
 0x406   :  { %v2630_v0 = vrot.slane %v2629_v13, 1  ;;  %v2741_v16 = vadd.f32 %v2740_v10, %v2739_v17  ;;  %v2685_v5 = vadd.f32 %v2684_v43, %v2683_v59  ;;  %v6508_v48 = vadd.f32 %v14675_v37, %v13253_v31  ;;  %v8825_v31 = vld [vmem:[#allocation8 + $0xfa4] ss:$16 sps:$4 sm:$0xff]   ;;  %v8852_v45 = vld [vmem:[#allocation8 + $0x4c] ss:$16 sps:$4 sm:$0xff]  }
 0x407   :  { %v2575_v63 = vadd.f32 %v2574_v6, %v2573_v8  ;;  %v3058_v54 = vsel %vm2883_vm6, %v2781_v52, %v3057_v41  ;;  %v13316_v15 = vadd.f32 %v6546_v32, %v6506_v35  ;;  %6699 = vmatpush1.bf16.msra.mxu0 %v8811_v36  ;;  %v13322_v32 = vpack.c.bf16 %v3048_v57, %v3048_v57  ;;  %v8829_v8 = vld [vmem:[#allocation8 + $0xfc0] ss:$16 sps:$4 sm:$0xff]   ;;  %v8837_v17 = vld [vmem:[#allocation8 + $0xfe4] ss:$16 sps:$4 sm:$0xff]   ;;  %v8850_v4 = vld [vmem:[#allocation8 + $0x48] ss:$16 sps:$4 sm:$0xff]  }
 0x408   :  { %v2631_v40 = vadd.f32 %v2630_v0, %v2629_v13  ;;  %v2742_v1 = vrot.slane %v2741_v16, 1  ;;  %v2686_v24 = vrot.slane %v2685_v5, 1  ;;  %v13318_v56 = vadd.f32 %v6548_v29, %v6508_v48  ;;  %6700 = vmatprep.subr.bf16.mxu0 %v8819_v7  ;;  %6666 = vmatpush1.bf16.msra.mxu1 %v8832_v38  ;;  %v14676_v29 = vld [vmem:[#allocation37_spill] sm:$0xff]  ;;  %v8835_v47 = vld [vmem:[#allocation8 + $0xfe0] ss:$16 sps:$4 sm:$0xff]   ;;  %v14677_v13 = vld [vmem:[#allocation63_spill] sm:$0xff] }
 0x409   :  { %v2789_v25 = vmul.f32 0.0625, %v2575_v63  ;;  %6717 = vmatprep.subr.bf16.mxu1 %v8840_v2  ;;  %v8858_v23 = vld [vmem:[#allocation8 + $0x6c] ss:$16 sps:$4 sm:$0xff]   ;;  %v8856_v30 = vld [vmem:[#allocation8 + $0x68] ss:$16 sps:$4 sm:$0xff]  }
 0x40a   :  { %v2743_v60 = vadd.f32 %v2742_v1, %v2741_v16  ;;  %v2797_v34 = vmul.f32 0.0625, %v2631_v40  ;;  %v2687_v50 = vadd.f32 %v2686_v24, %v2685_v5  ;;  %v8843_v51 = vld [vmem:[#allocation8 + $0x20c] ss:$16 sps:$4 sm:$0xff]   ;;  %v8841_v59 = vld [vmem:[#allocation8 + $0x208] ss:$16 sps:$4 sm:$0xff]  }
 0x40b   :  { %v3059_v49 = vsel %vm2885_vm7, %v2789_v25, %v3058_v54  ;;  %6701 = vmatpush1.bf16.msra.mxu0 %v8817_v61  ;;  %6668 = vmatmul.mubr.bf16.vlgmr.msra.gmra.mrb[20].mxu1 %v13322_v32  ;;  %v8849_v19 = vld [vmem:[#allocation8 + $0x22c] ss:$16 sps:$4 sm:$0xff]   ;;  %v8862_v6 = vld [vmem:[#allocation8 + $0x88] ss:$16 sps:$4 sm:$0xff]  }
 0x40c   :  { %v2813_v42 = vmul.f32 0.0625, %v2743_v60  ;;  %v3060_v3 = vsel %vm2887_vm8, %v2797_v34, %v3059_v49  ;;  %v2805_v46 = vmul.f32 0.0625, %v2687_v50  ;;  %6702 = vmatprep.subr.bf16.mxu0 %v8825_v31  ;;  %6718 = vmatpush1.bf16.msra.mxu1 %v8838_v53  ;;  %v8864_v57 = vld [vmem:[#allocation8 + $0x8c] ss:$16 sps:$4 sm:$0xff]   ;;  %v8847_v10 = vld [vmem:[#allocation8 + $0x228] ss:$16 sps:$4 sm:$0xff]  }
 0x40d   :  { %6749 = vmatprep.mubr.bf16.mxu1 %v14676_v29  ;;  %6719 = vmatprep.subr.bf16.mxu1 %v8846_v28  ;;  %v8870_v33 = vld [vmem:[#allocation8 + $0xac] ss:$16 sps:$4 sm:$0xff]   ;;  %v8868_v52 = vld [vmem:[#allocation8 + $0xa8] ss:$16 sps:$4 sm:$0xff]  }
 0x40e   :  { %v3061_v11 = vsel %vm2889_vm9, %v2805_v46, %v3060_v3  ;;  %v8855_v43 = vld [vmem:[#allocation8 + $0x24c] ss:$16 sps:$4 sm:$0xff]   ;;  %v8853_v26 = vld [vmem:[#allocation8 + $0x248] ss:$16 sps:$4 sm:$0xff]  }
 0x40f   :  { %v3062_v20 = vsel %vm2891_vm10, %v2813_v42, %v3061_v11  ;;  %6703 = vmatpush1.bf16.msra.mxu0 %v8823_v58  ;;  %v8876_v36 = vld [vmem:[#allocation8 + $0xcc] ss:$16 sps:$4 sm:$0xff]   ;;  %v8874_v63 = vld [vmem:[#allocation8 + $0xc8] ss:$16 sps:$4 sm:$0xff]  }
 0x410   :  { %6704 = vmatprep.subr.bf16.mxu0 %v8831_v62  ;;  %6720 = vmatpush1.bf16.msra.mxu1 %v8844_v27  ;;  %v13328_v44 = vpack.c.bf16 %v3062_v20, %v3062_v20  ;;  %v8861_v39 = vld [vmem:[#allocation8 + $0x26c] ss:$16 sps:$4 sm:$0xff]   ;;  %v8859_v0 = vld [vmem:[#allocation8 + $0x268] ss:$16 sps:$4 sm:$0xff]  }
 0x411   :  { %6721 = vmatprep.subr.bf16.mxu1 %v8852_v45  ;;  %v8882_v16 = vld [vmem:[#allocation8 + $0xec] ss:$16 sps:$4 sm:$0xff]   ;;  %v8880_v7 = vld [vmem:[#allocation8 + $0xe8] ss:$16 sps:$4 sm:$0xff]  }
 0x412   :  { %v8867_v41 = vld [vmem:[#allocation8 + $0x28c] ss:$16 sps:$4 sm:$0xff]   ;;  %v8865_v5 = vld [vmem:[#allocation8 + $0x288] ss:$16 sps:$4 sm:$0xff]  }
 0x413   :  { %6705 = vmatpush1.bf16.msra.mxu0 %v8829_v8  ;;  %v8888_v54 = vld [vmem:[#allocation8 + $0x10c] ss:$16 sps:$4 sm:$0xff]   ;;  %v8886_v35 = vld [vmem:[#allocation8 + $0x108] ss:$16 sps:$4 sm:$0xff]  }
 0x414   :  { %6706 = vmatprep.subr.bf16.mxu0 %v8837_v17  ;;  %6722 = vmatpush1.bf16.msra.mxu1 %v8850_v4  ;;  %v8873_v21 = vld [vmem:[#allocation8 + $0x2ac] ss:$16 sps:$4 sm:$0xff]   ;;  %v8871_v37 = vld [vmem:[#allocation8 + $0x2a8] ss:$16 sps:$4 sm:$0xff]  }
 0x415   :  { %6723 = vmatprep.subr.bf16.mxu1 %v8858_v23  ;;  %v8894_v48 = vld [vmem:[#allocation8 + $0x12c] ss:$16 sps:$4 sm:$0xff]   ;;  %v8892_v1 = vld [vmem:[#allocation8 + $0x128] ss:$16 sps:$4 sm:$0xff]  }
 0x416   :  { %v8879_v40 = vld [vmem:[#allocation8 + $0x2cc] ss:$16 sps:$4 sm:$0xff]   ;;  %v8877_v25 = vld [vmem:[#allocation8 + $0x2c8] ss:$16 sps:$4 sm:$0xff]  }
 0x417   :  { %6707 = vmatpush1.bf16.msra.mxu0 %v8835_v47  ;;  %v8900_v38 = vld [vmem:[#allocation8 + $0x14c] ss:$16 sps:$4 sm:$0xff]   ;;  %v8898_v61 = vld [vmem:[#allocation8 + $0x148] ss:$16 sps:$4 sm:$0xff]  }
 0x418   :  { %6758 = vmatprep.subr.bf16.mxu0 %v8843_v51  ;;  %6724 = vmatpush1.bf16.msra.mxu1 %v8856_v30  ;;  %v8885_v24 = vld [vmem:[#allocation8 + $0x2ec] ss:$16 sps:$4 sm:$0xff]   ;;  %v8883_v60 = vld [vmem:[#allocation8 + $0x2e8] ss:$16 sps:$4 sm:$0xff]  }
 0x419   :  { %6725 = vmatprep.subr.bf16.mxu1 %v8864_v57  ;;  %v8906_v34 = vld [vmem:[#allocation8 + $0x16c] ss:$16 sps:$4 sm:$0xff]   ;;  %v8904_v2 = vld [vmem:[#allocation8 + $0x168] ss:$16 sps:$4 sm:$0xff]  }
 0x41a   :  { %6709 = vmatmul.mubr.bf16.vlgmr.msra.gmra.mrb[16].mxu0 %v13328_v44  ;;  %v8891_v49 = vld [vmem:[#allocation8 + $0x30c] ss:$16 sps:$4 sm:$0xff]   ;;  %v8889_v31 = vld [vmem:[#allocation8 + $0x308] ss:$16 sps:$4 sm:$0xff]  }
 0x41b   :  { %6759 = vmatpush1.bf16.msra.mxu0 %v8841_v59  ;;  %6790 = vmatprep.mubr.bf16.mxu0 %v14677_v13  ;;  %v8912_v50 = vld [vmem:[#allocation8 + $0x18c] ss:$16 sps:$4 sm:$0xff]   ;;  %v8910_v3 = vld [vmem:[#allocation8 + $0x188] ss:$16 sps:$4 sm:$0xff]  }
 0x41c   :  { %6760 = vmatprep.subr.bf16.mxu0 %v8849_v19  ;;  %6726 = vmatpush1.bf16.msra.mxu1 %v8862_v6  ;;  %v8897_v42 = vld [vmem:[#allocation8 + $0x32c] ss:$16 sps:$4 sm:$0xff]   ;;  %v8895_v46 = vld [vmem:[#allocation8 + $0x328] ss:$16 sps:$4 sm:$0xff]   ;;  %v14679_v6 = vld [vmem:[#allocation38_spill] sm:$0xff] }
 0x41d   :  { %6727 = vmatprep.subr.bf16.mxu1 %v8870_v33  ;;  %v8918_v53 = vld [vmem:[#allocation8 + $0x1ac] ss:$16 sps:$4 sm:$0xff]   ;;  %v8916_v28 = vld [vmem:[#allocation8 + $0x1a8] ss:$16 sps:$4 sm:$0xff]  }
 0x41e   :  { %v8903_v58 = vld [vmem:[#allocation8 + $0x34c] ss:$16 sps:$4 sm:$0xff]   ;;  %v8901_v62 = vld [vmem:[#allocation8 + $0x348] ss:$16 sps:$4 sm:$0xff]  }
 0x41f   :  { %6761 = vmatpush1.bf16.msra.mxu0 %v8847_v10  ;;  %v8924_v11 = vld [vmem:[#allocation8 + $0x1cc] ss:$16 sps:$4 sm:$0xff]   ;;  %v8922_v29 = vld [vmem:[#allocation8 + $0x1c8] ss:$16 sps:$4 sm:$0xff]  }
 0x420   :  { %6762 = vmatprep.subr.bf16.mxu0 %v8855_v43  ;;  %6728 = vmatpush1.bf16.msra.mxu1 %v8868_v52  ;;  %v8909_v20 = vld [vmem:[#allocation8 + $0x36c] ss:$16 sps:$4 sm:$0xff]   ;;  %v8907_v27 = vld [vmem:[#allocation8 + $0x368] ss:$16 sps:$4 sm:$0xff]  }
 0x421   :  { %6729 = vmatprep.subr.bf16.mxu1 %v8876_v36  ;;  %v8930_v8 = vld [vmem:[#allocation8 + $0x1ec] ss:$16 sps:$4 sm:$0xff]   ;;  %v8928_v17 = vld [vmem:[#allocation8 + $0x1e8] ss:$16 sps:$4 sm:$0xff]  }
 0x422   :  { %v8915_v45 = vld [vmem:[#allocation8 + $0x38c] ss:$16 sps:$4 sm:$0xff]   ;;  %v8913_v4 = vld [vmem:[#allocation8 + $0x388] ss:$16 sps:$4 sm:$0xff]  }
 0x423   :  { %6763 = vmatpush1.bf16.msra.mxu0 %v8853_v26  ;;  %v8936_v47 = vld [vmem:[#allocation8 + $0x40c] ss:$16 sps:$4 sm:$0xff]   ;;  %v8934_v51 = vld [vmem:[#allocation8 + $0x408] ss:$16 sps:$4 sm:$0xff]  }
 0x424   :  { %6764 = vmatprep.subr.bf16.mxu0 %v8861_v39  ;;  %6730 = vmatpush1.bf16.msra.mxu1 %v8874_v63  ;;  %v8921_v23 = vld [vmem:[#allocation8 + $0x3ac] ss:$16 sps:$4 sm:$0xff]   ;;  %v8919_v30 = vld [vmem:[#allocation8 + $0x3a8] ss:$16 sps:$4 sm:$0xff]  }
 0x425   :  { %6731 = vmatprep.subr.bf16.mxu1 %v8882_v16  ;;  %v8942_v59 = vld [vmem:[#allocation8 + $0x42c] ss:$16 sps:$4 sm:$0xff]   ;;  %v8940_v13 = vld [vmem:[#allocation8 + $0x428] ss:$16 sps:$4 sm:$0xff]  }
 0x426   :  { %v8927_v19 = vld [vmem:[#allocation8 + $0x3cc] ss:$16 sps:$4 sm:$0xff]   ;;  %v8925_v10 = vld [vmem:[#allocation8 + $0x3c8] ss:$16 sps:$4 sm:$0xff]  }
 0x427   :  { %6765 = vmatpush1.bf16.msra.mxu0 %v8859_v0  ;;  %v14678_v57 = vld [vmem:[#allocation61_spill] sm:$0xff] }
 0x428   :  { %6766 = vmatprep.subr.bf16.mxu0 %v8867_v41  ;;  %6732 = vmatpush1.bf16.msra.mxu1 %v8880_v7  ;;  %v8948_v33 = vld [vmem:[#allocation8 + $0x44c] ss:$16 sps:$4 sm:$0xff]   ;;  %v8946_v52 = vld [vmem:[#allocation8 + $0x448] ss:$16 sps:$4 sm:$0xff]   ;;  %v14680_v7 = vld [vmem:[#allocation64_spill] sm:$0xff] }
 0x429   :  { %6733 = vmatprep.subr.bf16.mxu1 %v8888_v54  ;;  %v8933_v43 = vld [vmem:[#allocation8 + $0x3ec] ss:$16 sps:$4 sm:$0xff]   ;;  %v8931_v26 = vld [vmem:[#allocation8 + $0x3e8] ss:$16 sps:$4 sm:$0xff]  }
 0x42a   :  { %v8954_v36 = vld [vmem:[#allocation8 + $0x46c] ss:$16 sps:$4 sm:$0xff]   ;;  %v8952_v63 = vld [vmem:[#allocation8 + $0x468] ss:$16 sps:$4 sm:$0xff]  }
 0x42b   :  { %6767 = vmatpush1.bf16.msra.mxu0 %v8865_v5  ;;  %v8939_v39 = vld [vmem:[#allocation8 + $0x60c] ss:$16 sps:$4 sm:$0xff]   ;;  %v8937_v0 = vld [vmem:[#allocation8 + $0x608] ss:$16 sps:$4 sm:$0xff]  }
 0x42c   :  { %6768 = vmatprep.subr.bf16.mxu0 %v8873_v21  ;;  %6734 = vmatpush1.bf16.msra.mxu1 %v8886_v35  ;;  %v8945_v16 = vld [vmem:[#allocation8 + $0x62c] ss:$16 sps:$4 sm:$0xff]   ;;  %v8958_v5 = vld [vmem:[#allocation8 + $0x488] ss:$16 sps:$4 sm:$0xff]  }
 0x42d   :  { %6735 = vmatprep.subr.bf16.mxu1 %v8894_v48  ;;  %v8960_v41 = vld [vmem:[#allocation8 + $0x48c] ss:$16 sps:$4 sm:$0xff]   ;;  %v8943_v21 = vld [vmem:[#allocation8 + $0x628] ss:$16 sps:$4 sm:$0xff]  }
 0x42e   :  { %v14681_v54 = vld [vmem:[#allocation65_spill] sm:$0xff] }
 0x42f   :  { %6769 = vmatpush1.bf16.msra.mxu0 %v8871_v37  ;;  %v8966_v35 = vld [vmem:[#allocation8 + $0x4ac] ss:$16 sps:$4 sm:$0xff]   ;;  %v8964_v48 = vld [vmem:[#allocation8 + $0x4a8] ss:$16 sps:$4 sm:$0xff]  }
 0x430   :  { %6770 = vmatprep.subr.bf16.mxu0 %v8879_v40  ;;  %6736 = vmatpush1.bf16.msra.mxu1 %v8892_v1  ;;  %v8951_v37 = vld [vmem:[#allocation8 + $0x64c] ss:$16 sps:$4 sm:$0xff]   ;;  %v8949_v40 = vld [vmem:[#allocation8 + $0x648] ss:$16 sps:$4 sm:$0xff]  }
 0x431   :  { %6737 = vmatprep.subr.bf16.mxu1 %v8900_v38  ;;  %v8972_v1 = vld [vmem:[#allocation8 + $0x4cc] ss:$16 sps:$4 sm:$0xff]   ;;  %v8970_v38 = vld [vmem:[#allocation8 + $0x4c8] ss:$16 sps:$4 sm:$0xff]  }
 0x433   :  { %6771 = vmatpush1.bf16.msra.mxu0 %v8877_v25  ;;  %v8957_v25 = vld [vmem:[#allocation8 + $0x66c] ss:$16 sps:$4 sm:$0xff]  }
 0x434   :  { %6772 = vmatprep.subr.bf16.mxu0 %v8885_v24  ;;  %6738 = vmatpush1.bf16.msra.mxu1 %v8898_v61  ;;  %v8955_v24 = vld [vmem:[#allocation8 + $0x668] ss:$16 sps:$4 sm:$0xff]   ;;  %v8978_v61 = vld [vmem:[#allocation8 + $0x4ec] ss:$16 sps:$4 sm:$0xff]  }
 0x435   :  { %6739 = vmatprep.subr.bf16.mxu1 %v8906_v34  ;;  %v8976_v34 = vld [vmem:[#allocation8 + $0x4e8] ss:$16 sps:$4 sm:$0xff]  }
 0x437   :  { %6773 = vmatpush1.bf16.msra.mxu0 %v8883_v60  ;;  %v8963_v60 = vld [vmem:[#allocation8 + $0x68c] ss:$16 sps:$4 sm:$0xff]  }
 0x438   :  { %6774 = vmatprep.subr.bf16.mxu0 %v8891_v49  ;;  %6740 = vmatpush1.bf16.msra.mxu1 %v8904_v2  ;;  %v8961_v49 = vld [vmem:[#allocation8 + $0x688] ss:$16 sps:$4 sm:$0xff]   ;;  %v8984_v2 = vld [vmem:[#allocation8 + $0x50c] ss:$16 sps:$4 sm:$0xff]  }
 0x439   :  { %6741 = vmatprep.subr.bf16.mxu1 %v8912_v50  ;;  %v8982_v50 = vld [vmem:[#allocation8 + $0x508] ss:$16 sps:$4 sm:$0xff]  }
 0x43b   :  { %6775 = vmatpush1.bf16.msra.mxu0 %v8889_v31  ;;  %v8969_v31 = vld [vmem:[#allocation8 + $0x6ac] ss:$16 sps:$4 sm:$0xff]  }
 0x43c   :  { %6776 = vmatprep.subr.bf16.mxu0 %v8897_v42  ;;  %6742 = vmatpush1.bf16.msra.mxu1 %v8910_v3  ;;  %v8967_v42 = vld [vmem:[#allocation8 + $0x6a8] ss:$16 sps:$4 sm:$0xff]   ;;  %v8990_v3 = vld [vmem:[#allocation8 + $0x52c] ss:$16 sps:$4 sm:$0xff]  }
 0x43d   :  { %6743 = vmatprep.subr.bf16.mxu1 %v8918_v53  ;;  %v8988_v53 = vld [vmem:[#allocation8 + $0x528] ss:$16 sps:$4 sm:$0xff]  }
 0x43f   :  { %6777 = vmatpush1.bf16.msra.mxu0 %v8895_v46  ;;  %v8975_v46 = vld [vmem:[#allocation8 + $0x6cc] ss:$16 sps:$4 sm:$0xff]  }
 0x440   :  { %6778 = vmatprep.subr.bf16.mxu0 %v8903_v58  ;;  %6744 = vmatpush1.bf16.msra.mxu1 %v8916_v28  ;;  %v8973_v58 = vld [vmem:[#allocation8 + $0x6c8] ss:$16 sps:$4 sm:$0xff]   ;;  %v8996_v28 = vld [vmem:[#allocation8 + $0x54c] ss:$16 sps:$4 sm:$0xff]  }
 0x441   :  { %6745 = vmatprep.subr.bf16.mxu1 %v8924_v11  ;;  %v8994_v11 = vld [vmem:[#allocation8 + $0x548] ss:$16 sps:$4 sm:$0xff]  }
 0x443   :  { %6779 = vmatpush1.bf16.msra.mxu0 %v8901_v62  ;;  %v8981_v62 = vld [vmem:[#allocation8 + $0x6ec] ss:$16 sps:$4 sm:$0xff]  }
 0x444   :  { %6780 = vmatprep.subr.bf16.mxu0 %v8909_v20  ;;  %6746 = vmatpush1.bf16.msra.mxu1 %v8922_v29  ;;  %v8979_v20 = vld [vmem:[#allocation8 + $0x6e8] ss:$16 sps:$4 sm:$0xff]   ;;  %v9002_v29 = vld [vmem:[#allocation8 + $0x56c] ss:$16 sps:$4 sm:$0xff]  }
 0x445   :  { %6747 = vmatprep.subr.bf16.mxu1 %v8930_v8  ;;  %v9000_v8 = vld [vmem:[#allocation8 + $0x568] ss:$16 sps:$4 sm:$0xff]  }
 0x447   :  { %6781 = vmatpush1.bf16.msra.mxu0 %v8907_v27  ;;  %v8987_v27 = vld [vmem:[#allocation8 + $0x70c] ss:$16 sps:$4 sm:$0xff]  }
 0x448   :  { %6782 = vmatprep.subr.bf16.mxu0 %v8915_v45  ;;  %6748 = vmatpush1.bf16.msra.mxu1 %v8928_v17  ;;  %v8985_v45 = vld [vmem:[#allocation8 + $0x708] ss:$16 sps:$4 sm:$0xff]   ;;  %v9008_v17 = vld [vmem:[#allocation8 + $0x58c] ss:$16 sps:$4 sm:$0xff]  }
 0x449   :  { %6799 = vmatprep.subr.bf16.mxu1 %v8936_v47  ;;  %v9006_v47 = vld [vmem:[#allocation8 + $0x588] ss:$16 sps:$4 sm:$0xff]  }
 0x44b   :  { %6783 = vmatpush1.bf16.msra.mxu0 %v8913_v4  ;;  %6750 = vmatmul.mubr.bf16.vlgmr.msra.gmra.mrb[24].mxu1 %v14678_v57  ;;  %v8993_v4 = vld [vmem:[#allocation8 + $0x72c] ss:$16 sps:$4 sm:$0xff]  }
 0x44c   :  { %6784 = vmatprep.subr.bf16.mxu0 %v8921_v23  ;;  %6800 = vmatpush1.bf16.msra.mxu1 %v8934_v51  ;;  %v8991_v23 = vld [vmem:[#allocation8 + $0x728] ss:$16 sps:$4 sm:$0xff]   ;;  %v9014_v51 = vld [vmem:[#allocation8 + $0x5ac] ss:$16 sps:$4 sm:$0xff]  }
 0x44d   :  { %6831 = vmatprep.mubr.bf16.mxu1 %v14679_v6  ;;  %6801 = vmatprep.subr.bf16.mxu1 %v8942_v59  ;;  %v9012_v59 = vld [vmem:[#allocation8 + $0x5a8] ss:$16 sps:$4 sm:$0xff]   ;;  %v9020_v57 = vld [vmem:[#allocation8 + $0x5cc] ss:$16 sps:$4 sm:$0xff]  }
 0x44e   :  { %v9005_v6 = vld [vmem:[#allocation8 + $0x76c] ss:$16 sps:$4 sm:$0xff]  }
 0x44f   :  { %6785 = vmatpush1.bf16.msra.mxu0 %v8919_v30  ;;  %v8999_v30 = vld [vmem:[#allocation8 + $0x74c] ss:$16 sps:$4 sm:$0xff]  }
 0x450   :  { %6786 = vmatprep.subr.bf16.mxu0 %v8927_v19  ;;  %6802 = vmatpush1.bf16.msra.mxu1 %v8940_v13  ;;  %v8997_v19 = vld [vmem:[#allocation8 + $0x748] ss:$16 sps:$4 sm:$0xff]  }
 0x451   :  { %6803 = vmatprep.subr.bf16.mxu1 %v8948_v33  ;;  %v9018_v13 = vld [vmem:[#allocation8 + $0x5c8] ss:$16 sps:$4 sm:$0xff]   ;;  %v9026_v33 = vld [vmem:[#allocation8 + $0x5ec] ss:$16 sps:$4 sm:$0xff]  }
 0x453   :  { %6787 = vmatpush1.bf16.msra.mxu0 %v8925_v10  ;;  %v9003_v10 = vld [vmem:[#allocation8 + $0x768] ss:$16 sps:$4 sm:$0xff]  }
 0x454   :  { %6788 = vmatprep.subr.bf16.mxu0 %v8933_v43  ;;  %6804 = vmatpush1.bf16.msra.mxu1 %v8946_v52  ;;  %v9011_v43 = vld [vmem:[#allocation8 + $0x78c] ss:$16 sps:$4 sm:$0xff]   ;;  %v9024_v52 = vld [vmem:[#allocation8 + $0x5e8] ss:$16 sps:$4 sm:$0xff]  }
 0x455   :  { %6805 = vmatprep.subr.bf16.mxu1 %v8954_v36  ;;  %v9032_v36 = vld [vmem:[#allocation8 + $0x80c] ss:$16 sps:$4 sm:$0xff]  }
 0x457   :  { %6789 = vmatpush1.bf16.msra.mxu0 %v8931_v26  ;;  %v9009_v26 = vld [vmem:[#allocation8 + $0x788] ss:$16 sps:$4 sm:$0xff]  }
 0x458   :  { %6840 = vmatprep.subr.bf16.mxu0 %v8939_v39  ;;  %6806 = vmatpush1.bf16.msra.mxu1 %v8952_v63  ;;  %v9017_v39 = vld [vmem:[#allocation8 + $0x7ac] ss:$16 sps:$4 sm:$0xff]   ;;  %v9030_v63 = vld [vmem:[#allocation8 + $0x808] ss:$16 sps:$4 sm:$0xff]  }
 0x459   :  { %6807 = vmatprep.subr.bf16.mxu1 %v8960_v41  ;;  %v9023_v41 = vld [vmem:[#allocation8 + $0x7cc] ss:$16 sps:$4 sm:$0xff]  }
 0x45a   :  { %6791 = vmatmul.mubr.bf16.vlgmr.msra.gmra.mrb[20].mxu0 %v14680_v7  ;;  %v14682_v7 = vld [vmem:[#allocation59_spill] sm:$0xff] }
 0x45b   :  { %6841 = vmatpush1.bf16.msra.mxu0 %v8937_v0  ;;  %6872 = vmatprep.mubr.bf16.mxu0 %v14681_v54  ;;  %v9015_v0 = vld [vmem:[#allocation8 + $0x7a8] ss:$16 sps:$4 sm:$0xff]  }
 0x45c   :  { %6842 = vmatprep.subr.bf16.mxu0 %v8945_v16  ;;  %6808 = vmatpush1.bf16.msra.mxu1 %v8958_v5  ;;  %v9038_v16 = vld [vmem:[#allocation8 + $0x82c] ss:$16 sps:$4 sm:$0xff]   ;;  %v9036_v5 = vld [vmem:[#allocation8 + $0x828] ss:$16 sps:$4 sm:$0xff]  }
 0x45d   :  { %6809 = vmatprep.subr.bf16.mxu1 %v8966_v35  ;;  %v9021_v54 = vld [vmem:[#allocation8 + $0x7c8] ss:$16 sps:$4 sm:$0xff]   ;;  %v9029_v35 = vld [vmem:[#allocation8 + $0x7ec] ss:$16 sps:$4 sm:$0xff]  }
 0x45f   :  { %6843 = vmatpush1.bf16.msra.mxu0 %v8943_v21  ;;  %v9044_v21 = vld [vmem:[#allocation8 + $0x84c] ss:$16 sps:$4 sm:$0xff]  }
 0x460   :  { %6844 = vmatprep.subr.bf16.mxu0 %v8951_v37  ;;  %6810 = vmatpush1.bf16.msra.mxu1 %v8964_v48  ;;  %v9042_v37 = vld [vmem:[#allocation8 + $0x848] ss:$16 sps:$4 sm:$0xff]  }
 0x461   :  { %6811 = vmatprep.subr.bf16.mxu1 %v8972_v1  ;;  %v9027_v48 = vld [vmem:[#allocation8 + $0x7e8] ss:$16 sps:$4 sm:$0xff]   ;;  %v9035_v1 = vld [vmem:[#allocation8 + $0xa0c] ss:$16 sps:$4 sm:$0xff]  }
 0x463   :  { %6845 = vmatpush1.bf16.msra.mxu0 %v8949_v40  ;;  %v9050_v40 = vld [vmem:[#allocation8 + $0x86c] ss:$16 sps:$4 sm:$0xff]  }
 0x464   :  { %6846 = vmatprep.subr.bf16.mxu0 %v8957_v25  ;;  %6812 = vmatpush1.bf16.msra.mxu1 %v8970_v38  ;;  %v9048_v25 = vld [vmem:[#allocation8 + $0x868] ss:$16 sps:$4 sm:$0xff]  }
 0x465   :  { %6813 = vmatprep.subr.bf16.mxu1 %v8978_v61  ;;  %v9033_v38 = vld [vmem:[#allocation8 + $0xa08] ss:$16 sps:$4 sm:$0xff]   ;;  %v14683_v61 = vld [vmem:[#allocation72_spill] sm:$0xff] }
 0x467   :  { %6847 = vmatpush1.bf16.msra.mxu0 %v8955_v24  ;;  %v9056_v24 = vld [vmem:[#allocation8 + $0x88c] ss:$16 sps:$4 sm:$0xff]  }
 0x468   :  { %6848 = vmatprep.subr.bf16.mxu0 %v8963_v60  ;;  %6814 = vmatpush1.bf16.msra.mxu1 %v8976_v34  ;;  %v9054_v60 = vld [vmem:[#allocation8 + $0x888] ss:$16 sps:$4 sm:$0xff]  }
 0x469   :  { %6815 = vmatprep.subr.bf16.mxu1 %v8984_v2  ;;  %v9039_v34 = vld [vmem:[#allocation8 + $0xa28] ss:$16 sps:$4 sm:$0xff]   ;;  %v9047_v2 = vld [vmem:[#allocation8 + $0xa4c] ss:$16 sps:$4 sm:$0xff]  }
 0x46b   :  { %6849 = vmatpush1.bf16.msra.mxu0 %v8961_v49  ;;  %v9062_v49 = vld [vmem:[#allocation8 + $0x8ac] ss:$16 sps:$4 sm:$0xff]  }
 0x46c   :  { %6850 = vmatprep.subr.bf16.mxu0 %v8969_v31  ;;  %6816 = vmatpush1.bf16.msra.mxu1 %v8982_v50  ;;  %v9060_v31 = vld [vmem:[#allocation8 + $0x8a8] ss:$16 sps:$4 sm:$0xff]  }
 0x46d   :  { %6817 = vmatprep.subr.bf16.mxu1 %v8990_v3  ;;  %v9045_v50 = vld [vmem:[#allocation8 + $0xa48] ss:$16 sps:$4 sm:$0xff]   ;;  %v9053_v3 = vld [vmem:[#allocation8 + $0xa6c] ss:$16 sps:$4 sm:$0xff]  }
 0x46f   :  { %6851 = vmatpush1.bf16.msra.mxu0 %v8967_v42  ;;  %v9068_v42 = vld [vmem:[#allocation8 + $0x8cc] ss:$16 sps:$4 sm:$0xff]  }
 0x470   :  { %6852 = vmatprep.subr.bf16.mxu0 %v8975_v46  ;;  %6818 = vmatpush1.bf16.msra.mxu1 %v8988_v53 }
 0x471   :  { %6819 = vmatprep.subr.bf16.mxu1 %v8996_v28 }
 0x473   :  { %6853 = vmatpush1.bf16.msra.mxu0 %v8973_v58 }
 0x474   :  { %6854 = vmatprep.subr.bf16.mxu0 %v8981_v62  ;;  %6820 = vmatpush1.bf16.msra.mxu1 %v8994_v11  ;;  %v9066_v62 = vld [vmem:[#allocation8 + $0x8c8] ss:$16 sps:$4 sm:$0xff]  }
 0x475   :  { %6821 = vmatprep.subr.bf16.mxu1 %v9002_v29  ;;  %v9051_v11 = vld [vmem:[#allocation8 + $0xa68] ss:$16 sps:$4 sm:$0xff]   ;;  %v9074_v29 = vld [vmem:[#allocation8 + $0x8ec] ss:$16 sps:$4 sm:$0xff]  }
 0x477   :  { %6855 = vmatpush1.bf16.msra.mxu0 %v8979_v20 }
 0x478   :  { %6856 = vmatprep.subr.bf16.mxu0 %v8987_v27  ;;  %6822 = vmatpush1.bf16.msra.mxu1 %v9000_v8  ;;  %v9059_v27 = vld [vmem:[#allocation8 + $0xa8c] ss:$16 sps:$4 sm:$0xff]   ;;  %v9072_v8 = vld [vmem:[#allocation8 + $0x8e8] ss:$16 sps:$4 sm:$0xff]  }
 0x479   :  { %6823 = vmatprep.subr.bf16.mxu1 %v9008_v17  ;;  %v9080_v17 = vld [vmem:[#allocation8 + $0x90c] ss:$16 sps:$4 sm:$0xff]  }
 0x47b   :  { %6857 = vmatpush1.bf16.msra.mxu0 %v8985_v45  ;;  %v9057_v45 = vld [vmem:[#allocation8 + $0xa88] ss:$16 sps:$4 sm:$0xff]  }
 0x47c   :  { %6858 = vmatprep.subr.bf16.mxu0 %v8993_v4  ;;  %6824 = vmatpush1.bf16.msra.mxu1 %v9006_v47  ;;  %v9063_v4 = vld [vmem:[#allocation8 + $0xaa8] ss:$16 sps:$4 sm:$0xff]   ;;  %v9086_v47 = vld [vmem:[#allocation8 + $0x92c] ss:$16 sps:$4 sm:$0xff]  }
 0x47d   :  { %6825 = vmatprep.subr.bf16.mxu1 %v9014_v51 }
 0x47f   :  { %6859 = vmatpush1.bf16.msra.mxu0 %v8991_v23  ;;  %v9071_v23 = vld [vmem:[#allocation8 + $0xacc] ss:$16 sps:$4 sm:$0xff]  }
 0x480   :  { %6860 = vmatprep.subr.bf16.mxu0 %v8999_v30  ;;  %6826 = vmatpush1.bf16.msra.mxu1 %v9012_v59 }
 0x481   :  { %6827 = vmatprep.subr.bf16.mxu1 %v9020_v57 }
 0x483   :  { %6861 = vmatpush1.bf16.msra.mxu0 %v8997_v19  ;;  %v9084_v19 = vld [vmem:[#allocation8 + $0x928] ss:$16 sps:$4 sm:$0xff]  }
 0x484   :  { %6862 = vmatprep.subr.bf16.mxu0 %v9005_v6  ;;  %6828 = vmatpush1.bf16.msra.mxu1 %v9018_v13  ;;  %v9069_v13 = vld [vmem:[#allocation8 + $0xac8] ss:$16 sps:$4 sm:$0xff]  }
 0x485   :  { %6829 = vmatprep.subr.bf16.mxu1 %v9026_v33 }
 0x487   :  { %6863 = vmatpush1.bf16.msra.mxu0 %v9003_v10  ;;  %v9092_v10 = vld [vmem:[#allocation8 + $0x94c] ss:$16 sps:$4 sm:$0xff]  }
 0x488   :  { %6864 = vmatprep.subr.bf16.mxu0 %v9011_v43  ;;  %6830 = vmatpush1.bf16.msra.mxu1 %v9024_v52  ;;  %v9077_v43 = vld [vmem:[#allocation8 + $0xaec] ss:$16 sps:$4 sm:$0xff]   ;;  %v9090_v52 = vld [vmem:[#allocation8 + $0x948] ss:$16 sps:$4 sm:$0xff]  }
 0x489   :  { %6881 = vmatprep.subr.bf16.mxu1 %v9032_v36  ;;  %v9098_v36 = vld [vmem:[#allocation8 + $0x96c] ss:$16 sps:$4 sm:$0xff]  }
 0x48b   :  { %6865 = vmatpush1.bf16.msra.mxu0 %v9009_v26  ;;  %6832 = vmatmul.mubr.bf16.vlgmr.msra.gmra.mrb[28].mxu1 %v14682_v7  ;;  %v9075_v26 = vld [vmem:[#allocation8 + $0xae8] ss:$16 sps:$4 sm:$0xff]  }
 0x48c   :  { %6866 = vmatprep.subr.bf16.mxu0 %v9017_v39  ;;  %6882 = vmatpush1.bf16.msra.mxu1 %v9030_v63  ;;  %v9083_v39 = vld [vmem:[#allocation8 + $0xb0c] ss:$16 sps:$4 sm:$0xff]   ;;  %v9096_v63 = vld [vmem:[#allocation8 + $0x968] ss:$16 sps:$4 sm:$0xff]  }
 0x48d   :  { %6913 = vmatprep.mubr.bf16.mxu1 %v13115_v14  ;;  %6883 = vmatprep.subr.bf16.mxu1 %v9038_v16  ;;  %v9041_v14 = vld [vmem:[#allocation8 + $0xa2c] ss:$16 sps:$4 sm:$0xff]   ;;  %v9102_v7 = vld [vmem:[#allocation8 + $0x988] ss:$16 sps:$4 sm:$0xff]  }
 0x48e   :  { %v9104_v16 = vld [vmem:[#allocation8 + $0x98c] ss:$16 sps:$4 sm:$0xff]  }
 0x48f   :  { %6867 = vmatpush1.bf16.msra.mxu0 %v9015_v0  ;;  %v9081_v0 = vld [vmem:[#allocation8 + $0xb08] ss:$16 sps:$4 sm:$0xff]  }
 0x490   :  { %6868 = vmatprep.subr.bf16.mxu0 %v9023_v41  ;;  %6884 = vmatpush1.bf16.msra.mxu1 %v9036_v5  ;;  %v9089_v41 = vld [vmem:[#allocation8 + $0xb2c] ss:$16 sps:$4 sm:$0xff]   ;;  %v9087_v5 = vld [vmem:[#allocation8 + $0xb28] ss:$16 sps:$4 sm:$0xff]  }
 0x491   :  { %6885 = vmatprep.subr.bf16.mxu1 %v9044_v21  ;;  %v9095_v21 = vld [vmem:[#allocation8 + $0xb4c] ss:$16 sps:$4 sm:$0xff]  }
 0x493   :  { %6869 = vmatpush1.bf16.msra.mxu0 %v9021_v54  ;;  %v9110_v54 = vld [vmem:[#allocation8 + $0x9ac] ss:$16 sps:$4 sm:$0xff]  }
 0x494   :  { %6870 = vmatprep.subr.bf16.mxu0 %v9029_v35  ;;  %6886 = vmatpush1.bf16.msra.mxu1 %v9042_v37  ;;  %v9108_v35 = vld [vmem:[#allocation8 + $0x9a8] ss:$16 sps:$4 sm:$0xff]  }
 0x495   :  { %6887 = vmatprep.subr.bf16.mxu1 %v9050_v40  ;;  %v9093_v37 = vld [vmem:[#allocation8 + $0xb48] ss:$16 sps:$4 sm:$0xff]   ;;  %v9101_v40 = vld [vmem:[#allocation8 + $0xb6c] ss:$16 sps:$4 sm:$0xff]  }
 0x497   :  { %6871 = vmatpush1.bf16.msra.mxu0 %v9027_v48  ;;  %v9116_v48 = vld [vmem:[#allocation8 + $0x9cc] ss:$16 sps:$4 sm:$0xff]  }
 0x498   :  { %6922 = vmatprep.subr.bf16.mxu0 %v9035_v1  ;;  %6888 = vmatpush1.bf16.msra.mxu1 %v9048_v25  ;;  %v9114_v1 = vld [vmem:[#allocation8 + $0x9c8] ss:$16 sps:$4 sm:$0xff]  }
 0x499   :  { %6889 = vmatprep.subr.bf16.mxu1 %v9056_v24  ;;  %v9099_v25 = vld [vmem:[#allocation8 + $0xb68] ss:$16 sps:$4 sm:$0xff]  }
 0x49a   :  { %6873 = vmatmul.mubr.bf16.vlgmr.msra.gmra.mrb[24].mxu0 %v14683_v61  ;;  %v9120_v24 = vld [vmem:[#allocation8 + $0x9e8] ss:$16 sps:$4 sm:$0xff]  }
 0x49b   :  { %6923 = vmatpush1.bf16.msra.mxu0 %v9033_v38  ;;  %6954 = vmatprep.mubr.bf16.mxu0 %v13148_v55  ;;  %v9122_v38 = vld [vmem:[#allocation8 + $0x9ec] ss:$16 sps:$4 sm:$0xff]   ;;  %v9105_v61 = vld [vmem:[#allocation8 + $0xb88] ss:$16 sps:$4 sm:$0xff]  }
 0x49c   :  { %6924 = vmatprep.subr.bf16.mxu0 %v9041_v14  ;;  %6890 = vmatpush1.bf16.msra.mxu1 %v9054_v60  ;;  %v9107_v14 = vld [vmem:[#allocation8 + $0xb8c] ss:$16 sps:$4 sm:$0xff]  }
 0x49d   :  { %6891 = vmatprep.subr.bf16.mxu1 %v9062_v49  ;;  %v9128_v60 = vld [vmem:[#allocation8 + $0xc0c] ss:$16 sps:$4 sm:$0xff]   ;;  %v9126_v49 = vld [vmem:[#allocation8 + $0xc08] ss:$16 sps:$4 sm:$0xff]  }
 0x49e   :  { %v6587_v46 = vpop.f32.mrb[16].mxu1 }
 0x49f   :  { %6925 = vmatpush1.bf16.msra.mxu0 %v9039_v34  ;;  %v6588_v53 = vadd.f32 %v6587_v46, %v13316_v15  ;;  %v6589_v58 = vpop.f32.mrb[17].mxu1  ;;  %v9065_v15 = vld [vmem:[#allocation8 + $0xaac] ss:$16 sps:$4 sm:$0xff]  }
 0x4a0   :  { %6926 = vmatprep.subr.bf16.mxu0 %v9047_v2  ;;  %v6590_v28 = vadd.f32 %v6589_v58, %v13318_v56  ;;  %6892 = vmatpush1.bf16.msra.mxu1 %v9060_v31  ;;  %v6591_v55 = vpop.f32.mrb[18].mxu1  ;;  %v9078_v56 = vld [vmem:[#allocation8 + $0x908] ss:$16 sps:$4 sm:$0xff]   ;;  %v9113_v34 = vld [vmem:[#allocation8 + $0xbac] ss:$16 sps:$4 sm:$0xff]  }
 0x4a1   :  { %v6592_v20 = vpop.f32.mrb[19].mxu1  ;;  %6893 = vmatprep.subr.bf16.mxu1 %v9068_v42  ;;  %v9111_v2 = vld [vmem:[#allocation8 + $0xba8] ss:$16 sps:$4 sm:$0xff]   ;;  %v9134_v31 = vld [vmem:[#allocation8 + $0xc2c] ss:$16 sps:$4 sm:$0xff]  }
 0x4a2   :  { %v9132_v42 = vld [vmem:[#allocation8 + $0xc28] ss:$16 sps:$4 sm:$0xff]   ;;  %v9140_v46 = vld [vmem:[#allocation8 + $0xc4c] ss:$16 sps:$4 sm:$0xff]  }
 0x4a3   :  { %6927 = vmatpush1.bf16.msra.mxu0 %v9045_v50  ;;  %v9119_v50 = vld [vmem:[#allocation8 + $0xbcc] ss:$16 sps:$4 sm:$0xff]   ;;  %v9138_v58 = vld [vmem:[#allocation8 + $0xc48] ss:$16 sps:$4 sm:$0xff]  }
 0x4a4   :  { %6928 = vmatprep.subr.bf16.mxu0 %v9053_v3  ;;  %6894 = vmatpush1.bf16.msra.mxu1 %v9066_v62  ;;  %v9117_v3 = vld [vmem:[#allocation8 + $0xbc8] ss:$16 sps:$4 sm:$0xff]   ;;  %v9146_v55 = vld [vmem:[#allocation8 + $0xc6c] ss:$16 sps:$4 sm:$0xff]  }
 0x4a5   :  { %6895 = vmatprep.subr.bf16.mxu1 %v9074_v29  ;;  %v9131_v62 = vld [vmem:[#allocation8 + $0xe0c] ss:$16 sps:$4 sm:$0xff]   ;;  %v9150_v29 = vld [vmem:[#allocation8 + $0xc88] ss:$16 sps:$4 sm:$0xff]  }
 0x4a6   :  { %v9152_v20 = vld [vmem:[#allocation8 + $0xc8c] ss:$16 sps:$4 sm:$0xff]  }
 0x4a7   :  { %6929 = vmatpush1.bf16.msra.mxu0 %v9051_v11  ;;  %v9129_v11 = vld [vmem:[#allocation8 + $0xe08] ss:$16 sps:$4 sm:$0xff]  }
 0x4a8   :  { %6930 = vmatprep.subr.bf16.mxu0 %v9059_v27  ;;  %6896 = vmatpush1.bf16.msra.mxu1 %v9072_v8  ;;  %v9135_v27 = vld [vmem:[#allocation8 + $0xe28] ss:$16 sps:$4 sm:$0xff]   ;;  %v9158_v8 = vld [vmem:[#allocation8 + $0xcac] ss:$16 sps:$4 sm:$0xff]  }
 0x4a9   :  { %6897 = vmatprep.subr.bf16.mxu1 %v9080_v17  ;;  %v9156_v17 = vld [vmem:[#allocation8 + $0xca8] ss:$16 sps:$4 sm:$0xff]  }
 0x4ab   :  { %6931 = vmatpush1.bf16.msra.mxu0 %v9057_v45  ;;  %v9143_v45 = vld [vmem:[#allocation8 + $0xe4c] ss:$16 sps:$4 sm:$0xff]  }
 0x4ac   :  { %6932 = vmatprep.subr.bf16.mxu0 %v9065_v15  ;;  %v6628_v51 = vpop.f32.mrb[12].mxu0  ;;  %6898 = vmatpush1.bf16.msra.mxu1 %v9078_v56  ;;  %v9141_v15 = vld [vmem:[#allocation8 + $0xe48] ss:$16 sps:$4 sm:$0xff]   ;;  %v9164_v56 = vld [vmem:[#allocation8 + $0xccc] ss:$16 sps:$4 sm:$0xff]  }
 0x4ad   :  { %v13342_v30 = vadd.f32 %v6628_v51, %v6588_v53  ;;  %v6630_v59 = vpop.f32.mrb[13].mxu0  ;;  %6899 = vmatprep.subr.bf16.mxu1 %v9086_v47  ;;  %v9125_v53 = vld [vmem:[#allocation8 + $0xbec] ss:$16 sps:$4 sm:$0xff]  }
 0x4ae   :  { %v13344_v57 = vadd.f32 %v6630_v59, %v6590_v28  ;;  %v6632_v6 = vpop.f32.mrb[14].mxu0  ;;  %v9123_v28 = vld [vmem:[#allocation8 + $0xbe8] ss:$16 sps:$4 sm:$0xff]  }
 0x4af   :  { %6933 = vmatpush1.bf16.msra.mxu0 %v9063_v4  ;;  %v6633_v33 = vpop.f32.mrb[15].mxu0  ;;  %v9149_v4 = vld [vmem:[#allocation8 + $0xe6c] ss:$16 sps:$4 sm:$0xff]   ;;  %v9162_v59 = vld [vmem:[#allocation8 + $0xcc8] ss:$16 sps:$4 sm:$0xff]  }
 0x4b0   :  { %6934 = vmatprep.subr.bf16.mxu0 %v9071_v23  ;;  %6900 = vmatpush1.bf16.msra.mxu1 %v9084_v19  ;;  %v9147_v19 = vld [vmem:[#allocation8 + $0xe68] ss:$16 sps:$4 sm:$0xff]  }
 0x4b1   :  { %6901 = vmatprep.subr.bf16.mxu1 %v9092_v10  ;;  %v9155_v10 = vld [vmem:[#allocation8 + $0xe8c] ss:$16 sps:$4 sm:$0xff]   ;;  %v9168_v33 = vld [vmem:[#allocation8 + $0xce8] ss:$16 sps:$4 sm:$0xff]  }
 0x4b3   :  { %6935 = vmatpush1.bf16.msra.mxu0 %v9069_v13  ;;  %v9170_v13 = vld [vmem:[#allocation8 + $0xcec] ss:$16 sps:$4 sm:$0xff]  }
 0x4b4   :  { %6936 = vmatprep.subr.bf16.mxu0 %v9077_v43  ;;  %6902 = vmatpush1.bf16.msra.mxu1 %v9090_v52  ;;  %v9153_v43 = vld [vmem:[#allocation8 + $0xe88] ss:$16 sps:$4 sm:$0xff]   ;;  %v9176_v52 = vld [vmem:[#allocation8 + $0xd0c] ss:$16 sps:$4 sm:$0xff]  }
 0x4b5   :  { %6903 = vmatprep.subr.bf16.mxu1 %v9098_v36  ;;  %v9182_v36 = vld [vmem:[#allocation8 + $0xd2c] ss:$16 sps:$4 sm:$0xff]  }
 0x4b7   :  { %6937 = vmatpush1.bf16.msra.mxu0 %v9075_v26  ;;  %v9159_v26 = vld [vmem:[#allocation8 + $0xea8] ss:$16 sps:$4 sm:$0xff]  }
 0x4b8   :  { %6938 = vmatprep.subr.bf16.mxu0 %v9083_v39  ;;  %6904 = vmatpush1.bf16.msra.mxu1 %v9096_v63  ;;  %v9167_v39 = vld [vmem:[#allocation8 + $0xecc] ss:$16 sps:$4 sm:$0xff]  }
 0x4b9   :  { %6905 = vmatprep.subr.bf16.mxu1 %v9104_v16 }
 0x4bb   :  { %6939 = vmatpush1.bf16.msra.mxu0 %v9081_v0 }
 0x4bc   :  { %6940 = vmatprep.subr.bf16.mxu0 %v9089_v41  ;;  %6906 = vmatpush1.bf16.msra.mxu1 %v9102_v7  ;;  %v9180_v41 = vld [vmem:[#allocation8 + $0xd28] ss:$16 sps:$4 sm:$0xff]  }
 0x4bd   :  { %6907 = vmatprep.subr.bf16.mxu1 %v9110_v54  ;;  %v9165_v54 = vld [vmem:[#allocation8 + $0xec8] ss:$16 sps:$4 sm:$0xff]  }
 0x4bf   :  { %6941 = vmatpush1.bf16.msra.mxu0 %v9087_v5 }
 0x4c0   :  { %6942 = vmatprep.subr.bf16.mxu0 %v9095_v21  ;;  %6908 = vmatpush1.bf16.msra.mxu1 %v9108_v35  ;;  %v9188_v21 = vld [vmem:[#allocation8 + $0xd4c] ss:$16 sps:$4 sm:$0xff]  }
 0x4c1   :  { %6909 = vmatprep.subr.bf16.mxu1 %v9116_v48  ;;  %v9186_v48 = vld [vmem:[#allocation8 + $0xd48] ss:$16 sps:$4 sm:$0xff]  }
 0x4c3   :  { %6943 = vmatpush1.bf16.msra.mxu0 %v9093_v37  ;;  %v9173_v37 = vld [vmem:[#allocation8 + $0xeec] ss:$16 sps:$4 sm:$0xff]  }
 0x4c4   :  { %6944 = vmatprep.subr.bf16.mxu0 %v9101_v40  ;;  %6910 = vmatpush1.bf16.msra.mxu1 %v9114_v1  ;;  %v9171_v40 = vld [vmem:[#allocation8 + $0xee8] ss:$16 sps:$4 sm:$0xff]   ;;  %v9194_v1 = vld [vmem:[#allocation8 + $0xd6c] ss:$16 sps:$4 sm:$0xff]  }
 0x4c5   :  { %6911 = vmatprep.subr.bf16.mxu1 %v9122_v38  ;;  %v9192_v38 = vld [vmem:[#allocation8 + $0xd68] ss:$16 sps:$4 sm:$0xff]  }
 0x4c7   :  { %6945 = vmatpush1.bf16.msra.mxu0 %v9099_v25  ;;  %v9179_v25 = vld [vmem:[#allocation8 + $0xf0c] ss:$16 sps:$4 sm:$0xff]  }
 0x4c8   :  { %6946 = vmatprep.subr.bf16.mxu0 %v9107_v14  ;;  %6912 = vmatpush1.bf16.msra.mxu1 %v9120_v24  ;;  %v9177_v14 = vld [vmem:[#allocation8 + $0xf08] ss:$16 sps:$4 sm:$0xff]   ;;  %v9200_v24 = vld [vmem:[#allocation8 + $0xd8c] ss:$16 sps:$4 sm:$0xff]  }
 0x4c9   :  { %6963 = vmatprep.subr.bf16.mxu1 %v9128_v60  ;;  %v9198_v60 = vld [vmem:[#allocation8 + $0xd88] ss:$16 sps:$4 sm:$0xff]  }
 0x4cb   :  { %6947 = vmatpush1.bf16.msra.mxu0 %v9105_v61  ;;  %6914 = vmatmul.mubr.bf16.vlgmr.msra.gmra.mrb[32].mxu1 %v13177_v22  ;;  %v9144_v22 = vld [vmem:[#allocation8 + $0xc68] ss:$16 sps:$4 sm:$0xff]   ;;  %v9185_v61 = vld [vmem:[#allocation8 + $0xf2c] ss:$16 sps:$4 sm:$0xff]  }
 0x4cc   :  { %6948 = vmatprep.subr.bf16.mxu0 %v9113_v34  ;;  %6964 = vmatpush1.bf16.msra.mxu1 %v9126_v49  ;;  %v9183_v34 = vld [vmem:[#allocation8 + $0xf28] ss:$16 sps:$4 sm:$0xff]   ;;  %v9206_v49 = vld [vmem:[#allocation8 + $0xdac] ss:$16 sps:$4 sm:$0xff]  }
 0x4cd   :  { %6995 = vmatprep.mubr.bf16.mxu1 %v13243_v18  ;;  %6965 = vmatprep.subr.bf16.mxu1 %v9134_v31  ;;  %v9137_v18 = vld [vmem:[#allocation8 + $0xe2c] ss:$16 sps:$4 sm:$0xff]   ;;  %v13354_v31 = vld [vmem:[#allocation11] sm:$0xf] }
 0x4cf   :  { %6949 = vmatpush1.bf16.msra.mxu0 %v9111_v2  ;;  %v9191_v2 = vld [vmem:[#allocation8 + $0xf4c] ss:$16 sps:$4 sm:$0xff]  }
 0x4d0   :  { %6950 = vmatprep.subr.bf16.mxu0 %v9119_v50  ;;  %6966 = vmatpush1.bf16.msra.mxu1 %v9132_v42  ;;  %v9204_v50 = vld [vmem:[#allocation8 + $0xda8] ss:$16 sps:$4 sm:$0xff]  }
 0x4d1   :  { %6967 = vmatprep.subr.bf16.mxu1 %v9140_v46  ;;  %v9189_v42 = vld [vmem:[#allocation8 + $0xf48] ss:$16 sps:$4 sm:$0xff]  }
 0x4d2   :  { %v14684_v46 = vld [vmem:[#allocation27_spill] sm:$0xff] }
 0x4d3   :  { %6951 = vmatpush1.bf16.msra.mxu0 %v9117_v3  ;;  %v9212_v3 = vld [vmem:[#allocation8 + $0xdcc] ss:$16 sps:$4 sm:$0xff]  }
 0x4d4   :  { %6952 = vmatprep.subr.bf16.mxu0 %v9125_v53  ;;  %6968 = vmatpush1.bf16.msra.mxu1 %v9138_v58  ;;  %v7054_v53 = vrot.slane %v13354_v31, %v14684_v46  ;;  %v9197_v58 = vld [vmem:[#allocation8 + $0xf6c] ss:$16 sps:$4 sm:$0xff]  }
 0x4d5   :  { %6969 = vmatprep.subr.bf16.mxu1 %v9146_v55  ;;  %v9195_v55 = vld [vmem:[#allocation8 + $0xf68] ss:$16 sps:$4 sm:$0xff]  }
 0x4d7   :  { %6953 = vmatpush1.bf16.msra.mxu0 %v9123_v28  ;;  %v9210_v28 = vld [vmem:[#allocation8 + $0xdc8] ss:$16 sps:$4 sm:$0xff]  }
 0x4d8   :  { %7004 = vmatprep.subr.bf16.mxu0 %v9131_v62  ;;  %6970 = vmatpush1.bf16.msra.mxu1 %v9144_v22  ;;  %v9218_v62 = vld [vmem:[#allocation8 + $0xdec] ss:$16 sps:$4 sm:$0xff]  }
 0x4d9   :  { %6971 = vmatprep.subr.bf16.mxu1 %v9152_v20  ;;  %v9201_v20 = vld [vmem:[#allocation8 + $0xf88] ss:$16 sps:$4 sm:$0xff]  }
 0x4da   :  { %6955 = vmatmul.mubr.bf16.vlgmr.msra.gmra.mrb[28].mxu0 %v13210_v9 }
 0x4db   :  { %7005 = vmatpush1.bf16.msra.mxu0 %v9129_v11  ;;  %7036 = vmatprep.mubr.bf16.mxu0 %v13280_v12  ;;  %v9203_v11 = vld [vmem:[#allocation8 + $0xf8c] ss:$16 sps:$4 sm:$0xff]  }
 0x4dc   :  { %7006 = vmatprep.subr.bf16.mxu0 %v9137_v18  ;;  %6972 = vmatpush1.bf16.msra.mxu1 %v9150_v29  ;;  %v9216_v18 = vld [vmem:[#allocation8 + $0xde8] ss:$16 sps:$4 sm:$0xff]  }
 0x4dd   :  { %6973 = vmatprep.subr.bf16.mxu1 %v9158_v8  ;;  %v9224_v29 = vld [vmem:[#allocation13 + $0x4] ss:$8 sps:$4 sm:$0xff]   ;;  %v9209_v8 = vld [vmem:[#allocation8 + $0xfac] ss:$16 sps:$4 sm:$0xff]  }
 0x4de   :  { %v6669_v47 = vpop.f32.mrb[20].mxu1 }
 0x4df   :  { %7007 = vmatpush1.bf16.msra.mxu0 %v9135_v27  ;;  %v6670_v9 = vadd.f32 %v6669_v47, %v13342_v30  ;;  %v6671_v23 = vpop.f32.mrb[21].mxu1  ;;  %v9161_v30 = vld [vmem:[#allocation8 + $0xeac] ss:$16 sps:$4 sm:$0xff]  }
 0x4e0   :  { %7008 = vmatprep.subr.bf16.mxu0 %v9143_v45  ;;  %v6672_v51 = vadd.f32 %v6671_v23, %v13344_v57  ;;  %v6673_v12 = vpop.f32.mrb[22].mxu1  ;;  %6974 = vmatpush1.bf16.msra.mxu1 %v9156_v17  ;;  %v9174_v57 = vld [vmem:[#allocation8 + $0xd08] ss:$16 sps:$4 sm:$0xff]   ;;  %v9222_v45 = vld [vmem:[#allocation13] ss:$8 sps:$4 sm:$0xff]  }
 0x4e1   :  { %v6674_v6 = vpop.f32.mrb[23].mxu1  ;;  %6975 = vmatprep.subr.bf16.mxu1 %v9164_v56  ;;  %v9207_v17 = vld [vmem:[#allocation8 + $0xfa8] ss:$16 sps:$4 sm:$0xff]   ;;  %v9225_v47 = vld [vmem:[#allocation13 + $0x10] ss:$8 sps:$4 sm:$0xff]  }
 0x4e2   :  { %v9230_v23 = vld [vmem:[#allocation13 + $0x24] ss:$8 sps:$4 sm:$0xff]   ;;  %v9228_v12 = vld [vmem:[#allocation13 + $0x20] ss:$8 sps:$4 sm:$0xff]   ;;  %v9231_v6 = vld [vmem:[#allocation13 + $0x30] ss:$8 sps:$4 sm:$0xff]  }
 0x4e3   :  { %7009 = vmatpush1.bf16.msra.mxu0 %v9141_v15  ;;  %v9227_v15 = vld [vmem:[#allocation13 + $0x14] ss:$8 sps:$4 sm:$0xff]  }
 0x4e4   :  { %7010 = vmatprep.subr.bf16.mxu0 %v9149_v4  ;;  %6976 = vmatpush1.bf16.msra.mxu1 %v9162_v59  ;;  %v9215_v4 = vld [vmem:[#allocation8 + $0xfcc] ss:$16 sps:$4 sm:$0xff]   ;;  %v9219_v59 = vld [vmem:[#allocation8 + $0xfe8] ss:$16 sps:$4 sm:$0xff]  }
 0x4e5   :  { %6977 = vmatprep.subr.bf16.mxu1 %v9170_v13  ;;  %v9234_v13 = vld [vmem:[#allocation13 + $0x40] ss:$8 sps:$4 sm:$0xff]  }
 0x4e7   :  { %7011 = vmatpush1.bf16.msra.mxu0 %v9147_v19  ;;  %v9233_v19 = vld [vmem:[#allocation13 + $0x34] ss:$8 sps:$4 sm:$0xff]  }
 0x4e8   :  { %7012 = vmatprep.subr.bf16.mxu0 %v9155_v10  ;;  %6978 = vmatpush1.bf16.msra.mxu1 %v9168_v33  ;;  %v9239_v10 = vld [vmem:[#allocation13 + $0x54] ss:$8 sps:$4 sm:$0xff]   ;;  %v9237_v33 = vld [vmem:[#allocation13 + $0x50] ss:$8 sps:$4 sm:$0xff]  }
 0x4e9   :  { %6979 = vmatprep.subr.bf16.mxu1 %v9176_v52 }
 0x4eb   :  { %7013 = vmatpush1.bf16.msra.mxu0 %v9153_v43  ;;  %v9242_v43 = vld [vmem:[#allocation13 + $0x64] ss:$8 sps:$4 sm:$0xff]  }
 0x4ec   :  { %7014 = vmatprep.subr.bf16.mxu0 %v9161_v30  ;;  %6980 = vmatpush1.bf16.msra.mxu1 %v9174_v57  ;;  %v14685_v30 = vld [vmem:[#allocation67_spill] sm:$0xff] }
 0x4ed   :  { %v6710_v63 = vpop.f32.mrb[16].mxu0  ;;  %6981 = vmatprep.subr.bf16.mxu1 %v9182_v36  ;;  %v14686_v36 = vld [vmem:[#allocation69_spill] sm:$0xff] }
 0x4ee   :  { %v13352_v0 = vadd.f32 %v6710_v63, %v6670_v9  ;;  %v6712_v16 = vpop.f32.mrb[17].mxu0  ;;  %v9213_v9 = vld [vmem:[#allocation8 + $0xfc8] ss:$16 sps:$4 sm:$0xff]  }
 0x4ef   :  { %v6713_v7 = vadd.f32 %v6712_v16, %v6672_v51  ;;  %v6714_v5 = vpop.f32.mrb[18].mxu0  ;;  %7015 = vmatpush1.bf16.msra.mxu0 %v9159_v26  ;;  %v9221_v51 = vld [vmem:[#allocation8 + $0xfec] ss:$16 sps:$4 sm:$0xff]  }
 0x4f0   :  { %v6715_v35 = vpop.f32.mrb[19].mxu0  ;;  %7016 = vmatprep.subr.bf16.mxu0 %v9167_v39  ;;  %6982 = vmatpush1.bf16.msra.mxu1 %v9180_v41  ;;  %v9240_v16 = vld [vmem:[#allocation13 + $0x60] ss:$8 sps:$4 sm:$0xff]   ;;  %v9248_v5 = vld [vmem:[#allocation13 + $0x84] ss:$8 sps:$4 sm:$0xff]  }
 0x4f1   :  { %6983 = vmatprep.subr.bf16.mxu1 %v9188_v21  ;;  %v7068_v22 = vadd.f32 %v7054_v53, %v6713_v7  ;;  %v9243_v7 = vld [vmem:[#allocation13 + $0x70] ss:$8 sps:$4 sm:$0xff]   ;;  %v9251_v21 = vld [vmem:[#allocation13 + $0x94] ss:$8 sps:$4 sm:$0xff]   ;;  %v9266_v53 = vld [vmem:[#allocation13 + $0xe4] ss:$8 sps:$4 sm:$0xff]  }
 0x4f3   :  { %7017 = vmatpush1.bf16.msra.mxu0 %v9165_v54  ;;  %v7072_v27 = vmax.f32 %v7068_v22, 0.0  ;;  %v9246_v54 = vld [vmem:[#allocation13 + $0x80] ss:$8 sps:$4 sm:$0xff]  }
 0x4f4   :  { %7018 = vmatprep.subr.bf16.mxu0 %v9173_v37  ;;  %6984 = vmatpush1.bf16.msra.mxu1 %v9186_v48 }
 0x4f5   :  { %6985 = vmatprep.subr.bf16.mxu1 %v9194_v1  ;;  %v7076_v56 = vpack.c.bf16 %v7072_v27, %v7072_v27  ;;  %v9273_v27 = vld [vmem:[#allocation13 + $0x110] ss:$8 sps:$4 sm:$0xff]  }
 0x4f7   :  { %7019 = vmatpush1.bf16.msra.mxu0 %v9171_v40  ;;  %v9249_v40 = vld [vmem:[#allocation13 + $0x90] ss:$8 sps:$4 sm:$0xff]  }
 0x4f8   :  { %7020 = vmatprep.subr.bf16.mxu0 %v9179_v25  ;;  %6986 = vmatpush1.bf16.msra.mxu1 %v9192_v38  ;;  %v9254_v38 = vld [vmem:[#allocation13 + $0xa4] ss:$8 sps:$4 sm:$0xff]  }
 0x4f9   :  { %6987 = vmatprep.subr.bf16.mxu1 %v9200_v24  ;;  %v9252_v24 = vld [vmem:[#allocation13 + $0xa0] ss:$8 sps:$4 sm:$0xff]  }
 0x4fb   :  { %7021 = vmatpush1.bf16.msra.mxu0 %v9177_v14 }
 0x4fc   :  { %7022 = vmatprep.subr.bf16.mxu0 %v9185_v61  ;;  %6988 = vmatpush1.bf16.msra.mxu1 %v9198_v60  ;;  %v9257_v61 = vld [vmem:[#allocation13 + $0xb4] ss:$8 sps:$4 sm:$0xff]   ;;  %v9255_v60 = vld [vmem:[#allocation13 + $0xb0] ss:$8 sps:$4 sm:$0xff]  }
 0x4fd   :  { %6989 = vmatprep.subr.bf16.mxu1 %v9206_v49  ;;  %v9258_v49 = vld [vmem:[#allocation13 + $0xc0] ss:$8 sps:$4 sm:$0xff]  }
 0x4ff   :  { %7023 = vmatpush1.bf16.msra.mxu0 %v9183_v34  ;;  %v9260_v34 = vld [vmem:[#allocation13 + $0xc4] ss:$8 sps:$4 sm:$0xff]  }
 0x500   :  { %7024 = vmatprep.subr.bf16.mxu0 %v9191_v2  ;;  %6990 = vmatpush1.bf16.msra.mxu1 %v9204_v50  ;;  %v9263_v2 = vld [vmem:[#allocation13 + $0xd4] ss:$8 sps:$4 sm:$0xff]   ;;  %v9261_v50 = vld [vmem:[#allocation13 + $0xd0] ss:$8 sps:$4 sm:$0xff]  }
 0x501   :  { %6991 = vmatprep.subr.bf16.mxu1 %v9212_v3 }
 0x503   :  { %7025 = vmatpush1.bf16.msra.mxu0 %v9189_v42  ;;  %v14687_v42 = vld [vmem:[#allocation26_spill] sm:$0xff] }
 0x504   :  { %7026 = vmatprep.subr.bf16.mxu0 %v9197_v58  ;;  %6992 = vmatpush1.bf16.msra.mxu1 %v9210_v28  ;;  %v7050_v3 = vrot.slane %v13354_v31, %v14687_v42  ;;  %v9264_v58 = vld [vmem:[#allocation13 + $0xe0] ss:$8 sps:$4 sm:$0xff]  }
 0x505   :  { %6993 = vmatprep.subr.bf16.mxu1 %v9218_v62  ;;  %v9267_v62 = vld [vmem:[#allocation13 + $0xf0] ss:$8 sps:$4 sm:$0xff]  }
 0x506   :  { %v7067_v28 = vadd.f32 %v7050_v3, %v13352_v0  ;;  %v9281_v0 = vld [vmem:[#allocation13 + $0x134] ss:$8 sps:$4 sm:$0xff]   ;;  %v9327_v3 = vld [vmem:[#allocation16 + $0x20] sm:$0xff]  }
 0x507   :  { %7027 = vmatpush1.bf16.msra.mxu0 %v9195_v55  ;;  %v9269_v55 = vld [vmem:[#allocation13 + $0xf4] ss:$8 sps:$4 sm:$0xff]  }
 0x508   :  { %7028 = vmatprep.subr.bf16.mxu0 %v9203_v11  ;;  %6994 = vmatpush1.bf16.msra.mxu1 %v9216_v18  ;;  %v7071_v22 = vmax.f32 %v7067_v28, 0.0  ;;  %v9272_v11 = vld [vmem:[#allocation13 + $0x104] ss:$8 sps:$4 sm:$0xff]   ;;  %v9270_v18 = vld [vmem:[#allocation13 + $0x100] ss:$8 sps:$4 sm:$0xff]  }
 0x509   :  { %7475 = vmatprep.subr.bf16.mxu1 %v9224_v29  ;;  %v9275_v29 = vld [vmem:[#allocation13 + $0x114] ss:$8 sps:$4 sm:$0xff]  }
 0x50b   :  { %7029 = vmatpush1.bf16.msra.mxu0 %v9201_v20  ;;  %6996 = vmatmul.mubr.bf16.vlgmr.msra.gmra.mrb[36].mxu1 %v13322_v32  ;;  %v9236_v32 = vld [vmem:[#allocation13 + $0x44] ss:$8 sps:$4 sm:$0xff]   ;;  %v7075_v20 = vpack.c.bf16 %v7071_v22, %v7071_v22 }
 0x50c   :  { %7030 = vmatprep.subr.bf16.mxu0 %v9209_v8  ;;  %7476 = vmatpush1.bf16.msra.mxu1 %v9222_v45  ;;  %v9278_v8 = vld [vmem:[#allocation13 + $0x124] ss:$8 sps:$4 sm:$0xff]   ;;  %v9276_v45 = vld [vmem:[#allocation13 + $0x120] ss:$8 sps:$4 sm:$0xff]  }
 0x50d   :  { %7507 = vmatprep.mubr.bf16.mxu1 %v7076_v56  ;;  %7477 = vmatprep.subr.bf16.mxu1 %v9227_v15  ;;  %v9284_v15 = vld [vmem:[#allocation13 + $0x144] ss:$8 sps:$4 sm:$0xff]   ;;  %v9282_v56 = vld [vmem:[#allocation13 + $0x140] ss:$8 sps:$4 sm:$0xff]  }
 0x50f   :  { %7031 = vmatpush1.bf16.msra.mxu0 %v9207_v17  ;;  %v9279_v17 = vld [vmem:[#allocation13 + $0x130] ss:$8 sps:$4 sm:$0xff]  }
 0x510   :  { %7032 = vmatprep.subr.bf16.mxu0 %v9215_v4  ;;  %7478 = vmatpush1.bf16.msra.mxu1 %v9225_v47  ;;  %v9287_v4 = vld [vmem:[#allocation13 + $0x154] ss:$8 sps:$4 sm:$0xff]   ;;  %v9285_v47 = vld [vmem:[#allocation13 + $0x150] ss:$8 sps:$4 sm:$0xff]  }
 0x511   :  { %7479 = vmatprep.subr.bf16.mxu1 %v9230_v23 }
 0x513   :  { %7033 = vmatpush1.bf16.msra.mxu0 %v9213_v9  ;;  %v9290_v9 = vld [vmem:[#allocation13 + $0x164] ss:$8 sps:$4 sm:$0xff]  }
 0x514   :  { %7034 = vmatprep.subr.bf16.mxu0 %v9221_v51  ;;  %7480 = vmatpush1.bf16.msra.mxu1 %v9228_v12 }
 0x515   :  { %7481 = vmatprep.subr.bf16.mxu1 %v9233_v19 }
 0x517   :  { %7035 = vmatpush1.bf16.msra.mxu0 %v9219_v59 }
 0x518   :  { %7482 = vmatpush1.bf16.msra.mxu1 %v9231_v6  ;;  %v9288_v6 = vld [vmem:[#allocation13 + $0x160] ss:$8 sps:$4 sm:$0xff]  }
 0x519   :  { %7483 = vmatprep.subr.bf16.mxu1 %v9236_v32 }
 0x51a   :  { %7037 = vmatmul.mubr.bf16.vlgmr.msra.gmra.mrb[32].mxu0 %v13328_v44  ;;  %v9245_v44 = vld [vmem:[#allocation13 + $0x74] ss:$8 sps:$4 sm:$0xff]  }
 0x51c   :  { %7484 = vmatpush1.bf16.msra.mxu1 %v9234_v13  ;;  %v9293_v13 = vld [vmem:[#allocation13 + $0x174] ss:$8 sps:$4 sm:$0xff]  }
 0x51d   :  { %7485 = vmatprep.subr.bf16.mxu1 %v9239_v10  ;;  %v9291_v10 = vld [vmem:[#allocation13 + $0x170] ss:$8 sps:$4 sm:$0xff]  }
 0x51e   :  { %v6751_v52 = vpop.f32.mrb[24].mxu1 }
 0x51f   :  { %v6752_v57 = vadd.f32 %v6751_v52, %v14685_v30  ;;  %v6753_v26 = vpop.f32.mrb[25].mxu1  ;;  %v9299_v52 = vld [vmem:[#allocation13 + $0x194] ss:$8 sps:$4 sm:$0xff]  }
 0x520   :  { %v6754_v39 = vadd.f32 %v6753_v26, %v14686_v36  ;;  %v6755_v63 = vpop.f32.mrb[26].mxu1  ;;  %7486 = vmatpush1.bf16.msra.mxu1 %v9237_v33  ;;  %v9296_v33 = vld [vmem:[#allocation13 + $0x184] ss:$8 sps:$4 sm:$0xff]   ;;  %v9297_v36 = vld [vmem:[#allocation13 + $0x190] ss:$8 sps:$4 sm:$0xff]  }
 0x521   :  { %v6756_v41 = vpop.f32.mrb[27].mxu1  ;;  %7487 = vmatprep.subr.bf16.mxu1 %v9242_v43  ;;  %v9294_v43 = vld [vmem:[#allocation13 + $0x180] ss:$8 sps:$4 sm:$0xff]  }
 0x524   :  { %7488 = vmatpush1.bf16.msra.mxu1 %v9240_v16  ;;  %v9302_v16 = vld [vmem:[#allocation13 + $0x1a4] ss:$8 sps:$4 sm:$0xff]  }
 0x525   :  { %7489 = vmatprep.subr.bf16.mxu1 %v9245_v44  ;;  %v9300_v44 = vld [vmem:[#allocation13 + $0x1a0] ss:$8 sps:$4 sm:$0xff]  }
 0x528   :  { %7490 = vmatpush1.bf16.msra.mxu1 %v9243_v7  ;;  %v9305_v7 = vld [vmem:[#allocation13 + $0x1b4] ss:$8 sps:$4 sm:$0xff]  }
 0x529   :  { %7491 = vmatprep.subr.bf16.mxu1 %v9248_v5  ;;  %v9303_v5 = vld [vmem:[#allocation13 + $0x1b0] ss:$8 sps:$4 sm:$0xff]  }
 0x52c   :  { %7492 = vmatpush1.bf16.msra.mxu1 %v9246_v54  ;;  %v9308_v54 = vld [vmem:[#allocation13 + $0x1c4] ss:$8 sps:$4 sm:$0xff]  }
 0x52d   :  { %v6792_v35 = vpop.f32.mrb[20].mxu0  ;;  %7493 = vmatprep.subr.bf16.mxu1 %v9251_v21  ;;  %v9318_v21 = vld [vmem:[#allocation16 + $0x40] sm:$0xff]  }
 0x52e   :  { %v13362_v37 = vadd.f32 %v6792_v35, %v6752_v57  ;;  %v6794_v48 = vpop.f32.mrb[21].mxu0  ;;  %v9319_v35 = vld [vmem:[#allocation16] sm:$0xff]   ;;  %8388 = vmatprep.subr.bf16.mxu0 %v9318_v21 }
 0x52f   :  { %v6795_v1 = vadd.f32 %v6794_v48, %v6754_v39  ;;  %v6796_v25 = vpop.f32.mrb[22].mxu0  ;;  %v9306_v48 = vld [vmem:[#allocation13 + $0x1c0] ss:$8 sps:$4 sm:$0xff]   ;;  %8389 = vmatpush3.bf16.msra.mxu0 %v9319_v35 }
 0x530   :  { %v6797_v14 = vpop.f32.mrb[23].mxu0  ;;  %7494 = vmatpush1.bf16.msra.mxu1 %v9249_v40  ;;  %v9311_v40 = vld [vmem:[#allocation13 + $0x1d4] ss:$8 sps:$4 sm:$0xff]  }
 0x531   :  { %7495 = vmatprep.subr.bf16.mxu1 %v9254_v38  ;;  %v9322_v25 = vld [vmem:[#allocation16 + $0x50] sm:$0xff]   ;;  %v9314_v14 = vld [vmem:[#allocation13 + $0x1e4] ss:$8 sps:$4 sm:$0xff]  }
 0x532   :  { %v9309_v38 = vld [vmem:[#allocation13 + $0x1d0] ss:$8 sps:$4 sm:$0xff]  }
 0x534   :  { %7496 = vmatpush1.bf16.msra.mxu1 %v9252_v24  ;;  %v9323_v24 = vld [vmem:[#allocation16 + $0x10] sm:$0xff]  }
 0x535   :  { %7497 = vmatprep.subr.bf16.mxu1 %v9257_v61  ;;  %v9324_v61 = vld [vmem:[#allocation16 + $0x58] sm:$0xff]  }
 0x538   :  { %7498 = vmatpush1.bf16.msra.mxu1 %v9255_v60  ;;  %v9312_v60 = vld [vmem:[#allocation13 + $0x1e0] ss:$8 sps:$4 sm:$0xff]  }
 0x539   :  { %7499 = vmatprep.subr.bf16.mxu1 %v9260_v34  ;;  %v9317_v34 = vld [vmem:[#allocation13 + $0x1f4] ss:$8 sps:$4 sm:$0xff]  }
 0x53c   :  { %7500 = vmatpush1.bf16.msra.mxu1 %v9258_v49  ;;  %v9325_v49 = vld [vmem:[#allocation16 + $0x18] sm:$0xff]  }
 0x53d   :  { %7501 = vmatprep.subr.bf16.mxu1 %v9263_v2  ;;  %v9326_v2 = vld [vmem:[#allocation16 + $0x60] sm:$0xff]  }
 0x540   :  { %7502 = vmatpush1.bf16.msra.mxu1 %v9261_v50  ;;  %v9315_v50 = vld [vmem:[#allocation13 + $0x1f0] ss:$8 sps:$4 sm:$0xff]  }
 0x541   :  { %7503 = vmatprep.subr.bf16.mxu1 %v9266_v53  ;;  %v9328_v53 = vld [vmem:[#allocation16 + $0x68] sm:$0xff]  }
 0x544   :  { %7504 = vmatpush1.bf16.msra.mxu1 %v9264_v58  ;;  %v9329_v58 = vld [vmem:[#allocation16 + $0x28] sm:$0xff]  }
 0x545   :  { %7505 = vmatprep.subr.bf16.mxu1 %v9269_v55 }
 0x548   :  { %7506 = vmatpush1.bf16.msra.mxu1 %v9267_v62 }
 0x549   :  { %7516 = vmatprep.subr.bf16.mxu1 %v9272_v11 }
 0x54b   :  { %7508 = vmatmul.mubr.bf16.vlgmr.msra.gmra.mrb[40].mxu1 %v7075_v20 }
 0x54c   :  { %7517 = vmatpush1.bf16.msra.mxu1 %v9270_v18 }
 0x54d   :  { %7518 = vmatprep.subr.bf16.mxu1 %v9275_v29 }
 0x550   :  { %7519 = vmatpush1.bf16.msra.mxu1 %v9273_v27 }
 0x551   :  { %7520 = vmatprep.subr.bf16.mxu1 %v9278_v8 }
 0x554   :  { %7521 = vmatpush1.bf16.msra.mxu1 %v9276_v45 }
 0x555   :  { %7522 = vmatprep.subr.bf16.mxu1 %v9281_v0 }
 0x558   :  { %7523 = vmatpush1.bf16.msra.mxu1 %v9279_v17 }
 0x559   :  { %7524 = vmatprep.subr.bf16.mxu1 %v9284_v15 }
 0x55c   :  { %7525 = vmatpush1.bf16.msra.mxu1 %v9282_v56 }
 0x55d   :  { %7526 = vmatprep.subr.bf16.mxu1 %v9287_v4 }
 0x55e   :  { %v6833_v23 = vpop.f32.mrb[28].mxu1 }
 0x55f   :  { %v6834_v51 = vadd.f32 %v6833_v23, %v13362_v37  ;;  %v6835_v12 = vpop.f32.mrb[29].mxu1  ;;  %v9320_v37 = vld [vmem:[#allocation16 + $0x48] sm:$0xff]  }
 0x560   :  { %v6836_v59 = vadd.f32 %v6835_v12, %v6795_v1  ;;  %v6837_v19 = vpop.f32.mrb[30].mxu1  ;;  %7527 = vmatpush1.bf16.msra.mxu1 %v9285_v47  ;;  %v9321_v1 = vld [vmem:[#allocation16 + $0x8] sm:$0xff]   ;;  %8390 = vmatprep.subr.bf16.mxu0 %v9320_v37 }
 0x561   :  { %v6838_v32 = vpop.f32.mrb[31].mxu1  ;;  %7528 = vmatprep.subr.bf16.mxu1 %v9290_v9  ;;  %8391 = vmatpush3.bf16.msra.mxu0 %v9321_v1  ;;  %v14688_v23 = vld [vmem:[#allocation25_spill] sm:$0xff] }
 0x562   :  { %8392 = vmatprep.subr.bf16.mxu0 %v9322_v25  ;;  %v14690_v19 = vsub.s32 3, %v14688_v23 }
 0x564   :  { %7529 = vmatpush1.bf16.msra.mxu1 %v9288_v6  ;;  %v7062_v6 = vrot.slane %v13354_v31, %v14690_v19 }
 0x565   :  { %7530 = vmatprep.subr.bf16.mxu1 %v9293_v13  ;;  %8393 = vmatpush3.bf16.msra.mxu0 %v9323_v24 }
 0x566   :  { %8394 = vmatprep.subr.bf16.mxu0 %v9324_v61  ;;  %v8369_v61 = vld [vmem:[#allocation17] ss:$0 sm:$0xff] }
 0x568   :  { %7531 = vmatpush1.bf16.msra.mxu1 %v9291_v10 }
 0x569   :  { %7532 = vmatprep.subr.bf16.mxu1 %v9296_v33  ;;  %8395 = vmatpush3.bf16.msra.mxu0 %v9325_v49 }
 0x56a   :  { %8396 = vmatprep.subr.bf16.mxu0 %v9326_v2 }
 0x56c   :  { %7533 = vmatpush1.bf16.msra.mxu1 %v9294_v43 }
 0x56d   :  { %v6874_v30 = vpop.f32.mrb[24].mxu0  ;;  %7534 = vmatprep.subr.bf16.mxu1 %v9299_v52  ;;  %8397 = vmatpush3.bf16.msra.mxu0 %v9327_v3 }
 0x56e   :  { %v6875_v57 = vadd.f32 %v6874_v30, %v6834_v51  ;;  %v6876_v26 = vpop.f32.mrb[25].mxu0  ;;  %8398 = vmatprep.subr.bf16.mxu0 %v9328_v53  ;;  %v14689_v51 = vsub.s32 2, %v14688_v23 }
 0x56f   :  { %v6877_v39 = vadd.f32 %v6876_v26, %v6836_v59  ;;  %v6878_v63 = vpop.f32.mrb[26].mxu0 }
 0x570   :  { %v6879_v41 = vpop.f32.mrb[27].mxu0  ;;  %7535 = vmatpush1.bf16.msra.mxu1 %v9297_v36  ;;  %v7058_v12 = vrot.slane %v13354_v31, %v14689_v51  ;;  %v9330_v63 = vld [vmem:[#allocation16 + $0x70] sm:$0xff]   ;;  %v7143_v31 = vld [vmem:[#allocation14] sm:$0x3] }
 0x571   :  { %7536 = vmatprep.subr.bf16.mxu1 %v9302_v16  ;;  %8399 = vmatpush3.bf16.msra.mxu0 %v9329_v58  ;;  %v9331_v16 = vld [vmem:[#allocation16 + $0x30] sm:$0xff]   ;;  %v9332_v41 = vld [vmem:[#allocation16 + $0x78] sm:$0xff]  }
 0x572   :  { %8400 = vmatprep.subr.bf16.mxu0 %v9330_v63 }
 0x574   :  { %7537 = vmatpush1.bf16.msra.mxu1 %v9300_v44  ;;  %v9333_v44 = vld [vmem:[#allocation16 + $0x38] sm:$0xff]  }
 0x575   :  { %7538 = vmatprep.subr.bf16.mxu1 %v9305_v7  ;;  %8401 = vmatpush3.bf16.msra.mxu0 %v9331_v16  ;;  %v7148_v7 = vrot.slane %v7143_v31, %v14687_v42 }
 0x576   :  { %8402 = vmatprep.subr.bf16.mxu0 %v9332_v41 }
 0x578   :  { %7539 = vmatpush1.bf16.msra.mxu1 %v9303_v5  ;;  %v7152_v5 = vrot.slane %v7143_v31, %v14684_v46 }
 0x579   :  { %7540 = vmatprep.subr.bf16.mxu1 %v9308_v54  ;;  %8403 = vmatpush3.bf16.msra.mxu0 %v9333_v44 }
 0x57c   :  { %7541 = vmatpush1.bf16.msra.mxu1 %v9306_v48 }
 0x57d   :  { %7542 = vmatprep.subr.bf16.mxu1 %v9311_v40 }
 0x580   :  { %7543 = vmatpush1.bf16.msra.mxu1 %v9309_v38 }
 0x581   :  { %7544 = vmatprep.subr.bf16.mxu1 %v9314_v14 }
 0x584   :  { %7545 = vmatpush1.bf16.msra.mxu1 %v9312_v60 }
 0x585   :  { %7546 = vmatprep.subr.bf16.mxu1 %v9317_v34 }
 0x588   :  { %7547 = vmatpush1.bf16.msra.mxu1 %v9315_v50 }
 0x59e   :  { %v6915_v28 = vpop.f32.mrb[32].mxu1 }
 0x59f   :  { %v6916_v55 = vadd.f32 %v6915_v28, %v6875_v57  ;;  %v6917_v62 = vpop.f32.mrb[33].mxu1 }
 0x5a0   :  { %v6918_v22 = vadd.f32 %v6917_v62, %v6877_v39  ;;  %v6919_v11 = vpop.f32.mrb[34].mxu1 }
 0x5a1   :  { %v6920_v18 = vpop.f32.mrb[35].mxu1 }
 0x5ad   :  { %v6956_v20 = vpop.f32.mrb[28].mxu0 }
 0x5ae   :  { %v6957_v29 = vadd.f32 %v6956_v20, %v6916_v55  ;;  %v6958_v27 = vpop.f32.mrb[29].mxu0 }
 0x5af   :  { %v6959_v8 = vadd.f32 %v6958_v27, %v6918_v22  ;;  %v6960_v45 = vpop.f32.mrb[30].mxu0 }
 0x5b0   :  { %v6961_v0 = vpop.f32.mrb[31].mxu0 }
 0x5de   :  { %v6997_v17 = vpop.f32.mrb[36].mxu1 }
 0x5df   :  { %v6998_v15 = vadd.f32 %v6997_v17, %v6957_v29  ;;  %v6999_v56 = vpop.f32.mrb[37].mxu1 }
 0x5e0   :  { %v7000_v4 = vadd.f32 %v6999_v56, %v6959_v8  ;;  %v7001_v47 = vpop.f32.mrb[38].mxu1 }
 0x5e1   :  { %v7002_v9 = vpop.f32.mrb[39].mxu1 }
 0x5ed   :  { %v7038_v59 = vpop.f32.mrb[32].mxu0 }
 0x5ee   :  { %v7039_v32 = vadd.f32 %v7038_v59, %v6998_v15  ;;  %v7040_v13 = vpop.f32.mrb[33].mxu0 }
 0x5ef   :  { %v7041_v10 = vadd.f32 %v7040_v13, %v7000_v4  ;;  %v7042_v33 = vpop.f32.mrb[34].mxu0 }
 0x5f0   :  { %v7069_v43 = vadd.f32 %v7058_v12, %v7039_v32  ;;  %v7043_v52 = vpop.f32.mrb[35].mxu0 }
 0x5f1   :  { %v7070_v30 = vadd.f32 %v7062_v6, %v7041_v10 }
 0x5f2   :  { %v7073_v57 = vmax.f32 %v7069_v43, 0.0 }
 0x5f3   :  { %v7074_v26 = vmax.f32 %v7070_v30, 0.0 }
 0x5f4   :  { %v7077_v39 = vpack.c.bf16 %v7073_v57, %v7073_v57 }
 0x5f5   :  { %v7078_v36 = vpack.c.bf16 %v7074_v26, %v7074_v26 }
 0x5f7   :  { %7548 = vmatprep.mubr.bf16.mxu1 %v7078_v36 }
 0x5f8   :  { %7549 = vmatmul.mubr.bf16.vlgmr.msra.gmra.mrb[40].mxu1 %v7077_v39 }
 0x6cb   :  { %v7550_v54 = vpop.f32.mrb[40].mxu1 }
 0x6cc   :  { %v8415_v21 = vadd.f32 %v7550_v54, %v7148_v7  ;;  %v7552_v35 = vpop.f32.mrb[41].mxu1 }
 0x6cd   :  { %v8416_v37 = vadd.f32 %v7552_v35, %v7152_v5  ;;  %v7554_v48 = vpop.f32.mrb[42].mxu1 }
 0x6ce   :  { %v7557_v40 = vmax.f32 %v8415_v21, 0.0  ;;  %v7555_v1 = vpop.f32.mrb[43].mxu1 }
 0x6cf   :  { %v7558_v25 = vmax.f32 %v8416_v37, 0.0 }
 0x6d0   :  { %v7559_v14 = vpack.c.bf16 %v7557_v40, %v7557_v40 }
 0x6d1   :  { %v7560_v38 = vpack.c.bf16 %v7558_v25, %v7558_v25 }
 0x6d3   :  { %7728 = vmatprep.mubr.bf16.mxu0 %v7560_v38 }
 0x6d4   :  { %7729 = vmatmul.mubr.bf16.vlgmr.msra.gmra.mrb[36].mxu0 %v7559_v14 }
 0x7a7   :  { %v8404_v24 = vpop.f32.mrb[36].mxu0 }
 0x7a8   :  { %v8405_v60 = vpop.f32.mrb[37].mxu0 }
 0x7a9   :  { %v8406_v34 = vadd.f32 %v8405_v60, %v8404_v24  ;;  %v8407_v49 = vpop.f32.mrb[38].mxu0 }
 0x7aa   :  { %v8408_v42 = vpop.f32.mrb[39].mxu0 }
 0x7ab   :  { %v7731_v2 = vadd.f32 %v8406_v34, %v8369_v61 }
 0x7ad   :  { %7736 = vst [vmem:[%s13393_s14] sm:$0xff] %v7731_v2 }
 0x7ae   :  { %7741 = vsyncpa [#allocation4], 1 }
 0x7af   :  { %7742 = vsyncpa [#allocation6], 1 }
 0x7b0   :  { %7743 = vsyncpa [#allocation9], 1 }
 0x7b1   :  { %7744 = vsyncpa [#allocation12], 1 }
 0x7b2   :  { %7745 = vsyncpa [#allocation15], 1 }
 0x7b3   :  { %7746 = vsyncpa [#allocation18], 1 }

</bundles_post_ra>
